<compile_context>
chip_gen: v7x
topology: tpu7x:2x2x1
jax: 0.10.0
libtpu: 0.0.40
codegen_flags: <defaults>
</compile_context>

<pallas_src>
import functools

import jax
import jax.numpy as jnp
import numpy as np
from jax.experimental import pallas as pl
from jax.experimental.pallas import tpu as pltpu

TILE_H = 4        # image rows per M-tile  -> M = TILE_H * W = 128 for W = 32
CMAX = 128        # all trunk channel counts are zero-padded to this
KFUSE = 3 * CMAX  # the 3 kx taps of one kernel row are fused along K


# ------------------------------ fused kernel ------------------------------ #

def _zero_halo(buf, H, W, pad):
    """Zero only the halo strips of a (H+2p, W+2p, CMAX) activation buffer."""
    Wp = W + 2 * pad
    zrow = jnp.zeros((pad, Wp, CMAX), buf.dtype)
    buf[0:pad, :, :] = zrow                      # top rows
    buf[pad + H:pad + H + pad, :, :] = zrow      # bottom rows
    zcol = jnp.zeros((H, pad, CMAX), buf.dtype)
    buf[pad:pad + H, 0:pad, :] = zcol            # left cols
    buf[pad:pad + H, pad + W:pad + W + pad, :] = zcol  # right cols


def _context_net_kernel(x_ref, wt_ref, bt_ref, wh_ref, bh_ref, o_ref,
                        buf_a, buf_b, *, H, W, pad, dilations, tile_h):
    # x_ref : (1, H, W, 128) f32      input, channels zero-padded to 128
    # wt_ref: (6, 3, 384, 128) bf16   trunk weights, K = [kx=0 | kx=1 | kx=2]
    # bt_ref: (6, 128) f32            trunk biases
    # wh_ref: (3, 384, 4) bf16        fused head weights (sf lanes 0..2, d1 lane 3)
    # bh_ref: (1, 4) f32              fused head bias
    # o_ref : (1, H, W, 4) f32        fused head output
    # buf_a/buf_b: (H+2p, W+2p, 128) bf16 VMEM ping-pong activation buffers
    C = CMAX
    M = tile_h * W
    n_tiles = H // tile_h
    act_dt = buf_a.dtype

    # Zero only the halo strips each grid step: the (H, W) interiors are fully
    # overwritten (buf_a by the input below, buf_b by layer 0) before any read.
    # NOTE: do NOT guard this with pl.when(program_id == 0): with "parallel"
    # grid semantics each TensorCore has its own scratch and only one of them
    # would ever see step 0.
    _zero_halo(buf_a, H, W, pad)
    _zero_halo(buf_b, H, W, pad)

    # Place the input (already 128-lane padded) in the centre of buf_a.
    buf_a[pad:pad + H, pad:pad + W, :] = x_ref[0].astype(act_dt)

    def gather_row(src, ys, d):
        """K-fused operand for one kernel row: the 3 kx taps side by side."""
        parts = []
        for kx in range(3):
            xs = pad + (kx - 1) * d                     # static (sublane dim)
            blk = src[pl.ds(ys, tile_h), pl.ds(xs, W), :]   # (tile_h, W, C) bf16
            parts.append(blk.reshape(M, C))
        return jnp.concatenate(parts, axis=-1)          # (M, 3*C) bf16

    def conv_layer(src, dst, li, d):
        """3x3 dilated conv (dilation d) + bias + LeakyReLU(0.1), src -> dst."""
        def tile_body(t, carry):
            r0 = pl.multiple_of(t * tile_h, tile_h)
            # Accumulator initialised from the broadcast bias (no extra add).
            acc = jnp.broadcast_to(bt_ref[li], (M, C))
            for ky in range(3):
                ys = pad + r0 + (ky - 1) * d            # dynamic (outer dim)
                blk = gather_row(src, ys, d)
                acc = acc + jnp.dot(blk, wt_ref[li, ky],
                                    preferred_element_type=jnp.float32)
            acc = jnp.where(acc > 0, acc, 0.1 * acc)    # LeakyReLU(0.1)
            dst[pl.ds(pad + r0, tile_h), pl.ds(pad, W), :] = (
                acc.astype(act_dt).reshape(tile_h, W, C))
            return carry
        jax.lax.fori_loop(0, n_tiles, tile_body, 0)

    def head_layer(src):
        """Fused conv_sf (lanes 0..2, identity) + conv_d1 (lane 3, sigmoid*0.3)."""
        def tile_body(t, carry):
            r0 = pl.multiple_of(t * tile_h, tile_h)
            acc = jnp.broadcast_to(bh_ref[0], (M, 4))
            for ky in range(3):
                ys = pad + r0 + (ky - 1)
                blk = gather_row(src, ys, 1)
                acc = acc + jnp.dot(blk, wh_ref[ky],
                                    preferred_element_type=jnp.float32)
            lane = jax.lax.broadcasted_iota(jnp.int32, acc.shape, 1)
            res = jnp.where(lane == 3, jax.nn.sigmoid(acc) * 0.3, acc)
            # TODO(synk): last-dim-4 -> masked vst; emit a lane-dense
            # (N, H, W*4) out_shape for big H*W.
            o_ref[0, pl.ds(r0, tile_h), :, :] = res.reshape(tile_h, W, 4)
            return carry
        jax.lax.fori_loop(0, n_tiles, tile_body, 0)

    src, dst = buf_a, buf_b
    for li, d in enumerate(dilations):
        conv_layer(src, dst, li, d)
        src, dst = dst, src
    head_layer(src)          # after 6 swaps src == buf_a again


# ------------------------------- wrapper ----------------------------------- #

def context_network_forward(packed, x):
    """x: (N, H, W, ch_in) f32 -> (sf: (N,H,W,3), disp1: (N,H,W,1)) f32."""
    w_trunk, b_trunk, w_head, b_head, dilations = packed
    N, H, W, cin = x.shape
    assert cin <= CMAX and H % TILE_H == 0 and W % 16 == 0
    pad = max(max(dilations), 1)
    pad = ((pad + 15) // 16) * 16     # keep interior windows sublane-tile aligned (bf16)

    # One-time tiny channel pad of the input to 128 lanes.
    # TODO(synk): keep x at cin lanes in HBM and zero-extend inside the kernel.
    xp = jnp.pad(x, ((0, 0), (0, 0), (0, 0), (0, CMAX - cin)))

    kern = functools.partial(_context_net_kernel, H=H, W=W, pad=pad,
                             dilations=tuple(dilations), tile_h=TILE_H)

    out = pl.pallas_call(
        kern,
        out_shape=jax.ShapeDtypeStruct((N, H, W, 4), jnp.float32),
        grid_spec=pltpu.PrefetchScalarGridSpec(
            num_scalar_prefetch=0,
            grid=(N,),
            in_specs=[
                pl.BlockSpec((1, H, W, CMAX), lambda n: (n, 0, 0, 0)),
                pl.BlockSpec(w_trunk.shape, lambda n: (0, 0, 0, 0)),
                pl.BlockSpec(b_trunk.shape, lambda n: (0, 0)),
                pl.BlockSpec(w_head.shape, lambda n: (0, 0, 0)),
                pl.BlockSpec(b_head.shape, lambda n: (0, 0)),
            ],
            out_specs=pl.BlockSpec((1, H, W, 4), lambda n: (n, 0, 0, 0)),
            scratch_shapes=[
                pltpu.VMEM((H + 2 * pad, W + 2 * pad, CMAX), jnp.bfloat16),
                pltpu.VMEM((H + 2 * pad, W + 2 * pad, CMAX), jnp.bfloat16),
            ],
        ),
        compiler_params=pltpu.CompilerParams(
            dimension_semantics=("parallel",),
            vmem_limit_bytes=32 * 1024 * 1024),
    )(xp, w_trunk, b_trunk, w_head, b_head)

    sf = out[..., :3]
    disp1 = out[..., 3:4]
    return sf, disp1


# ------------------------- parameter construction ------------------------- #

def _init_conv_params(key, cin, cout):
    # Deterministic init mimicking PyTorch Conv2d default (+-1/sqrt(fan_in)).
    kw, kb = jax.random.split(key)
    fan_in = cin * 9
    bound = 1.0 / np.sqrt(fan_in)
    w = jax.random.uniform(kw, (9, cin, cout), jnp.float32, -bound, bound)
    b = jax.random.uniform(kb, (cout,), jnp.float32, -bound, bound)
    return w, b


def context_network_init(key, ch_in):
    # (cin, cout, dilation) of the 6-layer trunk, exactly as in the PyTorch module.
    trunk = [(ch_in, 128, 1), (128, 128, 2), (128, 128, 4),
             (128, 96, 8), (96, 64, 16), (64, 32, 1)]
    keys = jax.random.split(key, len(trunk) + 2)
    params = {"convs": [], "sf": None, "d1": None, "dilations": []}
    for k, (ci, co, dil) in zip(keys[:len(trunk)], trunk):
        params["convs"].append(_init_conv_params(k, ci, co))
        params["dilations"].append(dil)
    params["sf"] = _init_conv_params(keys[-2], 32, 3)   # conv_sf: 32 -> 3, no ReLU
    params["d1"] = _init_conv_params(keys[-1], 32, 1)   # conv_d1: 32 -> 1, sigmoid
    # TODO(synk): args.version == 'predict' adds conv_sf_pred / conv_d1_pred,
    # but they are unused in forward(), so they are not materialized here.
    return params


def pack_params(raw):
    """Pad/stack raw params into the K-fused layout the kernel expects."""
    wt, bt = [], []
    for (w, b) in raw["convs"]:
        cin, cout = w.shape[1], w.shape[2]
        wp = jnp.zeros((3, KFUSE, CMAX), jnp.float32)
        for ky in range(3):
            for kx in range(3):
                wp = wp.at[ky, kx * CMAX:kx * CMAX + cin, :cout].set(w[3 * ky + kx])
        bp = jnp.zeros((CMAX,), jnp.float32).at[:cout].set(b)
        wt.append(wp)
        bt.append(bp)
    w_trunk = jnp.stack(wt).astype(jnp.bfloat16)          # (6, 3, 384, 128)
    b_trunk = jnp.stack(bt)                               # (6, 128) f32

    w_sf, b_sf = raw["sf"]
    w_d1, b_d1 = raw["d1"]
    wh = jnp.concatenate([w_sf, w_d1], axis=-1)           # (9, 32, 4)
    whp = jnp.zeros((3, KFUSE, 4), jnp.float32)
    for ky in range(3):
        for kx in range(3):
            whp = whp.at[ky, kx * CMAX:kx * CMAX + wh.shape[1], :].set(wh[3 * ky + kx])
    w_head = whp.astype(jnp.bfloat16)                     # (3, 384, 4)
    b_head = jnp.concatenate([b_sf, b_d1]).reshape(1, 4).astype(jnp.float32)
    return w_trunk, b_trunk, w_head, b_head, tuple(raw["dilations"])


# ------------------------------ pure-JAX ref ------------------------------ #

def _reference_forward(params, x):
    def conv_ref(h, w, b, dil, act):
        w_hwio = w.reshape(3, 3, w.shape[1], w.shape[2])
        y = jax.lax.conv_general_dilated(
            h, w_hwio, window_strides=(1, 1),
            padding=((dil, dil), (dil, dil)),
            rhs_dilation=(dil, dil),
            dimension_numbers=("NHWC", "HWIO", "NHWC"),
            precision=jax.lax.Precision.HIGHEST) + b
        if act == "leaky":
            y = jnp.where(y > 0, y, 0.1 * y)
        elif act == "sigmoid":
            y = jax.nn.sigmoid(y)
        return y

    h = x
    for (w, b), dil in zip(params["convs"], params["dilations"]):
        h = conv_ref(h, w, b, dil, "leaky")
    sf = conv_ref(h, *params["sf"], 1, "none")
    disp1 = conv_ref(h, *params["d1"], 1, "sigmoid") * 0.3
    return sf, disp1


# ---------------------------------- main ----------------------------------- #

if __name__ == "__main__":
    key = jax.random.PRNGKey(0)
    kx_, kp = jax.random.split(key)

    N, H, W, ch_in = 2, 32, 32, 8
    x = jax.random.normal(kx_, (N, H, W, ch_in), jnp.float32)

    raw_params = context_network_init(kp, ch_in)
    packed = pack_params(raw_params)

    sf, disp1 = context_network_forward(packed, x)
    sf = jax.block_until_ready(sf)
    disp1 = jax.block_until_ready(disp1)

    assert sf.shape == (N, H, W, 3) and sf.dtype == jnp.float32
    assert disp1.shape == (N, H, W, 1) and disp1.dtype == jnp.float32

    sf_ref, disp1_ref = _reference_forward(raw_params, x)
    # bf16 MXU operands / bf16 activation storage vs f32 HIGHEST-precision
    # reference -> small tolerance (numerics identical to the previous version:
    # activations were already bf16-rounded at every dot).
    np.testing.assert_allclose(np.asarray(sf), np.asarray(sf_ref),
                               rtol=2e-2, atol=2e-2)
    np.testing.assert_allclose(np.asarray(disp1), np.asarray(disp1_ref),
                               rtol=2e-2, atol=2e-2)

    print("KERNEL_OK")
</pallas_src>

<mosaic_0001>
module attributes {stable_mosaic.version = 11 : i64} {
  func.func @_context_net_kernel(%arg0: i32, %arg1: memref<1x32x32x128xf32, #tpu.memory_space<vmem>>, %arg2: memref<6x3x384x128xbf16, #tpu.memory_space<vmem>>, %arg3: memref<6x128xf32, #tpu.memory_space<vmem>>, %arg4: memref<3x384x4xbf16, #tpu.memory_space<vmem>>, %arg5: memref<1x4xf32, #tpu.memory_space<vmem>>, %arg6: memref<1x32x32x4xf32, #tpu.memory_space<vmem>>, %arg7: memref<64x64x128xbf16, #tpu.memory_space<vmem>>, %arg8: memref<64x64x128xbf16, #tpu.memory_space<vmem>>) attributes {dimension_semantics = [#tpu.dimension_semantics<parallel>], iteration_bounds = array<i64: 2>, scalar_prefetch = 0 : i64, scratch_operands = 2 : i64, tpu.core_type = #tpu.core_type<tc>, window_params = [{transform_indices = @transform_0, window_bounds = array<i64: 1, 32, 32, 128>}, {pipeline_mode = #tpu.pipeline_mode<synchronous>, transform_indices = @transform_1, window_bounds = array<i64: 6, 3, 384, 128>}, {pipeline_mode = #tpu.pipeline_mode<synchronous>, transform_indices = @transform_2, window_bounds = array<i64: 6, 128>}, {pipeline_mode = #tpu.pipeline_mode<synchronous>, transform_indices = @transform_3, window_bounds = array<i64: 3, 384, 4>}, {pipeline_mode = #tpu.pipeline_mode<synchronous>, transform_indices = @transform_4, window_bounds = array<i64: 1, 4>}, {transform_indices = @transform_5, window_bounds = array<i64: 1, 32, 32, 4>}]} {
    %cst = arith.constant 0.000000e+00 : bf16
    %0 = vector.broadcast %cst : bf16 to vector<16x64x128xbf16>
    %c0 = arith.constant 0 : index
    %c0_0 = arith.constant 0 : index
    %c0_1 = arith.constant 0 : index
    %1 = vector.load %arg7[%c0, %c0_0, %c0_1] : memref<64x64x128xbf16, #tpu.memory_space<vmem>>, vector<16x64x128xbf16>
    tpu.vector_store %arg7[%c0, %c0_0, %c0_1], %0 {strides = array<i32>} : memref<64x64x128xbf16, #tpu.memory_space<vmem>>, vector<16x64x128xbf16>,
    %c48 = arith.constant 48 : index
    %c0_2 = arith.constant 0 : index
    %c0_3 = arith.constant 0 : index
    %2 = vector.load %arg7[%c48, %c0_2, %c0_3] : memref<64x64x128xbf16, #tpu.memory_space<vmem>>, vector<16x64x128xbf16>
    tpu.vector_store %arg7[%c48, %c0_2, %c0_3], %0 {strides = array<i32>} : memref<64x64x128xbf16, #tpu.memory_space<vmem>>, vector<16x64x128xbf16>,
    %cst_4 = arith.constant 0.000000e+00 : bf16
    %3 = vector.broadcast %cst_4 : bf16 to vector<32x16x128xbf16>
    %c16 = arith.constant 16 : index
    %c0_5 = arith.constant 0 : index
    %c0_6 = arith.constant 0 : index
    %4 = vector.load %arg7[%c16, %c0_5, %c0_6] : memref<64x64x128xbf16, #tpu.memory_space<vmem>>, vector<32x16x128xbf16>
    tpu.vector_store %arg7[%c16, %c0_5, %c0_6], %3 {strides = array<i32>} : memref<64x64x128xbf16, #tpu.memory_space<vmem>>, vector<32x16x128xbf16>,
    %c16_7 = arith.constant 16 : index
    %c48_8 = arith.constant 48 : index
    %c0_9 = arith.constant 0 : index
    %5 = vector.load %arg7[%c16_7, %c48_8, %c0_9] : memref<64x64x128xbf16, #tpu.memory_space<vmem>>, vector<32x16x128xbf16>
    tpu.vector_store %arg7[%c16_7, %c48_8, %c0_9], %3 {strides = array<i32>} : memref<64x64x128xbf16, #tpu.memory_space<vmem>>, vector<32x16x128xbf16>,
    %cst_10 = arith.constant 0.000000e+00 : bf16
    %6 = vector.broadcast %cst_10 : bf16 to vector<16x64x128xbf16>
    %c0_11 = arith.constant 0 : index
    %c0_12 = arith.constant 0 : index
    %c0_13 = arith.constant 0 : index
    %7 = vector.load %arg8[%c0_11, %c0_12, %c0_13] : memref<64x64x128xbf16, #tpu.memory_space<vmem>>, vector<16x64x128xbf16>
    tpu.vector_store %arg8[%c0_11, %c0_12, %c0_13], %6 {strides = array<i32>} : memref<64x64x128xbf16, #tpu.memory_space<vmem>>, vector<16x64x128xbf16>,
    %c48_14 = arith.constant 48 : index
    %c0_15 = arith.constant 0 : index
    %c0_16 = arith.constant 0 : index
    %8 = vector.load %arg8[%c48_14, %c0_15, %c0_16] : memref<64x64x128xbf16, #tpu.memory_space<vmem>>, vector<16x64x128xbf16>
    tpu.vector_store %arg8[%c48_14, %c0_15, %c0_16], %6 {strides = array<i32>} : memref<64x64x128xbf16, #tpu.memory_space<vmem>>, vector<16x64x128xbf16>,
    %cst_17 = arith.constant 0.000000e+00 : bf16
    %9 = vector.broadcast %cst_17 : bf16 to vector<32x16x128xbf16>
    %c16_18 = arith.constant 16 : index
    %c0_19 = arith.constant 0 : index
    %c0_20 = arith.constant 0 : index
    %10 = vector.load %arg8[%c16_18, %c0_19, %c0_20] : memref<64x64x128xbf16, #tpu.memory_space<vmem>>, vector<32x16x128xbf16>
    tpu.vector_store %arg8[%c16_18, %c0_19, %c0_20], %9 {strides = array<i32>} : memref<64x64x128xbf16, #tpu.memory_space<vmem>>, vector<32x16x128xbf16>,
    %c16_21 = arith.constant 16 : index
    %c48_22 = arith.constant 48 : index
    %c0_23 = arith.constant 0 : index
    %11 = vector.load %arg8[%c16_21, %c48_22, %c0_23] : memref<64x64x128xbf16, #tpu.memory_space<vmem>>, vector<32x16x128xbf16>
    tpu.vector_store %arg8[%c16_21, %c48_22, %c0_23], %9 {strides = array<i32>} : memref<64x64x128xbf16, #tpu.memory_space<vmem>>, vector<32x16x128xbf16>,
    %c0_24 = arith.constant 0 : index
    %c0_25 = arith.constant 0 : index
    %c0_26 = arith.constant 0 : index
    %c0_27 = arith.constant 0 : index
    %12 = vector.load %arg1[%c0_24, %c0_25, %c0_26, %c0_27] : memref<1x32x32x128xf32, #tpu.memory_space<vmem>>, vector<1x32x32x128xf32>
    %13 = vector.shape_cast %12 : vector<1x32x32x128xf32> to vector<32x32x128xf32>
    %14 = arith.truncf %13 : vector<32x32x128xf32> to vector<32x32x128xbf16>
    %c16_28 = arith.constant 16 : index
    %c16_29 = arith.constant 16 : index
    %c0_30 = arith.constant 0 : index
    %15 = vector.load %arg7[%c16_28, %c16_29, %c0_30] : memref<64x64x128xbf16, #tpu.memory_space<vmem>>, vector<32x32x128xbf16>
    tpu.vector_store %arg7[%c16_28, %c16_29, %c0_30], %14 {strides = array<i32>} : memref<64x64x128xbf16, #tpu.memory_space<vmem>>, vector<32x32x128xbf16>,
    %c0_i32 = arith.constant 0 : i32
    %c8_i32 = arith.constant 8 : i32
    %16 = arith.addi %c0_i32, %c8_i32 : i32
    %c1_i32 = arith.constant 1 : i32
    scf.for %arg9 = %c0_i32 to %16 step %c1_i32  : i32 {
      %c4_i32 = arith.constant 4 : i32
      %23 = arith.muli %arg9, %c4_i32 : i32
      %24 = tpu.assume_multiple %23, 4 : i32
      %c0_56 = arith.constant 0 : index
      %c0_57 = arith.constant 0 : index
      %25 = vector.load %arg3[%c0_56, %c0_57] : memref<6x128xf32, #tpu.memory_space<vmem>>, vector<1x128xf32>
      %26 = vector.shape_cast %25 : vector<1x128xf32> to vector<128xf32>
      %27 = vector.shape_cast %26 : vector<128xf32> to vector<1x128xf32>
      %28 = vector.broadcast %27 : vector<1x128xf32> to vector<128x128xf32>
      %c16_i32 = arith.constant 16 : i32
      %29 = arith.addi %c16_i32, %24 : i32
      %c-1_i32 = arith.constant -1 : i32
      %30 = arith.addi %29, %c-1_i32 : i32
      %31 = arith.index_cast %30 : i32 to index
      %c15 = arith.constant 15 : index
      %c0_58 = arith.constant 0 : index
      %32 = vector.load %arg7[%31, %c15, %c0_58] : memref<64x64x128xbf16, #tpu.memory_space<vmem>>, vector<4x32x128xbf16>
      %33 = vector.shape_cast %32 : vector<4x32x128xbf16> to vector<128x128xbf16>
      %34 = arith.index_cast %30 : i32 to index
      %c16_59 = arith.constant 16 : index
      %c0_60 = arith.constant 0 : index
      %35 = vector.load %arg7[%34, %c16_59, %c0_60] : memref<64x64x128xbf16, #tpu.memory_space<vmem>>, vector<4x32x128xbf16>
      %36 = vector.shape_cast %35 : vector<4x32x128xbf16> to vector<128x128xbf16>
      %37 = arith.index_cast %30 : i32 to index
      %c17 = arith.constant 17 : index
      %c0_61 = arith.constant 0 : index
      %38 = vector.load %arg7[%37, %c17, %c0_61] : memref<64x64x128xbf16, #tpu.memory_space<vmem>>, vector<4x32x128xbf16>
      %39 = vector.shape_cast %38 : vector<4x32x128xbf16> to vector<128x128xbf16>
      %40 = tpu.concatenate %33, %36, %39 in 1 : vector<128x128xbf16>, vector<128x128xbf16>, vector<128x128xbf16> -> vector<128x384xbf16>
      %c0_62 = arith.constant 0 : index
      %c0_63 = arith.constant 0 : index
      %c0_64 = arith.constant 0 : index
      %c0_65 = arith.constant 0 : index
      %41 = vector.load %arg2[%c0_62, %c0_63, %c0_64, %c0_65] : memref<6x3x384x128xbf16, #tpu.memory_space<vmem>>, vector<1x1x384x128xbf16>
      %42 = vector.shape_cast %41 : vector<1x1x384x128xbf16> to vector<384x128xbf16>
      %cst_66 = arith.constant dense<0.000000e+00> : vector<128x128xf32>
      %43 = tpu.matmul %40, %42, %cst_66 {dimension_numbers = #tpu.dot_dimension_numbers<[1], [0], [0], [1], [0, 0, 1, 1], [], []>} : vector<128x384xbf16>, vector<384x128xbf16>, vector<128x128xf32> -> vector<128x128xf32>
      %44 = arith.addf %28, %43 : vector<128x128xf32>
      %c16_i32_67 = arith.constant 16 : i32
      %45 = arith.addi %c16_i32_67, %24 : i32
      %c0_i32_68 = arith.constant 0 : i32
      %46 = arith.addi %45, %c0_i32_68 : i32
      %47 = arith.index_cast %46 : i32 to index
      %c15_69 = arith.constant 15 : index
      %c0_70 = arith.constant 0 : index
      %48 = vector.load %arg7[%47, %c15_69, %c0_70] : memref<64x64x128xbf16, #tpu.memory_space<vmem>>, vector<4x32x128xbf16>
      %49 = vector.shape_cast %48 : vector<4x32x128xbf16> to vector<128x128xbf16>
      %50 = arith.index_cast %46 : i32 to index
      %c16_71 = arith.constant 16 : index
      %c0_72 = arith.constant 0 : index
      %51 = vector.load %arg7[%50, %c16_71, %c0_72] : memref<64x64x128xbf16, #tpu.memory_space<vmem>>, vector<4x32x128xbf16>
      %52 = vector.shape_cast %51 : vector<4x32x128xbf16> to vector<128x128xbf16>
      %53 = arith.index_cast %46 : i32 to index
      %c17_73 = arith.constant 17 : index
      %c0_74 = arith.constant 0 : index
      %54 = vector.load %arg7[%53, %c17_73, %c0_74] : memref<64x64x128xbf16, #tpu.memory_space<vmem>>, vector<4x32x128xbf16>
      %55 = vector.shape_cast %54 : vector<4x32x128xbf16> to vector<128x128xbf16>
      %56 = tpu.concatenate %49, %52, %55 in 1 : vector<128x128xbf16>, vector<128x128xbf16>, vector<128x128xbf16> -> vector<128x384xbf16>
      %c0_75 = arith.constant 0 : index
      %c1 = arith.constant 1 : index
      %c0_76 = arith.constant 0 : index
      %c0_77 = arith.constant 0 : index
      %57 = vector.load %arg2[%c0_75, %c1, %c0_76, %c0_77] : memref<6x3x384x128xbf16, #tpu.memory_space<vmem>>, vector<1x1x384x128xbf16>
      %58 = vector.shape_cast %57 : vector<1x1x384x128xbf16> to vector<384x128xbf16>
      %cst_78 = arith.constant dense<0.000000e+00> : vector<128x128xf32>
      %59 = tpu.matmul %56, %58, %cst_78 {dimension_numbers = #tpu.dot_dimension_numbers<[1], [0], [0], [1], [0, 0, 1, 1], [], []>} : vector<128x384xbf16>, vector<384x128xbf16>, vector<128x128xf32> -> vector<128x128xf32>
      %60 = arith.addf %44, %59 : vector<128x128xf32>
      %c16_i32_79 = arith.constant 16 : i32
      %61 = arith.addi %c16_i32_79, %24 : i32
      %c1_i32_80 = arith.constant 1 : i32
      %62 = arith.addi %61, %c1_i32_80 : i32
      %63 = arith.index_cast %62 : i32 to index
      %c15_81 = arith.constant 15 : index
      %c0_82 = arith.constant 0 : index
      %64 = vector.load %arg7[%63, %c15_81, %c0_82] : memref<64x64x128xbf16, #tpu.memory_space<vmem>>, vector<4x32x128xbf16>
      %65 = vector.shape_cast %64 : vector<4x32x128xbf16> to vector<128x128xbf16>
      %66 = arith.index_cast %62 : i32 to index
      %c16_83 = arith.constant 16 : index
      %c0_84 = arith.constant 0 : index
      %67 = vector.load %arg7[%66, %c16_83, %c0_84] : memref<64x64x128xbf16, #tpu.memory_space<vmem>>, vector<4x32x128xbf16>
      %68 = vector.shape_cast %67 : vector<4x32x128xbf16> to vector<128x128xbf16>
      %69 = arith.index_cast %62 : i32 to index
      %c17_85 = arith.constant 17 : index
      %c0_86 = arith.constant 0 : index
      %70 = vector.load %arg7[%69, %c17_85, %c0_86] : memref<64x64x128xbf16, #tpu.memory_space<vmem>>, vector<4x32x128xbf16>
      %71 = vector.shape_cast %70 : vector<4x32x128xbf16> to vector<128x128xbf16>
      %72 = tpu.concatenate %65, %68, %71 in 1 : vector<128x128xbf16>, vector<128x128xbf16>, vector<128x128xbf16> -> vector<128x384xbf16>
      %c0_87 = arith.constant 0 : index
      %c2 = arith.constant 2 : index
      %c0_88 = arith.constant 0 : index
      %c0_89 = arith.constant 0 : index
      %73 = vector.load %arg2[%c0_87, %c2, %c0_88, %c0_89] : memref<6x3x384x128xbf16, #tpu.memory_space<vmem>>, vector<1x1x384x128xbf16>
      %74 = vector.shape_cast %73 : vector<1x1x384x128xbf16> to vector<384x128xbf16>
      %cst_90 = arith.constant dense<0.000000e+00> : vector<128x128xf32>
      %75 = tpu.matmul %72, %74, %cst_90 {dimension_numbers = #tpu.dot_dimension_numbers<[1], [0], [0], [1], [0, 0, 1, 1], [], []>} : vector<128x384xbf16>, vector<384x128xbf16>, vector<128x128xf32> -> vector<128x128xf32>
      %76 = arith.addf %60, %75 : vector<128x128xf32>
      %cst_91 = arith.constant 0.000000e+00 : f32
      %77 = vector.broadcast %cst_91 : f32 to vector<128x128xf32>
      %78 = arith.cmpf ogt, %76, %77 : vector<128x128xf32>
      %cst_92 = arith.constant 1.000000e-01 : f32
      %79 = vector.broadcast %cst_92 : f32 to vector<128x128xf32>
      %80 = arith.mulf %79, %76 : vector<128x128xf32>
      %81 = arith.select %78, %76, %80 : vector<128x128xi1>, vector<128x128xf32>
      %82 = arith.truncf %81 : vector<128x128xf32> to vector<128x128xbf16>
      %83 = vector.shape_cast %82 : vector<128x128xbf16> to vector<4x32x128xbf16>
      %c16_i32_93 = arith.constant 16 : i32
      %84 = arith.addi %c16_i32_93, %24 : i32
      %85 = arith.index_cast %84 : i32 to index
      %c16_94 = arith.constant 16 : index
      %c0_95 = arith.constant 0 : index
      %86 = vector.load %arg8[%85, %c16_94, %c0_95] : memref<64x64x128xbf16, #tpu.memory_space<vmem>>, vector<4x32x128xbf16>
      tpu.vector_store %arg8[%85, %c16_94, %c0_95], %83 {strides = array<i32>} : memref<64x64x128xbf16, #tpu.memory_space<vmem>>, vector<4x32x128xbf16>,
    }
    %c8_i32_31 = arith.constant 8 : i32
    %c0_i32_32 = arith.constant 0 : i32
    %c8_i32_33 = arith.constant 8 : i32
    %17 = arith.addi %c0_i32_32, %c8_i32_33 : i32
    %c1_i32_34 = arith.constant 1 : i32
    scf.for %arg9 = %c0_i32_32 to %17 step %c1_i32_34  : i32 {
      %c4_i32 = arith.constant 4 : i32
      %23 = arith.muli %arg9, %c4_i32 : i32
      %24 = tpu.assume_multiple %23, 4 : i32
      %c1 = arith.constant 1 : index
      %c0_56 = arith.constant 0 : index
      %25 = vector.load %arg3[%c1, %c0_56] : memref<6x128xf32, #tpu.memory_space<vmem>>, vector<1x128xf32>
      %26 = vector.shape_cast %25 : vector<1x128xf32> to vector<128xf32>
      %27 = vector.shape_cast %26 : vector<128xf32> to vector<1x128xf32>
      %28 = vector.broadcast %27 : vector<1x128xf32> to vector<128x128xf32>
      %c16_i32 = arith.constant 16 : i32
      %29 = arith.addi %c16_i32, %24 : i32
      %c-2_i32 = arith.constant -2 : i32
      %30 = arith.addi %29, %c-2_i32 : i32
      %31 = arith.index_cast %30 : i32 to index
      %c14 = arith.constant 14 : index
      %c0_57 = arith.constant 0 : index
      %32 = vector.load %arg8[%31, %c14, %c0_57] : memref<64x64x128xbf16, #tpu.memory_space<vmem>>, vector<4x32x128xbf16>
      %33 = vector.shape_cast %32 : vector<4x32x128xbf16> to vector<128x128xbf16>
      %34 = arith.index_cast %30 : i32 to index
      %c16_58 = arith.constant 16 : index
      %c0_59 = arith.constant 0 : index
      %35 = vector.load %arg8[%34, %c16_58, %c0_59] : memref<64x64x128xbf16, #tpu.memory_space<vmem>>, vector<4x32x128xbf16>
      %36 = vector.shape_cast %35 : vector<4x32x128xbf16> to vector<128x128xbf16>
      %37 = arith.index_cast %30 : i32 to index
      %c18 = arith.constant 18 : index
      %c0_60 = arith.constant 0 : index
      %38 = vector.load %arg8[%37, %c18, %c0_60] : memref<64x64x128xbf16, #tpu.memory_space<vmem>>, vector<4x32x128xbf16>
      %39 = vector.shape_cast %38 : vector<4x32x128xbf16> to vector<128x128xbf16>
      %40 = tpu.concatenate %33, %36, %39 in 1 : vector<128x128xbf16>, vector<128x128xbf16>, vector<128x128xbf16> -> vector<128x384xbf16>
      %c1_61 = arith.constant 1 : index
      %c0_62 = arith.constant 0 : index
      %c0_63 = arith.constant 0 : index
      %c0_64 = arith.constant 0 : index
      %41 = vector.load %arg2[%c1_61, %c0_62, %c0_63, %c0_64] : memref<6x3x384x128xbf16, #tpu.memory_space<vmem>>, vector<1x1x384x128xbf16>
      %42 = vector.shape_cast %41 : vector<1x1x384x128xbf16> to vector<384x128xbf16>
      %cst_65 = arith.constant dense<0.000000e+00> : vector<128x128xf32>
      %43 = tpu.matmul %40, %42, %cst_65 {dimension_numbers = #tpu.dot_dimension_numbers<[1], [0], [0], [1], [0, 0, 1, 1], [], []>} : vector<128x384xbf16>, vector<384x128xbf16>, vector<128x128xf32> -> vector<128x128xf32>
      %44 = arith.addf %28, %43 : vector<128x128xf32>
      %c16_i32_66 = arith.constant 16 : i32
      %45 = arith.addi %c16_i32_66, %24 : i32
      %c0_i32_67 = arith.constant 0 : i32
      %46 = arith.addi %45, %c0_i32_67 : i32
      %47 = arith.index_cast %46 : i32 to index
      %c14_68 = arith.constant 14 : index
      %c0_69 = arith.constant 0 : index
      %48 = vector.load %arg8[%47, %c14_68, %c0_69] : memref<64x64x128xbf16, #tpu.memory_space<vmem>>, vector<4x32x128xbf16>
      %49 = vector.shape_cast %48 : vector<4x32x128xbf16> to vector<128x128xbf16>
      %50 = arith.index_cast %46 : i32 to index
      %c16_70 = arith.constant 16 : index
      %c0_71 = arith.constant 0 : index
      %51 = vector.load %arg8[%50, %c16_70, %c0_71] : memref<64x64x128xbf16, #tpu.memory_space<vmem>>, vector<4x32x128xbf16>
      %52 = vector.shape_cast %51 : vector<4x32x128xbf16> to vector<128x128xbf16>
      %53 = arith.index_cast %46 : i32 to index
      %c18_72 = arith.constant 18 : index
      %c0_73 = arith.constant 0 : index
      %54 = vector.load %arg8[%53, %c18_72, %c0_73] : memref<64x64x128xbf16, #tpu.memory_space<vmem>>, vector<4x32x128xbf16>
      %55 = vector.shape_cast %54 : vector<4x32x128xbf16> to vector<128x128xbf16>
      %56 = tpu.concatenate %49, %52, %55 in 1 : vector<128x128xbf16>, vector<128x128xbf16>, vector<128x128xbf16> -> vector<128x384xbf16>
      %c1_74 = arith.constant 1 : index
      %c1_75 = arith.constant 1 : index
      %c0_76 = arith.constant 0 : index
      %c0_77 = arith.constant 0 : index
      %57 = vector.load %arg2[%c1_74, %c1_75, %c0_76, %c0_77] : memref<6x3x384x128xbf16, #tpu.memory_space<vmem>>, vector<1x1x384x128xbf16>
      %58 = vector.shape_cast %57 : vector<1x1x384x128xbf16> to vector<384x128xbf16>
      %cst_78 = arith.constant dense<0.000000e+00> : vector<128x128xf32>
      %59 = tpu.matmul %56, %58, %cst_78 {dimension_numbers = #tpu.dot_dimension_numbers<[1], [0], [0], [1], [0, 0, 1, 1], [], []>} : vector<128x384xbf16>, vector<384x128xbf16>, vector<128x128xf32> -> vector<128x128xf32>
      %60 = arith.addf %44, %59 : vector<128x128xf32>
      %c16_i32_79 = arith.constant 16 : i32
      %61 = arith.addi %c16_i32_79, %24 : i32
      %c2_i32 = arith.constant 2 : i32
      %62 = arith.addi %61, %c2_i32 : i32
      %63 = arith.index_cast %62 : i32 to index
      %c14_80 = arith.constant 14 : index
      %c0_81 = arith.constant 0 : index
      %64 = vector.load %arg8[%63, %c14_80, %c0_81] : memref<64x64x128xbf16, #tpu.memory_space<vmem>>, vector<4x32x128xbf16>
      %65 = vector.shape_cast %64 : vector<4x32x128xbf16> to vector<128x128xbf16>
      %66 = arith.index_cast %62 : i32 to index
      %c16_82 = arith.constant 16 : index
      %c0_83 = arith.constant 0 : index
      %67 = vector.load %arg8[%66, %c16_82, %c0_83] : memref<64x64x128xbf16, #tpu.memory_space<vmem>>, vector<4x32x128xbf16>
      %68 = vector.shape_cast %67 : vector<4x32x128xbf16> to vector<128x128xbf16>
      %69 = arith.index_cast %62 : i32 to index
      %c18_84 = arith.constant 18 : index
      %c0_85 = arith.constant 0 : index
      %70 = vector.load %arg8[%69, %c18_84, %c0_85] : memref<64x64x128xbf16, #tpu.memory_space<vmem>>, vector<4x32x128xbf16>
      %71 = vector.shape_cast %70 : vector<4x32x128xbf16> to vector<128x128xbf16>
      %72 = tpu.concatenate %65, %68, %71 in 1 : vector<128x128xbf16>, vector<128x128xbf16>, vector<128x128xbf16> -> vector<128x384xbf16>
      %c1_86 = arith.constant 1 : index
      %c2 = arith.constant 2 : index
      %c0_87 = arith.constant 0 : index
      %c0_88 = arith.constant 0 : index
      %73 = vector.load %arg2[%c1_86, %c2, %c0_87, %c0_88] : memref<6x3x384x128xbf16, #tpu.memory_space<vmem>>, vector<1x1x384x128xbf16>
      %74 = vector.shape_cast %73 : vector<1x1x384x128xbf16> to vector<384x128xbf16>
      %cst_89 = arith.constant dense<0.000000e+00> : vector<128x128xf32>
      %75 = tpu.matmul %72, %74, %cst_89 {dimension_numbers = #tpu.dot_dimension_numbers<[1], [0], [0], [1], [0, 0, 1, 1], [], []>} : vector<128x384xbf16>, vector<384x128xbf16>, vector<128x128xf32> -> vector<128x128xf32>
      %76 = arith.addf %60, %75 : vector<128x128xf32>
      %cst_90 = arith.constant 0.000000e+00 : f32
      %77 = vector.broadcast %cst_90 : f32 to vector<128x128xf32>
      %78 = arith.cmpf ogt, %76, %77 : vector<128x128xf32>
      %cst_91 = arith.constant 1.000000e-01 : f32
      %79 = vector.broadcast %cst_91 : f32 to vector<128x128xf32>
      %80 = arith.mulf %79, %76 : vector<128x128xf32>
      %81 = arith.select %78, %76, %80 : vector<128x128xi1>, vector<128x128xf32>
      %82 = arith.truncf %81 : vector<128x128xf32> to vector<128x128xbf16>
      %83 = vector.shape_cast %82 : vector<128x128xbf16> to vector<4x32x128xbf16>
      %c16_i32_92 = arith.constant 16 : i32
      %84 = arith.addi %c16_i32_92, %24 : i32
      %85 = arith.index_cast %84 : i32 to index
      %c16_93 = arith.constant 16 : index
      %c0_94 = arith.constant 0 : index
      %86 = vector.load %arg7[%85, %c16_93, %c0_94] : memref<64x64x128xbf16, #tpu.memory_space<vmem>>, vector<4x32x128xbf16>
      tpu.vector_store %arg7[%85, %c16_93, %c0_94], %83 {strides = array<i32>} : memref<64x64x128xbf16, #tpu.memory_space<vmem>>, vector<4x32x128xbf16>,
    }
    %c8_i32_35 = arith.constant 8 : i32
    %c0_i32_36 = arith.constant 0 : i32
    %c8_i32_37 = arith.constant 8 : i32
    %18 = arith.addi %c0_i32_36, %c8_i32_37 : i32
    %c1_i32_38 = arith.constant 1 : i32
    scf.for %arg9 = %c0_i32_36 to %18 step %c1_i32_38  : i32 {
      %c4_i32 = arith.constant 4 : i32
      %23 = arith.muli %arg9, %c4_i32 : i32
      %24 = tpu.assume_multiple %23, 4 : i32
      %c2 = arith.constant 2 : index
      %c0_56 = arith.constant 0 : index
      %25 = vector.load %arg3[%c2, %c0_56] : memref<6x128xf32, #tpu.memory_space<vmem>>, vector<1x128xf32>
      %26 = vector.shape_cast %25 : vector<1x128xf32> to vector<128xf32>
      %27 = vector.shape_cast %26 : vector<128xf32> to vector<1x128xf32>
      %28 = vector.broadcast %27 : vector<1x128xf32> to vector<128x128xf32>
      %c16_i32 = arith.constant 16 : i32
      %29 = arith.addi %c16_i32, %24 : i32
      %c-4_i32 = arith.constant -4 : i32
      %30 = arith.addi %29, %c-4_i32 : i32
      %31 = arith.index_cast %30 : i32 to index
      %c12 = arith.constant 12 : index
      %c0_57 = arith.constant 0 : index
      %32 = vector.load %arg7[%31, %c12, %c0_57] : memref<64x64x128xbf16, #tpu.memory_space<vmem>>, vector<4x32x128xbf16>
      %33 = vector.shape_cast %32 : vector<4x32x128xbf16> to vector<128x128xbf16>
      %34 = arith.index_cast %30 : i32 to index
      %c16_58 = arith.constant 16 : index
      %c0_59 = arith.constant 0 : index
      %35 = vector.load %arg7[%34, %c16_58, %c0_59] : memref<64x64x128xbf16, #tpu.memory_space<vmem>>, vector<4x32x128xbf16>
      %36 = vector.shape_cast %35 : vector<4x32x128xbf16> to vector<128x128xbf16>
      %37 = arith.index_cast %30 : i32 to index
      %c20 = arith.constant 20 : index
      %c0_60 = arith.constant 0 : index
      %38 = vector.load %arg7[%37, %c20, %c0_60] : memref<64x64x128xbf16, #tpu.memory_space<vmem>>, vector<4x32x128xbf16>
      %39 = vector.shape_cast %38 : vector<4x32x128xbf16> to vector<128x128xbf16>
      %40 = tpu.concatenate %33, %36, %39 in 1 : vector<128x128xbf16>, vector<128x128xbf16>, vector<128x128xbf16> -> vector<128x384xbf16>
      %c2_61 = arith.constant 2 : index
      %c0_62 = arith.constant 0 : index
      %c0_63 = arith.constant 0 : index
      %c0_64 = arith.constant 0 : index
      %41 = vector.load %arg2[%c2_61, %c0_62, %c0_63, %c0_64] : memref<6x3x384x128xbf16, #tpu.memory_space<vmem>>, vector<1x1x384x128xbf16>
      %42 = vector.shape_cast %41 : vector<1x1x384x128xbf16> to vector<384x128xbf16>
      %cst_65 = arith.constant dense<0.000000e+00> : vector<128x128xf32>
      %43 = tpu.matmul %40, %42, %cst_65 {dimension_numbers = #tpu.dot_dimension_numbers<[1], [0], [0], [1], [0, 0, 1, 1], [], []>} : vector<128x384xbf16>, vector<384x128xbf16>, vector<128x128xf32> -> vector<128x128xf32>
      %44 = arith.addf %28, %43 : vector<128x128xf32>
      %c16_i32_66 = arith.constant 16 : i32
      %45 = arith.addi %c16_i32_66, %24 : i32
      %c0_i32_67 = arith.constant 0 : i32
      %46 = arith.addi %45, %c0_i32_67 : i32
      %47 = arith.index_cast %46 : i32 to index
      %c12_68 = arith.constant 12 : index
      %c0_69 = arith.constant 0 : index
      %48 = vector.load %arg7[%47, %c12_68, %c0_69] : memref<64x64x128xbf16, #tpu.memory_space<vmem>>, vector<4x32x128xbf16>
      %49 = vector.shape_cast %48 : vector<4x32x128xbf16> to vector<128x128xbf16>
      %50 = arith.index_cast %46 : i32 to index
      %c16_70 = arith.constant 16 : index
      %c0_71 = arith.constant 0 : index
      %51 = vector.load %arg7[%50, %c16_70, %c0_71] : memref<64x64x128xbf16, #tpu.memory_space<vmem>>, vector<4x32x128xbf16>
      %52 = vector.shape_cast %51 : vector<4x32x128xbf16> to vector<128x128xbf16>
      %53 = arith.index_cast %46 : i32 to index
      %c20_72 = arith.constant 20 : index
      %c0_73 = arith.constant 0 : index
      %54 = vector.load %arg7[%53, %c20_72, %c0_73] : memref<64x64x128xbf16, #tpu.memory_space<vmem>>, vector<4x32x128xbf16>
      %55 = vector.shape_cast %54 : vector<4x32x128xbf16> to vector<128x128xbf16>
      %56 = tpu.concatenate %49, %52, %55 in 1 : vector<128x128xbf16>, vector<128x128xbf16>, vector<128x128xbf16> -> vector<128x384xbf16>
      %c2_74 = arith.constant 2 : index
      %c1 = arith.constant 1 : index
      %c0_75 = arith.constant 0 : index
      %c0_76 = arith.constant 0 : index
      %57 = vector.load %arg2[%c2_74, %c1, %c0_75, %c0_76] : memref<6x3x384x128xbf16, #tpu.memory_space<vmem>>, vector<1x1x384x128xbf16>
      %58 = vector.shape_cast %57 : vector<1x1x384x128xbf16> to vector<384x128xbf16>
      %cst_77 = arith.constant dense<0.000000e+00> : vector<128x128xf32>
      %59 = tpu.matmul %56, %58, %cst_77 {dimension_numbers = #tpu.dot_dimension_numbers<[1], [0], [0], [1], [0, 0, 1, 1], [], []>} : vector<128x384xbf16>, vector<384x128xbf16>, vector<128x128xf32> -> vector<128x128xf32>
      %60 = arith.addf %44, %59 : vector<128x128xf32>
      %c16_i32_78 = arith.constant 16 : i32
      %61 = arith.addi %c16_i32_78, %24 : i32
      %c4_i32_79 = arith.constant 4 : i32
      %62 = arith.addi %61, %c4_i32_79 : i32
      %63 = arith.index_cast %62 : i32 to index
      %c12_80 = arith.constant 12 : index
      %c0_81 = arith.constant 0 : index
      %64 = vector.load %arg7[%63, %c12_80, %c0_81] : memref<64x64x128xbf16, #tpu.memory_space<vmem>>, vector<4x32x128xbf16>
      %65 = vector.shape_cast %64 : vector<4x32x128xbf16> to vector<128x128xbf16>
      %66 = arith.index_cast %62 : i32 to index
      %c16_82 = arith.constant 16 : index
      %c0_83 = arith.constant 0 : index
      %67 = vector.load %arg7[%66, %c16_82, %c0_83] : memref<64x64x128xbf16, #tpu.memory_space<vmem>>, vector<4x32x128xbf16>
      %68 = vector.shape_cast %67 : vector<4x32x128xbf16> to vector<128x128xbf16>
      %69 = arith.index_cast %62 : i32 to index
      %c20_84 = arith.constant 20 : index
      %c0_85 = arith.constant 0 : index
      %70 = vector.load %arg7[%69, %c20_84, %c0_85] : memref<64x64x128xbf16, #tpu.memory_space<vmem>>, vector<4x32x128xbf16>
      %71 = vector.shape_cast %70 : vector<4x32x128xbf16> to vector<128x128xbf16>
      %72 = tpu.concatenate %65, %68, %71 in 1 : vector<128x128xbf16>, vector<128x128xbf16>, vector<128x128xbf16> -> vector<128x384xbf16>
      %c2_86 = arith.constant 2 : index
      %c2_87 = arith.constant 2 : index
      %c0_88 = arith.constant 0 : index
      %c0_89 = arith.constant 0 : index
      %73 = vector.load %arg2[%c2_86, %c2_87, %c0_88, %c0_89] : memref<6x3x384x128xbf16, #tpu.memory_space<vmem>>, vector<1x1x384x128xbf16>
      %74 = vector.shape_cast %73 : vector<1x1x384x128xbf16> to vector<384x128xbf16>
      %cst_90 = arith.constant dense<0.000000e+00> : vector<128x128xf32>
      %75 = tpu.matmul %72, %74, %cst_90 {dimension_numbers = #tpu.dot_dimension_numbers<[1], [0], [0], [1], [0, 0, 1, 1], [], []>} : vector<128x384xbf16>, vector<384x128xbf16>, vector<128x128xf32> -> vector<128x128xf32>
      %76 = arith.addf %60, %75 : vector<128x128xf32>
      %cst_91 = arith.constant 0.000000e+00 : f32
      %77 = vector.broadcast %cst_91 : f32 to vector<128x128xf32>
      %78 = arith.cmpf ogt, %76, %77 : vector<128x128xf32>
      %cst_92 = arith.constant 1.000000e-01 : f32
      %79 = vector.broadcast %cst_92 : f32 to vector<128x128xf32>
      %80 = arith.mulf %79, %76 : vector<128x128xf32>
      %81 = arith.select %78, %76, %80 : vector<128x128xi1>, vector<128x128xf32>
      %82 = arith.truncf %81 : vector<128x128xf32> to vector<128x128xbf16>
      %83 = vector.shape_cast %82 : vector<128x128xbf16> to vector<4x32x128xbf16>
      %c16_i32_93 = arith.constant 16 : i32
      %84 = arith.addi %c16_i32_93, %24 : i32
      %85 = arith.index_cast %84 : i32 to index
      %c16_94 = arith.constant 16 : index
      %c0_95 = arith.constant 0 : index
      %86 = vector.load %arg8[%85, %c16_94, %c0_95] : memref<64x64x128xbf16, #tpu.memory_space<vmem>>, vector<4x32x128xbf16>
      tpu.vector_store %arg8[%85, %c16_94, %c0_95], %83 {strides = array<i32>} : memref<64x64x128xbf16, #tpu.memory_space<vmem>>, vector<4x32x128xbf16>,
    }
    %c8_i32_39 = arith.constant 8 : i32
    %c0_i32_40 = arith.constant 0 : i32
    %c8_i32_41 = arith.constant 8 : i32
    %19 = arith.addi %c0_i32_40, %c8_i32_41 : i32
    %c1_i32_42 = arith.constant 1 : i32
    scf.for %arg9 = %c0_i32_40 to %19 step %c1_i32_42  : i32 {
      %c4_i32 = arith.constant 4 : i32
      %23 = arith.muli %arg9, %c4_i32 : i32
      %24 = tpu.assume_multiple %23, 4 : i32
      %c3 = arith.constant 3 : index
      %c0_56 = arith.constant 0 : index
      %25 = vector.load %arg3[%c3, %c0_56] : memref<6x128xf32, #tpu.memory_space<vmem>>, vector<1x128xf32>
      %26 = vector.shape_cast %25 : vector<1x128xf32> to vector<128xf32>
      %27 = vector.shape_cast %26 : vector<128xf32> to vector<1x128xf32>
      %28 = vector.broadcast %27 : vector<1x128xf32> to vector<128x128xf32>
      %c16_i32 = arith.constant 16 : i32
      %29 = arith.addi %c16_i32, %24 : i32
      %c-8_i32 = arith.constant -8 : i32
      %30 = arith.addi %29, %c-8_i32 : i32
      %31 = arith.index_cast %30 : i32 to index
      %c8 = arith.constant 8 : index
      %c0_57 = arith.constant 0 : index
      %32 = vector.load %arg8[%31, %c8, %c0_57] : memref<64x64x128xbf16, #tpu.memory_space<vmem>>, vector<4x32x128xbf16>
      %33 = vector.shape_cast %32 : vector<4x32x128xbf16> to vector<128x128xbf16>
      %34 = arith.index_cast %30 : i32 to index
      %c16_58 = arith.constant 16 : index
      %c0_59 = arith.constant 0 : index
      %35 = vector.load %arg8[%34, %c16_58, %c0_59] : memref<64x64x128xbf16, #tpu.memory_space<vmem>>, vector<4x32x128xbf16>
      %36 = vector.shape_cast %35 : vector<4x32x128xbf16> to vector<128x128xbf16>
      %37 = arith.index_cast %30 : i32 to index
      %c24 = arith.constant 24 : index
      %c0_60 = arith.constant 0 : index
      %38 = vector.load %arg8[%37, %c24, %c0_60] : memref<64x64x128xbf16, #tpu.memory_space<vmem>>, vector<4x32x128xbf16>
      %39 = vector.shape_cast %38 : vector<4x32x128xbf16> to vector<128x128xbf16>
      %40 = tpu.concatenate %33, %36, %39 in 1 : vector<128x128xbf16>, vector<128x128xbf16>, vector<128x128xbf16> -> vector<128x384xbf16>
      %c3_61 = arith.constant 3 : index
      %c0_62 = arith.constant 0 : index
      %c0_63 = arith.constant 0 : index
      %c0_64 = arith.constant 0 : index
      %41 = vector.load %arg2[%c3_61, %c0_62, %c0_63, %c0_64] : memref<6x3x384x128xbf16, #tpu.memory_space<vmem>>, vector<1x1x384x128xbf16>
      %42 = vector.shape_cast %41 : vector<1x1x384x128xbf16> to vector<384x128xbf16>
      %cst_65 = arith.constant dense<0.000000e+00> : vector<128x128xf32>
      %43 = tpu.matmul %40, %42, %cst_65 {dimension_numbers = #tpu.dot_dimension_numbers<[1], [0], [0], [1], [0, 0, 1, 1], [], []>} : vector<128x384xbf16>, vector<384x128xbf16>, vector<128x128xf32> -> vector<128x128xf32>
      %44 = arith.addf %28, %43 : vector<128x128xf32>
      %c16_i32_66 = arith.constant 16 : i32
      %45 = arith.addi %c16_i32_66, %24 : i32
      %c0_i32_67 = arith.constant 0 : i32
      %46 = arith.addi %45, %c0_i32_67 : i32
      %47 = arith.index_cast %46 : i32 to index
      %c8_68 = arith.constant 8 : index
      %c0_69 = arith.constant 0 : index
      %48 = vector.load %arg8[%47, %c8_68, %c0_69] : memref<64x64x128xbf16, #tpu.memory_space<vmem>>, vector<4x32x128xbf16>
      %49 = vector.shape_cast %48 : vector<4x32x128xbf16> to vector<128x128xbf16>
      %50 = arith.index_cast %46 : i32 to index
      %c16_70 = arith.constant 16 : index
      %c0_71 = arith.constant 0 : index
      %51 = vector.load %arg8[%50, %c16_70, %c0_71] : memref<64x64x128xbf16, #tpu.memory_space<vmem>>, vector<4x32x128xbf16>
      %52 = vector.shape_cast %51 : vector<4x32x128xbf16> to vector<128x128xbf16>
      %53 = arith.index_cast %46 : i32 to index
      %c24_72 = arith.constant 24 : index
      %c0_73 = arith.constant 0 : index
      %54 = vector.load %arg8[%53, %c24_72, %c0_73] : memref<64x64x128xbf16, #tpu.memory_space<vmem>>, vector<4x32x128xbf16>
      %55 = vector.shape_cast %54 : vector<4x32x128xbf16> to vector<128x128xbf16>
      %56 = tpu.concatenate %49, %52, %55 in 1 : vector<128x128xbf16>, vector<128x128xbf16>, vector<128x128xbf16> -> vector<128x384xbf16>
      %c3_74 = arith.constant 3 : index
      %c1 = arith.constant 1 : index
      %c0_75 = arith.constant 0 : index
      %c0_76 = arith.constant 0 : index
      %57 = vector.load %arg2[%c3_74, %c1, %c0_75, %c0_76] : memref<6x3x384x128xbf16, #tpu.memory_space<vmem>>, vector<1x1x384x128xbf16>
      %58 = vector.shape_cast %57 : vector<1x1x384x128xbf16> to vector<384x128xbf16>
      %cst_77 = arith.constant dense<0.000000e+00> : vector<128x128xf32>
      %59 = tpu.matmul %56, %58, %cst_77 {dimension_numbers = #tpu.dot_dimension_numbers<[1], [0], [0], [1], [0, 0, 1, 1], [], []>} : vector<128x384xbf16>, vector<384x128xbf16>, vector<128x128xf32> -> vector<128x128xf32>
      %60 = arith.addf %44, %59 : vector<128x128xf32>
      %c16_i32_78 = arith.constant 16 : i32
      %61 = arith.addi %c16_i32_78, %24 : i32
      %c8_i32_79 = arith.constant 8 : i32
      %62 = arith.addi %61, %c8_i32_79 : i32
      %63 = arith.index_cast %62 : i32 to index
      %c8_80 = arith.constant 8 : index
      %c0_81 = arith.constant 0 : index
      %64 = vector.load %arg8[%63, %c8_80, %c0_81] : memref<64x64x128xbf16, #tpu.memory_space<vmem>>, vector<4x32x128xbf16>
      %65 = vector.shape_cast %64 : vector<4x32x128xbf16> to vector<128x128xbf16>
      %66 = arith.index_cast %62 : i32 to index
      %c16_82 = arith.constant 16 : index
      %c0_83 = arith.constant 0 : index
      %67 = vector.load %arg8[%66, %c16_82, %c0_83] : memref<64x64x128xbf16, #tpu.memory_space<vmem>>, vector<4x32x128xbf16>
      %68 = vector.shape_cast %67 : vector<4x32x128xbf16> to vector<128x128xbf16>
      %69 = arith.index_cast %62 : i32 to index
      %c24_84 = arith.constant 24 : index
      %c0_85 = arith.constant 0 : index
      %70 = vector.load %arg8[%69, %c24_84, %c0_85] : memref<64x64x128xbf16, #tpu.memory_space<vmem>>, vector<4x32x128xbf16>
      %71 = vector.shape_cast %70 : vector<4x32x128xbf16> to vector<128x128xbf16>
      %72 = tpu.concatenate %65, %68, %71 in 1 : vector<128x128xbf16>, vector<128x128xbf16>, vector<128x128xbf16> -> vector<128x384xbf16>
      %c3_86 = arith.constant 3 : index
      %c2 = arith.constant 2 : index
      %c0_87 = arith.constant 0 : index
      %c0_88 = arith.constant 0 : index
      %73 = vector.load %arg2[%c3_86, %c2, %c0_87, %c0_88] : memref<6x3x384x128xbf16, #tpu.memory_space<vmem>>, vector<1x1x384x128xbf16>
      %74 = vector.shape_cast %73 : vector<1x1x384x128xbf16> to vector<384x128xbf16>
      %cst_89 = arith.constant dense<0.000000e+00> : vector<128x128xf32>
      %75 = tpu.matmul %72, %74, %cst_89 {dimension_numbers = #tpu.dot_dimension_numbers<[1], [0], [0], [1], [0, 0, 1, 1], [], []>} : vector<128x384xbf16>, vector<384x128xbf16>, vector<128x128xf32> -> vector<128x128xf32>
      %76 = arith.addf %60, %75 : vector<128x128xf32>
      %cst_90 = arith.constant 0.000000e+00 : f32
      %77 = vector.broadcast %cst_90 : f32 to vector<128x128xf32>
      %78 = arith.cmpf ogt, %76, %77 : vector<128x128xf32>
      %cst_91 = arith.constant 1.000000e-01 : f32
      %79 = vector.broadcast %cst_91 : f32 to vector<128x128xf32>
      %80 = arith.mulf %79, %76 : vector<128x128xf32>
      %81 = arith.select %78, %76, %80 : vector<128x128xi1>, vector<128x128xf32>
      %82 = arith.truncf %81 : vector<128x128xf32> to vector<128x128xbf16>
      %83 = vector.shape_cast %82 : vector<128x128xbf16> to vector<4x32x128xbf16>
      %c16_i32_92 = arith.constant 16 : i32
      %84 = arith.addi %c16_i32_92, %24 : i32
      %85 = arith.index_cast %84 : i32 to index
      %c16_93 = arith.constant 16 : index
      %c0_94 = arith.constant 0 : index
      %86 = vector.load %arg7[%85, %c16_93, %c0_94] : memref<64x64x128xbf16, #tpu.memory_space<vmem>>, vector<4x32x128xbf16>
      tpu.vector_store %arg7[%85, %c16_93, %c0_94], %83 {strides = array<i32>} : memref<64x64x128xbf16, #tpu.memory_space<vmem>>, vector<4x32x128xbf16>,
    }
    %c8_i32_43 = arith.constant 8 : i32
    %c0_i32_44 = arith.constant 0 : i32
    %c8_i32_45 = arith.constant 8 : i32
    %20 = arith.addi %c0_i32_44, %c8_i32_45 : i32
    %c1_i32_46 = arith.constant 1 : i32
    scf.for %arg9 = %c0_i32_44 to %20 step %c1_i32_46  : i32 {
      %c4_i32 = arith.constant 4 : i32
      %23 = arith.muli %arg9, %c4_i32 : i32
      %24 = tpu.assume_multiple %23, 4 : i32
      %c4 = arith.constant 4 : index
      %c0_56 = arith.constant 0 : index
      %25 = vector.load %arg3[%c4, %c0_56] : memref<6x128xf32, #tpu.memory_space<vmem>>, vector<1x128xf32>
      %26 = vector.shape_cast %25 : vector<1x128xf32> to vector<128xf32>
      %27 = vector.shape_cast %26 : vector<128xf32> to vector<1x128xf32>
      %28 = vector.broadcast %27 : vector<1x128xf32> to vector<128x128xf32>
      %c16_i32 = arith.constant 16 : i32
      %29 = arith.addi %c16_i32, %24 : i32
      %c-16_i32 = arith.constant -16 : i32
      %30 = arith.addi %29, %c-16_i32 : i32
      %31 = arith.index_cast %30 : i32 to index
      %c0_57 = arith.constant 0 : index
      %c0_58 = arith.constant 0 : index
      %32 = vector.load %arg7[%31, %c0_57, %c0_58] : memref<64x64x128xbf16, #tpu.memory_space<vmem>>, vector<4x32x128xbf16>
      %33 = vector.shape_cast %32 : vector<4x32x128xbf16> to vector<128x128xbf16>
      %34 = arith.index_cast %30 : i32 to index
      %c16_59 = arith.constant 16 : index
      %c0_60 = arith.constant 0 : index
      %35 = vector.load %arg7[%34, %c16_59, %c0_60] : memref<64x64x128xbf16, #tpu.memory_space<vmem>>, vector<4x32x128xbf16>
      %36 = vector.shape_cast %35 : vector<4x32x128xbf16> to vector<128x128xbf16>
      %37 = arith.index_cast %30 : i32 to index
      %c32 = arith.constant 32 : index
      %c0_61 = arith.constant 0 : index
      %38 = vector.load %arg7[%37, %c32, %c0_61] : memref<64x64x128xbf16, #tpu.memory_space<vmem>>, vector<4x32x128xbf16>
      %39 = vector.shape_cast %38 : vector<4x32x128xbf16> to vector<128x128xbf16>
      %40 = tpu.concatenate %33, %36, %39 in 1 : vector<128x128xbf16>, vector<128x128xbf16>, vector<128x128xbf16> -> vector<128x384xbf16>
      %c4_62 = arith.constant 4 : index
      %c0_63 = arith.constant 0 : index
      %c0_64 = arith.constant 0 : index
      %c0_65 = arith.constant 0 : index
      %41 = vector.load %arg2[%c4_62, %c0_63, %c0_64, %c0_65] : memref<6x3x384x128xbf16, #tpu.memory_space<vmem>>, vector<1x1x384x128xbf16>
      %42 = vector.shape_cast %41 : vector<1x1x384x128xbf16> to vector<384x128xbf16>
      %cst_66 = arith.constant dense<0.000000e+00> : vector<128x128xf32>
      %43 = tpu.matmul %40, %42, %cst_66 {dimension_numbers = #tpu.dot_dimension_numbers<[1], [0], [0], [1], [0, 0, 1, 1], [], []>} : vector<128x384xbf16>, vector<384x128xbf16>, vector<128x128xf32> -> vector<128x128xf32>
      %44 = arith.addf %28, %43 : vector<128x128xf32>
      %c16_i32_67 = arith.constant 16 : i32
      %45 = arith.addi %c16_i32_67, %24 : i32
      %c0_i32_68 = arith.constant 0 : i32
      %46 = arith.addi %45, %c0_i32_68 : i32
      %47 = arith.index_cast %46 : i32 to index
      %c0_69 = arith.constant 0 : index
      %c0_70 = arith.constant 0 : index
      %48 = vector.load %arg7[%47, %c0_69, %c0_70] : memref<64x64x128xbf16, #tpu.memory_space<vmem>>, vector<4x32x128xbf16>
      %49 = vector.shape_cast %48 : vector<4x32x128xbf16> to vector<128x128xbf16>
      %50 = arith.index_cast %46 : i32 to index
      %c16_71 = arith.constant 16 : index
      %c0_72 = arith.constant 0 : index
      %51 = vector.load %arg7[%50, %c16_71, %c0_72] : memref<64x64x128xbf16, #tpu.memory_space<vmem>>, vector<4x32x128xbf16>
      %52 = vector.shape_cast %51 : vector<4x32x128xbf16> to vector<128x128xbf16>
      %53 = arith.index_cast %46 : i32 to index
      %c32_73 = arith.constant 32 : index
      %c0_74 = arith.constant 0 : index
      %54 = vector.load %arg7[%53, %c32_73, %c0_74] : memref<64x64x128xbf16, #tpu.memory_space<vmem>>, vector<4x32x128xbf16>
      %55 = vector.shape_cast %54 : vector<4x32x128xbf16> to vector<128x128xbf16>
      %56 = tpu.concatenate %49, %52, %55 in 1 : vector<128x128xbf16>, vector<128x128xbf16>, vector<128x128xbf16> -> vector<128x384xbf16>
      %c4_75 = arith.constant 4 : index
      %c1 = arith.constant 1 : index
      %c0_76 = arith.constant 0 : index
      %c0_77 = arith.constant 0 : index
      %57 = vector.load %arg2[%c4_75, %c1, %c0_76, %c0_77] : memref<6x3x384x128xbf16, #tpu.memory_space<vmem>>, vector<1x1x384x128xbf16>
      %58 = vector.shape_cast %57 : vector<1x1x384x128xbf16> to vector<384x128xbf16>
      %cst_78 = arith.constant dense<0.000000e+00> : vector<128x128xf32>
      %59 = tpu.matmul %56, %58, %cst_78 {dimension_numbers = #tpu.dot_dimension_numbers<[1], [0], [0], [1], [0, 0, 1, 1], [], []>} : vector<128x384xbf16>, vector<384x128xbf16>, vector<128x128xf32> -> vector<128x128xf32>
      %60 = arith.addf %44, %59 : vector<128x128xf32>
      %c16_i32_79 = arith.constant 16 : i32
      %61 = arith.addi %c16_i32_79, %24 : i32
      %c16_i32_80 = arith.constant 16 : i32
      %62 = arith.addi %61, %c16_i32_80 : i32
      %63 = arith.index_cast %62 : i32 to index
      %c0_81 = arith.constant 0 : index
      %c0_82 = arith.constant 0 : index
      %64 = vector.load %arg7[%63, %c0_81, %c0_82] : memref<64x64x128xbf16, #tpu.memory_space<vmem>>, vector<4x32x128xbf16>
      %65 = vector.shape_cast %64 : vector<4x32x128xbf16> to vector<128x128xbf16>
      %66 = arith.index_cast %62 : i32 to index
      %c16_83 = arith.constant 16 : index
      %c0_84 = arith.constant 0 : index
      %67 = vector.load %arg7[%66, %c16_83, %c0_84] : memref<64x64x128xbf16, #tpu.memory_space<vmem>>, vector<4x32x128xbf16>
      %68 = vector.shape_cast %67 : vector<4x32x128xbf16> to vector<128x128xbf16>
      %69 = arith.index_cast %62 : i32 to index
      %c32_85 = arith.constant 32 : index
      %c0_86 = arith.constant 0 : index
      %70 = vector.load %arg7[%69, %c32_85, %c0_86] : memref<64x64x128xbf16, #tpu.memory_space<vmem>>, vector<4x32x128xbf16>
      %71 = vector.shape_cast %70 : vector<4x32x128xbf16> to vector<128x128xbf16>
      %72 = tpu.concatenate %65, %68, %71 in 1 : vector<128x128xbf16>, vector<128x128xbf16>, vector<128x128xbf16> -> vector<128x384xbf16>
      %c4_87 = arith.constant 4 : index
      %c2 = arith.constant 2 : index
      %c0_88 = arith.constant 0 : index
      %c0_89 = arith.constant 0 : index
      %73 = vector.load %arg2[%c4_87, %c2, %c0_88, %c0_89] : memref<6x3x384x128xbf16, #tpu.memory_space<vmem>>, vector<1x1x384x128xbf16>
      %74 = vector.shape_cast %73 : vector<1x1x384x128xbf16> to vector<384x128xbf16>
      %cst_90 = arith.constant dense<0.000000e+00> : vector<128x128xf32>
      %75 = tpu.matmul %72, %74, %cst_90 {dimension_numbers = #tpu.dot_dimension_numbers<[1], [0], [0], [1], [0, 0, 1, 1], [], []>} : vector<128x384xbf16>, vector<384x128xbf16>, vector<128x128xf32> -> vector<128x128xf32>
      %76 = arith.addf %60, %75 : vector<128x128xf32>
      %cst_91 = arith.constant 0.000000e+00 : f32
      %77 = vector.broadcast %cst_91 : f32 to vector<128x128xf32>
      %78 = arith.cmpf ogt, %76, %77 : vector<128x128xf32>
      %cst_92 = arith.constant 1.000000e-01 : f32
      %79 = vector.broadcast %cst_92 : f32 to vector<128x128xf32>
      %80 = arith.mulf %79, %76 : vector<128x128xf32>
      %81 = arith.select %78, %76, %80 : vector<128x128xi1>, vector<128x128xf32>
      %82 = arith.truncf %81 : vector<128x128xf32> to vector<128x128xbf16>
      %83 = vector.shape_cast %82 : vector<128x128xbf16> to vector<4x32x128xbf16>
      %c16_i32_93 = arith.constant 16 : i32
      %84 = arith.addi %c16_i32_93, %24 : i32
      %85 = arith.index_cast %84 : i32 to index
      %c16_94 = arith.constant 16 : index
      %c0_95 = arith.constant 0 : index
      %86 = vector.load %arg8[%85, %c16_94, %c0_95] : memref<64x64x128xbf16, #tpu.memory_space<vmem>>, vector<4x32x128xbf16>
      tpu.vector_store %arg8[%85, %c16_94, %c0_95], %83 {strides = array<i32>} : memref<64x64x128xbf16, #tpu.memory_space<vmem>>, vector<4x32x128xbf16>,
    }
    %c8_i32_47 = arith.constant 8 : i32
    %c0_i32_48 = arith.constant 0 : i32
    %c8_i32_49 = arith.constant 8 : i32
    %21 = arith.addi %c0_i32_48, %c8_i32_49 : i32
    %c1_i32_50 = arith.constant 1 : i32
    scf.for %arg9 = %c0_i32_48 to %21 step %c1_i32_50  : i32 {
      %c4_i32 = arith.constant 4 : i32
      %23 = arith.muli %arg9, %c4_i32 : i32
      %24 = tpu.assume_multiple %23, 4 : i32
      %c5 = arith.constant 5 : index
      %c0_56 = arith.constant 0 : index
      %25 = vector.load %arg3[%c5, %c0_56] : memref<6x128xf32, #tpu.memory_space<vmem>>, vector<1x128xf32>
      %26 = vector.shape_cast %25 : vector<1x128xf32> to vector<128xf32>
      %27 = vector.shape_cast %26 : vector<128xf32> to vector<1x128xf32>
      %28 = vector.broadcast %27 : vector<1x128xf32> to vector<128x128xf32>
      %c16_i32 = arith.constant 16 : i32
      %29 = arith.addi %c16_i32, %24 : i32
      %c-1_i32 = arith.constant -1 : i32
      %30 = arith.addi %29, %c-1_i32 : i32
      %31 = arith.index_cast %30 : i32 to index
      %c15 = arith.constant 15 : index
      %c0_57 = arith.constant 0 : index
      %32 = vector.load %arg8[%31, %c15, %c0_57] : memref<64x64x128xbf16, #tpu.memory_space<vmem>>, vector<4x32x128xbf16>
      %33 = vector.shape_cast %32 : vector<4x32x128xbf16> to vector<128x128xbf16>
      %34 = arith.index_cast %30 : i32 to index
      %c16_58 = arith.constant 16 : index
      %c0_59 = arith.constant 0 : index
      %35 = vector.load %arg8[%34, %c16_58, %c0_59] : memref<64x64x128xbf16, #tpu.memory_space<vmem>>, vector<4x32x128xbf16>
      %36 = vector.shape_cast %35 : vector<4x32x128xbf16> to vector<128x128xbf16>
      %37 = arith.index_cast %30 : i32 to index
      %c17 = arith.constant 17 : index
      %c0_60 = arith.constant 0 : index
      %38 = vector.load %arg8[%37, %c17, %c0_60] : memref<64x64x128xbf16, #tpu.memory_space<vmem>>, vector<4x32x128xbf16>
      %39 = vector.shape_cast %38 : vector<4x32x128xbf16> to vector<128x128xbf16>
      %40 = tpu.concatenate %33, %36, %39 in 1 : vector<128x128xbf16>, vector<128x128xbf16>, vector<128x128xbf16> -> vector<128x384xbf16>
      %c5_61 = arith.constant 5 : index
      %c0_62 = arith.constant 0 : index
      %c0_63 = arith.constant 0 : index
      %c0_64 = arith.constant 0 : index
      %41 = vector.load %arg2[%c5_61, %c0_62, %c0_63, %c0_64] : memref<6x3x384x128xbf16, #tpu.memory_space<vmem>>, vector<1x1x384x128xbf16>
      %42 = vector.shape_cast %41 : vector<1x1x384x128xbf16> to vector<384x128xbf16>
      %cst_65 = arith.constant dense<0.000000e+00> : vector<128x128xf32>
      %43 = tpu.matmul %40, %42, %cst_65 {dimension_numbers = #tpu.dot_dimension_numbers<[1], [0], [0], [1], [0, 0, 1, 1], [], []>} : vector<128x384xbf16>, vector<384x128xbf16>, vector<128x128xf32> -> vector<128x128xf32>
      %44 = arith.addf %28, %43 : vector<128x128xf32>
      %c16_i32_66 = arith.constant 16 : i32
      %45 = arith.addi %c16_i32_66, %24 : i32
      %c0_i32_67 = arith.constant 0 : i32
      %46 = arith.addi %45, %c0_i32_67 : i32
      %47 = arith.index_cast %46 : i32 to index
      %c15_68 = arith.constant 15 : index
      %c0_69 = arith.constant 0 : index
      %48 = vector.load %arg8[%47, %c15_68, %c0_69] : memref<64x64x128xbf16, #tpu.memory_space<vmem>>, vector<4x32x128xbf16>
      %49 = vector.shape_cast %48 : vector<4x32x128xbf16> to vector<128x128xbf16>
      %50 = arith.index_cast %46 : i32 to index
      %c16_70 = arith.constant 16 : index
      %c0_71 = arith.constant 0 : index
      %51 = vector.load %arg8[%50, %c16_70, %c0_71] : memref<64x64x128xbf16, #tpu.memory_space<vmem>>, vector<4x32x128xbf16>
      %52 = vector.shape_cast %51 : vector<4x32x128xbf16> to vector<128x128xbf16>
      %53 = arith.index_cast %46 : i32 to index
      %c17_72 = arith.constant 17 : index
      %c0_73 = arith.constant 0 : index
      %54 = vector.load %arg8[%53, %c17_72, %c0_73] : memref<64x64x128xbf16, #tpu.memory_space<vmem>>, vector<4x32x128xbf16>
      %55 = vector.shape_cast %54 : vector<4x32x128xbf16> to vector<128x128xbf16>
      %56 = tpu.concatenate %49, %52, %55 in 1 : vector<128x128xbf16>, vector<128x128xbf16>, vector<128x128xbf16> -> vector<128x384xbf16>
      %c5_74 = arith.constant 5 : index
      %c1 = arith.constant 1 : index
      %c0_75 = arith.constant 0 : index
      %c0_76 = arith.constant 0 : index
      %57 = vector.load %arg2[%c5_74, %c1, %c0_75, %c0_76] : memref<6x3x384x128xbf16, #tpu.memory_space<vmem>>, vector<1x1x384x128xbf16>
      %58 = vector.shape_cast %57 : vector<1x1x384x128xbf16> to vector<384x128xbf16>
      %cst_77 = arith.constant dense<0.000000e+00> : vector<128x128xf32>
      %59 = tpu.matmul %56, %58, %cst_77 {dimension_numbers = #tpu.dot_dimension_numbers<[1], [0], [0], [1], [0, 0, 1, 1], [], []>} : vector<128x384xbf16>, vector<384x128xbf16>, vector<128x128xf32> -> vector<128x128xf32>
      %60 = arith.addf %44, %59 : vector<128x128xf32>
      %c16_i32_78 = arith.constant 16 : i32
      %61 = arith.addi %c16_i32_78, %24 : i32
      %c1_i32_79 = arith.constant 1 : i32
      %62 = arith.addi %61, %c1_i32_79 : i32
      %63 = arith.index_cast %62 : i32 to index
      %c15_80 = arith.constant 15 : index
      %c0_81 = arith.constant 0 : index
      %64 = vector.load %arg8[%63, %c15_80, %c0_81] : memref<64x64x128xbf16, #tpu.memory_space<vmem>>, vector<4x32x128xbf16>
      %65 = vector.shape_cast %64 : vector<4x32x128xbf16> to vector<128x128xbf16>
      %66 = arith.index_cast %62 : i32 to index
      %c16_82 = arith.constant 16 : index
      %c0_83 = arith.constant 0 : index
      %67 = vector.load %arg8[%66, %c16_82, %c0_83] : memref<64x64x128xbf16, #tpu.memory_space<vmem>>, vector<4x32x128xbf16>
      %68 = vector.shape_cast %67 : vector<4x32x128xbf16> to vector<128x128xbf16>
      %69 = arith.index_cast %62 : i32 to index
      %c17_84 = arith.constant 17 : index
      %c0_85 = arith.constant 0 : index
      %70 = vector.load %arg8[%69, %c17_84, %c0_85] : memref<64x64x128xbf16, #tpu.memory_space<vmem>>, vector<4x32x128xbf16>
      %71 = vector.shape_cast %70 : vector<4x32x128xbf16> to vector<128x128xbf16>
      %72 = tpu.concatenate %65, %68, %71 in 1 : vector<128x128xbf16>, vector<128x128xbf16>, vector<128x128xbf16> -> vector<128x384xbf16>
      %c5_86 = arith.constant 5 : index
      %c2 = arith.constant 2 : index
      %c0_87 = arith.constant 0 : index
      %c0_88 = arith.constant 0 : index
      %73 = vector.load %arg2[%c5_86, %c2, %c0_87, %c0_88] : memref<6x3x384x128xbf16, #tpu.memory_space<vmem>>, vector<1x1x384x128xbf16>
      %74 = vector.shape_cast %73 : vector<1x1x384x128xbf16> to vector<384x128xbf16>
      %cst_89 = arith.constant dense<0.000000e+00> : vector<128x128xf32>
      %75 = tpu.matmul %72, %74, %cst_89 {dimension_numbers = #tpu.dot_dimension_numbers<[1], [0], [0], [1], [0, 0, 1, 1], [], []>} : vector<128x384xbf16>, vector<384x128xbf16>, vector<128x128xf32> -> vector<128x128xf32>
      %76 = arith.addf %60, %75 : vector<128x128xf32>
      %cst_90 = arith.constant 0.000000e+00 : f32
      %77 = vector.broadcast %cst_90 : f32 to vector<128x128xf32>
      %78 = arith.cmpf ogt, %76, %77 : vector<128x128xf32>
      %cst_91 = arith.constant 1.000000e-01 : f32
      %79 = vector.broadcast %cst_91 : f32 to vector<128x128xf32>
      %80 = arith.mulf %79, %76 : vector<128x128xf32>
      %81 = arith.select %78, %76, %80 : vector<128x128xi1>, vector<128x128xf32>
      %82 = arith.truncf %81 : vector<128x128xf32> to vector<128x128xbf16>
      %83 = vector.shape_cast %82 : vector<128x128xbf16> to vector<4x32x128xbf16>
      %c16_i32_92 = arith.constant 16 : i32
      %84 = arith.addi %c16_i32_92, %24 : i32
      %85 = arith.index_cast %84 : i32 to index
      %c16_93 = arith.constant 16 : index
      %c0_94 = arith.constant 0 : index
      %86 = vector.load %arg7[%85, %c16_93, %c0_94] : memref<64x64x128xbf16, #tpu.memory_space<vmem>>, vector<4x32x128xbf16>
      tpu.vector_store %arg7[%85, %c16_93, %c0_94], %83 {strides = array<i32>} : memref<64x64x128xbf16, #tpu.memory_space<vmem>>, vector<4x32x128xbf16>,
    }
    %c8_i32_51 = arith.constant 8 : i32
    %c0_i32_52 = arith.constant 0 : i32
    %c8_i32_53 = arith.constant 8 : i32
    %22 = arith.addi %c0_i32_52, %c8_i32_53 : i32
    %c1_i32_54 = arith.constant 1 : i32
    scf.for %arg9 = %c0_i32_52 to %22 step %c1_i32_54  : i32 {
      %c4_i32 = arith.constant 4 : i32
      %23 = arith.muli %arg9, %c4_i32 : i32
      %24 = tpu.assume_multiple %23, 4 : i32
      %c0_56 = arith.constant 0 : index
      %c0_57 = arith.constant 0 : index
      %25 = vector.load %arg5[%c0_56, %c0_57] : memref<1x4xf32, #tpu.memory_space<vmem>>, vector<1x4xf32>
      %26 = vector.shape_cast %25 : vector<1x4xf32> to vector<4xf32>
      %27 = vector.shape_cast %26 : vector<4xf32> to vector<1x4xf32>
      %28 = vector.broadcast %27 : vector<1x4xf32> to vector<128x4xf32>
      %c16_i32 = arith.constant 16 : i32
      %29 = arith.addi %c16_i32, %24 : i32
      %c-1_i32 = arith.constant -1 : i32
      %30 = arith.addi %29, %c-1_i32 : i32
      %31 = arith.index_cast %30 : i32 to index
      %c15 = arith.constant 15 : index
      %c0_58 = arith.constant 0 : index
      %32 = vector.load %arg7[%31, %c15, %c0_58] : memref<64x64x128xbf16, #tpu.memory_space<vmem>>, vector<4x32x128xbf16>
      %33 = vector.shape_cast %32 : vector<4x32x128xbf16> to vector<128x128xbf16>
      %34 = arith.index_cast %30 : i32 to index
      %c16_59 = arith.constant 16 : index
      %c0_60 = arith.constant 0 : index
      %35 = vector.load %arg7[%34, %c16_59, %c0_60] : memref<64x64x128xbf16, #tpu.memory_space<vmem>>, vector<4x32x128xbf16>
      %36 = vector.shape_cast %35 : vector<4x32x128xbf16> to vector<128x128xbf16>
      %37 = arith.index_cast %30 : i32 to index
      %c17 = arith.constant 17 : index
      %c0_61 = arith.constant 0 : index
      %38 = vector.load %arg7[%37, %c17, %c0_61] : memref<64x64x128xbf16, #tpu.memory_space<vmem>>, vector<4x32x128xbf16>
      %39 = vector.shape_cast %38 : vector<4x32x128xbf16> to vector<128x128xbf16>
      %40 = tpu.concatenate %33, %36, %39 in 1 : vector<128x128xbf16>, vector<128x128xbf16>, vector<128x128xbf16> -> vector<128x384xbf16>
      %c0_62 = arith.constant 0 : index
      %c0_63 = arith.constant 0 : index
      %c0_64 = arith.constant 0 : index
      %41 = vector.load %arg4[%c0_62, %c0_63, %c0_64] : memref<3x384x4xbf16, #tpu.memory_space<vmem>>, vector<1x384x4xbf16>
      %42 = vector.shape_cast %41 : vector<1x384x4xbf16> to vector<384x4xbf16>
      %cst_65 = arith.constant dense<0.000000e+00> : vector<128x4xf32>
      %43 = tpu.matmul %40, %42, %cst_65 {dimension_numbers = #tpu.dot_dimension_numbers<[1], [0], [0], [1], [0, 0, 1, 1], [], []>} : vector<128x384xbf16>, vector<384x4xbf16>, vector<128x4xf32> -> vector<128x4xf32>
      %44 = arith.addf %28, %43 : vector<128x4xf32>
      %c16_i32_66 = arith.constant 16 : i32
      %45 = arith.addi %c16_i32_66, %24 : i32
      %c0_i32_67 = arith.constant 0 : i32
      %46 = arith.addi %45, %c0_i32_67 : i32
      %47 = arith.index_cast %46 : i32 to index
      %c15_68 = arith.constant 15 : index
      %c0_69 = arith.constant 0 : index
      %48 = vector.load %arg7[%47, %c15_68, %c0_69] : memref<64x64x128xbf16, #tpu.memory_space<vmem>>, vector<4x32x128xbf16>
      %49 = vector.shape_cast %48 : vector<4x32x128xbf16> to vector<128x128xbf16>
      %50 = arith.index_cast %46 : i32 to index
      %c16_70 = arith.constant 16 : index
      %c0_71 = arith.constant 0 : index
      %51 = vector.load %arg7[%50, %c16_70, %c0_71] : memref<64x64x128xbf16, #tpu.memory_space<vmem>>, vector<4x32x128xbf16>
      %52 = vector.shape_cast %51 : vector<4x32x128xbf16> to vector<128x128xbf16>
      %53 = arith.index_cast %46 : i32 to index
      %c17_72 = arith.constant 17 : index
      %c0_73 = arith.constant 0 : index
      %54 = vector.load %arg7[%53, %c17_72, %c0_73] : memref<64x64x128xbf16, #tpu.memory_space<vmem>>, vector<4x32x128xbf16>
      %55 = vector.shape_cast %54 : vector<4x32x128xbf16> to vector<128x128xbf16>
      %56 = tpu.concatenate %49, %52, %55 in 1 : vector<128x128xbf16>, vector<128x128xbf16>, vector<128x128xbf16> -> vector<128x384xbf16>
      %c1 = arith.constant 1 : index
      %c0_74 = arith.constant 0 : index
      %c0_75 = arith.constant 0 : index
      %57 = vector.load %arg4[%c1, %c0_74, %c0_75] : memref<3x384x4xbf16, #tpu.memory_space<vmem>>, vector<1x384x4xbf16>
      %58 = vector.shape_cast %57 : vector<1x384x4xbf16> to vector<384x4xbf16>
      %cst_76 = arith.constant dense<0.000000e+00> : vector<128x4xf32>
      %59 = tpu.matmul %56, %58, %cst_76 {dimension_numbers = #tpu.dot_dimension_numbers<[1], [0], [0], [1], [0, 0, 1, 1], [], []>} : vector<128x384xbf16>, vector<384x4xbf16>, vector<128x4xf32> -> vector<128x4xf32>
      %60 = arith.addf %44, %59 : vector<128x4xf32>
      %c16_i32_77 = arith.constant 16 : i32
      %61 = arith.addi %c16_i32_77, %24 : i32
      %c1_i32_78 = arith.constant 1 : i32
      %62 = arith.addi %61, %c1_i32_78 : i32
      %63 = arith.index_cast %62 : i32 to index
      %c15_79 = arith.constant 15 : index
      %c0_80 = arith.constant 0 : index
      %64 = vector.load %arg7[%63, %c15_79, %c0_80] : memref<64x64x128xbf16, #tpu.memory_space<vmem>>, vector<4x32x128xbf16>
      %65 = vector.shape_cast %64 : vector<4x32x128xbf16> to vector<128x128xbf16>
      %66 = arith.index_cast %62 : i32 to index
      %c16_81 = arith.constant 16 : index
      %c0_82 = arith.constant 0 : index
      %67 = vector.load %arg7[%66, %c16_81, %c0_82] : memref<64x64x128xbf16, #tpu.memory_space<vmem>>, vector<4x32x128xbf16>
      %68 = vector.shape_cast %67 : vector<4x32x128xbf16> to vector<128x128xbf16>
      %69 = arith.index_cast %62 : i32 to index
      %c17_83 = arith.constant 17 : index
      %c0_84 = arith.constant 0 : index
      %70 = vector.load %arg7[%69, %c17_83, %c0_84] : memref<64x64x128xbf16, #tpu.memory_space<vmem>>, vector<4x32x128xbf16>
      %71 = vector.shape_cast %70 : vector<4x32x128xbf16> to vector<128x128xbf16>
      %72 = tpu.concatenate %65, %68, %71 in 1 : vector<128x128xbf16>, vector<128x128xbf16>, vector<128x128xbf16> -> vector<128x384xbf16>
      %c2 = arith.constant 2 : index
      %c0_85 = arith.constant 0 : index
      %c0_86 = arith.constant 0 : index
      %73 = vector.load %arg4[%c2, %c0_85, %c0_86] : memref<3x384x4xbf16, #tpu.memory_space<vmem>>, vector<1x384x4xbf16>
      %74 = vector.shape_cast %73 : vector<1x384x4xbf16> to vector<384x4xbf16>
      %cst_87 = arith.constant dense<0.000000e+00> : vector<128x4xf32>
      %75 = tpu.matmul %72, %74, %cst_87 {dimension_numbers = #tpu.dot_dimension_numbers<[1], [0], [0], [1], [0, 0, 1, 1], [], []>} : vector<128x384xbf16>, vector<384x4xbf16>, vector<128x4xf32> -> vector<128x4xf32>
      %76 = arith.addf %60, %75 : vector<128x4xf32>
      %77 = tpu.iota {dimensions = array<i32: 1>} : vector<128x4xi32>
      %c3_i32 = arith.constant 3 : i32
      %78 = vector.broadcast %c3_i32 : i32 to vector<128x4xi32>
      %79 = arith.cmpi eq, %77, %78 : vector<128x4xi32>
      %80 = arith.negf %76 : vector<128x4xf32>
      %81 = math.exp %80 : vector<128x4xf32>
      %cst_88 = arith.constant 1.000000e+00 : f32
      %82 = vector.broadcast %cst_88 : f32 to vector<128x4xf32>
      %83 = arith.addf %82, %81 : vector<128x4xf32>
      %84 = arith.divf %82, %83 : vector<128x4xf32>
      %cst_89 = arith.constant 3.000000e-01 : f32
      %85 = vector.broadcast %cst_89 : f32 to vector<128x4xf32>
      %86 = arith.mulf %84, %85 : vector<128x4xf32>
      %87 = arith.select %79, %86, %76 : vector<128x4xi1>, vector<128x4xf32>
      %88 = vector.shape_cast %87 : vector<128x4xf32> to vector<4x32x4xf32>
      %c0_90 = arith.constant 0 : index
      %89 = arith.index_cast %24 : i32 to index
      %c0_91 = arith.constant 0 : index
      %c0_92 = arith.constant 0 : index
      %90 = vector.load %arg6[%c0_90, %89, %c0_91, %c0_92] : memref<1x32x32x4xf32, #tpu.memory_space<vmem>>, vector<1x4x32x4xf32>
      %91 = vector.shape_cast %90 : vector<1x4x32x4xf32> to vector<4x32x4xf32>
      %92 = vector.shape_cast %88 : vector<4x32x4xf32> to vector<1x4x32x4xf32>
      tpu.vector_store %arg6[%c0_90, %89, %c0_91, %c0_92], %92 {strides = array<i32>} : memref<1x32x32x4xf32, #tpu.memory_space<vmem>>, vector<1x4x32x4xf32>,
    }
    %c8_i32_55 = arith.constant 8 : i32
    return
  }
  func.func @transform_0(%arg0: i32) -> (i32, i32, i32, i32) {
    %c0_i32 = arith.constant 0 : i32
    %c0_i32_0 = arith.constant 0 : i32
    %c0_i32_1 = arith.constant 0 : i32
    %c0_i32_2 = arith.constant 0 : i32
    return %arg0, %c0_i32, %c0_i32_0, %c0_i32_1 : i32, i32, i32, i32
  }
  func.func @transform_1(%arg0: i32) -> (i32, i32, i32, i32) {
    %c0_i32 = arith.constant 0 : i32
    %c0_i32_0 = arith.constant 0 : i32
    %c0_i32_1 = arith.constant 0 : i32
    %c0_i32_2 = arith.constant 0 : i32
    %c0_i32_3 = arith.constant 0 : i32
    return %c0_i32, %c0_i32_0, %c0_i32_1, %c0_i32_2 : i32, i32, i32, i32
  }
  func.func @transform_2(%arg0: i32) -> (i32, i32) {
    %c0_i32 = arith.constant 0 : i32
    %c0_i32_0 = arith.constant 0 : i32
    %c0_i32_1 = arith.constant 0 : i32
    return %c0_i32, %c0_i32_0 : i32, i32
  }
  func.func @transform_3(%arg0: i32) -> (i32, i32, i32) {
    %c0_i32 = arith.constant 0 : i32
    %c0_i32_0 = arith.constant 0 : i32
    %c0_i32_1 = arith.constant 0 : i32
    %c0_i32_2 = arith.constant 0 : i32
    return %c0_i32, %c0_i32_0, %c0_i32_1 : i32, i32, i32
  }
  func.func @transform_4(%arg0: i32) -> (i32, i32) {
    %c0_i32 = arith.constant 0 : i32
    %c0_i32_0 = arith.constant 0 : i32
    %c0_i32_1 = arith.constant 0 : i32
    return %c0_i32, %c0_i32_0 : i32, i32
  }
  func.func @transform_5(%arg0: i32) -> (i32, i32, i32, i32) {
    %c0_i32 = arith.constant 0 : i32
    %c0_i32_0 = arith.constant 0 : i32
    %c0_i32_1 = arith.constant 0 : i32
    %c0_i32_2 = arith.constant 0 : i32
    return %arg0, %c0_i32, %c0_i32_0, %c0_i32_1 : i32, i32, i32, i32
  }
}

</mosaic_0001>

<bundles_post_ra>
// kernel: tpu_custom_call.1
= control target key start
LH: loop header
LB: loop body
LE: loop exit
PB: predicated region body
PF: predicated region fallthrough
CT: control target
= control target key end

     0   :  { %10 = vsyncpa [#allocation5], 0  ;;  %s21553_s0 = inlined_call_operand.hbm [shape: f32[2,32,32,128], index: 0, kind: input, shape index: {}]   ;;  %s21554_s1 = inlined_call_operand.hbm [shape: bf16[6,3,384,128], index: 1, kind: input, shape index: {}]   ;;  %s21555_s2 = inlined_call_operand.hbm [shape: f32[6,128], index: 2, kind: input, shape index: {}]   ;;  %s21556_s3 = inlined_call_operand.vmem [shape: bf16[3,384,4], index: 3, kind: input, shape index: {}]   ;;  %s21557_s4 = inlined_call_operand.hbm [shape: f32[1,4], index: 4, kind: input, shape index: {}]   ;;  %s21558_s5 = inlined_call_operand.vmem [shape: f32[2,32,32,4], index: 5, kind: output, shape index: {}]  }
   0x1   :  { %12 = vsyncpa [#allocation5 + $0x1], 0 }
   0x2   :  { %13 = vsyncpa [#allocation7], 0 }
   0x3   :  { %14 = vsyncpa [#allocation10], 0  ;;  %s17965_s18 = smov 0   ;;  %s17967_s19 = smov 0  }
   0x4   :  { %s17969_s20 = smov 0   ;;  %s17971_s21 = smov 0  }
   0x5 LB: > { %s17984_s22 = sadd.s32 4294967295, %s17896_s21   ;;  %p40_p0 = scmp.ne.s32.totalorder %s17888_s19, %s17884_s18  ;;  %s17896_s21 = sphi %s17971_s21, %s21576_s21   ;;  %s17892_s20 = sphi %s17969_s20, %s21575_s20   ;;  %s17888_s19 = sphi %s17967_s19, %s21574_s19   ;;  %s17884_s18 = sphi %s17965_s18, %s21573_s18  }
   0x6   : > { %p21559_p1 = scmp.eq.s32.totalorder %s17984_s22, 0  ;;  %p12709_p2 = scmp.ge.s32.totalorder %s17896_s21, 1 }
   0x7   : > { %p161_p3 = scmp.lt.s32.totalorder %s17896_s21, 3  ;;  %s17926_s25 = smov [#allocation6]  }
   0x8   : > { %p17992_p4 = por %p21559_p1, %p40_p0  ;;  %s173_s26 = sshll.u32 %s17926_s25, 4  ;;  %s18000_s26 = int_to_ptr.vmem [resolvable:$true] %s173_s26 }
   0x9   : > { %p17996_p5 = pnand %p12709_p2, %p161_p3  ;;  %s17927_s28 = smov [#allocation8]  }
   0xa   : > { %s21562_s23 = scalar_select %p17992_p4, 1, 0 }
   0xb   : > { %s21563_s24 = scalar_select %p17996_p5, 1, 0 }
   0xc   : > { %p17027_p6 = pneg %p17996_p5  ;;  %s187_s29 = sshll.u32 %s17927_s28, 4  ;;  %s18010_s29 = int_to_ptr.vmem [resolvable:$true] %s187_s29 }
   0xd   : > { %s17928_s30 = smov [#allocation9]   ;;  %s17712_s9 = scalar_lea.hbm %s21554_s1, 55296 }
   0xe   : > { %p18006_p7 = pnand %p17027_p6, %p21559_p1  ;;  %s18012_s6 = sshll.u32 %s17928_s30, 4  ;;  %s202_s6 = int_to_ptr.vmem [resolvable:$true] %s18012_s6 }
   0xf   : > { %p17713_p8 = scmp.ne.s32.totalorder %s21554_s1, %s17712_s9  ;;  %p17719_p12 = scmp.lt.u32.totalorder %s17712_s9, %s21554_s1 }
  0x10   : > { %p18022_p9 = pneg %p18006_p7 }
  0x12   : > { %p17715_p10 = pnand %p18022_p9, %p17713_p8 }
  0x14   : > { %p17716_p11 = pneg %p17715_p10 }
  0x16   : > { %p17721_p13 = pnand %p17719_p12, %p17716_p11 }
  0x18   : > { %17724 = shalt.err (!%p17721_p13)
}
  0x19   : > { %s17725_s15 = scalar_lea.vmem %s18000_s26, 55296  ;;  %p17733_p6 = scmp.lt.s32.totalorder %s18000_s26, %s18000_s26 }
  0x1a   : > { %p17726_p0 = scmp.ne.s32.totalorder %s18000_s26, %s17725_s15  ;;  %p17734_p1 = scmp.lt.s32.totalorder %s17725_s15, %s17725_s15 }
  0x1c   : > { %p17728_p2 = pnand %p17726_p0, %p18022_p9  ;;  %p17735_p8 = por %p17734_p1, %p17733_p6 }
  0x1e   : > { %p17729_p3 = pneg %p17728_p2 }
  0x20   : > { %p17736_p10 = pnand %p17735_p8, %p17729_p3 }
  0x22   : > { %17739 = shalt.err (!%p17736_p10)
}
  0x23   : > { %s17929_s16 = smov 64   ;;  %s17930_s17 = smov 4  }
  0x24   : > { %17030 = dma.hbm_to_vmem [thread:$0]  (!%p18006_p7), %s21554_s1, 55296, %s18000_s26, [#allocation7], %s17929_s16, %s17929_s16, %s17930_s17  }
  0x25   : > { %s17740_s7 = scalar_lea.hbm %s21555_s2, 128 }
  0x26   : > { %p17741_p1 = scmp.ne.s32.totalorder %s21555_s2, %s17740_s7  ;;  %p17747_p13 = scmp.lt.u32.totalorder %s17740_s7, %s21555_s2 }
  0x28   : > { %p17743_p11 = pnand %p17741_p1, %p18022_p9 }
  0x2a   : > { %p17744_p12 = pneg %p17743_p11 }
  0x2c   : > { %p17749_p0 = pnand %p17747_p13, %p17744_p12 }
  0x2e   : > { %17752 = shalt.err (!%p17749_p0)
}
  0x2f   : > { %s17753_s26 = scalar_lea.vmem %s18010_s29, 128  ;;  %p17761_p8 = scmp.lt.s32.totalorder %s18010_s29, %s18010_s29 }
  0x30   : > { %p17754_p2 = scmp.ne.s32.totalorder %s18010_s29, %s17753_s26  ;;  %p17762_p10 = scmp.lt.s32.totalorder %s17753_s26, %s17753_s26 }
  0x32   : > { %p17756_p3 = pnand %p17754_p2, %p18022_p9  ;;  %p17763_p1 = por %p17762_p10, %p17761_p8 }
  0x34   : > { %p17757_p6 = pneg %p17756_p3 }
  0x36   : > { %p17764_p11 = pnand %p17763_p1, %p17757_p6 }
  0x38   : > { %17767 = shalt.err (!%p17764_p11)
}
  0x39   : > { %17033 = dma.hbm_to_vmem [thread:$0]  (!%p18006_p7), %s21555_s2, 128, %s18010_s29, [#allocation7]  }
  0x3a   : > { %s17768_s17 = scalar_lea.hbm %s21557_s4, 16 }
  0x3b   : > { %p17769_p12 = scmp.ne.s32.totalorder %s21557_s4, %s17768_s17  ;;  %p17775_p2 = scmp.lt.u32.totalorder %s17768_s17, %s21557_s4 }
  0x3d   : > { %p17771_p13 = pnand %p17769_p12, %p18022_p9 }
  0x3f   : > { %p17772_p0 = pneg %p17771_p13 }
  0x41   : > { %p17777_p3 = pnand %p17775_p2, %p17772_p0 }
  0x43   : > { %17780 = shalt.err (!%p17777_p3)
}
  0x44   : > { %s17781_s7 = scalar_lea.vmem %s202_s6, 16  ;;  %s17788_s29 = scalar_lea.vmem %s202_s6, 32 }
  0x45   : > { %p17782_p6 = scmp.ne.s32.totalorder %s202_s6, %s17781_s7  ;;  %p17789_p1 = scmp.lt.s32.totalorder %s202_s6, %s202_s6 }
  0x46   : > { %p17790_p11 = scmp.lt.s32.totalorder %s17788_s29, %s17781_s7 }
  0x47   : > { %p17784_p8 = pnand %p17782_p6, %p18022_p9 }
  0x48   : > { %p17791_p4 = por %p17790_p11, %p17789_p1 }
  0x49   : > { %p17785_p10 = pneg %p17784_p8 }
  0x4b   : > { %p17792_p5 = pnand %p17791_p4, %p17785_p10 }
  0x4d   : > { %17795 = shalt.err (!%p17792_p5)
}
  0x4e   : > { %17036 = dma.hbm_to_vmem [thread:$0]  (!%p18006_p7), %s21557_s4, 16, %s202_s6, [#allocation10]  }
  0x4f   : > { %s18086_s12 = sadd.s32 1, %s17896_s21   ;;  %s27_s11 = sadd.s32 1, %s17892_s20 }
  0x50   : > { %s24_s10 = ssub.s32 %s17896_s21, %s18086_s12  ;;  %p34_p5 = scmp.ne.s32.totalorder %s17892_s20, %s17888_s19 }
  0x51   : > { %p25_p4 = scmp.eq.s32.totalorder %s24_s10, 0  ;;  %p35_p9 = scmp.eq.s32.totalorder %s17896_s21, 0 }
  0x52   : > { %p17044_p12 = scmp.lt.s32.totalorder %s17896_s21, 2  ;;  %s212_s26 = sand.u32 1, %s17892_s20  }
  0x53   : > { %s18096_s27 = scalar_select %p25_p4, %s17892_s20, %s27_s11  }
  0x54   : > { %p36_p13 = por %p35_p9, %p34_p5  ;;  %s12714_s13 = sshll.u32 %s212_s26, 10 }
  0x55   : > { %s13846_s14 = sshll.u32 %s17896_s21, 14  ;;  %s216_s6 = scalar_lea.vmem [#allocation4], %s12714_s13 }
  0x56   : > { %s18103_s17 = scalar_lea.hbm %s21553_s0, %s13846_s14  ;;  %s223_s18 = sshll.u32 %s216_s6, 4  ;;  %s18105_s18 = int_to_ptr.vmem [resolvable:$true] %s223_s18 }
  0x57   : > { %p18107_p7 = pnand %p17044_p12, %p36_p13  ;;  %s18111_s21 = scalar_lea.sflag [#allocation5], %s212_s26 }
  0x58   : > { %s17796_s28 = scalar_lea.hbm %s18103_s17, 16384  ;;  %s17801_s29 = scalar_lea.hbm %s21553_s0, 32768 }
  0x59   : > { %p17797_p0 = scmp.ne.s32.totalorder %s18103_s17, %s17796_s28  ;;  %p17798_p2 = pneg %p18107_p7 }
  0x5a   : > { %p17802_p8 = scmp.lt.u32.totalorder %s18103_s17, %s21553_s0  ;;  %p17803_p10 = scmp.lt.u32.totalorder %s17801_s29, %s17796_s28 }
  0x5b   : > { %p17799_p3 = pnand %p17798_p2, %p17797_p0  ;;  %p17805_p11 = scmp.lt.u32.totalorder %s17796_s28, %s18103_s17 }
  0x5c   : > { %p17804_p1 = por %p17803_p10, %p17802_p8 }
  0x5d   : > { %p17800_p6 = pneg %p17799_p3 }
  0x5e   : > { %p17806_p4 = por %p17805_p11, %p17804_p1 }
  0x60   : > { %p17807_p5 = pnand %p17806_p4, %p17800_p6 }
  0x62   : > { %17810 = shalt.err (!%p17807_p5)
}
  0x63   : > { %s17811_s10 = scalar_lea.vmem %s18105_s18, 16384  ;;  %s17931_s11 = smov [#allocation4]  }
  0x64   : > { %p17812_p9 = scmp.ne.s32.totalorder %s18105_s18, %s17811_s10  ;;  %s17816_s26 = sshll.u32 %s17931_s11, 4  ;;  %s17817_s26 = int_to_ptr.vmem [resolvable:$false] %s17816_s26 }
  0x65   : > { %s17818_s13 = scalar_lea.vmem %s17817_s26, 32768  ;;  %p17819_p0 = scmp.lt.s32.totalorder %s18105_s18, %s17817_s26 }
  0x66   : > { %p17814_p12 = pnand %p17812_p9, %p17798_p2  ;;  %p17820_p3 = scmp.lt.s32.totalorder %s17818_s13, %s17811_s10 }
  0x68   : > { %p17815_p13 = pneg %p17814_p12  ;;  %p17821_p8 = por %p17820_p3, %p17819_p0 }
  0x6a   : > { %p17822_p10 = pnand %p17821_p8, %p17815_p13 }
  0x6c   : > { %17825 = shalt.err (!%p17822_p10)
}
  0x6d   : > { %s17932_s14 = smov 128   ;;  %s17933_s15 = smov 8  }
  0x6e   : > { %17040 = dma.hbm_to_vmem [thread:$0]  (!%p18107_p7), %s18103_s17, 16384, %s18105_s18, %s18111_s21, %s17932_s14, %s17932_s14, %s17933_s15  }
  0x6f   : > { %p21567_p2 = scmp.ne.s32.totalorder %s21563_s24, 0 }
  0x70   : > { %s237_s16 = sand.u32 (!%p21567_p2), 1, %s17888_s19   ;;  %p21568_p6 = scmp.ne.s32.totalorder (!%p21567_p2), %s21562_s23, 0 }
  0x71   : > { %235 = sbr.rel (%p21567_p2) target bundleno = 3175 (0xc67), region = 40  ;;  %s12718_s6 = sshll.u32 (!%p21567_p2), %s237_s16, 10 }
  0x72   : > { %s238_s28 = scalar_lea.sflag (!%p21567_p2), [#allocation5], %s237_s16  ;;  %s18142_s30 = scalar_lea.vmem (!%p21567_p2), [#allocation4], %s12718_s6 }
  0x78   : > { %17871 = dma.done.wait (%p21568_p6), %s238_s28, 16384  }
  0x79   : > { %17873 = vsyncadd (%p21568_p6), %s238_s28, 4294950912  ;;  %p21569_p1 = scmp.eq.s32.totalorder %s17984_s22, 0 }
  0x7b   : > { %17875 = dma.done.wait (%p21569_p1), [#allocation7], 55424   ;;  %p21570_p7 = pmov %p21569_p1 }
  0x7c   : > { %p21571_p11 = pmov %p21569_p1 }
  0x7d   : > { %17877 = vsyncadd (%p21570_p7), [#allocation7], 4294911872 }
  0x7e   : > { %17879 = dma.done.wait (%p21571_p11), [#allocation10], 16   ;;  %p21572_p4 = pmov %p21569_p1 }
  0x7f   : > { %p280_p5 = scmp.lt.s32.totalorder %s17984_s22, 1  ;;  %v17934_v0 = vmov 0   ;;  %v674_v1 = vld [vmem:[%s18142_s30] sm:$0xff]  ;;  %v675_v2 = vld [vmem:[%s18142_s30 + $0x8] sm:$0xff]  ;;  %v676_v3 = vld [vmem:[%s18142_s30 + $0x10] sm:$0xff] }
  0x80   : > { %17881 = vsyncadd (%p21572_p4), [#allocation10], 4294967280  ;;  %286 = vst [vmem:[#allocation2] sm:$0xff] %v17934_v0  ;;  %v802_v4 = vpack.c.bf16 %v675_v2, %v674_v1  ;;  %v677_v5 = vld [vmem:[%s18142_s30 + $0x18] sm:$0xff]  ;;  %v678_v6 = vld [vmem:[%s18142_s30 + $0x20] sm:$0xff] }
  0x81   : > { %287 = vst [vmem:[#allocation2 + $0x8] sm:$0xff] %v17934_v0  ;;  %288 = vst [vmem:[#allocation2 + $0x10] sm:$0xff] %v17934_v0  ;;  %s21578_s22 = smov (!%p280_p5, %s17984_s22), 1  ;;  %v679_v7 = vld [vmem:[%s18142_s30 + $0x28] sm:$0xff]  ;;  %v803_v8 = vpack.c.bf16 %v677_v5, %v676_v3  ;;  %v680_v10 = vld [vmem:[%s18142_s30 + $0x30] sm:$0xff] }
  0x82   : > { %289 = vst [vmem:[#allocation2 + $0x18] sm:$0xff] %v17934_v0  ;;  %290 = vst [vmem:[#allocation2 + $0x20] sm:$0xff] %v17934_v0  ;;  %s13847_s23 = sshll.u32 %s21578_s22, 10  ;;  %v804_v9 = vpack.c.bf16 %v679_v7, %v678_v6  ;;  %v681_v11 = vld [vmem:[%s18142_s30 + $0x38] sm:$0xff]  ;;  %v682_v12 = vld [vmem:[%s18142_s30 + $0x40] sm:$0xff]  ;;  %s18677_s22 = smov 0  }
  0x83   : > { %291 = vst [vmem:[#allocation2 + $0x28] sm:$0xff] %v17934_v0  ;;  %292 = vst [vmem:[#allocation2 + $0x30] sm:$0xff] %v17934_v0  ;;  %s18547_s18 = scalar_lea.vmem %s21558_s5, %s13847_s23  ;;  %v805_v13 = vpack.c.bf16 %v681_v11, %v680_v10  ;;  %v683_v14 = vld [vmem:[%s18142_s30 + $0x48] sm:$0xff]  ;;  %v684_v15 = vld [vmem:[%s18142_s30 + $0x50] sm:$0xff] }
  0x84   : > { %293 = vst [vmem:[#allocation2 + $0x38] sm:$0xff] %v17934_v0  ;;  %294 = vst [vmem:[#allocation2 + $0x40] sm:$0xff] %v17934_v0  ;;  %v685_v16 = vld [vmem:[%s18142_s30 + $0x58] sm:$0xff]  ;;  %v806_v17 = vpack.c.bf16 %v683_v14, %v682_v12  ;;  %v686_v19 = vld [vmem:[%s18142_s30 + $0x60] sm:$0xff] }
  0x85   : > { %295 = vst [vmem:[#allocation2 + $0x48] sm:$0xff] %v17934_v0  ;;  %296 = vst [vmem:[#allocation2 + $0x50] sm:$0xff] %v17934_v0  ;;  %v807_v18 = vpack.c.bf16 %v685_v16, %v684_v15  ;;  %v687_v20 = vld [vmem:[%s18142_s30 + $0x68] sm:$0xff]  ;;  %v688_v21 = vld [vmem:[%s18142_s30 + $0x70] sm:$0xff] }
  0x86   : > { %297 = vst [vmem:[#allocation2 + $0x58] sm:$0xff] %v17934_v0  ;;  %298 = vst [vmem:[#allocation2 + $0x60] sm:$0xff] %v17934_v0  ;;  %v808_v22 = vpack.c.bf16 %v687_v20, %v686_v19  ;;  %v689_v23 = vld [vmem:[%s18142_s30 + $0x78] sm:$0xff]  ;;  %v690_v24 = vld [vmem:[%s18142_s30 + $0x80] sm:$0xff] }
  0x87   : > { %299 = vst [vmem:[#allocation2 + $0x68] sm:$0xff] %v17934_v0  ;;  %300 = vst [vmem:[#allocation2 + $0x70] sm:$0xff] %v17934_v0  ;;  %v691_v25 = vld [vmem:[%s18142_s30 + $0x88] sm:$0xff]  ;;  %v809_v26 = vpack.c.bf16 %v689_v23, %v688_v21  ;;  %v692_v28 = vld [vmem:[%s18142_s30 + $0x90] sm:$0xff] }
  0x88   : > { %301 = vst [vmem:[#allocation2 + $0x78] sm:$0xff] %v17934_v0  ;;  %302 = vst [vmem:[#allocation2 + $0x80] sm:$0xff] %v17934_v0  ;;  %v810_v27 = vpack.c.bf16 %v691_v25, %v690_v24  ;;  %v693_v29 = vld [vmem:[%s18142_s30 + $0x98] sm:$0xff]  ;;  %v694_v30 = vld [vmem:[%s18142_s30 + $0xa0] sm:$0xff] }
  0x89   : > { %303 = vst [vmem:[#allocation2 + $0x88] sm:$0xff] %v17934_v0  ;;  %304 = vst [vmem:[#allocation2 + $0x90] sm:$0xff] %v17934_v0  ;;  %v811_v31 = vpack.c.bf16 %v693_v29, %v692_v28  ;;  %v695_v32 = vld [vmem:[%s18142_s30 + $0xa8] sm:$0xff]  ;;  %v696_v33 = vld [vmem:[%s18142_s30 + $0xb0] sm:$0xff] }
  0x8a   : > { %305 = vst [vmem:[#allocation2 + $0x98] sm:$0xff] %v17934_v0  ;;  %306 = vst [vmem:[#allocation2 + $0xa0] sm:$0xff] %v17934_v0  ;;  %v697_v34 = vld [vmem:[%s18142_s30 + $0xb8] sm:$0xff]  ;;  %v812_v35 = vpack.c.bf16 %v695_v32, %v694_v30  ;;  %v698_v37 = vld [vmem:[%s18142_s30 + $0xc0] sm:$0xff] }
  0x8b   : > { %307 = vst [vmem:[#allocation2 + $0xa8] sm:$0xff] %v17934_v0  ;;  %308 = vst [vmem:[#allocation2 + $0xb0] sm:$0xff] %v17934_v0  ;;  %v813_v36 = vpack.c.bf16 %v697_v34, %v696_v33  ;;  %v699_v38 = vld [vmem:[%s18142_s30 + $0xc8] sm:$0xff]  ;;  %v700_v39 = vld [vmem:[%s18142_s30 + $0xd0] sm:$0xff] }
  0x8c   : > { %309 = vst [vmem:[#allocation2 + $0xb8] sm:$0xff] %v17934_v0  ;;  %310 = vst [vmem:[#allocation2 + $0xc0] sm:$0xff] %v17934_v0  ;;  %v814_v40 = vpack.c.bf16 %v699_v38, %v698_v37  ;;  %v701_v41 = vld [vmem:[%s18142_s30 + $0xd8] sm:$0xff]  ;;  %v702_v42 = vld [vmem:[%s18142_s30 + $0xe0] sm:$0xff] }
  0x8d   : > { %311 = vst [vmem:[#allocation2 + $0xc8] sm:$0xff] %v17934_v0  ;;  %312 = vst [vmem:[#allocation2 + $0xd0] sm:$0xff] %v17934_v0  ;;  %v703_v43 = vld [vmem:[%s18142_s30 + $0xe8] sm:$0xff]  ;;  %v815_v44 = vpack.c.bf16 %v701_v41, %v700_v39  ;;  %v704_v46 = vld [vmem:[%s18142_s30 + $0xf0] sm:$0xff] }
  0x8e   : > { %313 = vst [vmem:[#allocation2 + $0xd8] sm:$0xff] %v17934_v0  ;;  %314 = vst [vmem:[#allocation2 + $0xe0] sm:$0xff] %v17934_v0  ;;  %v816_v45 = vpack.c.bf16 %v703_v43, %v702_v42  ;;  %v705_v47 = vld [vmem:[%s18142_s30 + $0xf8] sm:$0xff]  ;;  %v706_v48 = vld [vmem:[%s18142_s30 + $0x100] sm:$0xff] }
  0x8f   : > { %315 = vst [vmem:[#allocation2 + $0xe8] sm:$0xff] %v17934_v0  ;;  %316 = vst [vmem:[#allocation2 + $0xf0] sm:$0xff] %v17934_v0  ;;  %v817_v49 = vpack.c.bf16 %v705_v47, %v704_v46  ;;  %v707_v50 = vld [vmem:[%s18142_s30 + $0x108] sm:$0xff]  ;;  %v708_v51 = vld [vmem:[%s18142_s30 + $0x110] sm:$0xff] }
  0x90   : > { %317 = vst [vmem:[#allocation2 + $0xf8] sm:$0xff] %v17934_v0  ;;  %318 = vst [vmem:[#allocation2 + $0x100] sm:$0xff] %v17934_v0  ;;  %v709_v52 = vld [vmem:[%s18142_s30 + $0x118] sm:$0xff]  ;;  %v818_v53 = vpack.c.bf16 %v707_v50, %v706_v48  ;;  %v710_v55 = vld [vmem:[%s18142_s30 + $0x120] sm:$0xff] }
  0x91   : > { %319 = vst [vmem:[#allocation2 + $0x108] sm:$0xff] %v17934_v0  ;;  %320 = vst [vmem:[#allocation2 + $0x110] sm:$0xff] %v17934_v0  ;;  %v819_v54 = vpack.c.bf16 %v709_v52, %v708_v51  ;;  %v711_v56 = vld [vmem:[%s18142_s30 + $0x128] sm:$0xff]  ;;  %v712_v57 = vld [vmem:[%s18142_s30 + $0x130] sm:$0xff] }
  0x92   : > { %321 = vst [vmem:[#allocation2 + $0x118] sm:$0xff] %v17934_v0  ;;  %322 = vst [vmem:[#allocation2 + $0x120] sm:$0xff] %v17934_v0  ;;  %v820_v58 = vpack.c.bf16 %v711_v56, %v710_v55  ;;  %v713_v59 = vld [vmem:[%s18142_s30 + $0x138] sm:$0xff]  ;;  %v714_v60 = vld [vmem:[%s18142_s30 + $0x140] sm:$0xff] }
  0x93   : > { %323 = vst [vmem:[#allocation2 + $0x128] sm:$0xff] %v17934_v0  ;;  %324 = vst [vmem:[#allocation2 + $0x130] sm:$0xff] %v17934_v0  ;;  %v715_v61 = vld [vmem:[%s18142_s30 + $0x148] sm:$0xff]  ;;  %v821_v62 = vpack.c.bf16 %v713_v59, %v712_v57  ;;  %v717_v1 = vld [vmem:[%s18142_s30 + $0x158] sm:$0xff] }
  0x94   : > { %325 = vst [vmem:[#allocation2 + $0x138] sm:$0xff] %v17934_v0  ;;  %326 = vst [vmem:[#allocation2 + $0x140] sm:$0xff] %v17934_v0  ;;  %v822_v63 = vpack.c.bf16 %v715_v61, %v714_v60  ;;  %v718_v2 = vld [vmem:[%s18142_s30 + $0x160] sm:$0xff]  ;;  %v720_v5 = vld [vmem:[%s18142_s30 + $0x170] sm:$0xff] }
  0x95   : > { %327 = vst [vmem:[#allocation2 + $0x148] sm:$0xff] %v17934_v0  ;;  %328 = vst [vmem:[#allocation2 + $0x150] sm:$0xff] %v17934_v0  ;;  %v721_v6 = vld [vmem:[%s18142_s30 + $0x178] sm:$0xff]  ;;  %v723_v10 = vld [vmem:[%s18142_s30 + $0x188] sm:$0xff] }
  0x96   : > { %329 = vst [vmem:[#allocation2 + $0x158] sm:$0xff] %v17934_v0  ;;  %330 = vst [vmem:[#allocation2 + $0x160] sm:$0xff] %v17934_v0  ;;  %v724_v11 = vld [vmem:[%s18142_s30 + $0x190] sm:$0xff]  ;;  %v726_v14 = vld [vmem:[%s18142_s30 + $0x1a0] sm:$0xff] }
  0x97   : > { %331 = vst [vmem:[#allocation2 + $0x168] sm:$0xff] %v17934_v0  ;;  %332 = vst [vmem:[#allocation2 + $0x170] sm:$0xff] %v17934_v0  ;;  %v727_v15 = vld [vmem:[%s18142_s30 + $0x1a8] sm:$0xff]  ;;  %v729_v19 = vld [vmem:[%s18142_s30 + $0x1b8] sm:$0xff] }
  0x98   : > { %333 = vst [vmem:[#allocation2 + $0x178] sm:$0xff] %v17934_v0  ;;  %334 = vst [vmem:[#allocation2 + $0x180] sm:$0xff] %v17934_v0  ;;  %v730_v20 = vld [vmem:[%s18142_s30 + $0x1c0] sm:$0xff]  ;;  %v732_v23 = vld [vmem:[%s18142_s30 + $0x1d0] sm:$0xff] }
  0x99   : > { %335 = vst [vmem:[#allocation2 + $0x188] sm:$0xff] %v17934_v0  ;;  %336 = vst [vmem:[#allocation2 + $0x190] sm:$0xff] %v17934_v0  ;;  %v733_v24 = vld [vmem:[%s18142_s30 + $0x1d8] sm:$0xff]  ;;  %v735_v28 = vld [vmem:[%s18142_s30 + $0x1e8] sm:$0xff] }
  0x9a   : > { %337 = vst [vmem:[#allocation2 + $0x198] sm:$0xff] %v17934_v0  ;;  %338 = vst [vmem:[#allocation2 + $0x1a0] sm:$0xff] %v17934_v0  ;;  %v736_v29 = vld [vmem:[%s18142_s30 + $0x1f0] sm:$0xff]  ;;  %v738_v32 = vld [vmem:[%s18142_s30 + $0x200] sm:$0xff] }
  0x9b   : > { %339 = vst [vmem:[#allocation2 + $0x1a8] sm:$0xff] %v17934_v0  ;;  %340 = vst [vmem:[#allocation2 + $0x1b0] sm:$0xff] %v17934_v0  ;;  %v739_v33 = vld [vmem:[%s18142_s30 + $0x208] sm:$0xff]  ;;  %v741_v37 = vld [vmem:[%s18142_s30 + $0x218] sm:$0xff] }
  0x9c   : > { %341 = vst [vmem:[#allocation2 + $0x1b8] sm:$0xff] %v17934_v0  ;;  %342 = vst [vmem:[#allocation2 + $0x1c0] sm:$0xff] %v17934_v0  ;;  %v742_v38 = vld [vmem:[%s18142_s30 + $0x220] sm:$0xff]  ;;  %v744_v41 = vld [vmem:[%s18142_s30 + $0x230] sm:$0xff] }
  0x9d   : > { %343 = vst [vmem:[#allocation2 + $0x1c8] sm:$0xff] %v17934_v0  ;;  %344 = vst [vmem:[#allocation2 + $0x1d0] sm:$0xff] %v17934_v0  ;;  %v745_v42 = vld [vmem:[%s18142_s30 + $0x238] sm:$0xff]  ;;  %v747_v46 = vld [vmem:[%s18142_s30 + $0x248] sm:$0xff] }
  0x9e   : > { %345 = vst [vmem:[#allocation2 + $0x1d8] sm:$0xff] %v17934_v0  ;;  %346 = vst [vmem:[#allocation2 + $0x1e0] sm:$0xff] %v17934_v0  ;;  %v748_v47 = vld [vmem:[%s18142_s30 + $0x250] sm:$0xff]  ;;  %v750_v50 = vld [vmem:[%s18142_s30 + $0x260] sm:$0xff] }
  0x9f   : > { %347 = vst [vmem:[#allocation2 + $0x1e8] sm:$0xff] %v17934_v0  ;;  %348 = vst [vmem:[#allocation2 + $0x1f0] sm:$0xff] %v17934_v0  ;;  %v751_v51 = vld [vmem:[%s18142_s30 + $0x268] sm:$0xff]  ;;  %v753_v55 = vld [vmem:[%s18142_s30 + $0x278] sm:$0xff] }
  0xa0   : > { %349 = vst [vmem:[#allocation2 + $0x1f8] sm:$0xff] %v17934_v0  ;;  %351 = vst [vmem:[#allocation2 + $0x600] sm:$0xff] %v17934_v0  ;;  %v754_v56 = vld [vmem:[%s18142_s30 + $0x280] sm:$0xff]  ;;  %v756_v59 = vld [vmem:[%s18142_s30 + $0x290] sm:$0xff] }
  0xa1   : > { %352 = vst [vmem:[#allocation2 + $0x608] sm:$0xff] %v17934_v0  ;;  %353 = vst [vmem:[#allocation2 + $0x610] sm:$0xff] %v17934_v0  ;;  %v757_v60 = vld [vmem:[%s18142_s30 + $0x298] sm:$0xff] }
  0xa2   : > { %354 = vst [vmem:[#allocation2 + $0x618] sm:$0xff] %v17934_v0  ;;  %355 = vst [vmem:[#allocation2 + $0x620] sm:$0xff] %v17934_v0 }
  0xa3   : > { %356 = vst [vmem:[#allocation2 + $0x628] sm:$0xff] %v17934_v0  ;;  %357 = vst [vmem:[#allocation2 + $0x630] sm:$0xff] %v17934_v0 }
  0xa4   : > { %358 = vst [vmem:[#allocation2 + $0x638] sm:$0xff] %v17934_v0  ;;  %359 = vst [vmem:[#allocation2 + $0x640] sm:$0xff] %v17934_v0 }
  0xa5   : > { %360 = vst [vmem:[#allocation2 + $0x648] sm:$0xff] %v17934_v0  ;;  %361 = vst [vmem:[#allocation2 + $0x650] sm:$0xff] %v17934_v0 }
  0xa6   : > { %362 = vst [vmem:[#allocation2 + $0x658] sm:$0xff] %v17934_v0  ;;  %363 = vst [vmem:[#allocation2 + $0x660] sm:$0xff] %v17934_v0 }
  0xa7   : > { %364 = vst [vmem:[#allocation2 + $0x668] sm:$0xff] %v17934_v0  ;;  %365 = vst [vmem:[#allocation2 + $0x670] sm:$0xff] %v17934_v0 }
  0xa8   : > { %366 = vst [vmem:[#allocation2 + $0x678] sm:$0xff] %v17934_v0  ;;  %367 = vst [vmem:[#allocation2 + $0x680] sm:$0xff] %v17934_v0 }
  0xa9   : > { %368 = vst [vmem:[#allocation2 + $0x688] sm:$0xff] %v17934_v0  ;;  %369 = vst [vmem:[#allocation2 + $0x690] sm:$0xff] %v17934_v0 }
  0xaa   : > { %370 = vst [vmem:[#allocation2 + $0x698] sm:$0xff] %v17934_v0  ;;  %371 = vst [vmem:[#allocation2 + $0x6a0] sm:$0xff] %v17934_v0 }
  0xab   : > { %372 = vst [vmem:[#allocation2 + $0x6a8] sm:$0xff] %v17934_v0  ;;  %373 = vst [vmem:[#allocation2 + $0x6b0] sm:$0xff] %v17934_v0 }
  0xac   : > { %374 = vst [vmem:[#allocation2 + $0x6b8] sm:$0xff] %v17934_v0  ;;  %375 = vst [vmem:[#allocation2 + $0x6c0] sm:$0xff] %v17934_v0 }
  0xad   : > { %376 = vst [vmem:[#allocation2 + $0x6c8] sm:$0xff] %v17934_v0  ;;  %377 = vst [vmem:[#allocation2 + $0x6d0] sm:$0xff] %v17934_v0 }
  0xae   : > { %378 = vst [vmem:[#allocation2 + $0x6d8] sm:$0xff] %v17934_v0  ;;  %379 = vst [vmem:[#allocation2 + $0x6e0] sm:$0xff] %v17934_v0 }
  0xaf   : > { %380 = vst [vmem:[#allocation2 + $0x6e8] sm:$0xff] %v17934_v0  ;;  %381 = vst [vmem:[#allocation2 + $0x6f0] sm:$0xff] %v17934_v0 }
  0xb0   : > { %382 = vst [vmem:[#allocation2 + $0x6f8] sm:$0xff] %v17934_v0  ;;  %383 = vst [vmem:[#allocation2 + $0x700] sm:$0xff] %v17934_v0 }
  0xb1   : > { %384 = vst [vmem:[#allocation2 + $0x708] sm:$0xff] %v17934_v0  ;;  %385 = vst [vmem:[#allocation2 + $0x710] sm:$0xff] %v17934_v0 }
  0xb2   : > { %386 = vst [vmem:[#allocation2 + $0x718] sm:$0xff] %v17934_v0  ;;  %387 = vst [vmem:[#allocation2 + $0x720] sm:$0xff] %v17934_v0 }
  0xb3   : > { %388 = vst [vmem:[#allocation2 + $0x728] sm:$0xff] %v17934_v0  ;;  %389 = vst [vmem:[#allocation2 + $0x730] sm:$0xff] %v17934_v0 }
  0xb4   : > { %390 = vst [vmem:[#allocation2 + $0x738] sm:$0xff] %v17934_v0  ;;  %391 = vst [vmem:[#allocation2 + $0x740] sm:$0xff] %v17934_v0 }
  0xb5   : > { %392 = vst [vmem:[#allocation2 + $0x748] sm:$0xff] %v17934_v0  ;;  %393 = vst [vmem:[#allocation2 + $0x750] sm:$0xff] %v17934_v0 }
  0xb6   : > { %394 = vst [vmem:[#allocation2 + $0x758] sm:$0xff] %v17934_v0  ;;  %395 = vst [vmem:[#allocation2 + $0x760] sm:$0xff] %v17934_v0 }
  0xb7   : > { %396 = vst [vmem:[#allocation2 + $0x768] sm:$0xff] %v17934_v0  ;;  %397 = vst [vmem:[#allocation2 + $0x770] sm:$0xff] %v17934_v0 }
  0xb8   : > { %398 = vst [vmem:[#allocation2 + $0x778] sm:$0xff] %v17934_v0  ;;  %399 = vst [vmem:[#allocation2 + $0x780] sm:$0xff] %v17934_v0 }
  0xb9   : > { %400 = vst [vmem:[#allocation2 + $0x788] sm:$0xff] %v17934_v0  ;;  %401 = vst [vmem:[#allocation2 + $0x790] sm:$0xff] %v17934_v0 }
  0xba   : > { %402 = vst [vmem:[#allocation2 + $0x798] sm:$0xff] %v17934_v0  ;;  %403 = vst [vmem:[#allocation2 + $0x7a0] sm:$0xff] %v17934_v0 }
  0xbb   : > { %404 = vst [vmem:[#allocation2 + $0x7a8] sm:$0xff] %v17934_v0  ;;  %405 = vst [vmem:[#allocation2 + $0x7b0] sm:$0xff] %v17934_v0 }
  0xbc   : > { %406 = vst [vmem:[#allocation2 + $0x7b8] sm:$0xff] %v17934_v0  ;;  %407 = vst [vmem:[#allocation2 + $0x7c0] sm:$0xff] %v17934_v0 }
  0xbd   : > { %408 = vst [vmem:[#allocation2 + $0x7c8] sm:$0xff] %v17934_v0  ;;  %409 = vst [vmem:[#allocation2 + $0x7d0] sm:$0xff] %v17934_v0 }
  0xbe   : > { %410 = vst [vmem:[#allocation2 + $0x7d8] sm:$0xff] %v17934_v0  ;;  %411 = vst [vmem:[#allocation2 + $0x7e0] sm:$0xff] %v17934_v0 }
  0xbf   : > { %412 = vst [vmem:[#allocation2 + $0x7e8] sm:$0xff] %v17934_v0  ;;  %413 = vst [vmem:[#allocation2 + $0x7f0] sm:$0xff] %v17934_v0 }
  0xc0   : > { %414 = vst [vmem:[#allocation2 + $0x7f8] sm:$0xff] %v17934_v0  ;;  %416 = vst [vmem:[#allocation2 + $0x200] sm:$0xff] %v17934_v0 }
  0xc1   : > { %417 = vst [vmem:[#allocation2 + $0x220] sm:$0xff] %v17934_v0  ;;  %418 = vst [vmem:[#allocation2 + $0x240] sm:$0xff] %v17934_v0 }
  0xc2   : > { %419 = vst [vmem:[#allocation2 + $0x260] sm:$0xff] %v17934_v0  ;;  %420 = vst [vmem:[#allocation2 + $0x280] sm:$0xff] %v17934_v0 }
  0xc3   : > { %421 = vst [vmem:[#allocation2 + $0x2a0] sm:$0xff] %v17934_v0  ;;  %422 = vst [vmem:[#allocation2 + $0x2c0] sm:$0xff] %v17934_v0 }
  0xc4   : > { %423 = vst [vmem:[#allocation2 + $0x2e0] sm:$0xff] %v17934_v0  ;;  %424 = vst [vmem:[#allocation2 + $0x300] sm:$0xff] %v17934_v0 }
  0xc5   : > { %425 = vst [vmem:[#allocation2 + $0x320] sm:$0xff] %v17934_v0  ;;  %426 = vst [vmem:[#allocation2 + $0x340] sm:$0xff] %v17934_v0 }
  0xc6   : > { %427 = vst [vmem:[#allocation2 + $0x360] sm:$0xff] %v17934_v0  ;;  %428 = vst [vmem:[#allocation2 + $0x380] sm:$0xff] %v17934_v0 }
  0xc7   : > { %429 = vst [vmem:[#allocation2 + $0x3a0] sm:$0xff] %v17934_v0  ;;  %430 = vst [vmem:[#allocation2 + $0x3c0] sm:$0xff] %v17934_v0 }
  0xc8   : > { %431 = vst [vmem:[#allocation2 + $0x3e0] sm:$0xff] %v17934_v0  ;;  %432 = vst [vmem:[#allocation2 + $0x400] sm:$0xff] %v17934_v0 }
  0xc9   : > { %433 = vst [vmem:[#allocation2 + $0x420] sm:$0xff] %v17934_v0  ;;  %434 = vst [vmem:[#allocation2 + $0x440] sm:$0xff] %v17934_v0 }
  0xca   : > { %435 = vst [vmem:[#allocation2 + $0x460] sm:$0xff] %v17934_v0  ;;  %436 = vst [vmem:[#allocation2 + $0x480] sm:$0xff] %v17934_v0 }
  0xcb   : > { %437 = vst [vmem:[#allocation2 + $0x4a0] sm:$0xff] %v17934_v0  ;;  %438 = vst [vmem:[#allocation2 + $0x4c0] sm:$0xff] %v17934_v0 }
  0xcc   : > { %439 = vst [vmem:[#allocation2 + $0x4e0] sm:$0xff] %v17934_v0  ;;  %440 = vst [vmem:[#allocation2 + $0x500] sm:$0xff] %v17934_v0 }
  0xcd   : > { %441 = vst [vmem:[#allocation2 + $0x520] sm:$0xff] %v17934_v0  ;;  %442 = vst [vmem:[#allocation2 + $0x540] sm:$0xff] %v17934_v0 }
  0xce   : > { %443 = vst [vmem:[#allocation2 + $0x560] sm:$0xff] %v17934_v0  ;;  %444 = vst [vmem:[#allocation2 + $0x580] sm:$0xff] %v17934_v0 }
  0xcf   : > { %445 = vst [vmem:[#allocation2 + $0x5a0] sm:$0xff] %v17934_v0  ;;  %446 = vst [vmem:[#allocation2 + $0x5c0] sm:$0xff] %v17934_v0 }
  0xd0   : > { %447 = vst [vmem:[#allocation2 + $0x5e0] sm:$0xff] %v17934_v0  ;;  %448 = vst [vmem:[#allocation2 + $0x218] sm:$0xff] %v17934_v0 }
  0xd1   : > { %449 = vst [vmem:[#allocation2 + $0x238] sm:$0xff] %v17934_v0  ;;  %450 = vst [vmem:[#allocation2 + $0x258] sm:$0xff] %v17934_v0 }
  0xd2   : > { %451 = vst [vmem:[#allocation2 + $0x278] sm:$0xff] %v17934_v0  ;;  %452 = vst [vmem:[#allocation2 + $0x298] sm:$0xff] %v17934_v0 }
  0xd3   : > { %453 = vst [vmem:[#allocation2 + $0x2b8] sm:$0xff] %v17934_v0  ;;  %454 = vst [vmem:[#allocation2 + $0x2d8] sm:$0xff] %v17934_v0 }
  0xd4   : > { %455 = vst [vmem:[#allocation2 + $0x2f8] sm:$0xff] %v17934_v0  ;;  %456 = vst [vmem:[#allocation2 + $0x318] sm:$0xff] %v17934_v0 }
  0xd5   : > { %457 = vst [vmem:[#allocation2 + $0x338] sm:$0xff] %v17934_v0  ;;  %458 = vst [vmem:[#allocation2 + $0x358] sm:$0xff] %v17934_v0 }
  0xd6   : > { %459 = vst [vmem:[#allocation2 + $0x378] sm:$0xff] %v17934_v0  ;;  %460 = vst [vmem:[#allocation2 + $0x398] sm:$0xff] %v17934_v0 }
  0xd7   : > { %461 = vst [vmem:[#allocation2 + $0x3b8] sm:$0xff] %v17934_v0  ;;  %462 = vst [vmem:[#allocation2 + $0x3d8] sm:$0xff] %v17934_v0 }
  0xd8   : > { %463 = vst [vmem:[#allocation2 + $0x3f8] sm:$0xff] %v17934_v0  ;;  %464 = vst [vmem:[#allocation2 + $0x418] sm:$0xff] %v17934_v0 }
  0xd9   : > { %465 = vst [vmem:[#allocation2 + $0x438] sm:$0xff] %v17934_v0  ;;  %466 = vst [vmem:[#allocation2 + $0x458] sm:$0xff] %v17934_v0 }
  0xda   : > { %467 = vst [vmem:[#allocation2 + $0x478] sm:$0xff] %v17934_v0  ;;  %468 = vst [vmem:[#allocation2 + $0x498] sm:$0xff] %v17934_v0 }
  0xdb   : > { %469 = vst [vmem:[#allocation2 + $0x4b8] sm:$0xff] %v17934_v0  ;;  %470 = vst [vmem:[#allocation2 + $0x4d8] sm:$0xff] %v17934_v0 }
  0xdc   : > { %471 = vst [vmem:[#allocation2 + $0x4f8] sm:$0xff] %v17934_v0  ;;  %472 = vst [vmem:[#allocation2 + $0x518] sm:$0xff] %v17934_v0 }
  0xdd   : > { %473 = vst [vmem:[#allocation2 + $0x538] sm:$0xff] %v17934_v0  ;;  %474 = vst [vmem:[#allocation2 + $0x558] sm:$0xff] %v17934_v0 }
  0xde   : > { %475 = vst [vmem:[#allocation2 + $0x578] sm:$0xff] %v17934_v0  ;;  %476 = vst [vmem:[#allocation2 + $0x598] sm:$0xff] %v17934_v0 }
  0xdf   : > { %477 = vst [vmem:[#allocation2 + $0x5b8] sm:$0xff] %v17934_v0  ;;  %478 = vst [vmem:[#allocation2 + $0x5d8] sm:$0xff] %v17934_v0 }
  0xe0   : > { %479 = vst [vmem:[#allocation2 + $0x5f8] sm:$0xff] %v17934_v0  ;;  %480 = vst [vmem:[#allocation3] sm:$0xff] %v17934_v0 }
  0xe1   : > { %481 = vst [vmem:[#allocation3 + $0x8] sm:$0xff] %v17934_v0  ;;  %482 = vst [vmem:[#allocation3 + $0x10] sm:$0xff] %v17934_v0 }
  0xe2   : > { %483 = vst [vmem:[#allocation3 + $0x18] sm:$0xff] %v17934_v0  ;;  %484 = vst [vmem:[#allocation3 + $0x20] sm:$0xff] %v17934_v0 }
  0xe3   : > { %485 = vst [vmem:[#allocation3 + $0x28] sm:$0xff] %v17934_v0  ;;  %486 = vst [vmem:[#allocation3 + $0x30] sm:$0xff] %v17934_v0 }
  0xe4   : > { %487 = vst [vmem:[#allocation3 + $0x38] sm:$0xff] %v17934_v0  ;;  %488 = vst [vmem:[#allocation3 + $0x40] sm:$0xff] %v17934_v0 }
  0xe5   : > { %489 = vst [vmem:[#allocation3 + $0x48] sm:$0xff] %v17934_v0  ;;  %490 = vst [vmem:[#allocation3 + $0x50] sm:$0xff] %v17934_v0 }
  0xe6   : > { %491 = vst [vmem:[#allocation3 + $0x58] sm:$0xff] %v17934_v0  ;;  %492 = vst [vmem:[#allocation3 + $0x60] sm:$0xff] %v17934_v0 }
  0xe7   : > { %493 = vst [vmem:[#allocation3 + $0x68] sm:$0xff] %v17934_v0  ;;  %494 = vst [vmem:[#allocation3 + $0x70] sm:$0xff] %v17934_v0 }
  0xe8   : > { %495 = vst [vmem:[#allocation3 + $0x78] sm:$0xff] %v17934_v0  ;;  %496 = vst [vmem:[#allocation3 + $0x80] sm:$0xff] %v17934_v0 }
  0xe9   : > { %497 = vst [vmem:[#allocation3 + $0x88] sm:$0xff] %v17934_v0  ;;  %498 = vst [vmem:[#allocation3 + $0x90] sm:$0xff] %v17934_v0 }
  0xea   : > { %499 = vst [vmem:[#allocation3 + $0x98] sm:$0xff] %v17934_v0  ;;  %500 = vst [vmem:[#allocation3 + $0xa0] sm:$0xff] %v17934_v0 }
  0xeb   : > { %501 = vst [vmem:[#allocation3 + $0xa8] sm:$0xff] %v17934_v0  ;;  %502 = vst [vmem:[#allocation3 + $0xb0] sm:$0xff] %v17934_v0 }
  0xec   : > { %503 = vst [vmem:[#allocation3 + $0xb8] sm:$0xff] %v17934_v0  ;;  %504 = vst [vmem:[#allocation3 + $0xc0] sm:$0xff] %v17934_v0 }
  0xed   : > { %505 = vst [vmem:[#allocation3 + $0xc8] sm:$0xff] %v17934_v0  ;;  %506 = vst [vmem:[#allocation3 + $0xd0] sm:$0xff] %v17934_v0 }
  0xee   : > { %507 = vst [vmem:[#allocation3 + $0xd8] sm:$0xff] %v17934_v0  ;;  %508 = vst [vmem:[#allocation3 + $0xe0] sm:$0xff] %v17934_v0 }
  0xef   : > { %509 = vst [vmem:[#allocation3 + $0xe8] sm:$0xff] %v17934_v0  ;;  %510 = vst [vmem:[#allocation3 + $0xf0] sm:$0xff] %v17934_v0 }
  0xf0   : > { %511 = vst [vmem:[#allocation3 + $0xf8] sm:$0xff] %v17934_v0  ;;  %512 = vst [vmem:[#allocation3 + $0x100] sm:$0xff] %v17934_v0 }
  0xf1   : > { %513 = vst [vmem:[#allocation3 + $0x108] sm:$0xff] %v17934_v0  ;;  %514 = vst [vmem:[#allocation3 + $0x110] sm:$0xff] %v17934_v0 }
  0xf2   : > { %515 = vst [vmem:[#allocation3 + $0x118] sm:$0xff] %v17934_v0  ;;  %516 = vst [vmem:[#allocation3 + $0x120] sm:$0xff] %v17934_v0 }
  0xf3   : > { %517 = vst [vmem:[#allocation3 + $0x128] sm:$0xff] %v17934_v0  ;;  %518 = vst [vmem:[#allocation3 + $0x130] sm:$0xff] %v17934_v0 }
  0xf4   : > { %519 = vst [vmem:[#allocation3 + $0x138] sm:$0xff] %v17934_v0  ;;  %520 = vst [vmem:[#allocation3 + $0x140] sm:$0xff] %v17934_v0 }
  0xf5   : > { %521 = vst [vmem:[#allocation3 + $0x148] sm:$0xff] %v17934_v0  ;;  %522 = vst [vmem:[#allocation3 + $0x150] sm:$0xff] %v17934_v0 }
  0xf6   : > { %523 = vst [vmem:[#allocation3 + $0x158] sm:$0xff] %v17934_v0  ;;  %524 = vst [vmem:[#allocation3 + $0x160] sm:$0xff] %v17934_v0 }
  0xf7   : > { %525 = vst [vmem:[#allocation3 + $0x168] sm:$0xff] %v17934_v0  ;;  %526 = vst [vmem:[#allocation3 + $0x170] sm:$0xff] %v17934_v0 }
  0xf8   : > { %527 = vst [vmem:[#allocation3 + $0x178] sm:$0xff] %v17934_v0  ;;  %528 = vst [vmem:[#allocation3 + $0x180] sm:$0xff] %v17934_v0 }
  0xf9   : > { %529 = vst [vmem:[#allocation3 + $0x188] sm:$0xff] %v17934_v0  ;;  %530 = vst [vmem:[#allocation3 + $0x190] sm:$0xff] %v17934_v0 }
  0xfa   : > { %531 = vst [vmem:[#allocation3 + $0x198] sm:$0xff] %v17934_v0  ;;  %532 = vst [vmem:[#allocation3 + $0x1a0] sm:$0xff] %v17934_v0 }
  0xfb   : > { %533 = vst [vmem:[#allocation3 + $0x1a8] sm:$0xff] %v17934_v0  ;;  %534 = vst [vmem:[#allocation3 + $0x1b0] sm:$0xff] %v17934_v0 }
  0xfc   : > { %535 = vst [vmem:[#allocation3 + $0x1b8] sm:$0xff] %v17934_v0  ;;  %536 = vst [vmem:[#allocation3 + $0x1c0] sm:$0xff] %v17934_v0 }
  0xfd   : > { %537 = vst [vmem:[#allocation3 + $0x1c8] sm:$0xff] %v17934_v0  ;;  %538 = vst [vmem:[#allocation3 + $0x1d0] sm:$0xff] %v17934_v0 }
  0xfe   : > { %539 = vst [vmem:[#allocation3 + $0x1d8] sm:$0xff] %v17934_v0  ;;  %540 = vst [vmem:[#allocation3 + $0x1e0] sm:$0xff] %v17934_v0 }
  0xff   : > { %541 = vst [vmem:[#allocation3 + $0x1e8] sm:$0xff] %v17934_v0  ;;  %542 = vst [vmem:[#allocation3 + $0x1f0] sm:$0xff] %v17934_v0 }
 0x100   : > { %543 = vst [vmem:[#allocation3 + $0x1f8] sm:$0xff] %v17934_v0  ;;  %545 = vst [vmem:[#allocation3 + $0x600] sm:$0xff] %v17934_v0 }
 0x101   : > { %546 = vst [vmem:[#allocation3 + $0x608] sm:$0xff] %v17934_v0  ;;  %547 = vst [vmem:[#allocation3 + $0x610] sm:$0xff] %v17934_v0 }
 0x102   : > { %548 = vst [vmem:[#allocation3 + $0x618] sm:$0xff] %v17934_v0  ;;  %549 = vst [vmem:[#allocation3 + $0x620] sm:$0xff] %v17934_v0 }
 0x103   : > { %550 = vst [vmem:[#allocation3 + $0x628] sm:$0xff] %v17934_v0  ;;  %551 = vst [vmem:[#allocation3 + $0x630] sm:$0xff] %v17934_v0 }
 0x104   : > { %552 = vst [vmem:[#allocation3 + $0x638] sm:$0xff] %v17934_v0  ;;  %553 = vst [vmem:[#allocation3 + $0x640] sm:$0xff] %v17934_v0 }
 0x105   : > { %554 = vst [vmem:[#allocation3 + $0x648] sm:$0xff] %v17934_v0  ;;  %555 = vst [vmem:[#allocation3 + $0x650] sm:$0xff] %v17934_v0 }
 0x106   : > { %556 = vst [vmem:[#allocation3 + $0x658] sm:$0xff] %v17934_v0  ;;  %557 = vst [vmem:[#allocation3 + $0x660] sm:$0xff] %v17934_v0 }
 0x107   : > { %558 = vst [vmem:[#allocation3 + $0x668] sm:$0xff] %v17934_v0  ;;  %559 = vst [vmem:[#allocation3 + $0x670] sm:$0xff] %v17934_v0 }
 0x108   : > { %560 = vst [vmem:[#allocation3 + $0x678] sm:$0xff] %v17934_v0  ;;  %561 = vst [vmem:[#allocation3 + $0x680] sm:$0xff] %v17934_v0 }
 0x109   : > { %562 = vst [vmem:[#allocation3 + $0x688] sm:$0xff] %v17934_v0  ;;  %563 = vst [vmem:[#allocation3 + $0x690] sm:$0xff] %v17934_v0 }
 0x10a   : > { %564 = vst [vmem:[#allocation3 + $0x698] sm:$0xff] %v17934_v0  ;;  %565 = vst [vmem:[#allocation3 + $0x6a0] sm:$0xff] %v17934_v0 }
 0x10b   : > { %566 = vst [vmem:[#allocation3 + $0x6a8] sm:$0xff] %v17934_v0  ;;  %567 = vst [vmem:[#allocation3 + $0x6b0] sm:$0xff] %v17934_v0 }
 0x10c   : > { %568 = vst [vmem:[#allocation3 + $0x6b8] sm:$0xff] %v17934_v0  ;;  %569 = vst [vmem:[#allocation3 + $0x6c0] sm:$0xff] %v17934_v0 }
 0x10d   : > { %570 = vst [vmem:[#allocation3 + $0x6c8] sm:$0xff] %v17934_v0  ;;  %571 = vst [vmem:[#allocation3 + $0x6d0] sm:$0xff] %v17934_v0 }
 0x10e   : > { %572 = vst [vmem:[#allocation3 + $0x6d8] sm:$0xff] %v17934_v0  ;;  %573 = vst [vmem:[#allocation3 + $0x6e0] sm:$0xff] %v17934_v0 }
 0x10f   : > { %574 = vst [vmem:[#allocation3 + $0x6e8] sm:$0xff] %v17934_v0  ;;  %575 = vst [vmem:[#allocation3 + $0x6f0] sm:$0xff] %v17934_v0 }
 0x110   : > { %576 = vst [vmem:[#allocation3 + $0x6f8] sm:$0xff] %v17934_v0  ;;  %577 = vst [vmem:[#allocation3 + $0x700] sm:$0xff] %v17934_v0 }
 0x111   : > { %578 = vst [vmem:[#allocation3 + $0x708] sm:$0xff] %v17934_v0  ;;  %579 = vst [vmem:[#allocation3 + $0x710] sm:$0xff] %v17934_v0 }
 0x112   : > { %580 = vst [vmem:[#allocation3 + $0x718] sm:$0xff] %v17934_v0  ;;  %581 = vst [vmem:[#allocation3 + $0x720] sm:$0xff] %v17934_v0 }
 0x113   : > { %582 = vst [vmem:[#allocation3 + $0x728] sm:$0xff] %v17934_v0  ;;  %583 = vst [vmem:[#allocation3 + $0x730] sm:$0xff] %v17934_v0 }
 0x114   : > { %584 = vst [vmem:[#allocation3 + $0x738] sm:$0xff] %v17934_v0  ;;  %585 = vst [vmem:[#allocation3 + $0x740] sm:$0xff] %v17934_v0 }
 0x115   : > { %586 = vst [vmem:[#allocation3 + $0x748] sm:$0xff] %v17934_v0  ;;  %587 = vst [vmem:[#allocation3 + $0x750] sm:$0xff] %v17934_v0 }
 0x116   : > { %588 = vst [vmem:[#allocation3 + $0x758] sm:$0xff] %v17934_v0  ;;  %589 = vst [vmem:[#allocation3 + $0x760] sm:$0xff] %v17934_v0 }
 0x117   : > { %590 = vst [vmem:[#allocation3 + $0x768] sm:$0xff] %v17934_v0  ;;  %591 = vst [vmem:[#allocation3 + $0x770] sm:$0xff] %v17934_v0 }
 0x118   : > { %592 = vst [vmem:[#allocation3 + $0x778] sm:$0xff] %v17934_v0  ;;  %593 = vst [vmem:[#allocation3 + $0x780] sm:$0xff] %v17934_v0 }
 0x119   : > { %594 = vst [vmem:[#allocation3 + $0x788] sm:$0xff] %v17934_v0  ;;  %595 = vst [vmem:[#allocation3 + $0x790] sm:$0xff] %v17934_v0 }
 0x11a   : > { %596 = vst [vmem:[#allocation3 + $0x798] sm:$0xff] %v17934_v0  ;;  %597 = vst [vmem:[#allocation3 + $0x7a0] sm:$0xff] %v17934_v0 }
 0x11b   : > { %598 = vst [vmem:[#allocation3 + $0x7a8] sm:$0xff] %v17934_v0  ;;  %599 = vst [vmem:[#allocation3 + $0x7b0] sm:$0xff] %v17934_v0 }
 0x11c   : > { %600 = vst [vmem:[#allocation3 + $0x7b8] sm:$0xff] %v17934_v0  ;;  %601 = vst [vmem:[#allocation3 + $0x7c0] sm:$0xff] %v17934_v0 }
 0x11d   : > { %602 = vst [vmem:[#allocation3 + $0x7c8] sm:$0xff] %v17934_v0  ;;  %603 = vst [vmem:[#allocation3 + $0x7d0] sm:$0xff] %v17934_v0 }
 0x11e   : > { %604 = vst [vmem:[#allocation3 + $0x7d8] sm:$0xff] %v17934_v0  ;;  %605 = vst [vmem:[#allocation3 + $0x7e0] sm:$0xff] %v17934_v0 }
 0x11f   : > { %606 = vst [vmem:[#allocation3 + $0x7e8] sm:$0xff] %v17934_v0  ;;  %607 = vst [vmem:[#allocation3 + $0x7f0] sm:$0xff] %v17934_v0 }
 0x120   : > { %608 = vst [vmem:[#allocation3 + $0x7f8] sm:$0xff] %v17934_v0  ;;  %610 = vst [vmem:[#allocation3 + $0x200] sm:$0xff] %v17934_v0 }
 0x121   : > { %611 = vst [vmem:[#allocation3 + $0x220] sm:$0xff] %v17934_v0  ;;  %612 = vst [vmem:[#allocation3 + $0x240] sm:$0xff] %v17934_v0 }
 0x122   : > { %613 = vst [vmem:[#allocation3 + $0x260] sm:$0xff] %v17934_v0  ;;  %614 = vst [vmem:[#allocation3 + $0x280] sm:$0xff] %v17934_v0 }
 0x123   : > { %615 = vst [vmem:[#allocation3 + $0x2a0] sm:$0xff] %v17934_v0  ;;  %616 = vst [vmem:[#allocation3 + $0x2c0] sm:$0xff] %v17934_v0 }
 0x124   : > { %617 = vst [vmem:[#allocation3 + $0x2e0] sm:$0xff] %v17934_v0  ;;  %618 = vst [vmem:[#allocation3 + $0x300] sm:$0xff] %v17934_v0 }
 0x125   : > { %619 = vst [vmem:[#allocation3 + $0x320] sm:$0xff] %v17934_v0  ;;  %620 = vst [vmem:[#allocation3 + $0x340] sm:$0xff] %v17934_v0 }
 0x126   : > { %621 = vst [vmem:[#allocation3 + $0x360] sm:$0xff] %v17934_v0  ;;  %622 = vst [vmem:[#allocation3 + $0x380] sm:$0xff] %v17934_v0 }
 0x127   : > { %623 = vst [vmem:[#allocation3 + $0x3a0] sm:$0xff] %v17934_v0  ;;  %624 = vst [vmem:[#allocation3 + $0x3c0] sm:$0xff] %v17934_v0 }
 0x128   : > { %625 = vst [vmem:[#allocation3 + $0x3e0] sm:$0xff] %v17934_v0  ;;  %626 = vst [vmem:[#allocation3 + $0x400] sm:$0xff] %v17934_v0 }
 0x129   : > { %627 = vst [vmem:[#allocation3 + $0x420] sm:$0xff] %v17934_v0  ;;  %628 = vst [vmem:[#allocation3 + $0x440] sm:$0xff] %v17934_v0 }
 0x12a   : > { %629 = vst [vmem:[#allocation3 + $0x460] sm:$0xff] %v17934_v0  ;;  %630 = vst [vmem:[#allocation3 + $0x480] sm:$0xff] %v17934_v0 }
 0x12b   : > { %631 = vst [vmem:[#allocation3 + $0x4a0] sm:$0xff] %v17934_v0  ;;  %632 = vst [vmem:[#allocation3 + $0x4c0] sm:$0xff] %v17934_v0 }
 0x12c   : > { %633 = vst [vmem:[#allocation3 + $0x4e0] sm:$0xff] %v17934_v0  ;;  %634 = vst [vmem:[#allocation3 + $0x500] sm:$0xff] %v17934_v0 }
 0x12d   : > { %635 = vst [vmem:[#allocation3 + $0x520] sm:$0xff] %v17934_v0  ;;  %636 = vst [vmem:[#allocation3 + $0x540] sm:$0xff] %v17934_v0 }
 0x12e   : > { %637 = vst [vmem:[#allocation3 + $0x560] sm:$0xff] %v17934_v0  ;;  %638 = vst [vmem:[#allocation3 + $0x580] sm:$0xff] %v17934_v0 }
 0x12f   : > { %639 = vst [vmem:[#allocation3 + $0x5a0] sm:$0xff] %v17934_v0  ;;  %640 = vst [vmem:[#allocation3 + $0x5c0] sm:$0xff] %v17934_v0 }
 0x130   : > { %641 = vst [vmem:[#allocation3 + $0x5e0] sm:$0xff] %v17934_v0  ;;  %642 = vst [vmem:[#allocation3 + $0x218] sm:$0xff] %v17934_v0 }
 0x131   : > { %643 = vst [vmem:[#allocation3 + $0x238] sm:$0xff] %v17934_v0  ;;  %644 = vst [vmem:[#allocation3 + $0x258] sm:$0xff] %v17934_v0 }
 0x132   : > { %645 = vst [vmem:[#allocation3 + $0x278] sm:$0xff] %v17934_v0  ;;  %646 = vst [vmem:[#allocation3 + $0x298] sm:$0xff] %v17934_v0 }
 0x133   : > { %647 = vst [vmem:[#allocation3 + $0x2b8] sm:$0xff] %v17934_v0  ;;  %648 = vst [vmem:[#allocation3 + $0x2d8] sm:$0xff] %v17934_v0 }
 0x134   : > { %649 = vst [vmem:[#allocation3 + $0x2f8] sm:$0xff] %v17934_v0  ;;  %650 = vst [vmem:[#allocation3 + $0x318] sm:$0xff] %v17934_v0 }
 0x135   : > { %651 = vst [vmem:[#allocation3 + $0x338] sm:$0xff] %v17934_v0  ;;  %652 = vst [vmem:[#allocation3 + $0x358] sm:$0xff] %v17934_v0 }
 0x136   : > { %653 = vst [vmem:[#allocation3 + $0x378] sm:$0xff] %v17934_v0  ;;  %654 = vst [vmem:[#allocation3 + $0x398] sm:$0xff] %v17934_v0 }
 0x137   : > { %655 = vst [vmem:[#allocation3 + $0x3b8] sm:$0xff] %v17934_v0  ;;  %656 = vst [vmem:[#allocation3 + $0x3d8] sm:$0xff] %v17934_v0 }
 0x138   : > { %657 = vst [vmem:[#allocation3 + $0x3f8] sm:$0xff] %v17934_v0  ;;  %658 = vst [vmem:[#allocation3 + $0x418] sm:$0xff] %v17934_v0 }
 0x139   : > { %659 = vst [vmem:[#allocation3 + $0x438] sm:$0xff] %v17934_v0  ;;  %660 = vst [vmem:[#allocation3 + $0x458] sm:$0xff] %v17934_v0 }
 0x13a   : > { %661 = vst [vmem:[#allocation3 + $0x478] sm:$0xff] %v17934_v0  ;;  %662 = vst [vmem:[#allocation3 + $0x498] sm:$0xff] %v17934_v0 }
 0x13b   : > { %663 = vst [vmem:[#allocation3 + $0x4b8] sm:$0xff] %v17934_v0  ;;  %664 = vst [vmem:[#allocation3 + $0x4d8] sm:$0xff] %v17934_v0 }
 0x13c   : > { %665 = vst [vmem:[#allocation3 + $0x4f8] sm:$0xff] %v17934_v0  ;;  %666 = vst [vmem:[#allocation3 + $0x518] sm:$0xff] %v17934_v0 }
 0x13d   : > { %667 = vst [vmem:[#allocation3 + $0x538] sm:$0xff] %v17934_v0  ;;  %668 = vst [vmem:[#allocation3 + $0x558] sm:$0xff] %v17934_v0 }
 0x13e   : > { %669 = vst [vmem:[#allocation3 + $0x578] sm:$0xff] %v17934_v0  ;;  %670 = vst [vmem:[#allocation3 + $0x598] sm:$0xff] %v17934_v0 }
 0x13f   : > { %671 = vst [vmem:[#allocation3 + $0x5b8] sm:$0xff] %v17934_v0  ;;  %672 = vst [vmem:[#allocation3 + $0x5d8] sm:$0xff] %v17934_v0 }
 0x140   : > { %673 = vst [vmem:[#allocation3 + $0x5f8] sm:$0xff] %v17934_v0  ;;  %866 = vst [vmem:[#allocation2 + $0x208] sm:$0xff] %v802_v4  ;;  %v716_v0 = vld [vmem:[%s18142_s30 + $0x150] sm:$0xff]  ;;  %v719_v4 = vld [vmem:[%s18142_s30 + $0x168] sm:$0xff] }
 0x141   : > { %867 = vst [vmem:[#allocation2 + $0x210] sm:$0xff] %v803_v8  ;;  %868 = vst [vmem:[#allocation2 + $0x228] sm:$0xff] %v804_v9  ;;  %v823_v3 = vpack.c.bf16 %v717_v1, %v716_v0  ;;  %v824_v7 = vpack.c.bf16 %v719_v4, %v718_v2  ;;  %v825_v8 = vpack.c.bf16 %v721_v6, %v720_v5  ;;  %v722_v9 = vld [vmem:[%s18142_s30 + $0x180] sm:$0xff]  ;;  %v759_v0 = vld [vmem:[%s18142_s30 + $0x2a8] sm:$0xff] }
 0x142   : > { %869 = vst [vmem:[#allocation2 + $0x230] sm:$0xff] %v805_v13  ;;  %870 = vst [vmem:[#allocation2 + $0x248] sm:$0xff] %v806_v17  ;;  %v826_v12 = vpack.c.bf16 %v723_v10, %v722_v9  ;;  %v725_v13 = vld [vmem:[%s18142_s30 + $0x198] sm:$0xff]  ;;  %v828_v17 = vpack.c.bf16 %v727_v15, %v726_v14  ;;  %v760_v1 = vld [vmem:[%s18142_s30 + $0x2b0] sm:$0xff] }
 0x143   : > { %871 = vst [vmem:[#allocation2 + $0x250] sm:$0xff] %v807_v18  ;;  %872 = vst [vmem:[#allocation2 + $0x268] sm:$0xff] %v808_v22  ;;  %v827_v16 = vpack.c.bf16 %v725_v13, %v724_v11  ;;  %v728_v18 = vld [vmem:[%s18142_s30 + $0x1b0] sm:$0xff]  ;;  %v731_v22 = vld [vmem:[%s18142_s30 + $0x1c8] sm:$0xff] }
 0x144   : > { %873 = vst [vmem:[#allocation2 + $0x270] sm:$0xff] %v809_v26  ;;  %874 = vst [vmem:[#allocation2 + $0x288] sm:$0xff] %v810_v27  ;;  %v829_v21 = vpack.c.bf16 %v729_v19, %v728_v18  ;;  %v830_v25 = vpack.c.bf16 %v731_v22, %v730_v20  ;;  %v831_v26 = vpack.c.bf16 %v733_v24, %v732_v23  ;;  %v734_v27 = vld [vmem:[%s18142_s30 + $0x1e0] sm:$0xff]  ;;  %v763_v5 = vld [vmem:[%s18142_s30 + $0x2c8] sm:$0xff] }
 0x145   : > { %875 = vst [vmem:[#allocation2 + $0x290] sm:$0xff] %v811_v31  ;;  %876 = vst [vmem:[#allocation2 + $0x2a8] sm:$0xff] %v812_v35  ;;  %v832_v30 = vpack.c.bf16 %v735_v28, %v734_v27  ;;  %v737_v31 = vld [vmem:[%s18142_s30 + $0x1f8] sm:$0xff]  ;;  %v834_v35 = vpack.c.bf16 %v739_v33, %v738_v32  ;;  %v762_v4 = vld [vmem:[%s18142_s30 + $0x2c0] sm:$0xff] }
 0x146   : > { %877 = vst [vmem:[#allocation2 + $0x2b0] sm:$0xff] %v813_v36  ;;  %878 = vst [vmem:[#allocation2 + $0x2c8] sm:$0xff] %v814_v40  ;;  %v833_v34 = vpack.c.bf16 %v737_v31, %v736_v29  ;;  %v740_v36 = vld [vmem:[%s18142_s30 + $0x210] sm:$0xff]  ;;  %v743_v40 = vld [vmem:[%s18142_s30 + $0x228] sm:$0xff] }
 0x147   : > { %879 = vst [vmem:[#allocation2 + $0x2d0] sm:$0xff] %v815_v44  ;;  %880 = vst [vmem:[#allocation2 + $0x2e8] sm:$0xff] %v816_v45  ;;  %v835_v39 = vpack.c.bf16 %v741_v37, %v740_v36  ;;  %v836_v43 = vpack.c.bf16 %v743_v40, %v742_v38  ;;  %v837_v44 = vpack.c.bf16 %v745_v42, %v744_v41  ;;  %v746_v45 = vld [vmem:[%s18142_s30 + $0x240] sm:$0xff]  ;;  %v765_v9 = vld [vmem:[%s18142_s30 + $0x2d8] sm:$0xff] }
 0x148   : > { %881 = vst [vmem:[#allocation2 + $0x2f0] sm:$0xff] %v817_v49  ;;  %882 = vst [vmem:[#allocation2 + $0x308] sm:$0xff] %v818_v53  ;;  %v838_v48 = vpack.c.bf16 %v747_v46, %v746_v45  ;;  %v749_v49 = vld [vmem:[%s18142_s30 + $0x258] sm:$0xff]  ;;  %v840_v53 = vpack.c.bf16 %v751_v51, %v750_v50  ;;  %v766_v10 = vld [vmem:[%s18142_s30 + $0x2e0] sm:$0xff] }
 0x149   : > { %883 = vst [vmem:[#allocation2 + $0x310] sm:$0xff] %v819_v54  ;;  %884 = vst [vmem:[#allocation2 + $0x328] sm:$0xff] %v820_v58  ;;  %v839_v52 = vpack.c.bf16 %v749_v49, %v748_v47  ;;  %v752_v54 = vld [vmem:[%s18142_s30 + $0x270] sm:$0xff]  ;;  %v755_v58 = vld [vmem:[%s18142_s30 + $0x288] sm:$0xff] }
 0x14a   : > { %885 = vst [vmem:[#allocation2 + $0x330] sm:$0xff] %v821_v62  ;;  %886 = vst [vmem:[#allocation2 + $0x348] sm:$0xff] %v822_v63  ;;  %v841_v57 = vpack.c.bf16 %v753_v55, %v752_v54  ;;  %v842_v61 = vpack.c.bf16 %v755_v58, %v754_v56  ;;  %v843_v62 = vpack.c.bf16 %v757_v60, %v756_v59  ;;  %v758_v63 = vld [vmem:[%s18142_s30 + $0x2a0] sm:$0xff]  ;;  %v768_v13 = vld [vmem:[%s18142_s30 + $0x2f0] sm:$0xff] }
 0x14b   : > { %887 = vst [vmem:[#allocation2 + $0x350] sm:$0xff] %v823_v3  ;;  %888 = vst [vmem:[#allocation2 + $0x368] sm:$0xff] %v824_v7  ;;  %v844_v2 = vpack.c.bf16 %v759_v0, %v758_v63  ;;  %v761_v3 = vld [vmem:[%s18142_s30 + $0x2b8] sm:$0xff]  ;;  %v846_v7 = vpack.c.bf16 %v763_v5, %v762_v4  ;;  %v771_v18 = vld [vmem:[%s18142_s30 + $0x308] sm:$0xff] }
 0x14c   : > { %889 = vst [vmem:[#allocation2 + $0x370] sm:$0xff] %v825_v8  ;;  %890 = vst [vmem:[#allocation2 + $0x388] sm:$0xff] %v826_v12  ;;  %v845_v6 = vpack.c.bf16 %v761_v3, %v760_v1  ;;  %v764_v8 = vld [vmem:[%s18142_s30 + $0x2d0] sm:$0xff]  ;;  %v767_v12 = vld [vmem:[%s18142_s30 + $0x2e8] sm:$0xff] }
 0x14d   : > { %891 = vst [vmem:[#allocation2 + $0x390] sm:$0xff] %v827_v16  ;;  %892 = vst [vmem:[#allocation2 + $0x3a8] sm:$0xff] %v828_v17  ;;  %v847_v11 = vpack.c.bf16 %v765_v9, %v764_v8  ;;  %v769_v14 = vld [vmem:[%s18142_s30 + $0x2f8] sm:$0xff]  ;;  %v848_v15 = vpack.c.bf16 %v767_v12, %v766_v10  ;;  %v770_v17 = vld [vmem:[%s18142_s30 + $0x300] sm:$0xff] }
 0x14e   : > { %893 = vst [vmem:[#allocation2 + $0x3b0] sm:$0xff] %v829_v21  ;;  %894 = vst [vmem:[#allocation2 + $0x3c8] sm:$0xff] %v830_v25  ;;  %v849_v16 = vpack.c.bf16 %v769_v14, %v768_v13  ;;  %v772_v19 = vld [vmem:[%s18142_s30 + $0x310] sm:$0xff]  ;;  %v850_v20 = vpack.c.bf16 %v771_v18, %v770_v17  ;;  %v773_v21 = vld [vmem:[%s18142_s30 + $0x318] sm:$0xff] }
 0x14f   : > { %895 = vst [vmem:[#allocation2 + $0x3d0] sm:$0xff] %v831_v26  ;;  %896 = vst [vmem:[#allocation2 + $0x3e8] sm:$0xff] %v832_v30  ;;  %v774_v22 = vld [vmem:[%s18142_s30 + $0x320] sm:$0xff]  ;;  %v775_v23 = vld [vmem:[%s18142_s30 + $0x328] sm:$0xff]  ;;  %v851_v24 = vpack.c.bf16 %v773_v21, %v772_v19 }
 0x150   : > { %897 = vst [vmem:[#allocation2 + $0x3f0] sm:$0xff] %v833_v34  ;;  %898 = vst [vmem:[#allocation2 + $0x408] sm:$0xff] %v834_v35  ;;  %v852_v25 = vpack.c.bf16 %v775_v23, %v774_v22  ;;  %v776_v26 = vld [vmem:[%s18142_s30 + $0x330] sm:$0xff]  ;;  %v777_v27 = vld [vmem:[%s18142_s30 + $0x338] sm:$0xff] }
 0x151   : > { %899 = vst [vmem:[#allocation2 + $0x410] sm:$0xff] %v835_v39  ;;  %900 = vst [vmem:[#allocation2 + $0x428] sm:$0xff] %v836_v43  ;;  %v778_v28 = vld [vmem:[%s18142_s30 + $0x340] sm:$0xff]  ;;  %v853_v29 = vpack.c.bf16 %v777_v27, %v776_v26  ;;  %v779_v30 = vld [vmem:[%s18142_s30 + $0x348] sm:$0xff] }
 0x152   : > { %901 = vst [vmem:[#allocation2 + $0x430] sm:$0xff] %v837_v44  ;;  %902 = vst [vmem:[#allocation2 + $0x448] sm:$0xff] %v838_v48  ;;  %v780_v31 = vld [vmem:[%s18142_s30 + $0x350] sm:$0xff]  ;;  %v781_v32 = vld [vmem:[%s18142_s30 + $0x358] sm:$0xff]  ;;  %v854_v33 = vpack.c.bf16 %v779_v30, %v778_v28 }
 0x153   : > { %903 = vst [vmem:[#allocation2 + $0x450] sm:$0xff] %v839_v52  ;;  %904 = vst [vmem:[#allocation2 + $0x468] sm:$0xff] %v840_v53  ;;  %v855_v34 = vpack.c.bf16 %v781_v32, %v780_v31  ;;  %v782_v35 = vld [vmem:[%s18142_s30 + $0x360] sm:$0xff]  ;;  %v783_v36 = vld [vmem:[%s18142_s30 + $0x368] sm:$0xff] }
 0x154   : > { %905 = vst [vmem:[#allocation2 + $0x470] sm:$0xff] %v841_v57  ;;  %906 = vst [vmem:[#allocation2 + $0x488] sm:$0xff] %v842_v61  ;;  %v784_v37 = vld [vmem:[%s18142_s30 + $0x370] sm:$0xff]  ;;  %v856_v38 = vpack.c.bf16 %v783_v36, %v782_v35  ;;  %v785_v39 = vld [vmem:[%s18142_s30 + $0x378] sm:$0xff] }
 0x155   : > { %907 = vst [vmem:[#allocation2 + $0x490] sm:$0xff] %v843_v62  ;;  %908 = vst [vmem:[#allocation2 + $0x4a8] sm:$0xff] %v844_v2  ;;  %v786_v40 = vld [vmem:[%s18142_s30 + $0x380] sm:$0xff]  ;;  %v787_v41 = vld [vmem:[%s18142_s30 + $0x388] sm:$0xff]  ;;  %v857_v42 = vpack.c.bf16 %v785_v39, %v784_v37 }
 0x156   : > { %909 = vst [vmem:[#allocation2 + $0x4b0] sm:$0xff] %v845_v6  ;;  %910 = vst [vmem:[#allocation2 + $0x4c8] sm:$0xff] %v846_v7  ;;  %v858_v43 = vpack.c.bf16 %v787_v41, %v786_v40  ;;  %v788_v44 = vld [vmem:[%s18142_s30 + $0x390] sm:$0xff]  ;;  %v789_v45 = vld [vmem:[%s18142_s30 + $0x398] sm:$0xff] }
 0x157   : > { %911 = vst [vmem:[#allocation2 + $0x4d0] sm:$0xff] %v847_v11  ;;  %912 = vst [vmem:[#allocation2 + $0x4e8] sm:$0xff] %v848_v15  ;;  %v790_v46 = vld [vmem:[%s18142_s30 + $0x3a0] sm:$0xff]  ;;  %v859_v47 = vpack.c.bf16 %v789_v45, %v788_v44  ;;  %v791_v48 = vld [vmem:[%s18142_s30 + $0x3a8] sm:$0xff] }
 0x158   : > { %913 = vst [vmem:[#allocation2 + $0x4f0] sm:$0xff] %v849_v16  ;;  %914 = vst [vmem:[#allocation2 + $0x508] sm:$0xff] %v850_v20  ;;  %v792_v49 = vld [vmem:[%s18142_s30 + $0x3b0] sm:$0xff]  ;;  %v793_v50 = vld [vmem:[%s18142_s30 + $0x3b8] sm:$0xff]  ;;  %v860_v51 = vpack.c.bf16 %v791_v48, %v790_v46 }
 0x159   : > { %915 = vst [vmem:[#allocation2 + $0x510] sm:$0xff] %v851_v24  ;;  %916 = vst [vmem:[#allocation2 + $0x528] sm:$0xff] %v852_v25  ;;  %v861_v52 = vpack.c.bf16 %v793_v50, %v792_v49  ;;  %v794_v53 = vld [vmem:[%s18142_s30 + $0x3c0] sm:$0xff]  ;;  %v795_v54 = vld [vmem:[%s18142_s30 + $0x3c8] sm:$0xff] }
 0x15a   : > { %917 = vst [vmem:[#allocation2 + $0x530] sm:$0xff] %v853_v29  ;;  %918 = vst [vmem:[#allocation2 + $0x548] sm:$0xff] %v854_v33  ;;  %v796_v55 = vld [vmem:[%s18142_s30 + $0x3d0] sm:$0xff]  ;;  %v862_v56 = vpack.c.bf16 %v795_v54, %v794_v53  ;;  %v797_v57 = vld [vmem:[%s18142_s30 + $0x3d8] sm:$0xff] }
 0x15b   : > { %919 = vst [vmem:[#allocation2 + $0x550] sm:$0xff] %v855_v34  ;;  %920 = vst [vmem:[#allocation2 + $0x568] sm:$0xff] %v856_v38  ;;  %v798_v58 = vld [vmem:[%s18142_s30 + $0x3e0] sm:$0xff]  ;;  %v799_v59 = vld [vmem:[%s18142_s30 + $0x3e8] sm:$0xff]  ;;  %v863_v60 = vpack.c.bf16 %v797_v57, %v796_v55 }
 0x15c   : > { %921 = vst [vmem:[#allocation2 + $0x570] sm:$0xff] %v857_v42  ;;  %922 = vst [vmem:[#allocation2 + $0x588] sm:$0xff] %v858_v43  ;;  %v864_v61 = vpack.c.bf16 %v799_v59, %v798_v58  ;;  %v800_v62 = vld [vmem:[%s18142_s30 + $0x3f0] sm:$0xff]  ;;  %v801_v63 = vld [vmem:[%s18142_s30 + $0x3f8] sm:$0xff] }
 0x15d   : > { %923 = vst [vmem:[#allocation2 + $0x590] sm:$0xff] %v859_v47  ;;  %924 = vst [vmem:[#allocation2 + $0x5a8] sm:$0xff] %v860_v51  ;;  %v865_v0 = vpack.c.bf16 %v801_v63, %v800_v62 }
 0x15e   : > { %925 = vst [vmem:[#allocation2 + $0x5b0] sm:$0xff] %v861_v52  ;;  %926 = vst [vmem:[#allocation2 + $0x5c8] sm:$0xff] %v862_v56 }
 0x15f   : > { %927 = vst [vmem:[#allocation2 + $0x5d0] sm:$0xff] %v863_v60  ;;  %928 = vst [vmem:[#allocation2 + $0x5e8] sm:$0xff] %v864_v61 }
 0x160   : > { %929 = vst [vmem:[#allocation2 + $0x5f0] sm:$0xff] %v865_v0 }
 0x161 LB: >> { %v17144_v1 = vld [vmem:[#allocation6 + $0x40] sm:$0xff]   ;;  %v17147_v4 = vld [vmem:[#allocation6 + $0x48] sm:$0xff]   ;;  %v17150_v7 = vld [vmem:[#allocation6 + $0x50] sm:$0xff]   ;;  %s13848_s25 = sshll.u32 %s17900_s22, 7  ;;  %vm1051_vm0 = vsmask.f32 7424  ;;  %s17900_s22 = sphi %s18677_s22, %s935_s22  }
 0x162   : >> { %v17145_v2 = vld [vmem:[#allocation6 + $0x80] sm:$0xff]   ;;  %13877 = vmatprep.subr.bf16.mxu0 %v17144_v1  ;;  %v17148_v5 = vld [vmem:[#allocation6 + $0x88] sm:$0xff]   ;;  %v17151_v8 = vld [vmem:[#allocation6 + $0x90] sm:$0xff]   ;;  %s18685_s21 = scalar_lea.vmem [#allocation2], %s13848_s25  ;;  %vm958_vm1 = vsmask.f32 256 }
 0x163   : >> { %v17146_v3 = vld [vmem:[#allocation6] sm:$0xff]   ;;  %15557 = vmatprep.subr.bf16.mxu1 %v17145_v2  ;;  %v17149_v6 = vld [vmem:[#allocation6 + $0x8] sm:$0xff]   ;;  %v17152_v9 = vld [vmem:[#allocation6 + $0x10] sm:$0xff]   ;;  %s19078_s7 = scalar_lea.vmem [#allocation3], %s13848_s25  ;;  %s935_s22 = sadd.s32 1, %s17900_s22  }
 0x164   : >> { %13878 = vmatpush3.bf16.msra.mxu0 %v17146_v3  ;;  %15558 = vmatpush3.bf16.msra.mxu1 %v17145_v2  ;;  %v17153_v10 = vld [vmem:[#allocation6 + $0x58] sm:$0xff]   ;;  %v17156_v13 = vld [vmem:[#allocation6 + $0x60] sm:$0xff]   ;;  %v17159_v16 = vld [vmem:[#allocation6 + $0x68] sm:$0xff]   ;;  %p932_p9 = scmp.ge.s32.totalorder %s935_s22, 8  }
 0x165   : >> { %13879 = vmatprep.subr.bf16.mxu0 %v17147_v4  ;;  %15559 = vmatprep.subr.bf16.mxu1 %v17148_v5  ;;  %v17154_v11 = vld [vmem:[#allocation6 + $0x98] sm:$0xff]   ;;  %v17157_v14 = vld [vmem:[#allocation6 + $0xa0] sm:$0xff]   ;;  %v17160_v17 = vld [vmem:[#allocation6 + $0xa8] sm:$0xff]   ;;  %s19098_s29 = smov (%p932_p9), 0  }
 0x166   : >> { %v17155_v12 = vld [vmem:[#allocation6 + $0x18] sm:$0xff]   ;;  %v17158_v15 = vld [vmem:[#allocation6 + $0x20] sm:$0xff]   ;;  %v17161_v18 = vld [vmem:[#allocation6 + $0x28] sm:$0xff]  }
 0x167   : >> { %v17162_v19 = vld [vmem:[#allocation6 + $0x70] sm:$0xff]   ;;  %v17165_v22 = vld [vmem:[#allocation6 + $0x78] sm:$0xff]   ;;  %v12728_v23 = vld [vmem:[%s18685_s21 + $0x1e8] sm:$0xff] }
 0x168   : >> { %13880 = vmatpush3.bf16.msra.mxu0 %v17149_v6  ;;  %15560 = vmatpush3.bf16.msra.mxu1 %v17148_v5  ;;  %v17163_v20 = vld [vmem:[#allocation6 + $0xb0] sm:$0xff]   ;;  %v12727_v25 = vld [vmem:[%s18685_s21 + $0x1e0] sm:$0x80]  ;;  %v17166_v26 = vld [vmem:[#allocation6 + $0xb8] sm:$0xff]   ;;  %v964_v27 = vshrl.u32 %v12728_v23, 16  ;;  %v967_v28 = vshll.u32 %v12728_v23, 16 }
 0x169   : >> { %13881 = vmatprep.subr.bf16.mxu0 %v17150_v7  ;;  %15561 = vmatprep.subr.bf16.mxu1 %v17151_v8  ;;  %v17164_v21 = vld [vmem:[#allocation6 + $0x30] sm:$0xff]   ;;  %v17167_v30 = vld [vmem:[#allocation6 + $0x38] sm:$0xff]   ;;  %v960_v31 = vshrl.u32 %v12727_v25, 16  ;;  %v17168_v39 = vld [vmem:[#allocation6 + $0x100] sm:$0xff]  }
 0x16a   : >> { %v12729_v24 = vld [vmem:[%s18685_s21 + $0x1f0] sm:$0xff]  ;;  %1324 = vmatprep.mubr.bf16.mxu0 %v12728_v23  ;;  %v12739_v33 = vld [vmem:[%s18685_s21 + $0x1f8] sm:$0x1]  ;;  %v966_v34 = vrot.slane %v964_v27, 7  ;;  %v1052_v35 = vrot.slane %v967_v28, 1  ;;  %v17169_v44 = vld [vmem:[#allocation6 + $0x1c0] sm:$0xff]  }
 0x16b   : >> { %v975_v29 = vshll.u32 %v12729_v24, 16  ;;  %v972_v32 = vshrl.u32 %v12729_v24, 16  ;;  %v1058_v37 = vshll.u32 %v12739_v33, 16  ;;  %v962_v38 = vrot.slane %v960_v31, 7  ;;  %v17170_v45 = vld [vmem:[#allocation6 + $0xc0] sm:$0xff]   ;;  %v17172_v50 = vld [vmem:[#allocation6 + $0x108] sm:$0xff]  }
 0x16c   : >> { %13882 = vmatpush3.bf16.msra.mxu0 %v17152_v9  ;;  %15562 = vmatpush3.bf16.msra.mxu1 %v17151_v8  ;;  %v969_v40 = vor.u32 %v967_v28, %v966_v34  ;;  %v1053_v41 = vor.u32 %v1052_v35, %v964_v27  ;;  %v17171_v47 = vld [vmem:[#allocation6 + $0x180] sm:$0xff]   ;;  %v18695_v52 = vld [vmem:[%s18685_s21 + $0x208] sm:$0xff]  ;;  %v18698_v53 = vld [vmem:[%s18685_s21 + $0x210] sm:$0xff] }
 0x16d   : >> { %13883 = vmatprep.subr.bf16.mxu0 %v17153_v10  ;;  %15563 = vmatprep.subr.bf16.mxu1 %v17154_v11  ;;  %v1054_v36 = vrot.slane %v975_v29, 1  ;;  %v1060_v43 = vrot.slane %v1058_v37, 1  ;;  %v974_v51 = vrot.slane %v972_v32, 7  ;;  %v12740_v54 = vld [vmem:[%s18685_s21 + $0x218] sm:$0x1]  ;;  %v17173_v55 = vld [vmem:[#allocation6 + $0xc8] sm:$0xff]  }
 0x16e   : >> { %v970_v48 = vsel %vm958_vm1, %v962_v38, %v969_v40  ;;  %v984_v56 = vshrl.u32 %v18695_v52, 16  ;;  %v987_v57 = vshll.u32 %v18695_v52, 16  ;;  %v995_v58 = vshll.u32 %v18698_v53, 16  ;;  %v17174_v0 = vld [vmem:[#allocation6 + $0x110] sm:$0xff]   ;;  %v17175_v1 = vld [vmem:[#allocation6 + $0x1c8] sm:$0xff]  }
 0x16f   : >> { %v1056_v42 = vor.u32 %v1054_v36, %v972_v32  ;;  %v1055_v46 = vsel %vm1051_vm0, %v1053_v41, %v1054_v36  ;;  %v992_v59 = vshrl.u32 %v18698_v53, 16  ;;  %v1068_v60 = vshll.u32 %v12740_v54, 16  ;;  %v17177_v3 = vld [vmem:[#allocation6 + $0x188] sm:$0xff]   ;;  %v17176_v9 = vld [vmem:[#allocation6 + $0xd0] sm:$0xff]   ;;  %v12742_v41 = vld [vmem:[%s18685_s21 + $0x258] sm:$0x1] }
 0x170   : >> { %13884 = vmatpush3.bf16.msra.mxu0 %v17155_v12  ;;  %15564 = vmatpush3.bf16.msra.mxu1 %v17154_v11  ;;  %v1062_v61 = vrot.slane %v987_v57, 1  ;;  %v1064_v62 = vrot.slane %v995_v58, 1  ;;  %v977_v63 = vor.u32 %v975_v29, %v974_v51  ;;  %v18716_v10 = vld [vmem:[%s18685_s21 + $0x228] sm:$0xff]  ;;  %v18718_v11 = vrot.slane %v984_v56, 7  ;;  %v17178_v12 = vld [vmem:[#allocation6 + $0x118] sm:$0xff]   ;;  %v17183_v32 = vld [vmem:[#allocation6 + $0x190] sm:$0xff]  }
 0x171   : >> { %13885 = vmatprep.subr.bf16.mxu0 %v17156_v13  ;;  %15565 = vmatprep.subr.bf16.mxu1 %v17157_v14  ;;  %v1061_v49 = vsel %vm1051_vm0, %v1056_v42, %v1060_v43  ;;  %v1070_v2 = vrot.slane %v1068_v60, 1  ;;  %v18722_v13 = vld [vmem:[%s18685_s21 + $0x230] sm:$0xff]  ;;  %v17184_v37 = vld [vmem:[#allocation6 + $0x128] sm:$0xff]   ;;  %v994_v38 = vrot.slane %v992_v59, 7  ;;  %v17187_v54 = vld [vmem:[#allocation6 + $0x1d8] sm:$0xff]  }
 0x172   : >> { %15573 = vmatprep.mubr.bf16.mxu1 %v1055_v46  ;;  %v1063_v4 = vor.u32 %v1062_v61, %v984_v56  ;;  %v18707_v5 = vor.u32 %v1064_v62, %v992_v59  ;;  %v978_v7 = vsel %vm958_vm1, %v966_v34, %v977_v63  ;;  %v18736_v27 = vor.u32 %v987_v57, %v18718_v11  ;;  %v17182_v34 = vld [vmem:[#allocation6 + $0xe0] sm:$0xff]   ;;  %v18756_v40 = vld [vmem:[%s18685_s21 + $0x250] sm:$0xff]  ;;  %v17185_v46 = vld [vmem:[#allocation6 + $0xe8] sm:$0xff]  }
 0x173   : >> { %v17186_v51 = vld [vmem:[#allocation6 + $0x130] sm:$0xff]   ;;  %v17189_v56 = vld [vmem:[#allocation6 + $0x198] sm:$0xff]   ;;  %v12733_v63 = vld [vmem:[%s18685_s21 + $0x220] sm:$0x80] }
 0x174   : >> { %13886 = vmatpush3.bf16.msra.mxu0 %v17158_v15  ;;  %15566 = vmatpush3.bf16.msra.mxu1 %v17157_v14  ;;  %v18710_v6 = vsel %vm1051_vm0, %v1063_v4, %v1064_v62  ;;  %v1071_v8 = vsel %vm1051_vm0, %v18707_v5, %v1070_v2  ;;  %v1004_v14 = vshrl.u32 %v18716_v10, 16  ;;  %v1007_v15 = vshll.u32 %v18716_v10, 16  ;;  %v17188_v62 = vld [vmem:[#allocation6 + $0xf0] sm:$0xff]   ;;  %v17191_v4 = vld [vmem:[#allocation6 + $0xf8] sm:$0xff]  }
 0x175   : >> { %13887 = vmatprep.subr.bf16.mxu0 %v17159_v16  ;;  %15567 = vmatprep.subr.bf16.mxu1 %v17160_v17  ;;  %v12730_v16 = vld [vmem:[%s18685_s21 + $0x200] sm:$0x80]  ;;  %v1000_v2 = vshrl.u32 %v12733_v63, 16  ;;  %v18847_v63 = vld [vmem:[%s18685_s21 + $0x268] sm:$0xff] }
 0x176   : >> { %v1072_v23 = vrot.slane %v1007_v15, 1 }
 0x178   : >> { %13888 = vmatpush3.bf16.msra.mxu0 %v17161_v18  ;;  %15568 = vmatpush3.bf16.msra.mxu1 %v17160_v17  ;;  %v17179_v17 = vld [vmem:[#allocation6 + $0xd8] sm:$0xff]   ;;  %v1015_v18 = vshll.u32 %v18722_v13, 16  ;;  %v1073_v28 = vor.u32 %v1072_v23, %v1004_v14  ;;  %v17197_v23 = vld [vmem:[#allocation6 + $0x1a8] sm:$0xff]  }
 0x179   : >> { %13889 = vmatprep.subr.bf16.mxu0 %v17162_v19  ;;  %15569 = vmatprep.subr.bf16.mxu1 %v17163_v20  ;;  %v980_v19 = vshrl.u32 %v12730_v16, 16 }
 0x17a   : >> { %v1074_v25 = vrot.slane %v1015_v18, 1 }
 0x17c   : >> { %13890 = vmatpush3.bf16.msra.mxu0 %v17164_v21  ;;  %15570 = vmatpush3.bf16.msra.mxu1 %v17163_v20  ;;  %v1012_v20 = vshrl.u32 %v18722_v13, 16  ;;  %v12741_v21 = vld [vmem:[%s18685_s21 + $0x238] sm:$0x1]  ;;  %v18745_v33 = vsel %vm1051_vm0, %v1073_v28, %v1074_v25 }
 0x17d   : >> { %13891 = vmatprep.subr.bf16.mxu0 %v17165_v22  ;;  %15571 = vmatprep.subr.bf16.mxu1 %v17166_v26  ;;  %v17181_v22 = vld [vmem:[#allocation6 + $0x1d0] sm:$0xff]  }
 0x17e   : >> { %v18742_v31 = vor.u32 %v1074_v25, %v1012_v20 }
 0x180   : >> { %13892 = vmatpush3.bf16.msra.mxu0 %v17167_v30  ;;  %15572 = vmatpush3.bf16.msra.mxu1 %v17166_v26  ;;  %v982_v26 = vrot.slane %v980_v19, 7  ;;  %v17180_v30 = vld [vmem:[#allocation6 + $0x120] sm:$0xff]  }
 0x181   : >> { %13957 = vmatprep.subr.bf16.mxu1 %v17168_v39  ;;  %14037 = vmatprep.subr.bf16.mxu0 %v17169_v44  ;;  %v18753_v39 = vld [vmem:[%s18685_s21 + $0x248] sm:$0xff]  ;;  %v1035_v44 = vshll.u32 %v18756_v40, 16 }
 0x182   : >> { %v990_v35 = vsel %vm958_vm1, %v982_v26, %v18736_v27  ;;  %v1024_v42 = vshrl.u32 %v18753_v39, 16  ;;  %v1027_v43 = vshll.u32 %v18753_v39, 16  ;;  %v12772_v26 = vld [vmem:[%s18685_s21 + $0x220] sm:$0x80] }
 0x183   : >> { %1325 = vmatmul.mubr.bf16.vlgmr.msra.gmra.mrb[0].mxu0 %v970_v48  ;;  %15574 = vmatmul.mubr.bf16.vlgmr.msra.gmra.mrb[0].mxu1 %v1061_v49  ;;  %v1084_v49 = vrot.slane %v1035_v44, 1 }
 0x184   : >> { %13958 = vmatpush3.bf16.msra.mxu1 %v17170_v45  ;;  %14038 = vmatpush3.bf16.msra.mxu0 %v17171_v47  ;;  %v1032_v45 = vshrl.u32 %v18756_v40, 16  ;;  %v1088_v47 = vshll.u32 %v12742_v41, 16  ;;  %v1082_v48 = vrot.slane %v1027_v43, 1  ;;  %v17204_v41 = vld [vmem:[#allocation6 + $0x160] sm:$0xff]  }
 0x185   : >> { %13959 = vmatprep.subr.bf16.mxu1 %v17172_v50  ;;  %1332 = vmatprep.mubr.bf16.mxu0 %v12729_v24  ;;  %v1078_v24 = vshll.u32 %v12741_v21, 16  ;;  %v997_v50 = vor.u32 %v995_v58, %v994_v38 }
 0x186   : >> { %14039 = vmatprep.subr.bf16.mxu0 %v17175_v1  ;;  %15577 = vmatprep.mubr.bf16.mxu1 %v18710_v6  ;;  %v1083_v57 = vor.u32 %v1082_v48, %v1024_v42  ;;  %v18774_v59 = vor.u32 %v1084_v49, %v1032_v45  ;;  %v17190_v1 = vld [vmem:[#allocation6 + $0x138] sm:$0xff]  }
 0x187   : >> { %v1080_v29 = vrot.slane %v1078_v24, 1  ;;  %v998_v58 = vsel %vm958_vm1, %v18718_v11, %v997_v50  ;;  %v17194_v11 = vld [vmem:[#allocation6 + $0x1a0] sm:$0xff]  }
 0x188   : >> { %13960 = vmatpush3.bf16.msra.mxu1 %v17173_v55  ;;  %14040 = vmatpush3.bf16.msra.mxu0 %v17177_v3  ;;  %v1090_v55 = vrot.slane %v1088_v47, 1  ;;  %v18777_v60 = vsel %vm1051_vm0, %v1083_v57, %v1084_v49  ;;  %v12769_v3 = vld [vmem:[%s18685_s21 + $0x200] sm:$0x80]  ;;  %v17206_v47 = vld [vmem:[#allocation6 + $0x168] sm:$0xff]  }
 0x189   : >> { %13961 = vmatprep.subr.bf16.mxu1 %v17174_v0  ;;  %14041 = vmatprep.subr.bf16.mxu0 %v17181_v22  ;;  %v1081_v36 = vsel %vm1051_vm0, %v18742_v31, %v1080_v29  ;;  %v1006_v0 = vrot.slane %v1004_v14, 7  ;;  %v1014_v22 = vrot.slane %v1012_v20, 7  ;;  %v12736_v24 = vld [vmem:[%s18685_s21 + $0x240] sm:$0x80]  ;;  %v17200_v20 = vld [vmem:[#allocation6 + $0x1b0] sm:$0xff]   ;;  %v1026_v29 = vrot.slane %v1024_v42, 7 }
 0x18a   : >> { %v1091_v61 = vsel %vm1051_vm0, %v18774_v59, %v1090_v55  ;;  %v1020_v28 = vshrl.u32 %v12736_v24, 16  ;;  %v12775_v49 = vld [vmem:[%s18685_s21 + $0x240] sm:$0x80]  ;;  %v12781_v24 = vld [vmem:[%s18685_s21 + $0x218] sm:$0x1] }
 0x18b   : >> { %1333 = vmatmul.mubr.bf16.gmra.mrb[4].mxu0 %v978_v7  ;;  %15578 = vmatmul.mubr.bf16.gmra.mrb[4].mxu1 %v1071_v8  ;;  %v1519_v7 = vshrl.u32 %v12769_v3, 16  ;;  %v17193_v8 = vld [vmem:[#allocation6 + $0x1e0] sm:$0xff]   ;;  %v18791_v14 = vor.u32 %v1007_v15, %v1006_v0  ;;  %v17195_v15 = vld [vmem:[#allocation6 + $0x148] sm:$0xff]   ;;  %v1017_v25 = vor.u32 %v1015_v18, %v1014_v22  ;;  %v17202_v18 = vld [vmem:[#allocation6 + $0x1f8] sm:$0xff]  }
 0x18c   : >> { %13962 = vmatpush3.bf16.msra.mxu1 %v17176_v9  ;;  %1340 = vmatprep.mubr.bf16.mxu0 %v18695_v52  ;;  %v17192_v9 = vld [vmem:[#allocation6 + $0x140] sm:$0xff]  }
 0x18d   : >> { %13963 = vmatprep.subr.bf16.mxu1 %v17178_v12  ;;  %15581 = vmatprep.mubr.bf16.mxu1 %v18745_v33  ;;  %v1002_v12 = vrot.slane %v1000_v2, 7  ;;  %v1521_v16 = vrot.slane %v1519_v7, 7  ;;  %v12811_v50 = vld [vmem:[%s18685_s21 + $0x220] sm:$0x80]  ;;  %v18857_v2 = vld [vmem:[#allocation6 + $0x210] sm:$0xff]  }
 0x18e   : >> { %14042 = vmatpush3.bf16.msra.mxu0 %v17183_v32  ;;  %v1539_v32 = vshrl.u32 %v12772_v26, 16  ;;  %v2078_v55 = vshrl.u32 %v12811_v50, 16 }
 0x18f   : >> { %14043 = vmatprep.subr.bf16.mxu0 %v17187_v54  ;;  %v1010_v19 = vsel %vm958_vm1, %v1002_v12, %v18791_v14  ;;  %v1529_v21 = vsel %vm958_vm1, %v1521_v16, %v18736_v27  ;;  %v17198_v27 = vld [vmem:[#allocation6 + $0x150] sm:$0xff]  }
 0x190   : >> { %13964 = vmatpush3.bf16.msra.mxu1 %v17179_v17  ;;  %v17196_v17 = vld [vmem:[#allocation6 + $0x1e8] sm:$0xff]   ;;  %v1541_v38 = vrot.slane %v1539_v32, 7  ;;  %v2080_v57 = vrot.slane %v2078_v55, 7  ;;  %v12784_v55 = vld [vmem:[%s18685_s21 + $0x278] sm:$0x1] }
 0x191   : >> { %13965 = vmatprep.subr.bf16.mxu1 %v17180_v30  ;;  %v18809_v30 = vsel %vm958_vm1, %v1006_v0, %v1017_v25  ;;  %v12778_v0 = vld [vmem:[%s18685_s21 + $0x260] sm:$0x80]  ;;  %v18896_v25 = vld [vmem:[#allocation6 + $0x230] sm:$0xff]  }
 0x192   : >> { %14044 = vmatpush3.bf16.msra.mxu0 %v17189_v56  ;;  %v17210_v56 = vld [vmem:[#allocation6 + $0x178] sm:$0xff]   ;;  %v1579_v7 = vshrl.u32 %v12778_v0, 16 }
 0x193   : >> { %1341 = vmatmul.mubr.bf16.gmra.mrb[8].mxu0 %v990_v35  ;;  %15582 = vmatmul.mubr.bf16.gmra.mrb[8].mxu1 %v1081_v36  ;;  %v17203_v35 = vld [vmem:[#allocation6 + $0x1b8] sm:$0xff]   ;;  %v1022_v36 = vrot.slane %v1020_v28, 7 }
 0x194   : >> { %13966 = vmatpush3.bf16.msra.mxu1 %v17182_v34  ;;  %1348 = vmatprep.mubr.bf16.mxu0 %v18698_v53  ;;  %v17201_v34 = vld [vmem:[#allocation6 + $0x158] sm:$0xff]   ;;  %v1581_v12 = vrot.slane %v1579_v7, 7 }
 0x195   : >> { %13967 = vmatprep.subr.bf16.mxu1 %v17184_v37  ;;  %15585 = vmatprep.mubr.bf16.mxu1 %v18777_v60  ;;  %v18818_v37 = vor.u32 %v1027_v43, %v1026_v29  ;;  %v1034_v43 = vrot.slane %v1032_v45, 7  ;;  %v1559_v45 = vshrl.u32 %v12775_v49, 16  ;;  %v18901_v28 = vld [vmem:[#allocation6 + $0x238] sm:$0xff]  }
 0x196   : >> { %14045 = vmatprep.subr.bf16.mxu0 %v17193_v8 }
 0x197   : >> { %14046 = vmatpush3.bf16.msra.mxu0 %v17194_v11  ;;  %v1030_v42 = vsel %vm958_vm1, %v1022_v36, %v18818_v37  ;;  %v1037_v48 = vor.u32 %v1035_v44, %v1034_v43  ;;  %v1561_v44 = vrot.slane %v1559_v45, 7 }
 0x198   : >> { %13968 = vmatpush3.bf16.msra.mxu1 %v17185_v46  ;;  %14047 = vmatprep.subr.bf16.mxu0 %v17196_v17  ;;  %v1549_v46 = vsel %vm958_vm1, %v1541_v38, %v18791_v14  ;;  %v18878_v17 = vld [vmem:[#allocation6 + $0x220] sm:$0xff]  }
 0x199   : >> { %13969 = vmatprep.subr.bf16.mxu1 %v17186_v51  ;;  %v17208_v51 = vld [vmem:[#allocation6 + $0x170] sm:$0xff]   ;;  %v18834_v54 = vsel %vm958_vm1, %v1026_v29, %v1037_v48 }
 0x19b   : >> { %1349 = vmatmul.mubr.bf16.gmra.mrb[12].mxu0 %v998_v58  ;;  %15586 = vmatmul.mubr.bf16.gmra.mrb[12].mxu1 %v1091_v61  ;;  %v2088_v61 = vsel %vm958_vm1, %v2080_v57, %v18791_v14 }
 0x19c   : >> { %13970 = vmatpush3.bf16.msra.mxu1 %v17188_v62  ;;  %1356 = vmatprep.mubr.bf16.mxu0 %v18716_v10  ;;  %v18844_v62 = vld [vmem:[#allocation6 + $0x208] sm:$0xff]  }
 0x19d   : >> { %13971 = vmatprep.subr.bf16.mxu1 %v17190_v1  ;;  %1883 = vmatprep.mubr.bf16.mxu1 %v18695_v52  ;;  %v17199_v52 = vld [vmem:[#allocation6 + $0x1f0] sm:$0xff]   ;;  %v12814_v1 = vld [vmem:[%s18685_s21 + $0x240] sm:$0x80] }
 0x19e   : >> { %14048 = vmatpush3.bf16.msra.mxu0 %v17197_v23  ;;  %v2098_v8 = vshrl.u32 %v12814_v1, 16  ;;  %v12823_v1 = vld [vmem:[%s18685_s21 + $0x238] sm:$0x1] }
 0x19f   : >> { %14049 = vmatprep.subr.bf16.mxu0 %v17199_v52  ;;  %v12817_v52 = vld [vmem:[%s18685_s21 + $0x260] sm:$0x80]  ;;  %v2175_v7 = vshll.u32 %v12823_v1, 16 }
 0x1a0   : >> { %13972 = vmatpush3.bf16.msra.mxu1 %v17191_v4  ;;  %v1586_v4 = vshll.u32 %v18847_v63, 16  ;;  %v2100_v14 = vrot.slane %v2098_v8, 7 }
 0x1a1   : >> { %15589 = vmatprep.subr.bf16.mxu1 %v17192_v9 }
 0x1a2   : >> { %14050 = vmatpush3.bf16.msra.mxu0 %v17200_v20  ;;  %v2118_v20 = vshrl.u32 %v12817_v52, 16  ;;  %v1640_v43 = vrot.slane %v1586_v4, 1 }
 0x1a3   : >> { %1357 = vmatmul.mubr.bf16.gmra.mrb[16].mxu0 %v1010_v19  ;;  %1884 = vmatmul.mubr.bf16.vlgmr.msra.gmra.mrb[16].mxu1 %v1529_v21  ;;  %v2108_v21 = vsel %vm958_vm1, %v2100_v14, %v18818_v37 }
 0x1a4   : >> { %15590 = vmatpush3.bf16.msra.mxu1 %v17192_v9  ;;  %1364 = vmatprep.mubr.bf16.mxu0 %v18722_v13  ;;  %v18865_v9 = vld [vmem:[%s18685_s21 + $0x270] sm:$0xff]  ;;  %v2120_v29 = vrot.slane %v2118_v20, 7 }
 0x1a5   : >> { %1891 = vmatprep.mubr.bf16.mxu1 %v18698_v53  ;;  %15591 = vmatprep.subr.bf16.mxu1 %v17195_v15  ;;  %v18812_v53 = vld [vmem:[#allocation6 + $0x200] sm:$0xff]   ;;  %v1591_v16 = vshrl.u32 %v18865_v9, 16  ;;  %v1594_v22 = vshll.u32 %v18865_v9, 16 }
 0x1a6   : >> { %14051 = vmatprep.subr.bf16.mxu0 %v17202_v18 }
 0x1a7   : >> { %14052 = vmatpush3.bf16.msra.mxu0 %v17203_v35  ;;  %v18913_v35 = vld [vmem:[%s18685_s21 + $0x288] sm:$0xff]  ;;  %v1642_v45 = vrot.slane %v1594_v22, 1 }
 0x1a8   : >> { %15592 = vmatpush3.bf16.msra.mxu1 %v17195_v15  ;;  %15621 = vmatprep.subr.bf16.mxu0 %v18812_v53  ;;  %v18888_v15 = vld [vmem:[#allocation6 + $0x228] sm:$0xff]   ;;  %v2142_v36 = vshrl.u32 %v18913_v35, 16  ;;  %v2145_v38 = vshll.u32 %v18913_v35, 16 }
 0x1a9   : >> { %15593 = vmatprep.subr.bf16.mxu1 %v17198_v27 }
 0x1ab   : >> { %1365 = vmatmul.mubr.bf16.gmra.mrb[20].mxu0 %v18809_v30  ;;  %1892 = vmatmul.mubr.bf16.gmra.mrb[20].mxu1 %v998_v58  ;;  %v1569_v58 = vsel %vm958_vm1, %v1561_v44, %v18818_v37  ;;  %v12820_v37 = vld [vmem:[%s18685_s21 + $0x280] sm:$0x80] }
 0x1ac   : >> { %1372 = vmatprep.mubr.bf16.mxu0 %v18753_v39  ;;  %1899 = vmatprep.mubr.bf16.mxu1 %v18716_v10 }
 0x1ad   : >> { %15594 = vmatpush3.bf16.msra.mxu1 %v17198_v27  ;;  %v1616_v27 = vshll.u32 %v12781_v24, 16 }
 0x1ae   : >> { %15595 = vmatprep.subr.bf16.mxu1 %v17201_v34 }
 0x1b1   : >> { %15596 = vmatpush3.bf16.msra.mxu1 %v17201_v34 }
 0x1b2   : >> { %15597 = vmatprep.subr.bf16.mxu1 %v17204_v41 }
 0x1b3   : >> { %1373 = vmatmul.mubr.bf16.gmra.mrb[24].mxu0 %v1030_v42  ;;  %1900 = vmatmul.mubr.bf16.gmra.mrb[24].mxu1 %v1549_v46  ;;  %v2138_v46 = vshrl.u32 %v12820_v37, 16 }
 0x1b4   : >> { %1380 = vmatprep.mubr.bf16.mxu0 %v18756_v40  ;;  %1907 = vmatprep.mubr.bf16.mxu1 %v18722_v13 }
 0x1b5   : >> { %15598 = vmatpush3.bf16.msra.mxu1 %v17204_v41  ;;  %v2140_v50 = vrot.slane %v2138_v46, 7 }
 0x1b6   : >> { %15599 = vmatprep.subr.bf16.mxu1 %v17206_v47 }
 0x1b9   : >> { %15600 = vmatpush3.bf16.msra.mxu1 %v17206_v47  ;;  %v12822_v47 = vld [vmem:[%s18685_s21 + $0x290] sm:$0xff] }
 0x1ba   : >> { %15601 = vmatprep.subr.bf16.mxu1 %v17208_v51 }
 0x1bb   : >> { %1381 = vmatmul.mubr.bf16.gmra.mrb[28].mxu0 %v18834_v54  ;;  %1908 = vmatmul.mubr.bf16.gmra.mrb[28].mxu1 %v18809_v30 }
 0x1bc   : >> { %1915 = vmatprep.mubr.bf16.mxu1 %v18753_v39  ;;  %2442 = vmatprep.mubr.bf16.mxu0 %v18716_v10  ;;  %v1583_v10 = vshrl.u32 %v18847_v63, 16 }
 0x1bd   : >> { %15602 = vmatpush3.bf16.msra.mxu1 %v17208_v51  ;;  %v2150_v51 = vshrl.u32 %v12822_v47, 16 }
 0x1be   : >> { %15603 = vmatprep.subr.bf16.mxu1 %v17210_v56  ;;  %v1585_v3 = vrot.slane %v1583_v10, 7 }
 0x1c0   : >> { %v1588_v11 = vor.u32 %v1586_v4, %v1585_v3 }
 0x1c1   : >> { %15604 = vmatpush3.bf16.msra.mxu1 %v17210_v56  ;;  %v2153_v56 = vshll.u32 %v12822_v47, 16 }
 0x1c2   : >> { %16229 = vmatprep.subr.bf16.mxu1 %v18812_v53  ;;  %v1589_v19 = vsel %vm958_vm1, %v1581_v12, %v1588_v11  ;;  %v2128_v34 = vsel %vm958_vm1, %v2120_v29, %v1588_v11 }
 0x1c3   : >> { %1916 = vmatmul.mubr.bf16.gmra.mrb[32].mxu1 %v1569_v58  ;;  %2443 = vmatmul.mubr.bf16.vlgmr.msra.gmra.mrb[32].mxu0 %v2088_v61  ;;  %v2152_v58 = vrot.slane %v2150_v51, 7  ;;  %v1646_v61 = vshll.u32 %v12784_v55, 16  ;;  %v2201_v14 = vrot.slane %v2153_v56, 1 }
 0x1c4   : >> { %15622 = vmatpush3.bf16.msra.mxu0 %v18812_v53  ;;  %1923 = vmatprep.mubr.bf16.mxu1 %v18756_v40 }
 0x1c5   : >> { %2450 = vmatprep.mubr.bf16.mxu0 %v18722_v13  ;;  %15623 = vmatprep.subr.bf16.mxu0 %v18844_v62  ;;  %v18867_v13 = vld [vmem:[#allocation6 + $0x218] sm:$0xff]   ;;  %v1648_v0 = vrot.slane %v1646_v61, 1 }
 0x1c8   : >> { %15624 = vmatpush3.bf16.msra.mxu0 %v18844_v62 }
 0x1c9   : >> { %15625 = vmatprep.subr.bf16.mxu0 %v18857_v2 }
 0x1cb   : >> { %1924 = vmatmul.mubr.bf16.gmra.mrb[36].mxu1 %v18834_v54  ;;  %2451 = vmatmul.mubr.bf16.gmra.mrb[36].mxu0 %v18809_v30  ;;  %v12782_v30 = vld [vmem:[%s18685_s21 + $0x238] sm:$0x1] }
 0x1cc   : >> { %1931 = vmatprep.mubr.bf16.mxu1 %v18847_v63  ;;  %2458 = vmatprep.mubr.bf16.mxu0 %v18753_v39  ;;  %v1593_v39 = vrot.slane %v1591_v16, 7  ;;  %v1626_v18 = vshll.u32 %v12782_v30, 16 }
 0x1cd   : >> { %15626 = vmatpush3.bf16.msra.mxu0 %v18857_v2 }
 0x1ce   : >> { %15627 = vmatprep.subr.bf16.mxu0 %v18867_v13  ;;  %v1596_v23 = vor.u32 %v1594_v22, %v1593_v39 }
 0x1d0   : >> { %v1597_v26 = vsel %vm958_vm1, %v1585_v3, %v1596_v23 }
 0x1d1   : >> { %15628 = vmatpush3.bf16.msra.mxu0 %v18867_v13 }
 0x1d2   : >> { %15629 = vmatprep.subr.bf16.mxu0 %v18878_v17 }
 0x1d3   : >> { %1932 = vmatmul.mubr.bf16.gmra.mrb[40].mxu1 %v1589_v19  ;;  %2459 = vmatmul.mubr.bf16.gmra.mrb[40].mxu0 %v2108_v21 }
 0x1d4   : >> { %1939 = vmatprep.mubr.bf16.mxu1 %v18865_v9  ;;  %2466 = vmatprep.mubr.bf16.mxu0 %v18756_v40  ;;  %v1618_v40 = vrot.slane %v1616_v27, 1 }
 0x1d5   : >> { %15630 = vmatpush3.bf16.msra.mxu0 %v18878_v17 }
 0x1d6   : >> { %15631 = vmatprep.subr.bf16.mxu0 %v18888_v15  ;;  %v1619_v32 = vsel %vm1051_vm0, %v18707_v5, %v1618_v40  ;;  %v12783_v5 = vld [vmem:[%s18685_s21 + $0x258] sm:$0x1] }
 0x1d7   : >> { %v1636_v42 = vshll.u32 %v12783_v5, 16 }
 0x1d9   : >> { %15632 = vmatpush3.bf16.msra.mxu0 %v18888_v15  ;;  %v1638_v49 = vrot.slane %v1636_v42, 1 }
 0x1da   : >> { %15633 = vmatprep.subr.bf16.mxu0 %v18896_v25 }
 0x1db   : >> { %1940 = vmatmul.mubr.bf16.gmra.mrb[44].mxu1 %v1597_v26  ;;  %2467 = vmatmul.mubr.bf16.gmra.mrb[44].mxu0 %v18834_v54  ;;  %v1641_v54 = vor.u32 %v1640_v43, %v1583_v10  ;;  %v1639_v44 = vsel %vm1051_vm0, %v18774_v59, %v1638_v49  ;;  %v2155_v10 = vor.u32 %v2153_v56, %v2152_v58 }
 0x1dc   : >> { %15605 = vmatprep.mubr.bf16.mxu1 %v18710_v6  ;;  %2474 = vmatprep.mubr.bf16.mxu0 %v18847_v63  ;;  %v1628_v6 = vrot.slane %v1626_v18, 1  ;;  %v1644_v63 = vor.u32 %v1642_v45, %v1591_v16  ;;  %v12824_v16 = vld [vmem:[%s18685_s21 + $0x258] sm:$0x1] }
 0x1dd   : >> { %15634 = vmatpush3.bf16.msra.mxu0 %v18896_v25  ;;  %v2185_v39 = vshll.u32 %v12824_v16, 16 }
 0x1de   : >> { %15635 = vmatprep.subr.bf16.mxu0 %v18901_v28  ;;  %v1629_v41 = vsel %vm1051_vm0, %v18742_v31, %v1628_v6  ;;  %v1649_v3 = vsel %vm1051_vm0, %v1644_v63, %v1648_v0 }
 0x1df   : >> { %v2187_v23 = vrot.slane %v2185_v39, 1 }
 0x1e1   : >> { %15636 = vmatpush3.bf16.msra.mxu0 %v18901_v28  ;;  %v2188_v52 = vsel %vm1051_vm0, %v18774_v59, %v2187_v23 }
 0x1e3   : >> { %15606 = vmatmul.mubr.bf16.vlgmr.msra.gmra.mrb[0].mxu1 %v1619_v32  ;;  %2475 = vmatmul.mubr.bf16.gmra.mrb[48].mxu0 %v2128_v34 }
 0x1e4   : >> { %16237 = vmatpush3.bf16.msra.mxu1 %v18812_v53  ;;  %15609 = vmatprep.mubr.bf16.mxu1 %v18745_v33  ;;  %v2144_v53 = vrot.slane %v2142_v36, 7 }
 0x1e5   : >> { %16230 = vmatprep.subr.bf16.mxu1 %v18844_v62  ;;  %2482 = vmatprep.mubr.bf16.mxu0 %v18865_v9  ;;  %v2199_v9 = vrot.slane %v2145_v38, 1 }
 0x1e6   : >> { %v2147_v48 = vor.u32 %v2145_v38, %v2144_v53  ;;  %v2156_v4 = vsel %vm958_vm1, %v2144_v53, %v2155_v10 }
 0x1e7   : >> { %v2200_v12 = vor.u32 %v2199_v9, %v2142_v36 }
 0x1e8   : >> { %16238 = vmatpush3.bf16.msra.mxu1 %v18844_v62  ;;  %v2148_v57 = vsel %vm958_vm1, %v2140_v50, %v2147_v48  ;;  %v1643_v62 = vsel %vm1051_vm0, %v1641_v54, %v1642_v45 }
 0x1e9   : >> { %16231 = vmatprep.subr.bf16.mxu1 %v18857_v2 }
 0x1eb   : >> { %15610 = vmatmul.mubr.bf16.gmra.mrb[4].mxu1 %v1629_v41  ;;  %2483 = vmatmul.mubr.bf16.gmra.mrb[52].mxu0 %v1597_v26 }
 0x1ec   : >> { %16239 = vmatpush3.bf16.msra.mxu1 %v18857_v2  ;;  %15613 = vmatprep.mubr.bf16.mxu1 %v18777_v60  ;;  %v12825_v2 = vld [vmem:[%s18685_s21 + $0x278] sm:$0x1] }
 0x1ed   : >> { %16232 = vmatprep.subr.bf16.mxu1 %v18867_v13  ;;  %2490 = vmatprep.mubr.bf16.mxu0 %v18913_v35  ;;  %v2195_v8 = vshll.u32 %v12825_v2, 16 }
 0x1ef   : >> { %v2197_v11 = vrot.slane %v2195_v8, 1 }
 0x1f0   : >> { %16240 = vmatpush3.bf16.msra.mxu1 %v18867_v13  ;;  %v2177_v13 = vrot.slane %v2175_v7, 1 }
 0x1f1   : >> { %16233 = vmatprep.subr.bf16.mxu1 %v18878_v17  ;;  %v2198_v21 = vsel %vm1051_vm0, %v1644_v63, %v2197_v11 }
 0x1f2   : >> { %v2178_v19 = vsel %vm1051_vm0, %v18742_v31, %v2177_v13 }
 0x1f3   : >> { %15614 = vmatmul.mubr.bf16.gmra.mrb[8].mxu1 %v1639_v44  ;;  %2491 = vmatmul.mubr.bf16.gmra.mrb[56].mxu0 %v2148_v57 }
 0x1f4   : >> { %16241 = vmatpush3.bf16.msra.mxu1 %v18878_v17  ;;  %15617 = vmatprep.mubr.bf16.mxu1 %v1643_v62  ;;  %v12826_v17 = vld [vmem:[%s18685_s21 + $0x298] sm:$0x1] }
 0x1f5   : >> { %16234 = vmatprep.subr.bf16.mxu1 %v18888_v15  ;;  %2498 = vmatprep.mubr.bf16.mxu0 %v12822_v47  ;;  %v2205_v22 = vshll.u32 %v12826_v17, 16  ;;  %v18968_v47 = vld [vmem:[#allocation8] ss:$0 sm:$0xff] }
 0x1f7   : >> { %v2207_v24 = vrot.slane %v2205_v22, 1 }
 0x1f8   : >> { %16242 = vmatpush3.bf16.msra.mxu1 %v18888_v15  ;;  %v2203_v15 = vor.u32 %v2201_v14, %v2150_v51 }
 0x1f9   : >> { %16235 = vmatprep.subr.bf16.mxu1 %v18896_v25 }
 0x1fb   : >> { %15618 = vmatmul.mubr.bf16.gmra.mrb[12].mxu1 %v1649_v3  ;;  %2499 = vmatmul.mubr.bf16.gmra.mrb[60].mxu0 %v2156_v4 }
 0x1fc   : >> { %16243 = vmatpush3.bf16.msra.mxu1 %v18896_v25  ;;  %15637 = vmatprep.mubr.bf16.mxu0 %v18745_v33  ;;  %v2202_v33 = vsel %vm1051_vm0, %v2200_v12, %v2201_v14  ;;  %v2208_v25 = vsel %vm1051_vm0, %v2203_v15, %v2207_v24 }
 0x1fd   : >> { %16236 = vmatprep.subr.bf16.mxu1 %v18901_v28  ;;  %15645 = vmatprep.mubr.bf16.mxu1 %v1643_v62 }
 0x200   : >> { %16244 = vmatpush3.bf16.msra.mxu1 %v18901_v28 }
 0x203   : >> { %15638 = vmatmul.mubr.bf16.vlgmr.msra.gmra.mrb[64].mxu0 %v2178_v19  ;;  %15646 = vmatmul.mubr.bf16.vlgmr.msra.gmra.mrb[8].mxu1 %v2198_v21 }
 0x204   : >> { %15641 = vmatprep.mubr.bf16.mxu0 %v18777_v60  ;;  %15649 = vmatprep.mubr.bf16.mxu1 %v2202_v33 }
 0x20b   : >> { %15642 = vmatmul.mubr.bf16.gmra.mrb[68].mxu0 %v2188_v52  ;;  %15650 = vmatmul.mubr.bf16.gmra.mrb[12].mxu1 %v2208_v25 }
 0x256   : >> { %v13893_v31 = vpop.f32.mrb[0].mxu0 }
 0x257   : >> { %v13894_v26 = vpop.f32.mrb[1].mxu0 }
 0x258   : >> { %v13895_v27 = vadd.f32 %v13894_v26, %v13893_v31  ;;  %v13896_v20 = vpop.f32.mrb[2].mxu0 }
 0x259   : >> { %v13897_v28 = vpop.f32.mrb[3].mxu0 }
 0x25a   : >> { %v13898_v40 = vadd.f32 %v13897_v28, %v13896_v20  ;;  %v16250_v54 = vadd.f32 %v13895_v27, %v18968_v47 }
 0x25c   : >> { %v16260_v61 = vadd.f32 %v13898_v40, %v18968_v47 }
 0x25e   : >> { %v13899_v29 = vpop.f32.mrb[4].mxu0 }
 0x25f   : >> { %v13900_v30 = vpop.f32.mrb[5].mxu0 }
 0x260   : >> { %v13901_v32 = vadd.f32 %v13900_v30, %v13899_v29  ;;  %v13902_v60 = vpop.f32.mrb[6].mxu0 }
 0x261   : >> { %v13903_v34 = vpop.f32.mrb[7].mxu0 }
 0x262   : >> { %v13904_v18 = vadd.f32 %v13903_v34, %v13902_v60  ;;  %v16245_v7 = vadd.f32 %v13901_v32, %v18968_v47 }
 0x264   : >> { %v16255_v16 = vadd.f32 %v13904_v18, %v18968_v47 }
 0x266   : >> { %v13905_v35 = vpop.f32.mrb[8].mxu0 }
 0x267   : >> { %v13906_v6 = vpop.f32.mrb[9].mxu0 }
 0x268   : >> { %v13907_v36 = vadd.f32 %v13906_v6, %v13905_v35  ;;  %v13908_v59 = vpop.f32.mrb[10].mxu0 }
 0x269   : >> { %v13909_v5 = vpop.f32.mrb[11].mxu0 }
 0x26a   : >> { %v13910_v37 = vadd.f32 %v13909_v5, %v13908_v59  ;;  %v16270_v24 = vadd.f32 %v13907_v36, %v18968_v47 }
 0x26c   : >> { %v16280_v28 = vadd.f32 %v13910_v37, %v18968_v47 }
 0x26e   : >> { %v13911_v38 = vpop.f32.mrb[12].mxu0 }
 0x26f   : >> { %v13912_v41 = vpop.f32.mrb[13].mxu0 }
 0x270   : >> { %v13913_v53 = vadd.f32 %v13912_v41, %v13911_v38  ;;  %v13914_v42 = vpop.f32.mrb[14].mxu0 }
 0x271   : >> { %v13915_v46 = vpop.f32.mrb[15].mxu0 }
 0x272   : >> { %v13916_v43 = vadd.f32 %v13915_v46, %v13914_v42  ;;  %v16265_v6 = vadd.f32 %v13913_v53, %v18968_v47 }
 0x274   : >> { %v16275_v42 = vadd.f32 %v13916_v43, %v18968_v47 }
 0x276   : >> { %v13917_v48 = vpop.f32.mrb[16].mxu0  ;;  %v13973_v49 = vpop.f32.mrb[16].mxu1 }
 0x277   : >> { %v13918_v50 = vpop.f32.mrb[17].mxu0  ;;  %v13974_v51 = vpop.f32.mrb[17].mxu1 }
 0x278   : >> { %v18971_v45 = vadd.f32 %v13918_v50, %v13917_v48  ;;  %v13975_v55 = vadd.f32 %v13974_v51, %v13973_v49  ;;  %v13920_v56 = vpop.f32.mrb[18].mxu0  ;;  %v13976_v44 = vpop.f32.mrb[18].mxu1 }
 0x279   : >> { %v13921_v57 = vpop.f32.mrb[19].mxu0  ;;  %v13977_v58 = vpop.f32.mrb[19].mxu1 }
 0x27a   : >> { %v18974_v62 = vadd.f32 %v13921_v57, %v13920_v56  ;;  %v13978_v63 = vadd.f32 %v13977_v58, %v13976_v44  ;;  %v18976_v10 = vadd.f32 %v16250_v54, %v13975_v55  ;;  %v16289_v56 = vadd.f32 %v18971_v45, %v18968_v47 }
 0x27c   : >> { %v18978_v0 = vadd.f32 %v16260_v61, %v13978_v63 }
 0x27e   : >> { %v13923_v1 = vpop.f32.mrb[20].mxu0  ;;  %v13979_v2 = vpop.f32.mrb[20].mxu1 }
 0x27f   : >> { %v13924_v3 = vpop.f32.mrb[21].mxu0  ;;  %v13980_v4 = vpop.f32.mrb[21].mxu1 }
 0x280   : >> { %v18981_v8 = vadd.f32 %v13924_v3, %v13923_v1  ;;  %v13981_v9 = vadd.f32 %v13980_v4, %v13979_v2  ;;  %v13926_v13 = vpop.f32.mrb[22].mxu0  ;;  %v13982_v11 = vpop.f32.mrb[22].mxu1  ;;  %v16297_v1 = vadd.f32 %v18974_v62, %v18968_v47 }
 0x281   : >> { %v13927_v12 = vpop.f32.mrb[23].mxu0  ;;  %v13983_v14 = vpop.f32.mrb[23].mxu1 }
 0x282   : >> { %v18984_v17 = vadd.f32 %v13927_v12, %v13926_v13  ;;  %v13984_v19 = vadd.f32 %v13983_v14, %v13982_v11  ;;  %v18986_v21 = vadd.f32 %v16245_v7, %v13981_v9  ;;  %v16285_v12 = vadd.f32 %v18981_v8, %v18968_v47 }
 0x284   : >> { %v18988_v39 = vadd.f32 %v16255_v16, %v13984_v19 }
 0x286   : >> { %v13929_v22 = vpop.f32.mrb[24].mxu0  ;;  %v13985_v33 = vpop.f32.mrb[24].mxu1 }
 0x287   : >> { %v13930_v15 = vpop.f32.mrb[25].mxu0  ;;  %v13986_v23 = vpop.f32.mrb[25].mxu1 }
 0x288   : >> { %v18991_v52 = vadd.f32 %v13930_v15, %v13929_v22  ;;  %v13987_v25 = vadd.f32 %v13986_v23, %v13985_v33  ;;  %v13932_v31 = vpop.f32.mrb[26].mxu0  ;;  %v13988_v26 = vpop.f32.mrb[26].mxu1  ;;  %v16293_v15 = vadd.f32 %v18984_v17, %v18968_v47 }
 0x289   : >> { %v13933_v27 = vpop.f32.mrb[27].mxu0  ;;  %v13989_v20 = vpop.f32.mrb[27].mxu1 }
 0x28a   : >> { %v18994_v40 = vadd.f32 %v13933_v27, %v13932_v31  ;;  %v13990_v29 = vadd.f32 %v13989_v20, %v13988_v26  ;;  %v18996_v30 = vadd.f32 %v16270_v24, %v13987_v25  ;;  %v16305_v8 = vadd.f32 %v18991_v52, %v18968_v47 }
 0x28c   : >> { %v18998_v32 = vadd.f32 %v16280_v28, %v13990_v29  ;;  %v16313_v17 = vadd.f32 %v18994_v40, %v18968_v47 }
 0x28e   : >> { %v13935_v60 = vpop.f32.mrb[28].mxu0  ;;  %v13991_v34 = vpop.f32.mrb[28].mxu1 }
 0x28f   : >> { %v13936_v18 = vpop.f32.mrb[29].mxu0  ;;  %v13992_v35 = vpop.f32.mrb[29].mxu1 }
 0x290   : >> { %v19001_v36 = vadd.f32 %v13936_v18, %v13935_v60  ;;  %v13993_v59 = vadd.f32 %v13992_v35, %v13991_v34  ;;  %v13938_v5 = vpop.f32.mrb[30].mxu0  ;;  %v13994_v38 = vpop.f32.mrb[30].mxu1 }
 0x291   : >> { %v13939_v41 = vpop.f32.mrb[31].mxu0  ;;  %v13995_v37 = vpop.f32.mrb[31].mxu1 }
 0x292   : >> { %v19004_v46 = vadd.f32 %v13939_v41, %v13938_v5  ;;  %v13996_v48 = vadd.f32 %v13995_v37, %v13994_v38  ;;  %v19006_v49 = vadd.f32 %v16265_v6, %v13993_v59  ;;  %v16301_v52 = vadd.f32 %v19001_v36, %v18968_v47 }
 0x294   : >> { %v19008_v50 = vadd.f32 %v16275_v42, %v13996_v48  ;;  %v16309_v40 = vadd.f32 %v19004_v46, %v18968_v47 }
 0x296   : >> { %v13997_v51 = vpop.f32.mrb[32].mxu1  ;;  %v14053_v54 = vpop.f32.mrb[32].mxu0 }
 0x297   : >> { %v13998_v55 = vpop.f32.mrb[33].mxu1  ;;  %v14054_v53 = vpop.f32.mrb[33].mxu0 }
 0x298   : >> { %v13999_v44 = vadd.f32 %v13998_v55, %v13997_v51  ;;  %v19012_v57 = vadd.f32 %v14054_v53, %v14053_v54  ;;  %v14000_v58 = vpop.f32.mrb[34].mxu1  ;;  %v14056_v61 = vpop.f32.mrb[34].mxu0 }
 0x299   : >> { %v14001_v43 = vpop.f32.mrb[35].mxu1  ;;  %v14057_v63 = vpop.f32.mrb[35].mxu0 }
 0x29a   : >> { %v19016_v2 = vadd.f32 %v16289_v56, %v13999_v44  ;;  %v14002_v3 = vadd.f32 %v14001_v43, %v14000_v58  ;;  %v19018_v4 = vadd.f32 %v14057_v63, %v14056_v61 }
 0x29c   : >> { %v19020_v7 = vadd.f32 %v16297_v1, %v14002_v3 }
 0x29e   : >> { %v14003_v9 = vpop.f32.mrb[36].mxu1  ;;  %v14059_v13 = vpop.f32.mrb[36].mxu0 }
 0x29f   : >> { %v14004_v45 = vpop.f32.mrb[37].mxu1  ;;  %v14060_v11 = vpop.f32.mrb[37].mxu0 }
 0x2a0   : >> { %v14005_v14 = vadd.f32 %v14004_v45, %v14003_v9  ;;  %v14061_v16 = vadd.f32 %v14060_v11, %v14059_v13  ;;  %v14006_v19 = vpop.f32.mrb[38].mxu1  ;;  %v14062_v22 = vpop.f32.mrb[38].mxu0 }
 0x2a1   : >> { %v14007_v33 = vpop.f32.mrb[39].mxu1  ;;  %v14063_v62 = vpop.f32.mrb[39].mxu0 }
 0x2a2   : >> { %v19026_v23 = vadd.f32 %v16285_v12, %v14005_v14  ;;  %v14008_v24 = vadd.f32 %v14007_v33, %v14006_v19  ;;  %v14064_v25 = vadd.f32 %v14063_v62, %v14062_v22 }
 0x2a4   : >> { %v19028_v31 = vadd.f32 %v16293_v15, %v14008_v24 }
 0x2a6   : >> { %v14009_v26 = vpop.f32.mrb[40].mxu1  ;;  %v14065_v27 = vpop.f32.mrb[40].mxu0 }
 0x2a7   : >> { %v14010_v20 = vpop.f32.mrb[41].mxu1  ;;  %v14066_v28 = vpop.f32.mrb[41].mxu0 }
 0x2a8   : >> { %v14011_v29 = vadd.f32 %v14010_v20, %v14009_v26  ;;  %v14067_v60 = vadd.f32 %v14066_v28, %v14065_v27  ;;  %v14012_v34 = vpop.f32.mrb[42].mxu1  ;;  %v14068_v18 = vpop.f32.mrb[42].mxu0 }
 0x2a9   : >> { %v14013_v35 = vpop.f32.mrb[43].mxu1  ;;  %v14069_v6 = vpop.f32.mrb[43].mxu0 }
 0x2aa   : >> { %v19034_v59 = vadd.f32 %v16305_v8, %v14011_v29  ;;  %v14014_v5 = vadd.f32 %v14013_v35, %v14012_v34  ;;  %v14070_v38 = vadd.f32 %v14069_v6, %v14068_v18 }
 0x2ac   : >> { %v19036_v41 = vadd.f32 %v16313_v17, %v14014_v5 }
 0x2ae   : >> { %v14015_v37 = vpop.f32.mrb[44].mxu1  ;;  %v14071_v42 = vpop.f32.mrb[44].mxu0 }
 0x2af   : >> { %v14016_v48 = vpop.f32.mrb[45].mxu1  ;;  %v14072_v51 = vpop.f32.mrb[45].mxu0 }
 0x2b0   : >> { %v14017_v54 = vadd.f32 %v14016_v48, %v14015_v37  ;;  %v14073_v55 = vadd.f32 %v14072_v51, %v14071_v42  ;;  %v14018_v53 = vpop.f32.mrb[46].mxu1  ;;  %v14074_v56 = vpop.f32.mrb[46].mxu0 }
 0x2b1   : >> { %v14019_v44 = vpop.f32.mrb[47].mxu1  ;;  %v14075_v58 = vpop.f32.mrb[47].mxu0 }
 0x2b2   : >> { %v16302_v61 = vadd.f32 %v16301_v52, %v14017_v54  ;;  %v14020_v43 = vadd.f32 %v14019_v44, %v14018_v53  ;;  %v14076_v63 = vadd.f32 %v14075_v58, %v14074_v56 }
 0x2b4   : >> { %v16310_v1 = vadd.f32 %v16309_v40, %v14020_v43 }
 0x2b6   : >> { %v15607_v3 = vpop.f32.mrb[0].mxu1  ;;  %v14077_v9 = vpop.f32.mrb[48].mxu0 }
 0x2b7   : >> { %v16247_v13 = vadd.f32 %v18986_v21, %v15607_v3  ;;  %v1982_v45 = vpop.f32.mrb[1].mxu1  ;;  %v14078_v11 = vpop.f32.mrb[49].mxu0 }
 0x2b8   : >> { %v16252_v36 = vadd.f32 %v18976_v10, %v1982_v45  ;;  %v14079_v12 = vadd.f32 %v14078_v11, %v14077_v9  ;;  %v15608_v14 = vpop.f32.mrb[2].mxu1  ;;  %v14080_v19 = vpop.f32.mrb[50].mxu0 }
 0x2b9   : >> { %v16257_v22 = vadd.f32 %v18988_v39, %v15608_v14  ;;  %v1985_v33 = vpop.f32.mrb[3].mxu1  ;;  %v14081_v62 = vpop.f32.mrb[51].mxu0  ;;  %v16248_v47 = vadd.f32 %v16247_v13, %v14061_v16 }
 0x2ba   : >> { %v16262_v46 = vadd.f32 %v18978_v0, %v1985_v33  ;;  %v14082_v15 = vadd.f32 %v14081_v62, %v14080_v19  ;;  %v16253_v24 = vadd.f32 %v16252_v36, %v19012_v57  ;;  %v16291_v26 = vadd.f32 %v19016_v2, %v14079_v12 }
 0x2bb   : >> { %v16258_v21 = vadd.f32 %v16257_v22, %v14064_v25 }
 0x2bc   : >> { %v19049_v27 = vadd.f32 %v16262_v46, %v19018_v4  ;;  %v16299_v10 = vadd.f32 %v19020_v7, %v14082_v15 }
 0x2be   : >> { %v15611_v20 = vpop.f32.mrb[4].mxu1  ;;  %v14083_v28 = vpop.f32.mrb[52].mxu0 }
 0x2bf   : >> { %v16267_v39 = vadd.f32 %v19006_v49, %v15611_v20  ;;  %v1998_v8 = vpop.f32.mrb[5].mxu1  ;;  %v14084_v29 = vpop.f32.mrb[53].mxu0 }
 0x2c0   : >> { %v16272_v16 = vadd.f32 %v18996_v30, %v1998_v8  ;;  %v14085_v0 = vadd.f32 %v14084_v29, %v14083_v28  ;;  %v15612_v34 = vpop.f32.mrb[6].mxu1  ;;  %v14086_v18 = vpop.f32.mrb[54].mxu0 }
 0x2c1   : >> { %v16277_v57 = vadd.f32 %v19008_v50, %v15612_v34  ;;  %v2001_v2 = vpop.f32.mrb[7].mxu1  ;;  %v14087_v25 = vpop.f32.mrb[55].mxu0  ;;  %v19055_v35 = vadd.f32 %v16267_v39, %v14073_v55 }
 0x2c2   : >> { %v16282_v4 = vadd.f32 %v18998_v32, %v2001_v2  ;;  %v14088_v7 = vadd.f32 %v14087_v25, %v14086_v18  ;;  %v16287_v6 = vadd.f32 %v19026_v23, %v14085_v0  ;;  %v19059_v17 = vadd.f32 %v16272_v16, %v14067_v60 }
 0x2c3   : >> { %v19061_v49 = vadd.f32 %v16277_v57, %v14076_v63 }
 0x2c4   : >> { %v16295_v30 = vadd.f32 %v19028_v31, %v14088_v7  ;;  %v19064_v5 = vadd.f32 %v16282_v4, %v14070_v38 }
 0x2c6   : >> { %v14089_v37 = vpop.f32.mrb[56].mxu0 }
 0x2c7   : >> { %v14090_v42 = vpop.f32.mrb[57].mxu0 }
 0x2c8   : >> { %v14091_v50 = vadd.f32 %v14090_v42, %v14089_v37  ;;  %v14092_v48 = vpop.f32.mrb[58].mxu0 }
 0x2c9   : >> { %v14093_v51 = vpop.f32.mrb[59].mxu0 }
 0x2ca   : >> { %v14094_v52 = vadd.f32 %v14093_v51, %v14092_v48  ;;  %v19067_v54 = vadd.f32 %v19034_v59, %v14091_v50 }
 0x2cc   : >> { %v19070_v32 = vadd.f32 %v19036_v41, %v14094_v52 }
 0x2ce   : >> { %v14095_v23 = vpop.f32.mrb[60].mxu0 }
 0x2cf   : >> { %v14096_v60 = vpop.f32.mrb[61].mxu0 }
 0x2d0   : >> { %v14097_v55 = vadd.f32 %v14096_v60, %v14095_v23  ;;  %v14098_v53 = vpop.f32.mrb[62].mxu0 }
 0x2d1   : >> { %v14099_v56 = vpop.f32.mrb[63].mxu0 }
 0x2d2   : >> { %v14100_v31 = vadd.f32 %v14099_v56, %v14098_v53  ;;  %v16303_v38 = vadd.f32 %v16302_v61, %v14097_v55 }
 0x2d4   : >> { %v16311_v44 = vadd.f32 %v16310_v1, %v14100_v31 }
 0x2d6   : >> { %v15639_v58 = vpop.f32.mrb[64].mxu0  ;;  %v15647_v40 = vpop.f32.mrb[8].mxu1 }
 0x2d7   : >> { %v16249_v43 = vadd.f32 %v16248_v47, %v15639_v58  ;;  %v16288_v63 = vadd.f32 %v16287_v6, %v15647_v40  ;;  %v2541_v3 = vpop.f32.mrb[65].mxu0  ;;  %v2573_v9 = vpop.f32.mrb[9].mxu1 }
 0x2d8   : >> { %v16254_v13 = vadd.f32 %v16253_v24, %v2541_v3  ;;  %v16292_v59 = vadd.f32 %v16291_v26, %v2573_v9  ;;  %v15640_v45 = vpop.f32.mrb[66].mxu0  ;;  %v15648_v11 = vpop.f32.mrb[10].mxu1 }
 0x2d9   : >> { %vm2622_vm2 = vcmp.gt.f32.partialorder %v16249_v43, 0.0  ;;  %v2638_v41 = vmul.f32 0.1, %v16249_v43  ;;  %vm2630_vm3 = vcmp.gt.f32.partialorder %v16288_v63, 0.0  ;;  %v2646_v36 = vmul.f32 0.1, %v16288_v63 }
 0x2da   : >> { %vm2620_vm4 = vcmp.gt.f32.partialorder %v16254_v13, 0.0  ;;  %v2636_v12 = vmul.f32 0.1, %v16254_v13  ;;  %vm2628_vm5 = vcmp.gt.f32.partialorder %v16292_v59, 0.0  ;;  %v2644_v14 = vmul.f32 0.1, %v16292_v59 }
 0x2db   : >> { %v16259_v61 = vadd.f32 %v16258_v21, %v15640_v45  ;;  %v16296_v1 = vadd.f32 %v16295_v30, %v15648_v11  ;;  %v2544_v19 = vpop.f32.mrb[67].mxu0  ;;  %v2576_v22 = vpop.f32.mrb[11].mxu1  ;;  %v2654_v33 = vsel %vm2622_vm2, %v16249_v43, %v2638_v41  ;;  %v2662_v62 = vsel %vm2630_vm3, %v16288_v63, %v2646_v36 }
 0x2dc   : >> { %v16264_v47 = vadd.f32 %v19049_v27, %v2544_v19  ;;  %v16300_v46 = vadd.f32 %v16299_v10, %v2576_v22  ;;  %v2652_v28 = vsel %vm2620_vm4, %v16254_v13, %v2636_v12  ;;  %v2660_v21 = vsel %vm2628_vm5, %v16292_v59, %v2644_v14 }
 0x2dd   : >> { %vm2623_vm6 = vcmp.gt.f32.partialorder %v16259_v61, 0.0  ;;  %v2639_v15 = vmul.f32 0.1, %v16259_v61  ;;  %vm2631_vm7 = vcmp.gt.f32.partialorder %v16296_v1, 0.0  ;;  %v2647_v24 = vmul.f32 0.1, %v16296_v1 }
 0x2de   : >> { %vm2621_vm8 = vcmp.gt.f32.partialorder %v16264_v47, 0.0  ;;  %v2637_v26 = vmul.f32 0.1, %v16264_v47  ;;  %vm2629_vm9 = vcmp.gt.f32.partialorder %v16300_v46, 0.0  ;;  %v2645_v20 = vmul.f32 0.1, %v16300_v46 }
 0x2df   : >> { %v2655_v39 = vsel %vm2623_vm6, %v16259_v61, %v2639_v15  ;;  %v2663_v8 = vsel %vm2631_vm7, %v16296_v1, %v2647_v24  ;;  %v15643_v29 = vpop.f32.mrb[68].mxu0  ;;  %v15651_v16 = vpop.f32.mrb[12].mxu1 }
 0x2e0   : >> { %v2669_v0 = vpack.c.bf16 %v2655_v39, %v2654_v33  ;;  %v2673_v27 = vpack.c.bf16 %v2663_v8, %v2662_v62  ;;  %v2653_v10 = vsel %vm2621_vm8, %v16264_v47, %v2637_v26  ;;  %v2661_v34 = vsel %vm2629_vm9, %v16300_v46, %v2645_v20  ;;  %v2557_v18 = vpop.f32.mrb[69].mxu0  ;;  %v2589_v57 = vpop.f32.mrb[13].mxu1 }
 0x2e1   : >> { %v2668_v2 = vpack.c.bf16 %v2653_v10, %v2652_v28  ;;  %v2672_v25 = vpack.c.bf16 %v2661_v34, %v2660_v21  ;;  %v16269_v4 = vadd.f32 %v19055_v35, %v15643_v29  ;;  %v16304_v7 = vadd.f32 %v16303_v38, %v15651_v16  ;;  %v15644_v6 = vpop.f32.mrb[70].mxu0  ;;  %v15652_v30 = vpop.f32.mrb[14].mxu1 }
 0x2e2   : >> { %12854 = vst [vmem:[%s19078_s7 + $0x210] sm:$0xff] %v2669_v0  ;;  %12858 = vst [vmem:[%s19078_s7 + $0x250] sm:$0xff] %v2673_v27  ;;  %v16274_v37 = vadd.f32 %v19059_v17, %v2557_v18  ;;  %v16308_v42 = vadd.f32 %v19067_v54, %v2589_v57  ;;  %v16279_v50 = vadd.f32 %v19061_v49, %v15644_v6  ;;  %v2560_v35 = vpop.f32.mrb[71].mxu0  ;;  %v2592_v51 = vpop.f32.mrb[15].mxu1 }
 0x2e3   : >> { %v16312_v48 = vadd.f32 %v16311_v44, %v15652_v30  ;;  %12853 = vst [vmem:[%s19078_s7 + $0x208] sm:$0xff] %v2668_v2  ;;  %12857 = vst [vmem:[%s19078_s7 + $0x248] sm:$0xff] %v2672_v25  ;;  %v2642_v52 = vmul.f32 0.1, %v16269_v4  ;;  %vm2626_vm10 = vcmp.gt.f32.partialorder %v16269_v4, 0.0  ;;  %vm2634_vm11 = vcmp.gt.f32.partialorder %v16304_v7, 0.0 }
 0x2e4   : >> { %v2650_v23 = vmul.f32 0.1, %v16304_v7  ;;  %vm2624_vm12 = vcmp.gt.f32.partialorder %v16274_v37, 0.0  ;;  %vm2627_vm13 = vcmp.gt.f32.partialorder %v16279_v50, 0.0  ;;  %v2643_v60 = vmul.f32 0.1, %v16279_v50 }
 0x2e5   : >> { %v2640_v55 = vmul.f32 0.1, %v16274_v37  ;;  %vm2632_vm14 = vcmp.gt.f32.partialorder %v16308_v42, 0.0  ;;  %vm2635_vm15 = vcmp.gt.f32.partialorder %v16312_v48, 0.0  ;;  %v2651_v17 = vmul.f32 0.1, %v16312_v48 }
 0x2e6   : >> { %v2658_v54 = vsel %vm2626_vm10, %v16269_v4, %v2642_v52  ;;  %v2659_v49 = vsel %vm2627_vm13, %v16279_v50, %v2643_v60  ;;  %v16284_v53 = vadd.f32 %v19064_v5, %v2560_v35  ;;  %v16316_v56 = vadd.f32 %v19070_v32, %v2592_v51 }
 0x2e7   : >> { %v2666_v31 = vsel %vm2634_vm11, %v16304_v7, %v2650_v23  ;;  %v2648_v38 = vmul.f32 0.1, %v16308_v42  ;;  %v2671_v44 = vpack.c.bf16 %v2659_v49, %v2658_v54  ;;  %v2667_v58 = vsel %vm2635_vm15, %v16312_v48, %v2651_v17 }
 0x2e8   : >> { %v2675_v40 = vpack.c.bf16 %v2667_v58, %v2666_v31  ;;  %vm2625_vm2 = vcmp.gt.f32.partialorder %v16284_v53, 0.0  ;;  %v2641_v43 = vmul.f32 0.1, %v16284_v53  ;;  %vm2633_vm3 = vcmp.gt.f32.partialorder %v16316_v56, 0.0  ;;  %934 = sbr.rel (!%p932_p9) target bundleno = 353 (0x161), region = 192 }
 0x2e9   : >> { %12856 = vst [vmem:[%s19078_s7 + $0x230] sm:$0xff] %v2671_v44  ;;  %v2649_v63 = vmul.f32 0.1, %v16316_v56  ;;  %v2656_v3 = vsel %vm2624_vm12, %v16274_v37, %v2640_v55  ;;  %v2664_v5 = vsel %vm2632_vm14, %v16308_v42, %v2648_v38 }
 0x2ea   : >> { %12860 = vst [vmem:[%s19078_s7 + $0x270] sm:$0xff] %v2675_v40  ;;  %v2657_v9 = vsel %vm2625_vm2, %v16284_v53, %v2641_v43 }
 0x2eb   : >> { %v2670_v13 = vpack.c.bf16 %v2657_v9, %v2656_v3  ;;  %v2665_v32 = vsel %vm2633_vm3, %v16316_v56, %v2649_v63 }
 0x2ec   : >> { %v2674_v59 = vpack.c.bf16 %v2665_v32, %v2664_v5 }
 0x2ed   : >> { %12855 = vst [vmem:[%s19078_s7 + $0x228] sm:$0xff] %v2670_v13 }
 0x2ee   : >> { %12859 = vst [vmem:[%s19078_s7 + $0x268] sm:$0xff] %v2674_v59 }
 0x2ef LB: >> { %v17216_v45 = vld [vmem:[#allocation6 + $0x280] sm:$0xff]   ;;  %v17219_v36 = vld [vmem:[#allocation6 + $0x288] sm:$0xff]   ;;  %v17222_v61 = vld [vmem:[#allocation6 + $0x290] sm:$0xff]   ;;  %s13852_s8 = sshll.u32 %s17904_s29, 7  ;;  %vm2779_vm4 = vcmask 1046528   ;;  %vm2726_vm5 = vcmask 1040384   ;;  %s17904_s29 = sphi %s19098_s29, %s2691_s29  }
 0x2f0   : >> { %v17217_v11 = vld [vmem:[#allocation6 + $0x2c0] sm:$0xff]   ;;  %14117 = vmatprep.subr.bf16.mxu0 %v17216_v45  ;;  %v17220_v12 = vld [vmem:[#allocation6 + $0x2c8] sm:$0xff]   ;;  %v17223_v1 = vld [vmem:[#allocation6 + $0x2d0] sm:$0xff]   ;;  %s19106_s9 = scalar_lea.vmem [#allocation3], %s13852_s8  ;;  %s19424_s10 = scalar_lea.vmem [#allocation2], %s13852_s8 }
 0x2f1   : >> { %v17218_v41 = vld [vmem:[#allocation6 + $0x240] sm:$0xff]   ;;  %15653 = vmatprep.subr.bf16.mxu1 %v17217_v11  ;;  %v17221_v14 = vld [vmem:[#allocation6 + $0x248] sm:$0xff]   ;;  %v17224_v19 = vld [vmem:[#allocation6 + $0x250] sm:$0xff]   ;;  %s2691_s29 = sadd.s32 1, %s17904_s29  }
 0x2f2   : >> { %14118 = vmatpush3.bf16.msra.mxu0 %v17218_v41  ;;  %15654 = vmatpush3.bf16.msra.mxu1 %v17217_v11  ;;  %v17225_v22 = vld [vmem:[#allocation6 + $0x298] sm:$0xff]   ;;  %v17228_v47 = vld [vmem:[#allocation6 + $0x2a0] sm:$0xff]   ;;  %v17231_v24 = vld [vmem:[#allocation6 + $0x2a8] sm:$0xff]   ;;  %p2688_p12 = scmp.ge.s32.totalorder %s2691_s29, 8  }
 0x2f3   : >> { %14119 = vmatprep.subr.bf16.mxu0 %v17219_v36  ;;  %15655 = vmatprep.subr.bf16.mxu1 %v17220_v12  ;;  %v17226_v33 = vld [vmem:[#allocation6 + $0x2d8] sm:$0xff]   ;;  %v17229_v46 = vld [vmem:[#allocation6 + $0x2e0] sm:$0xff]   ;;  %v17232_v26 = vld [vmem:[#allocation6 + $0x2e8] sm:$0xff]   ;;  %s19444_s11 = smov (%p2688_p12), 0  }
 0x2f4   : >> { %v17227_v62 = vld [vmem:[#allocation6 + $0x258] sm:$0xff]   ;;  %v17230_v15 = vld [vmem:[#allocation6 + $0x260] sm:$0xff]   ;;  %v17233_v20 = vld [vmem:[#allocation6 + $0x268] sm:$0xff]  }
 0x2f5   : >> { %v17234_v28 = vld [vmem:[#allocation6 + $0x2b0] sm:$0xff]   ;;  %v12865_v8 = vld [vmem:[%s19106_s9 + $0x1c8] sm:$0xff]  ;;  %v17237_v0 = vld [vmem:[#allocation6 + $0x2b8] sm:$0xff]  }
 0x2f6   : >> { %14120 = vmatpush3.bf16.msra.mxu0 %v17221_v14  ;;  %15656 = vmatpush3.bf16.msra.mxu1 %v17220_v12  ;;  %v17235_v21 = vld [vmem:[#allocation6 + $0x2f0] sm:$0xff]   ;;  %v12880_v16 = vld [vmem:[%s19106_s9 + $0x1c8] sm:$0xfe]  ;;  %v17238_v27 = vld [vmem:[#allocation6 + $0x2f8] sm:$0xff]   ;;  %v2728_v2 = vrot.slane %v12865_v8, 7 }
 0x2f7   : >> { %14121 = vmatprep.subr.bf16.mxu0 %v17222_v61  ;;  %15657 = vmatprep.subr.bf16.mxu1 %v17223_v1  ;;  %v17236_v39 = vld [vmem:[#allocation6 + $0x270] sm:$0xff]   ;;  %v2780_v10 = vrot.slane %v12880_v16, 1  ;;  %v12864_v18 = vld [vmem:[%s19106_s9 + $0x1c0] sm:$0x80]  ;;  %v17239_v57 = vld [vmem:[#allocation6 + $0x278] sm:$0xff]  }
 0x2f8   : >> { %v12876_v29 = vld [vmem:[%s19106_s9 + $0x1d0] sm:$0xff]  ;;  %3033 = vmatprep.mubr.bf16.mxu0 %v12865_v8  ;;  %v12881_v25 = vld [vmem:[%s19106_s9 + $0x1d8] sm:$0x1]  ;;  %v2727_v7 = vrot.slane %v12864_v18, 7  ;;  %v17240_v30 = vld [vmem:[#allocation6 + $0x340] sm:$0xff]  }
 0x2f9   : >> { %v2781_v34 = vrot.slane %v12876_v29, 1  ;;  %v2783_v6 = vrot.slane %v12881_v25, 1  ;;  %v17241_v37 = vld [vmem:[#allocation6 + $0x400] sm:$0xff]   ;;  %v19117_v51 = vld [vmem:[%s19106_s9 + $0x1f0] sm:$0xff]  ;;  %v12882_v52 = vld [vmem:[%s19106_s9 + $0x1e8] sm:$0xfe] }
 0x2fa   : >> { %14122 = vmatpush3.bf16.msra.mxu0 %v17224_v19  ;;  %15658 = vmatpush3.bf16.msra.mxu1 %v17223_v1  ;;  %v17242_v42 = vld [vmem:[#allocation6 + $0x300] sm:$0xff]   ;;  %v2729_v48 = vsel %vm2726_vm5, %v2727_v7, %v2728_v2  ;;  %v12866_v23 = vld [vmem:[%s19106_s9 + $0x1d0] sm:$0x7f]  ;;  %v17244_v60 = vld [vmem:[#allocation6 + $0x348] sm:$0xff]   ;;  %v2785_v55 = vrot.slane %v12882_v52, 1  ;;  %v2786_v17 = vrot.slane %v19117_v51, 1 }
 0x2fb   : >> { %14123 = vmatprep.subr.bf16.mxu0 %v17225_v22  ;;  %15659 = vmatprep.subr.bf16.mxu1 %v17226_v33  ;;  %v2782_v4 = vsel %vm2779_vm4, %v2780_v10, %v2781_v34  ;;  %v17243_v50 = vld [vmem:[#allocation6 + $0x3c0] sm:$0xff]   ;;  %v2784_v35 = vsel %vm2779_vm4, %v2781_v34, %v2783_v6  ;;  %v12883_v54 = vld [vmem:[%s19106_s9 + $0x1f8] sm:$0x1]  ;;  %v17245_v49 = vld [vmem:[#allocation6 + $0x308] sm:$0xff]   ;;  %v2730_v53 = vrot.slane %v12866_v23, 7 }
 0x2fc   : >> { %15669 = vmatprep.mubr.bf16.mxu1 %v2782_v4  ;;  %v17247_v56 = vld [vmem:[#allocation6 + $0x408] sm:$0xff]   ;;  %v2787_v31 = vsel %vm2779_vm4, %v2785_v55, %v2786_v17  ;;  %v2788_v38 = vrot.slane %v12883_v54, 1  ;;  %v17246_v44 = vld [vmem:[#allocation6 + $0x350] sm:$0xff]   ;;  %v12867_v13 = vld [vmem:[%s19106_s9 + $0x1e0] sm:$0x80] }
 0x2fd   : >> { %v17249_v58 = vld [vmem:[#allocation6 + $0x3c8] sm:$0xff]   ;;  %v17248_v40 = vld [vmem:[#allocation6 + $0x310] sm:$0xff]   ;;  %v2731_v63 = vsel %vm2726_vm5, %v2728_v2, %v2730_v53  ;;  %v17250_v32 = vld [vmem:[#allocation6 + $0x358] sm:$0xff]   ;;  %v2732_v12 = vrot.slane %v12867_v13, 7 }
 0x2fe   : >> { %14124 = vmatpush3.bf16.msra.mxu0 %v17227_v62  ;;  %15660 = vmatpush3.bf16.msra.mxu1 %v17226_v33  ;;  %v12868_v43 = vld [vmem:[%s19106_s9 + $0x1e8] sm:$0xff]  ;;  %v2789_v3 = vsel %vm2779_vm4, %v2786_v17, %v2788_v38  ;;  %v19128_v9 = vld [vmem:[%s19106_s9 + $0x210] sm:$0xff]  ;;  %v12885_v41 = vld [vmem:[%s19106_s9 + $0x218] sm:$0x1] }
 0x2ff   : >> { %14125 = vmatprep.subr.bf16.mxu0 %v17228_v47  ;;  %15661 = vmatprep.subr.bf16.mxu1 %v17229_v46  ;;  %v12884_v5 = vld [vmem:[%s19106_s9 + $0x208] sm:$0xfe]  ;;  %v2733_v59 = vrot.slane %v12868_v43, 7  ;;  %v19133_v11 = vrot.slane %v19128_v9, 1  ;;  %v17251_v36 = vld [vmem:[#allocation6 + $0x318] sm:$0xff]   ;;  %v17253_v14 = vld [vmem:[#allocation6 + $0x410] sm:$0xff]  }
 0x300   : >> { %v2790_v45 = vrot.slane %v12884_v5, 1  ;;  %v2793_v1 = vrot.slane %v12885_v41, 1  ;;  %v17252_v19 = vld [vmem:[#allocation6 + $0x360] sm:$0xff]   ;;  %v17255_v22 = vld [vmem:[#allocation6 + $0x3d0] sm:$0xff]   ;;  %v17259_v8 = vld [vmem:[#allocation6 + $0x418] sm:$0xff]  }
 0x301   : >> { %v19139_v33 = vld [vmem:[%s19106_s9 + $0x230] sm:$0xff]  ;;  %v2734_v62 = vsel %vm2726_vm5, %v2732_v12, %v2733_v59  ;;  %v17261_v10 = vld [vmem:[#allocation6 + $0x3d8] sm:$0xff]   ;;  %v12871_v25 = vld [vmem:[%s19106_s9 + $0x208] sm:$0xff] }
 0x302   : >> { %14126 = vmatpush3.bf16.msra.mxu0 %v17230_v15  ;;  %15662 = vmatpush3.bf16.msra.mxu1 %v17229_v46  ;;  %v2792_v61 = vsel %vm2779_vm4, %v2790_v45, %v19133_v11  ;;  %v2794_v47 = vsel %vm2779_vm4, %v19133_v11, %v2793_v1  ;;  %v17254_v46 = vld [vmem:[#allocation6 + $0x320] sm:$0xff]   ;;  %v12886_v15 = vld [vmem:[%s19106_s9 + $0x228] sm:$0xfe]  ;;  %v17258_v16 = vld [vmem:[#allocation6 + $0x370] sm:$0xff]  }
 0x303   : >> { %14127 = vmatprep.subr.bf16.mxu0 %v17231_v24  ;;  %15663 = vmatprep.subr.bf16.mxu1 %v17232_v26  ;;  %v19146_v24 = vrot.slane %v19139_v33, 1  ;;  %v17260_v34 = vld [vmem:[#allocation6 + $0x330] sm:$0xff]   ;;  %v17262_v18 = vld [vmem:[#allocation6 + $0x378] sm:$0xff]   ;;  %v12870_v4 = vld [vmem:[%s19106_s9 + $0x200] sm:$0x80] }
 0x304   : >> { %v12914_v7 = vld [vmem:[%s19106_s9 + $0x200] sm:$0x80]  ;;  %v12916_v55 = vld [vmem:[%s19106_s9 + $0x210] sm:$0x7f]  ;;  %v17267_v17 = vld [vmem:[#allocation6 + $0x388] sm:$0xff]  }
 0x305   : >> { %v17265_v6 = vld [vmem:[#allocation6 + $0x420] sm:$0xff]   ;;  %v17269_v54 = vld [vmem:[#allocation6 + $0x3e8] sm:$0xff]   ;;  %v17272_v38 = vld [vmem:[#allocation6 + $0x3f0] sm:$0xff]  }
 0x306   : >> { %14128 = vmatpush3.bf16.msra.mxu0 %v17233_v20  ;;  %15664 = vmatpush3.bf16.msra.mxu1 %v17232_v26  ;;  %v12869_v26 = vld [vmem:[%s19106_s9 + $0x1f0] sm:$0x7f]  ;;  %v17256_v20 = vld [vmem:[#allocation6 + $0x368] sm:$0xff]   ;;  %v17273_v5 = vld [vmem:[#allocation6 + $0x398] sm:$0xff]  }
 0x307   : >> { %14129 = vmatprep.subr.bf16.mxu0 %v17234_v28  ;;  %15665 = vmatprep.subr.bf16.mxu1 %v17235_v21  ;;  %v2795_v28 = vrot.slane %v12886_v15, 1  ;;  %v17275_v13 = vld [vmem:[#allocation6 + $0x3f8] sm:$0xff]   ;;  %v17276_v41 = vld [vmem:[#allocation6 + $0x3a0] sm:$0xff]   ;;  %v17278_v1 = vld [vmem:[#allocation6 + $0x3a8] sm:$0xff]  }
 0x308   : >> { %v12921_v15 = vld [vmem:[%s19106_s9 + $0x248] sm:$0xff] }
 0x30a   : >> { %14130 = vmatpush3.bf16.msra.mxu0 %v17236_v39  ;;  %15666 = vmatpush3.bf16.msra.mxu1 %v17235_v21  ;;  %v12887_v21 = vld [vmem:[%s19106_s9 + $0x238] sm:$0x1]  ;;  %v17257_v39 = vld [vmem:[#allocation6 + $0x328] sm:$0xff]  }
 0x30b   : >> { %14131 = vmatprep.subr.bf16.mxu0 %v17237_v0  ;;  %15667 = vmatprep.subr.bf16.mxu1 %v17238_v27  ;;  %v2735_v0 = vrot.slane %v12869_v26, 7  ;;  %v12920_v26 = vld [vmem:[%s19106_s9 + $0x240] sm:$0x80] }
 0x30e   : >> { %14132 = vmatpush3.bf16.msra.mxu0 %v17239_v57  ;;  %15668 = vmatpush3.bf16.msra.mxu1 %v17238_v27  ;;  %v2798_v27 = vrot.slane %v12887_v21, 1  ;;  %v2736_v57 = vsel %vm2726_vm5, %v2733_v59, %v2735_v0  ;;  %v3249_v21 = vrot.slane %v12920_v26, 7  ;;  %v12922_v0 = vld [vmem:[%s19106_s9 + $0x250] sm:$0x7f]  ;;  %v12935_v26 = vld [vmem:[%s19106_s9 + $0x258] sm:$0x1] }
 0x30f   : >> { %14197 = vmatprep.subr.bf16.mxu1 %v17240_v30  ;;  %14277 = vmatprep.subr.bf16.mxu0 %v17241_v37  ;;  %v17263_v30 = vld [vmem:[#allocation6 + $0x338] sm:$0xff]   ;;  %v17266_v37 = vld [vmem:[#allocation6 + $0x3e0] sm:$0xff]  }
 0x310   : >> { %v2799_v2 = vsel %vm2779_vm4, %v19146_v24, %v2798_v27  ;;  %v12966_v27 = vld [vmem:[%s19106_s9 + $0x250] sm:$0x7f] }
 0x311   : >> { %3034 = vmatmul.mubr.bf16.vlgmr.msra.gmra.mrb[0].mxu0 %v2729_v48  ;;  %15670 = vmatmul.mubr.bf16.vlgmr.msra.gmra.mrb[0].mxu1 %v2784_v35  ;;  %v3239_v48 = vrot.slane %v12914_v7, 7  ;;  %v17264_v35 = vld [vmem:[#allocation6 + $0x380] sm:$0xff]  }
 0x312   : >> { %14198 = vmatpush3.bf16.msra.mxu1 %v17242_v42  ;;  %14278 = vmatpush3.bf16.msra.mxu0 %v17243_v50  ;;  %v2738_v42 = vrot.slane %v12871_v25, 7  ;;  %v2737_v50 = vrot.slane %v12870_v4, 7  ;;  %v12924_v4 = vld [vmem:[%s19106_s9 + $0x268] sm:$0xff]  ;;  %v12923_v7 = vld [vmem:[%s19106_s9 + $0x260] sm:$0x80] }
 0x313   : >> { %14199 = vmatprep.subr.bf16.mxu1 %v17244_v60  ;;  %3041 = vmatprep.mubr.bf16.mxu0 %v12876_v29  ;;  %v2797_v29 = vsel %vm2779_vm4, %v2795_v28, %v19146_v24  ;;  %v12872_v60 = vld [vmem:[%s19106_s9 + $0x210] sm:$0x7f]  ;;  %v17282_v28 = vld [vmem:[#allocation6 + $0x3b8] sm:$0xff]  }
 0x314   : >> { %15673 = vmatprep.mubr.bf16.mxu1 %v2787_v31  ;;  %14279 = vmatprep.subr.bf16.mxu0 %v17247_v56  ;;  %v2739_v52 = vsel %vm2726_vm5, %v2737_v50, %v2738_v42  ;;  %v3241_v23 = vsel %vm2726_vm5, %v3239_v48, %v2738_v42  ;;  %v2740_v53 = vrot.slane %v12872_v60, 7  ;;  %v3242_v56 = vrot.slane %v12916_v55, 7  ;;  %v17270_v31 = vld [vmem:[#allocation6 + $0x390] sm:$0xff]   ;;  %v19211_v48 = vld [vmem:[#allocation6 + $0x460] sm:$0xff]   ;;  %v12930_v55 = vld [vmem:[%s19106_s9 + $0x208] sm:$0xfe] }
 0x315   : >> { %v12969_v60 = vld [vmem:[%s19106_s9 + $0x270] sm:$0x7f] }
 0x316   : >> { %14200 = vmatpush3.bf16.msra.mxu1 %v17245_v49  ;;  %14280 = vmatpush3.bf16.msra.mxu0 %v17249_v58  ;;  %v17271_v49 = vld [vmem:[#allocation6 + $0x430] sm:$0xff]   ;;  %v2741_v58 = vsel %vm2726_vm5, %v2738_v42, %v2740_v53  ;;  %v3291_v53 = vrot.slane %v12930_v55, 1 }
 0x317   : >> { %14201 = vmatprep.subr.bf16.mxu1 %v17246_v44  ;;  %14281 = vmatprep.subr.bf16.mxu0 %v17253_v14  ;;  %v12874_v44 = vld [vmem:[%s19106_s9 + $0x228] sm:$0xff]  ;;  %v12875_v14 = vld [vmem:[%s19106_s9 + $0x230] sm:$0x7f] }
 0x319   : >> { %3042 = vmatmul.mubr.bf16.gmra.mrb[4].mxu0 %v2731_v63  ;;  %15674 = vmatmul.mubr.bf16.gmra.mrb[4].mxu1 %v2789_v3  ;;  %v12917_v63 = vld [vmem:[%s19106_s9 + $0x220] sm:$0x80]  ;;  %v17274_v3 = vld [vmem:[#allocation6 + $0x438] sm:$0xff]  }
 0x31a   : >> { %14202 = vmatpush3.bf16.msra.mxu1 %v17248_v40  ;;  %3049 = vmatprep.mubr.bf16.mxu0 %v12868_v43  ;;  %v3243_v40 = vsel %vm2726_vm5, %v2738_v42, %v3242_v56  ;;  %v12873_v43 = vld [vmem:[%s19106_s9 + $0x220] sm:$0x80]  ;;  %v3244_v45 = vrot.slane %v12917_v63, 7  ;;  %v3254_v42 = vrot.slane %v12923_v7, 7  ;;  %v19229_v56 = vld [vmem:[#allocation6 + $0x470] sm:$0xff]  }
 0x31b   : >> { %14203 = vmatprep.subr.bf16.mxu1 %v17250_v32  ;;  %15677 = vmatprep.mubr.bf16.mxu1 %v2792_v61  ;;  %v2743_v32 = vrot.slane %v12874_v44, 7  ;;  %v2742_v59 = vrot.slane %v12873_v43, 7  ;;  %v12919_v61 = vld [vmem:[%s19106_s9 + $0x230] sm:$0x7f]  ;;  %v12970_v43 = vld [vmem:[%s19106_s9 + $0x280] sm:$0x80] }
 0x31c   : >> { %14282 = vmatpush3.bf16.msra.mxu0 %v17255_v22  ;;  %v3247_v22 = vrot.slane %v12919_v61, 7  ;;  %v12932_v63 = vld [vmem:[%s19106_s9 + $0x228] sm:$0xfe]  ;;  %v19254_v61 = vld [vmem:[%s19106_s9 + $0x290] sm:$0xff] }
 0x31d   : >> { %14283 = vmatprep.subr.bf16.mxu0 %v17259_v8  ;;  %v3246_v12 = vsel %vm2726_vm5, %v3244_v45, %v2743_v32  ;;  %v3813_v7 = vrot.slane %v19254_v61, 1 }
 0x31e   : >> { %14204 = vmatpush3.bf16.msra.mxu1 %v17251_v36  ;;  %v2744_v36 = vsel %vm2726_vm5, %v2742_v59, %v2743_v32  ;;  %v3296_v59 = vrot.slane %v12932_v63, 1 }
 0x31f   : >> { %14205 = vmatprep.subr.bf16.mxu1 %v17252_v19  ;;  %v2745_v19 = vrot.slane %v12875_v14, 7  ;;  %v12972_v14 = vld [vmem:[%s19106_s9 + $0x290] sm:$0x7f] }
 0x320   : >> { %14284 = vmatpush3.bf16.msra.mxu0 %v17261_v10  ;;  %v19191_v10 = vld [vmem:[#allocation6 + $0x448] sm:$0xff]  }
 0x321   : >> { %3050 = vmatmul.mubr.bf16.gmra.mrb[8].mxu0 %v2734_v62  ;;  %15678 = vmatmul.mubr.bf16.gmra.mrb[8].mxu1 %v2794_v47  ;;  %v17280_v62 = vld [vmem:[#allocation6 + $0x3b0] sm:$0xff]   ;;  %v2746_v47 = vsel %vm2726_vm5, %v2743_v32, %v2745_v19  ;;  %v3763_v19 = vrot.slane %v12972_v14, 7 }
 0x322   : >> { %14206 = vmatpush3.bf16.msra.mxu1 %v17254_v46  ;;  %3057 = vmatprep.mubr.bf16.mxu0 %v19117_v51  ;;  %v17268_v51 = vld [vmem:[#allocation6 + $0x428] sm:$0xff]   ;;  %v3248_v46 = vsel %vm2726_vm5, %v2743_v32, %v3247_v22  ;;  %v3760_v32 = vrot.slane %v12970_v43, 7 }
 0x323   : >> { %14207 = vmatprep.subr.bf16.mxu1 %v17256_v20  ;;  %15681 = vmatprep.mubr.bf16.mxu1 %v2797_v29  ;;  %v12964_v20 = vld [vmem:[%s19106_s9 + $0x240] sm:$0x80] }
 0x324   : >> { %14285 = vmatprep.subr.bf16.mxu0 %v17265_v6  ;;  %v12967_v6 = vld [vmem:[%s19106_s9 + $0x260] sm:$0x80] }
 0x325   : >> { %14286 = vmatpush3.bf16.msra.mxu0 %v17266_v37  ;;  %v3255_v37 = vrot.slane %v12924_v4, 7  ;;  %v3755_v50 = vrot.slane %v12967_v6, 7 }
 0x326   : >> { %14208 = vmatpush3.bf16.msra.mxu1 %v17257_v39  ;;  %14287 = vmatprep.subr.bf16.mxu0 %v17268_v51  ;;  %v3750_v39 = vrot.slane %v12964_v20, 7  ;;  %v12973_v20 = vld [vmem:[%s19106_s9 + $0x2a0] sm:$0x80] }
 0x327   : >> { %14209 = vmatprep.subr.bf16.mxu1 %v17258_v16  ;;  %v19187_v16 = vld [vmem:[%s19106_s9 + $0x250] sm:$0xff]  ;;  %v3757_v51 = vsel %vm2726_vm5, %v3755_v50, %v3255_v37  ;;  %v12981_v50 = vld [vmem:[%s19106_s9 + $0x258] sm:$0x1] }
 0x328   : >> { %v19259_v22 = vrot.slane %v19187_v16, 1 }
 0x329   : >> { %3058 = vmatmul.mubr.bf16.gmra.mrb[12].mxu0 %v2736_v57  ;;  %15682 = vmatmul.mubr.bf16.gmra.mrb[12].mxu1 %v2799_v2  ;;  %v19198_v57 = vld [vmem:[#allocation6 + $0x450] sm:$0xff]  }
 0x32a   : >> { %14210 = vmatpush3.bf16.msra.mxu1 %v17260_v34  ;;  %3065 = vmatprep.mubr.bf16.mxu0 %v12871_v25  ;;  %v3252_v34 = vrot.slane %v12922_v0, 7 }
 0x32b   : >> { %14211 = vmatprep.subr.bf16.mxu1 %v17262_v18  ;;  %3544 = vmatprep.mubr.bf16.mxu1 %v12871_v25  ;;  %v3753_v18 = vrot.slane %v12966_v27, 7  ;;  %v12937_v27 = vld [vmem:[%s19106_s9 + $0x278] sm:$0x1] }
 0x32c   : >> { %14288 = vmatpush3.bf16.msra.mxu0 %v17269_v54 }
 0x32d   : >> { %14289 = vmatprep.subr.bf16.mxu0 %v17271_v49  ;;  %v3758_v49 = vrot.slane %v12969_v60, 7 }
 0x32e   : >> { %14212 = vmatpush3.bf16.msra.mxu1 %v17263_v30  ;;  %v19207_v30 = vld [vmem:[#allocation6 + $0x458] sm:$0xff]  }
 0x32f   : >> { %15685 = vmatprep.subr.bf16.mxu1 %v17264_v35 }
 0x330   : >> { %14290 = vmatpush3.bf16.msra.mxu0 %v17272_v38  ;;  %v3759_v38 = vsel %vm2726_vm5, %v3255_v37, %v3758_v49 }
 0x331   : >> { %3066 = vmatmul.mubr.bf16.gmra.mrb[16].mxu0 %v2739_v52  ;;  %3545 = vmatmul.mubr.bf16.vlgmr.msra.gmra.mrb[16].mxu1 %v3241_v23  ;;  %v19216_v52 = vld [vmem:[%s19106_s9 + $0x270] sm:$0xff] }
 0x332   : >> { %15686 = vmatpush3.bf16.msra.mxu1 %v17264_v35  ;;  %3073 = vmatprep.mubr.bf16.mxu0 %v19128_v9  ;;  %v3256_v35 = vsel %vm2726_vm5, %v3254_v42, %v3255_v37  ;;  %v12925_v23 = vld [vmem:[%s19106_s9 + $0x270] sm:$0x7f] }
 0x333   : >> { %3552 = vmatprep.mubr.bf16.mxu1 %v19128_v9  ;;  %15687 = vmatprep.subr.bf16.mxu1 %v17267_v17  ;;  %v19170_v9 = vld [vmem:[#allocation6 + $0x440] sm:$0xff]   ;;  %v3257_v54 = vrot.slane %v12925_v23, 7  ;;  %v3805_v23 = vrot.slane %v12981_v50, 1 }
 0x334   : >> { %14291 = vmatprep.subr.bf16.mxu0 %v17274_v3  ;;  %v19241_v3 = vld [vmem:[#allocation6 + $0x478] sm:$0xff]  }
 0x335   : >> { %14292 = vmatpush3.bf16.msra.mxu0 %v17275_v13  ;;  %v3806_v49 = vsel %vm2779_vm4, %v19259_v22, %v3805_v23 }
 0x336   : >> { %15688 = vmatpush3.bf16.msra.mxu1 %v17267_v17  ;;  %15717 = vmatprep.subr.bf16.mxu0 %v19170_v9  ;;  %v19223_v17 = vld [vmem:[#allocation6 + $0x468] sm:$0xff]  }
 0x337   : >> { %15689 = vmatprep.subr.bf16.mxu1 %v17270_v31 }
 0x339   : >> { %3074 = vmatmul.mubr.bf16.gmra.mrb[20].mxu0 %v2741_v58  ;;  %3553 = vmatmul.mubr.bf16.gmra.mrb[20].mxu1 %v3243_v40  ;;  %v12971_v58 = vld [vmem:[%s19106_s9 + $0x288] sm:$0xff]  ;;  %v12931_v40 = vld [vmem:[%s19106_s9 + $0x218] sm:$0x1] }
 0x33a   : >> { %3081 = vmatprep.mubr.bf16.mxu0 %v12874_v44  ;;  %3560 = vmatprep.mubr.bf16.mxu1 %v12874_v44  ;;  %v3293_v44 = vsel %vm2779_vm4, %v3291_v53, %v19133_v11  ;;  %v3294_v13 = vrot.slane %v12931_v40, 1 }
 0x33b   : >> { %15690 = vmatpush3.bf16.msra.mxu1 %v17270_v31  ;;  %v3258_v31 = vsel %vm2726_vm5, %v3255_v37, %v3257_v54 }
 0x33c   : >> { %15691 = vmatprep.subr.bf16.mxu1 %v17273_v5  ;;  %v3295_v45 = vsel %vm2779_vm4, %v19133_v11, %v3294_v13 }
 0x33f   : >> { %15692 = vmatpush3.bf16.msra.mxu1 %v17273_v5  ;;  %v3761_v5 = vrot.slane %v12971_v58, 7 }
 0x340   : >> { %15693 = vmatprep.subr.bf16.mxu1 %v17276_v41 }
 0x341   : >> { %3082 = vmatmul.mubr.bf16.gmra.mrb[24].mxu0 %v2744_v36  ;;  %3561 = vmatmul.mubr.bf16.gmra.mrb[24].mxu1 %v3246_v12  ;;  %v3298_v36 = vsel %vm2779_vm4, %v3296_v59, %v19146_v24  ;;  %v12933_v12 = vld [vmem:[%s19106_s9 + $0x238] sm:$0x1] }
 0x342   : >> { %3089 = vmatprep.mubr.bf16.mxu0 %v19139_v33  ;;  %3568 = vmatprep.mubr.bf16.mxu1 %v19139_v33  ;;  %v3250_v33 = vrot.slane %v12921_v15, 7  ;;  %v3299_v11 = vrot.slane %v12933_v12, 1 }
 0x343   : >> { %15694 = vmatpush3.bf16.msra.mxu1 %v17276_v41  ;;  %v3762_v41 = vsel %vm2726_vm5, %v3760_v32, %v3761_v5 }
 0x344   : >> { %15695 = vmatprep.subr.bf16.mxu1 %v17278_v1  ;;  %v3251_v8 = vsel %vm2726_vm5, %v3249_v21, %v3250_v33  ;;  %v3752_v29 = vsel %vm2726_vm5, %v3750_v39, %v3250_v33  ;;  %v3253_v2 = vsel %vm2726_vm5, %v3250_v33, %v3252_v34  ;;  %v3754_v25 = vsel %vm2726_vm5, %v3250_v33, %v3753_v18  ;;  %v12979_v34 = vld [vmem:[%s19106_s9 + $0x2b0] sm:$0xff]  ;;  %v12980_v18 = vld [vmem:[%s19106_s9 + $0x248] sm:$0xfe] }
 0x345   : >> { %v3304_v33 = vrot.slane %v12935_v26, 1  ;;  %v3765_v21 = vrot.slane %v12973_v20, 7  ;;  %v3307_v39 = vrot.slane %v19216_v52, 1  ;;  %v3818_v55 = vrot.slane %v12979_v34, 1 }
 0x347   : >> { %15696 = vmatpush3.bf16.msra.mxu1 %v17278_v1  ;;  %v12934_v1 = vld [vmem:[%s19106_s9 + $0x248] sm:$0xfe] }
 0x348   : >> { %15697 = vmatprep.subr.bf16.mxu1 %v17280_v62 }
 0x349   : >> { %3090 = vmatmul.mubr.bf16.gmra.mrb[28].mxu0 %v2746_v47  ;;  %3569 = vmatmul.mubr.bf16.gmra.mrb[28].mxu1 %v3248_v46  ;;  %v3300_v47 = vsel %vm2779_vm4, %v19146_v24, %v3299_v11  ;;  %v3764_v46 = vsel %vm2726_vm5, %v3761_v5, %v3763_v19 }
 0x34a   : >> { %3576 = vmatprep.mubr.bf16.mxu1 %v12921_v15  ;;  %4055 = vmatprep.mubr.bf16.mxu0 %v12921_v15  ;;  %v12974_v15 = vld [vmem:[%s19106_s9 + $0x2a8] sm:$0xff] }
 0x34b   : >> { %15698 = vmatpush3.bf16.msra.mxu1 %v17280_v62  ;;  %v3301_v62 = vrot.slane %v12934_v1, 1  ;;  %v3766_v24 = vrot.slane %v12974_v15, 7 }
 0x34c   : >> { %15699 = vmatprep.subr.bf16.mxu1 %v17282_v28 }
 0x34f   : >> { %15700 = vmatpush3.bf16.msra.mxu1 %v17282_v28  ;;  %v12936_v28 = vld [vmem:[%s19106_s9 + $0x268] sm:$0xfe] }
 0x350   : >> { %16341 = vmatprep.subr.bf16.mxu1 %v19170_v9 }
 0x351   : >> { %3577 = vmatmul.mubr.bf16.gmra.mrb[32].mxu1 %v3251_v8  ;;  %4056 = vmatmul.mubr.bf16.vlgmr.msra.gmra.mrb[32].mxu0 %v3752_v29  ;;  %v3306_v8 = vrot.slane %v12936_v28, 1  ;;  %v3305_v29 = vsel %vm2779_vm4, %v19259_v22, %v3304_v33  ;;  %v19314_v33 = vld [vmem:[#allocation8 + $0x1] ss:$0 sm:$0xff] }
 0x352   : >> { %15718 = vmatpush3.bf16.msra.mxu0 %v19170_v9  ;;  %3584 = vmatprep.mubr.bf16.mxu1 %v19187_v16 }
 0x353   : >> { %4063 = vmatprep.mubr.bf16.mxu0 %v19187_v16  ;;  %15719 = vmatprep.subr.bf16.mxu0 %v19191_v10  ;;  %v3767_v16 = vsel %vm2726_vm5, %v3765_v21, %v3766_v24  ;;  %v3308_v0 = vsel %vm2779_vm4, %v3306_v8, %v3307_v39 }
 0x356   : >> { %15720 = vmatpush3.bf16.msra.mxu0 %v19191_v10 }
 0x357   : >> { %15721 = vmatprep.subr.bf16.mxu0 %v19198_v57 }
 0x359   : >> { %3585 = vmatmul.mubr.bf16.gmra.mrb[36].mxu1 %v3253_v2  ;;  %4064 = vmatmul.mubr.bf16.gmra.mrb[36].mxu0 %v3754_v25  ;;  %v3309_v2 = vrot.slane %v12937_v27, 1 }
 0x35a   : >> { %3592 = vmatprep.mubr.bf16.mxu1 %v12924_v4  ;;  %4071 = vmatprep.mubr.bf16.mxu0 %v12924_v4  ;;  %v3802_v4 = vrot.slane %v12980_v18, 1 }
 0x35b   : >> { %15722 = vmatpush3.bf16.msra.mxu0 %v19198_v57 }
 0x35c   : >> { %15723 = vmatprep.subr.bf16.mxu0 %v19207_v30  ;;  %v3804_v42 = vsel %vm2779_vm4, %v3802_v4, %v19259_v22 }
 0x35f   : >> { %15724 = vmatpush3.bf16.msra.mxu0 %v19207_v30 }
 0x360   : >> { %15725 = vmatprep.subr.bf16.mxu0 %v19211_v48 }
 0x361   : >> { %3593 = vmatmul.mubr.bf16.gmra.mrb[40].mxu1 %v3256_v35  ;;  %4072 = vmatmul.mubr.bf16.gmra.mrb[40].mxu0 %v3757_v51  ;;  %v12982_v51 = vld [vmem:[%s19106_s9 + $0x268] sm:$0xfe] }
 0x362   : >> { %3600 = vmatprep.mubr.bf16.mxu1 %v19216_v52  ;;  %4079 = vmatprep.mubr.bf16.mxu0 %v19216_v52  ;;  %v12986_v52 = vld [vmem:[%s19106_s9 + $0x2a8] sm:$0xfe] }
 0x363   : >> { %15726 = vmatpush3.bf16.msra.mxu0 %v19211_v48  ;;  %v3817_v54 = vrot.slane %v12986_v52, 1 }
 0x364   : >> { %15727 = vmatprep.subr.bf16.mxu0 %v19223_v17 }
 0x367   : >> { %15728 = vmatpush3.bf16.msra.mxu0 %v19223_v17 }
 0x368   : >> { %15729 = vmatprep.subr.bf16.mxu0 %v19229_v56 }
 0x369   : >> { %3601 = vmatmul.mubr.bf16.gmra.mrb[44].mxu1 %v3258_v31  ;;  %4080 = vmatmul.mubr.bf16.gmra.mrb[44].mxu0 %v3759_v38  ;;  %v12983_v38 = vld [vmem:[%s19106_s9 + $0x278] sm:$0x1] }
 0x36a   : >> { %15701 = vmatprep.mubr.bf16.mxu1 %v3293_v44  ;;  %4087 = vmatprep.mubr.bf16.mxu0 %v12971_v58  ;;  %v12987_v44 = vld [vmem:[%s19106_s9 + $0x2b8] sm:$0x1]  ;;  %v3810_v58 = vrot.slane %v12983_v38, 1 }
 0x36b   : >> { %15730 = vmatpush3.bf16.msra.mxu0 %v19229_v56  ;;  %v3820_v40 = vrot.slane %v12987_v44, 1 }
 0x36c   : >> { %15731 = vmatprep.subr.bf16.mxu0 %v19241_v3  ;;  %v3811_v43 = vsel %vm2779_vm4, %v3307_v39, %v3810_v58 }
 0x36d   : >> { %v3821_v63 = vsel %vm2779_vm4, %v3818_v55, %v3820_v40 }
 0x36f   : >> { %15732 = vmatpush3.bf16.msra.mxu0 %v19241_v3 }
 0x371   : >> { %15702 = vmatmul.mubr.bf16.vlgmr.msra.gmra.mrb[0].mxu1 %v3295_v45  ;;  %4088 = vmatmul.mubr.bf16.gmra.mrb[48].mxu0 %v3762_v41 }
 0x372   : >> { %16349 = vmatpush3.bf16.msra.mxu1 %v19170_v9  ;;  %15705 = vmatprep.mubr.bf16.mxu1 %v3298_v36  ;;  %v3303_v9 = vsel %vm2779_vm4, %v3301_v62, %v19259_v22 }
 0x373   : >> { %16342 = vmatprep.subr.bf16.mxu1 %v19191_v10  ;;  %4095 = vmatprep.mubr.bf16.mxu0 %v19254_v61 }
 0x376   : >> { %16350 = vmatpush3.bf16.msra.mxu1 %v19191_v10  ;;  %v12975_v10 = vld [vmem:[%s19106_s9 + $0x2b0] sm:$0x7f] }
 0x377   : >> { %16343 = vmatprep.subr.bf16.mxu1 %v19198_v57  ;;  %v3768_v25 = vrot.slane %v12975_v10, 7 }
 0x379   : >> { %15706 = vmatmul.mubr.bf16.gmra.mrb[4].mxu1 %v3300_v47  ;;  %4096 = vmatmul.mubr.bf16.gmra.mrb[52].mxu0 %v3764_v46  ;;  %v3769_v37 = vsel %vm2726_vm5, %v3766_v24, %v3768_v25 }
 0x37a   : >> { %16351 = vmatpush3.bf16.msra.mxu1 %v19198_v57  ;;  %15709 = vmatprep.mubr.bf16.mxu1 %v3303_v9  ;;  %v12984_v57 = vld [vmem:[%s19106_s9 + $0x288] sm:$0xfe] }
 0x37b   : >> { %16344 = vmatprep.subr.bf16.mxu1 %v19207_v30  ;;  %4103 = vmatprep.mubr.bf16.mxu0 %v12974_v15  ;;  %v3812_v6 = vrot.slane %v12984_v57, 1 }
 0x37d   : >> { %v3814_v35 = vsel %vm2779_vm4, %v3812_v6, %v3813_v7 }
 0x37e   : >> { %16352 = vmatpush3.bf16.msra.mxu1 %v19207_v30  ;;  %v3310_v30 = vsel %vm2779_vm4, %v3307_v39, %v3309_v2 }
 0x37f   : >> { %16345 = vmatprep.subr.bf16.mxu1 %v19211_v48 }
 0x381   : >> { %15710 = vmatmul.mubr.bf16.gmra.mrb[8].mxu1 %v3305_v29  ;;  %4104 = vmatmul.mubr.bf16.gmra.mrb[56].mxu0 %v3767_v16 }
 0x382   : >> { %16353 = vmatpush3.bf16.msra.mxu1 %v19211_v48  ;;  %15713 = vmatprep.mubr.bf16.mxu1 %v3308_v0  ;;  %v12985_v48 = vld [vmem:[%s19106_s9 + $0x298] sm:$0x1] }
 0x383   : >> { %16346 = vmatprep.subr.bf16.mxu1 %v19223_v17  ;;  %4111 = vmatprep.mubr.bf16.mxu0 %v12979_v34  ;;  %v3815_v60 = vrot.slane %v12985_v48, 1 }
 0x385   : >> { %v3816_v53 = vsel %vm2779_vm4, %v3813_v7, %v3815_v60 }
 0x386   : >> { %16354 = vmatpush3.bf16.msra.mxu1 %v19223_v17  ;;  %v3807_v17 = vrot.slane %v12982_v51, 1 }
 0x387   : >> { %16347 = vmatprep.subr.bf16.mxu1 %v19229_v56 }
 0x388   : >> { %v3809_v31 = vsel %vm2779_vm4, %v3807_v17, %v3307_v39 }
 0x389   : >> { %15714 = vmatmul.mubr.bf16.gmra.mrb[12].mxu1 %v3310_v30  ;;  %4112 = vmatmul.mubr.bf16.gmra.mrb[60].mxu0 %v3769_v37 }
 0x38a   : >> { %16355 = vmatpush3.bf16.msra.mxu1 %v19229_v56  ;;  %15733 = vmatprep.mubr.bf16.mxu0 %v3804_v42  ;;  %v3819_v56 = vsel %vm2779_vm4, %v3817_v54, %v3818_v55 }
 0x38b   : >> { %16348 = vmatprep.subr.bf16.mxu1 %v19241_v3  ;;  %15741 = vmatprep.mubr.bf16.mxu1 %v3814_v35 }
 0x38e   : >> { %16356 = vmatpush3.bf16.msra.mxu1 %v19241_v3 }
 0x391   : >> { %15734 = vmatmul.mubr.bf16.vlgmr.msra.gmra.mrb[64].mxu0 %v3806_v49  ;;  %15742 = vmatmul.mubr.bf16.vlgmr.msra.gmra.mrb[8].mxu1 %v3816_v53 }
 0x392   : >> { %15737 = vmatprep.mubr.bf16.mxu0 %v3809_v31  ;;  %15745 = vmatprep.mubr.bf16.mxu1 %v3819_v56 }
 0x399   : >> { %15738 = vmatmul.mubr.bf16.gmra.mrb[68].mxu0 %v3811_v43  ;;  %15746 = vmatmul.mubr.bf16.gmra.mrb[12].mxu1 %v3821_v63 }
 0x3e4   : >> { %v14133_v3 = vpop.f32.mrb[0].mxu0 }
 0x3e5   : >> { %v14134_v5 = vpop.f32.mrb[1].mxu0 }
 0x3e6   : >> { %v14135_v13 = vadd.f32 %v14134_v5, %v14133_v3  ;;  %v14136_v32 = vpop.f32.mrb[2].mxu0 }
 0x3e7   : >> { %v14137_v59 = vpop.f32.mrb[3].mxu0 }
 0x3e8   : >> { %v14138_v45 = vadd.f32 %v14137_v59, %v14136_v32  ;;  %v16362_v16 = vadd.f32 %v14135_v13, %v19314_v33 }
 0x3ea   : >> { %v16372_v2 = vadd.f32 %v14138_v45, %v19314_v33 }
 0x3ec   : >> { %v14139_v41 = vpop.f32.mrb[4].mxu0 }
 0x3ed   : >> { %v14140_v36 = vpop.f32.mrb[5].mxu0 }
 0x3ee   : >> { %v14141_v12 = vadd.f32 %v14140_v36, %v14139_v41  ;;  %v14142_v14 = vpop.f32.mrb[6].mxu0 }
 0x3ef   : >> { %v14143_v61 = vpop.f32.mrb[7].mxu0 }
 0x3f0   : >> { %v14144_v1 = vadd.f32 %v14143_v61, %v14142_v14  ;;  %v16357_v48 = vadd.f32 %v14141_v12, %v19314_v33 }
 0x3f2   : >> { %v16367_v17 = vadd.f32 %v14144_v1, %v19314_v33 }
 0x3f4   : >> { %v14145_v11 = vpop.f32.mrb[8].mxu0 }
 0x3f5   : >> { %v14146_v19 = vpop.f32.mrb[9].mxu0 }
 0x3f6   : >> { %v14147_v22 = vadd.f32 %v14146_v19, %v14145_v11  ;;  %v14148_v62 = vpop.f32.mrb[10].mxu0 }
 0x3f7   : >> { %v14149_v47 = vpop.f32.mrb[11].mxu0 }
 0x3f8   : >> { %v14150_v46 = vadd.f32 %v14149_v47, %v14148_v62  ;;  %v16382_v40 = vadd.f32 %v14147_v22, %v19314_v33 }
 0x3fa   : >> { %v16392_v59 = vadd.f32 %v14150_v46, %v19314_v33 }
 0x3fc   : >> { %v14151_v9 = vpop.f32.mrb[12].mxu0 }
 0x3fd   : >> { %v14152_v15 = vpop.f32.mrb[13].mxu0 }
 0x3fe   : >> { %v14153_v26 = vadd.f32 %v14152_v15, %v14151_v9  ;;  %v14154_v20 = vpop.f32.mrb[14].mxu0 }
 0x3ff   : >> { %v14155_v28 = vpop.f32.mrb[15].mxu0 }
 0x400   : >> { %v14156_v24 = vadd.f32 %v14155_v28, %v14154_v20  ;;  %v16377_v19 = vadd.f32 %v14153_v26, %v19314_v33 }
 0x402   : >> { %v16387_v20 = vadd.f32 %v14156_v24, %v19314_v33 }
 0x404   : >> { %v14157_v21 = vpop.f32.mrb[16].mxu0  ;;  %v14213_v39 = vpop.f32.mrb[16].mxu1 }
 0x405   : >> { %v14158_v8 = vpop.f32.mrb[17].mxu0  ;;  %v14214_v29 = vpop.f32.mrb[17].mxu1 }
 0x406   : >> { %v19317_v0 = vadd.f32 %v14158_v8, %v14157_v21  ;;  %v14215_v27 = vadd.f32 %v14214_v29, %v14213_v39  ;;  %v14160_v10 = vpop.f32.mrb[18].mxu0  ;;  %v14216_v34 = vpop.f32.mrb[18].mxu1 }
 0x407   : >> { %v14161_v18 = vpop.f32.mrb[19].mxu0  ;;  %v14217_v57 = vpop.f32.mrb[19].mxu1 }
 0x408   : >> { %v19320_v25 = vadd.f32 %v14161_v18, %v14160_v10  ;;  %v14218_v4 = vadd.f32 %v14217_v57, %v14216_v34  ;;  %v19322_v7 = vadd.f32 %v16362_v16, %v14215_v27  ;;  %v16401_v10 = vadd.f32 %v19317_v0, %v19314_v33 }
 0x40a   : >> { %v19324_v6 = vadd.f32 %v16372_v2, %v14218_v4 }
 0x40c   : >> { %v14163_v30 = vpop.f32.mrb[20].mxu0  ;;  %v14219_v37 = vpop.f32.mrb[20].mxu1 }
 0x40d   : >> { %v14164_v42 = vpop.f32.mrb[21].mxu0  ;;  %v14220_v50 = vpop.f32.mrb[21].mxu1 }
 0x40e   : >> { %v19327_v35 = vadd.f32 %v14164_v42, %v14163_v30  ;;  %v14221_v51 = vadd.f32 %v14220_v50, %v14219_v37  ;;  %v14166_v52 = vpop.f32.mrb[22].mxu0  ;;  %v14222_v23 = vpop.f32.mrb[22].mxu1  ;;  %v16409_v30 = vadd.f32 %v19320_v25, %v19314_v33 }
 0x40f   : >> { %v14167_v60 = vpop.f32.mrb[23].mxu0  ;;  %v14223_v55 = vpop.f32.mrb[23].mxu1 }
 0x410   : >> { %v19330_v54 = vadd.f32 %v14167_v60, %v14166_v52  ;;  %v14224_v49 = vadd.f32 %v14223_v55, %v14222_v23  ;;  %v19332_v53 = vadd.f32 %v16357_v48, %v14221_v51  ;;  %v16397_v60 = vadd.f32 %v19327_v35, %v19314_v33 }
 0x412   : >> { %v19334_v31 = vadd.f32 %v16367_v17, %v14224_v49 }
 0x414   : >> { %v14169_v56 = vpop.f32.mrb[24].mxu0  ;;  %v14225_v38 = vpop.f32.mrb[24].mxu1 }
 0x415   : >> { %v14170_v44 = vpop.f32.mrb[25].mxu0  ;;  %v14226_v58 = vpop.f32.mrb[25].mxu1 }
 0x416   : >> { %v19337_v43 = vadd.f32 %v14170_v44, %v14169_v56  ;;  %v14227_v63 = vadd.f32 %v14226_v58, %v14225_v38  ;;  %v14172_v3 = vpop.f32.mrb[26].mxu0  ;;  %v14228_v5 = vpop.f32.mrb[26].mxu1  ;;  %v16405_v44 = vadd.f32 %v19330_v54, %v19314_v33 }
 0x417   : >> { %v14173_v13 = vpop.f32.mrb[27].mxu0  ;;  %v14229_v32 = vpop.f32.mrb[27].mxu1 }
 0x418   : >> { %v19340_v45 = vadd.f32 %v14173_v13, %v14172_v3  ;;  %v14230_v41 = vadd.f32 %v14229_v32, %v14228_v5  ;;  %v19342_v36 = vadd.f32 %v16382_v40, %v14227_v63  ;;  %v16417_v35 = vadd.f32 %v19337_v43, %v19314_v33 }
 0x41a   : >> { %v19344_v12 = vadd.f32 %v16392_v59, %v14230_v41  ;;  %v16425_v54 = vadd.f32 %v19340_v45, %v19314_v33 }
 0x41c   : >> { %v14175_v14 = vpop.f32.mrb[28].mxu0  ;;  %v14231_v61 = vpop.f32.mrb[28].mxu1 }
 0x41d   : >> { %v14176_v1 = vpop.f32.mrb[29].mxu0  ;;  %v14232_v11 = vpop.f32.mrb[29].mxu1 }
 0x41e   : >> { %v19347_v22 = vadd.f32 %v14176_v1, %v14175_v14  ;;  %v14233_v62 = vadd.f32 %v14232_v11, %v14231_v61  ;;  %v14178_v47 = vpop.f32.mrb[30].mxu0  ;;  %v14234_v9 = vpop.f32.mrb[30].mxu1 }
 0x41f   : >> { %v14179_v15 = vpop.f32.mrb[31].mxu0  ;;  %v14235_v46 = vpop.f32.mrb[31].mxu1 }
 0x420   : >> { %v19350_v28 = vadd.f32 %v14179_v15, %v14178_v47  ;;  %v14236_v21 = vadd.f32 %v14235_v46, %v14234_v9  ;;  %v19352_v39 = vadd.f32 %v16377_v19, %v14233_v62  ;;  %v16413_v43 = vadd.f32 %v19347_v22, %v19314_v33 }
 0x422   : >> { %v19354_v8 = vadd.f32 %v16387_v20, %v14236_v21  ;;  %v16421_v45 = vadd.f32 %v19350_v28, %v19314_v33 }
 0x424   : >> { %v14237_v29 = vpop.f32.mrb[32].mxu1  ;;  %v14293_v16 = vpop.f32.mrb[32].mxu0 }
 0x425   : >> { %v14238_v27 = vpop.f32.mrb[33].mxu1  ;;  %v14294_v26 = vpop.f32.mrb[33].mxu0 }
 0x426   : >> { %v14239_v34 = vadd.f32 %v14238_v27, %v14237_v29  ;;  %v19358_v18 = vadd.f32 %v14294_v26, %v14293_v16  ;;  %v14240_v57 = vpop.f32.mrb[34].mxu1  ;;  %v14296_v2 = vpop.f32.mrb[34].mxu0 }
 0x427   : >> { %v14241_v24 = vpop.f32.mrb[35].mxu1  ;;  %v14297_v4 = vpop.f32.mrb[35].mxu0 }
 0x428   : >> { %v19362_v37 = vadd.f32 %v16401_v10, %v14239_v34  ;;  %v14242_v42 = vadd.f32 %v14241_v24, %v14240_v57  ;;  %v19364_v50 = vadd.f32 %v14297_v4, %v14296_v2 }
 0x42a   : >> { %v19366_v48 = vadd.f32 %v16409_v30, %v14242_v42 }
 0x42c   : >> { %v14243_v51 = vpop.f32.mrb[36].mxu1  ;;  %v14299_v52 = vpop.f32.mrb[36].mxu0 }
 0x42d   : >> { %v14244_v0 = vpop.f32.mrb[37].mxu1  ;;  %v14300_v23 = vpop.f32.mrb[37].mxu0 }
 0x42e   : >> { %v14245_v55 = vadd.f32 %v14244_v0, %v14243_v51  ;;  %v14301_v17 = vadd.f32 %v14300_v23, %v14299_v52  ;;  %v14246_v49 = vpop.f32.mrb[38].mxu1  ;;  %v14302_v56 = vpop.f32.mrb[38].mxu0 }
 0x42f   : >> { %v14247_v38 = vpop.f32.mrb[39].mxu1  ;;  %v14303_v25 = vpop.f32.mrb[39].mxu0 }
 0x430   : >> { %v19372_v58 = vadd.f32 %v16397_v60, %v14245_v55  ;;  %v14248_v40 = vadd.f32 %v14247_v38, %v14246_v49  ;;  %v14304_v63 = vadd.f32 %v14303_v25, %v14302_v56 }
 0x432   : >> { %v19374_v3 = vadd.f32 %v16405_v44, %v14248_v40 }
 0x434   : >> { %v14249_v5 = vpop.f32.mrb[40].mxu1  ;;  %v14305_v13 = vpop.f32.mrb[40].mxu0 }
 0x435   : >> { %v14250_v32 = vpop.f32.mrb[41].mxu1  ;;  %v14306_v59 = vpop.f32.mrb[41].mxu0 }
 0x436   : >> { %v14251_v41 = vadd.f32 %v14250_v32, %v14249_v5  ;;  %v14307_v14 = vadd.f32 %v14306_v59, %v14305_v13  ;;  %v14252_v61 = vpop.f32.mrb[42].mxu1  ;;  %v14308_v1 = vpop.f32.mrb[42].mxu0 }
 0x437   : >> { %v14253_v11 = vpop.f32.mrb[43].mxu1  ;;  %v14309_v19 = vpop.f32.mrb[43].mxu0 }
 0x438   : >> { %v19380_v62 = vadd.f32 %v16417_v35, %v14251_v41  ;;  %v14254_v47 = vadd.f32 %v14253_v11, %v14252_v61  ;;  %v14310_v9 = vadd.f32 %v14309_v19, %v14308_v1 }
 0x43a   : >> { %v19382_v15 = vadd.f32 %v16425_v54, %v14254_v47 }
 0x43c   : >> { %v14255_v46 = vpop.f32.mrb[44].mxu1  ;;  %v14311_v20 = vpop.f32.mrb[44].mxu0 }
 0x43d   : >> { %v14256_v21 = vpop.f32.mrb[45].mxu1  ;;  %v14312_v29 = vpop.f32.mrb[45].mxu0 }
 0x43e   : >> { %v14257_v16 = vadd.f32 %v14256_v21, %v14255_v46  ;;  %v14313_v27 = vadd.f32 %v14312_v29, %v14311_v20  ;;  %v14258_v26 = vpop.f32.mrb[46].mxu1  ;;  %v14314_v10 = vpop.f32.mrb[46].mxu0 }
 0x43f   : >> { %v14259_v34 = vpop.f32.mrb[47].mxu1  ;;  %v14315_v57 = vpop.f32.mrb[47].mxu0 }
 0x440   : >> { %v16414_v2 = vadd.f32 %v16413_v43, %v14257_v16  ;;  %v14260_v24 = vadd.f32 %v14259_v34, %v14258_v26  ;;  %v14316_v4 = vadd.f32 %v14315_v57, %v14314_v10 }
 0x442   : >> { %v16422_v30 = vadd.f32 %v16421_v45, %v14260_v24 }
 0x444   : >> { %v15703_v42 = vpop.f32.mrb[0].mxu1  ;;  %v14317_v51 = vpop.f32.mrb[48].mxu0 }
 0x445   : >> { %v16359_v52 = vadd.f32 %v19332_v53, %v15703_v42  ;;  %v3643_v0 = vpop.f32.mrb[1].mxu1  ;;  %v14318_v23 = vpop.f32.mrb[49].mxu0 }
 0x446   : >> { %v16364_v22 = vadd.f32 %v19322_v7, %v3643_v0  ;;  %v14319_v60 = vadd.f32 %v14318_v23, %v14317_v51  ;;  %v15704_v55 = vpop.f32.mrb[2].mxu1  ;;  %v14320_v49 = vpop.f32.mrb[50].mxu0 }
 0x447   : >> { %v16369_v56 = vadd.f32 %v19334_v31, %v15704_v55  ;;  %v3646_v38 = vpop.f32.mrb[3].mxu1  ;;  %v14321_v25 = vpop.f32.mrb[51].mxu0  ;;  %v16360_v33 = vadd.f32 %v16359_v52, %v14301_v17 }
 0x448   : >> { %v16374_v28 = vadd.f32 %v19324_v6, %v3646_v38  ;;  %v14322_v44 = vadd.f32 %v14321_v25, %v14320_v49  ;;  %v16365_v40 = vadd.f32 %v16364_v22, %v19358_v18  ;;  %v16403_v5 = vadd.f32 %v19362_v37, %v14319_v60 }
 0x449   : >> { %v16370_v53 = vadd.f32 %v16369_v56, %v14304_v63 }
 0x44a   : >> { %v19395_v13 = vadd.f32 %v16374_v28, %v19364_v50  ;;  %v16411_v7 = vadd.f32 %v19366_v48, %v14322_v44 }
 0x44c   : >> { %v15707_v32 = vpop.f32.mrb[4].mxu1  ;;  %v14323_v59 = vpop.f32.mrb[52].mxu0 }
 0x44d   : >> { %v16379_v31 = vadd.f32 %v19352_v39, %v15707_v32  ;;  %v3659_v35 = vpop.f32.mrb[5].mxu1  ;;  %v14324_v41 = vpop.f32.mrb[53].mxu0 }
 0x44e   : >> { %v16384_v17 = vadd.f32 %v19342_v36, %v3659_v35  ;;  %v14325_v6 = vadd.f32 %v14324_v41, %v14323_v59  ;;  %v15708_v61 = vpop.f32.mrb[6].mxu1  ;;  %v14326_v1 = vpop.f32.mrb[54].mxu0 }
 0x44f   : >> { %v16389_v18 = vadd.f32 %v19354_v8, %v15708_v61  ;;  %v3662_v37 = vpop.f32.mrb[7].mxu1  ;;  %v14327_v63 = vpop.f32.mrb[55].mxu0  ;;  %v19401_v11 = vadd.f32 %v16379_v31, %v14313_v27 }
 0x450   : >> { %v16394_v50 = vadd.f32 %v19344_v12, %v3662_v37  ;;  %v14328_v48 = vadd.f32 %v14327_v63, %v14326_v1  ;;  %v16399_v19 = vadd.f32 %v19372_v58, %v14325_v6  ;;  %v19405_v54 = vadd.f32 %v16384_v17, %v14307_v14 }
 0x451   : >> { %v19407_v39 = vadd.f32 %v16389_v18, %v14316_v4 }
 0x452   : >> { %v16407_v36 = vadd.f32 %v19374_v3, %v14328_v48  ;;  %v19410_v47 = vadd.f32 %v16394_v50, %v14310_v9 }
 0x454   : >> { %v14329_v46 = vpop.f32.mrb[56].mxu0 }
 0x455   : >> { %v14330_v20 = vpop.f32.mrb[57].mxu0 }
 0x456   : >> { %v14331_v8 = vadd.f32 %v14330_v20, %v14329_v46  ;;  %v14332_v21 = vpop.f32.mrb[58].mxu0 }
 0x457   : >> { %v14333_v29 = vpop.f32.mrb[59].mxu0 }
 0x458   : >> { %v14334_v43 = vadd.f32 %v14333_v29, %v14332_v21  ;;  %v19413_v16 = vadd.f32 %v19380_v62, %v14331_v8 }
 0x45a   : >> { %v19416_v12 = vadd.f32 %v19382_v15, %v14334_v43 }
 0x45c   : >> { %v14335_v58 = vpop.f32.mrb[60].mxu0 }
 0x45d   : >> { %v14336_v14 = vpop.f32.mrb[61].mxu0 }
 0x45e   : >> { %v14337_v27 = vadd.f32 %v14336_v14, %v14335_v58  ;;  %v14338_v26 = vpop.f32.mrb[62].mxu0 }
 0x45f   : >> { %v14339_v10 = vpop.f32.mrb[63].mxu0 }
 0x460   : >> { %v14340_v3 = vadd.f32 %v14339_v10, %v14338_v26  ;;  %v16415_v9 = vadd.f32 %v16414_v2, %v14337_v27 }
 0x462   : >> { %v16423_v34 = vadd.f32 %v16422_v30, %v14340_v3 }
 0x464   : >> { %v15735_v57 = vpop.f32.mrb[64].mxu0  ;;  %v15743_v45 = vpop.f32.mrb[8].mxu1 }
 0x465   : >> { %v16361_v24 = vadd.f32 %v16360_v33, %v15735_v57  ;;  %v16400_v4 = vadd.f32 %v16399_v19, %v15743_v45  ;;  %v4154_v42 = vpop.f32.mrb[65].mxu0  ;;  %v4186_v51 = vpop.f32.mrb[9].mxu1 }
 0x466   : >> { %v16366_v52 = vadd.f32 %v16365_v40, %v4154_v42  ;;  %v16404_v62 = vadd.f32 %v16403_v5, %v4186_v51  ;;  %v15736_v0 = vpop.f32.mrb[66].mxu0  ;;  %v15744_v23 = vpop.f32.mrb[10].mxu1 }
 0x467   : >> { %vm4235_vm6 = vcmp.gt.f32.partialorder %v16361_v24, 0.0  ;;  %v4251_v15 = vmul.f32 0.1, %v16361_v24  ;;  %vm4243_vm7 = vcmp.gt.f32.partialorder %v16400_v4, 0.0  ;;  %v4259_v22 = vmul.f32 0.1, %v16400_v4 }
 0x468   : >> { %vm4233_vm8 = vcmp.gt.f32.partialorder %v16366_v52, 0.0  ;;  %v4249_v60 = vmul.f32 0.1, %v16366_v52  ;;  %vm4241_vm9 = vcmp.gt.f32.partialorder %v16404_v62, 0.0  ;;  %v4257_v55 = vmul.f32 0.1, %v16404_v62 }
 0x469   : >> { %v16371_v2 = vadd.f32 %v16370_v53, %v15736_v0  ;;  %v16408_v30 = vadd.f32 %v16407_v36, %v15744_v23  ;;  %v4157_v49 = vpop.f32.mrb[67].mxu0  ;;  %v4189_v56 = vpop.f32.mrb[11].mxu1  ;;  %v4267_v38 = vsel %vm4235_vm6, %v16361_v24, %v4251_v15  ;;  %v4275_v25 = vsel %vm4243_vm7, %v16400_v4, %v4259_v22 }
 0x46a   : >> { %v16376_v33 = vadd.f32 %v19395_v13, %v4157_v49  ;;  %v16412_v28 = vadd.f32 %v16411_v7, %v4189_v56  ;;  %v4265_v59 = vsel %vm4233_vm8, %v16366_v52, %v4249_v60  ;;  %v4273_v53 = vsel %vm4241_vm9, %v16404_v62, %v4257_v55 }
 0x46b   : >> { %vm4236_vm10 = vcmp.gt.f32.partialorder %v16371_v2, 0.0  ;;  %v4252_v44 = vmul.f32 0.1, %v16371_v2  ;;  %vm4244_vm11 = vcmp.gt.f32.partialorder %v16408_v30, 0.0  ;;  %v4260_v40 = vmul.f32 0.1, %v16408_v30 }
 0x46c   : >> { %vm4234_vm12 = vcmp.gt.f32.partialorder %v16376_v33, 0.0  ;;  %v4250_v5 = vmul.f32 0.1, %v16376_v33  ;;  %vm4242_vm13 = vcmp.gt.f32.partialorder %v16412_v28, 0.0  ;;  %v4258_v32 = vmul.f32 0.1, %v16412_v28 }
 0x46d   : >> { %v4268_v31 = vsel %vm4236_vm10, %v16371_v2, %v4252_v44  ;;  %v4276_v35 = vsel %vm4244_vm11, %v16408_v30, %v4260_v40  ;;  %v15739_v41 = vpop.f32.mrb[68].mxu0  ;;  %v15747_v17 = vpop.f32.mrb[12].mxu1 }
 0x46e   : >> { %v4282_v6 = vpack.c.bf16 %v4268_v31, %v4267_v38  ;;  %v4286_v13 = vpack.c.bf16 %v4276_v35, %v4275_v25  ;;  %v4266_v7 = vsel %vm4234_vm12, %v16376_v33, %v4250_v5  ;;  %v4274_v61 = vsel %vm4242_vm13, %v16412_v28, %v4258_v32  ;;  %v4170_v1 = vpop.f32.mrb[69].mxu0  ;;  %v4202_v18 = vpop.f32.mrb[13].mxu1 }
 0x46f   : >> { %v4281_v37 = vpack.c.bf16 %v4266_v7, %v4265_v59  ;;  %v4285_v63 = vpack.c.bf16 %v4274_v61, %v4273_v53  ;;  %v16381_v50 = vadd.f32 %v19401_v11, %v15739_v41  ;;  %v16416_v48 = vadd.f32 %v16415_v9, %v15747_v17  ;;  %v15740_v19 = vpop.f32.mrb[70].mxu0  ;;  %v15748_v36 = vpop.f32.mrb[14].mxu1 }
 0x470   : >> { %13015 = vst [vmem:[%s19424_s10 + $0x210] sm:$0xff] %v4282_v6  ;;  %13019 = vst [vmem:[%s19424_s10 + $0x250] sm:$0xff] %v4286_v13  ;;  %v16386_v46 = vadd.f32 %v19405_v54, %v4170_v1  ;;  %v16420_v20 = vadd.f32 %v19413_v16, %v4202_v18  ;;  %v16391_v8 = vadd.f32 %v19407_v39, %v15740_v19  ;;  %v4173_v11 = vpop.f32.mrb[71].mxu0  ;;  %v4205_v29 = vpop.f32.mrb[15].mxu1 }
 0x471   : >> { %v16424_v21 = vadd.f32 %v16423_v34, %v15748_v36  ;;  %13014 = vst [vmem:[%s19424_s10 + $0x208] sm:$0xff] %v4281_v37  ;;  %13018 = vst [vmem:[%s19424_s10 + $0x248] sm:$0xff] %v4285_v63  ;;  %v4255_v43 = vmul.f32 0.1, %v16381_v50  ;;  %vm4239_vm14 = vcmp.gt.f32.partialorder %v16381_v50, 0.0  ;;  %vm4247_vm15 = vcmp.gt.f32.partialorder %v16416_v48, 0.0 }
 0x472   : >> { %v4263_v58 = vmul.f32 0.1, %v16416_v48  ;;  %vm4237_vm2 = vcmp.gt.f32.partialorder %v16386_v46, 0.0  ;;  %vm4240_vm3 = vcmp.gt.f32.partialorder %v16391_v8, 0.0  ;;  %v4256_v14 = vmul.f32 0.1, %v16391_v8 }
 0x473   : >> { %v4253_v27 = vmul.f32 0.1, %v16386_v46  ;;  %vm4245_vm4 = vcmp.gt.f32.partialorder %v16420_v20, 0.0  ;;  %vm4248_vm5 = vcmp.gt.f32.partialorder %v16424_v21, 0.0  ;;  %v4264_v54 = vmul.f32 0.1, %v16424_v21 }
 0x474   : >> { %v4271_v16 = vsel %vm4239_vm14, %v16381_v50, %v4255_v43  ;;  %v4272_v39 = vsel %vm4240_vm3, %v16391_v8, %v4256_v14  ;;  %v16396_v26 = vadd.f32 %v19410_v47, %v4173_v11  ;;  %v16428_v10 = vadd.f32 %v19416_v12, %v4205_v29 }
 0x475   : >> { %v4279_v3 = vsel %vm4247_vm15, %v16416_v48, %v4263_v58  ;;  %v4261_v9 = vmul.f32 0.1, %v16420_v20  ;;  %v4284_v34 = vpack.c.bf16 %v4272_v39, %v4271_v16  ;;  %v4280_v57 = vsel %vm4248_vm5, %v16424_v21, %v4264_v54 }
 0x476   : >> { %v4288_v45 = vpack.c.bf16 %v4280_v57, %v4279_v3  ;;  %vm4238_vm6 = vcmp.gt.f32.partialorder %v16396_v26, 0.0  ;;  %v4254_v24 = vmul.f32 0.1, %v16396_v26  ;;  %vm4246_vm7 = vcmp.gt.f32.partialorder %v16428_v10, 0.0  ;;  %2690 = sbr.rel (!%p2688_p12) target bundleno = 751 (0x2ef), region = 203 }
 0x477   : >> { %13017 = vst [vmem:[%s19424_s10 + $0x230] sm:$0xff] %v4284_v34  ;;  %v4262_v4 = vmul.f32 0.1, %v16428_v10  ;;  %v4269_v42 = vsel %vm4237_vm2, %v16386_v46, %v4253_v27  ;;  %v4277_v47 = vsel %vm4245_vm4, %v16420_v20, %v4261_v9 }
 0x478   : >> { %13021 = vst [vmem:[%s19424_s10 + $0x270] sm:$0xff] %v4288_v45  ;;  %v4270_v51 = vsel %vm4238_vm6, %v16396_v26, %v4254_v24 }
 0x479   : >> { %v4283_v52 = vpack.c.bf16 %v4270_v51, %v4269_v42  ;;  %v4278_v12 = vsel %vm4246_vm7, %v16428_v10, %v4262_v4 }
 0x47a   : >> { %v4287_v62 = vpack.c.bf16 %v4278_v12, %v4277_v47 }
 0x47b   : >> { %13016 = vst [vmem:[%s19424_s10 + $0x228] sm:$0xff] %v4283_v52 }
 0x47c   : >> { %13020 = vst [vmem:[%s19424_s10 + $0x268] sm:$0xff] %v4287_v62 }
 0x47d LB: >> { %v17288_v0 = vld [vmem:[#allocation6 + $0x4c0] sm:$0xff]   ;;  %v17291_v22 = vld [vmem:[#allocation6 + $0x4c8] sm:$0xff]   ;;  %v17294_v2 = vld [vmem:[#allocation6 + $0x4d0] sm:$0xff]   ;;  %s13856_s26 = sshll.u32 %s17908_s11, 7  ;;  %vm4392_vm8 = vcmask 1045504   ;;  %vm4339_vm9 = vcmask 1041408   ;;  %s17908_s11 = sphi %s19444_s11, %s4304_s11  }
 0x47e   : >> { %v17289_v23 = vld [vmem:[#allocation6 + $0x500] sm:$0xff]   ;;  %14357 = vmatprep.subr.bf16.mxu0 %v17288_v0  ;;  %v17292_v60 = vld [vmem:[#allocation6 + $0x508] sm:$0xff]   ;;  %v17295_v30 = vld [vmem:[#allocation6 + $0x510] sm:$0xff]   ;;  %s19452_s13 = scalar_lea.vmem [#allocation2], %s13856_s26  ;;  %s19772_s14 = scalar_lea.vmem [#allocation3], %s13856_s26 }
 0x47f   : >> { %v17290_v15 = vld [vmem:[#allocation6 + $0x480] sm:$0xff]   ;;  %15749 = vmatprep.subr.bf16.mxu1 %v17289_v23  ;;  %v17293_v55 = vld [vmem:[#allocation6 + $0x488] sm:$0xff]   ;;  %v17296_v49 = vld [vmem:[#allocation6 + $0x490] sm:$0xff]   ;;  %s4304_s11 = sadd.s32 1, %s17908_s11  }
 0x480   : >> { %14358 = vmatpush3.bf16.msra.mxu0 %v17290_v15  ;;  %15750 = vmatpush3.bf16.msra.mxu1 %v17289_v23  ;;  %v17297_v56 = vld [vmem:[#allocation6 + $0x4d8] sm:$0xff]   ;;  %v17300_v33 = vld [vmem:[#allocation6 + $0x4e0] sm:$0xff]   ;;  %v17303_v40 = vld [vmem:[#allocation6 + $0x4e8] sm:$0xff]   ;;  %p4301_p13 = scmp.ge.s32.totalorder %s4304_s11, 8  }
 0x481   : >> { %14359 = vmatprep.subr.bf16.mxu0 %v17291_v22  ;;  %15751 = vmatprep.subr.bf16.mxu1 %v17292_v60  ;;  %v17298_v38 = vld [vmem:[#allocation6 + $0x518] sm:$0xff]   ;;  %v17301_v28 = vld [vmem:[#allocation6 + $0x520] sm:$0xff]   ;;  %v17304_v5 = vld [vmem:[#allocation6 + $0x528] sm:$0xff]   ;;  %s19792_s15 = smov (%p4301_p13), 0  }
 0x482   : >> { %v17299_v25 = vld [vmem:[#allocation6 + $0x498] sm:$0xff]   ;;  %v17302_v44 = vld [vmem:[#allocation6 + $0x4a0] sm:$0xff]   ;;  %v17305_v32 = vld [vmem:[#allocation6 + $0x4a8] sm:$0xff]  }
 0x483   : >> { %v17306_v59 = vld [vmem:[#allocation6 + $0x4f0] sm:$0xff]   ;;  %v13026_v35 = vld [vmem:[%s19452_s13 + $0x188] sm:$0xff]  ;;  %v17309_v6 = vld [vmem:[#allocation6 + $0x4f8] sm:$0xff]  }
 0x484   : >> { %14360 = vmatpush3.bf16.msra.mxu0 %v17293_v55  ;;  %15752 = vmatpush3.bf16.msra.mxu1 %v17292_v60  ;;  %v17307_v53 = vld [vmem:[#allocation6 + $0x530] sm:$0xff]   ;;  %v13041_v17 = vld [vmem:[%s19452_s13 + $0x188] sm:$0xfc]  ;;  %v17310_v13 = vld [vmem:[#allocation6 + $0x538] sm:$0xff]   ;;  %v4341_v37 = vrot.slane %v13026_v35, 6 }
 0x485   : >> { %14361 = vmatprep.subr.bf16.mxu0 %v17294_v2  ;;  %15753 = vmatprep.subr.bf16.mxu1 %v17295_v30  ;;  %v17308_v31 = vld [vmem:[#allocation6 + $0x4b0] sm:$0xff]   ;;  %v4393_v7 = vrot.slane %v13041_v17, 2  ;;  %v13025_v1 = vld [vmem:[%s19452_s13 + $0x180] sm:$0xc0]  ;;  %v17311_v18 = vld [vmem:[#allocation6 + $0x4b8] sm:$0xff]  }
 0x486   : >> { %v13037_v41 = vld [vmem:[%s19452_s13 + $0x190] sm:$0xff]  ;;  %4646 = vmatprep.mubr.bf16.mxu0 %v13026_v35  ;;  %v13042_v63 = vld [vmem:[%s19452_s13 + $0x198] sm:$0x3]  ;;  %v4340_v48 = vrot.slane %v13025_v1, 6  ;;  %v17312_v36 = vld [vmem:[#allocation6 + $0x580] sm:$0xff]  }
 0x487   : >> { %v4394_v61 = vrot.slane %v13037_v41, 2  ;;  %v4396_v19 = vrot.slane %v13042_v63, 2  ;;  %v17313_v46 = vld [vmem:[#allocation6 + $0x640] sm:$0xff]   ;;  %v19463_v29 = vld [vmem:[%s19452_s13 + $0x1b0] sm:$0xff]  ;;  %v13043_v43 = vld [vmem:[%s19452_s13 + $0x1a8] sm:$0xfc] }
 0x488   : >> { %14362 = vmatpush3.bf16.msra.mxu0 %v17296_v49  ;;  %15754 = vmatpush3.bf16.msra.mxu1 %v17295_v30  ;;  %v17314_v20 = vld [vmem:[#allocation6 + $0x540] sm:$0xff]   ;;  %v4342_v21 = vsel %vm4339_vm9, %v4340_v48, %v4341_v37  ;;  %v13027_v58 = vld [vmem:[%s19452_s13 + $0x190] sm:$0x3f]  ;;  %v17316_v14 = vld [vmem:[#allocation6 + $0x588] sm:$0xff]   ;;  %v4398_v27 = vrot.slane %v13043_v43, 2  ;;  %v4399_v54 = vrot.slane %v19463_v29, 2 }
 0x489   : >> { %14363 = vmatprep.subr.bf16.mxu0 %v17297_v56  ;;  %15755 = vmatprep.subr.bf16.mxu1 %v17298_v38  ;;  %v4395_v50 = vsel %vm4392_vm8, %v4393_v7, %v4394_v61  ;;  %v17315_v8 = vld [vmem:[#allocation6 + $0x600] sm:$0xff]   ;;  %v4397_v11 = vsel %vm4392_vm8, %v4394_v61, %v4396_v19  ;;  %v13044_v16 = vld [vmem:[%s19452_s13 + $0x1b8] sm:$0x3]  ;;  %v17317_v39 = vld [vmem:[#allocation6 + $0x548] sm:$0xff]   ;;  %v4343_v26 = vrot.slane %v13027_v58, 6 }
 0x48a   : >> { %15765 = vmatprep.mubr.bf16.mxu1 %v4395_v50  ;;  %v17319_v10 = vld [vmem:[#allocation6 + $0x648] sm:$0xff]   ;;  %v4400_v3 = vsel %vm4392_vm8, %v4398_v27, %v4399_v54  ;;  %v4401_v9 = vrot.slane %v13044_v16, 2  ;;  %v17318_v34 = vld [vmem:[#allocation6 + $0x590] sm:$0xff]   ;;  %v13028_v52 = vld [vmem:[%s19452_s13 + $0x1a0] sm:$0xc0] }
 0x48b   : >> { %v17321_v57 = vld [vmem:[#allocation6 + $0x608] sm:$0xff]   ;;  %v17320_v45 = vld [vmem:[#allocation6 + $0x550] sm:$0xff]   ;;  %v4344_v4 = vsel %vm4339_vm9, %v4341_v37, %v4343_v26  ;;  %v17322_v12 = vld [vmem:[#allocation6 + $0x598] sm:$0xff]   ;;  %v4345_v60 = vrot.slane %v13028_v52, 6 }
 0x48c   : >> { %14364 = vmatpush3.bf16.msra.mxu0 %v17299_v25  ;;  %15756 = vmatpush3.bf16.msra.mxu1 %v17298_v38  ;;  %v13029_v24 = vld [vmem:[%s19452_s13 + $0x1a8] sm:$0xff]  ;;  %v4402_v42 = vsel %vm4392_vm8, %v4399_v54, %v4401_v9  ;;  %v19474_v51 = vld [vmem:[%s19452_s13 + $0x1d0] sm:$0xff]  ;;  %v13046_v15 = vld [vmem:[%s19452_s13 + $0x1d8] sm:$0x3] }
 0x48d   : >> { %14365 = vmatprep.subr.bf16.mxu0 %v17300_v33  ;;  %15757 = vmatprep.subr.bf16.mxu1 %v17301_v28  ;;  %v13045_v47 = vld [vmem:[%s19452_s13 + $0x1c8] sm:$0xfc]  ;;  %v4346_v62 = vrot.slane %v13029_v24, 6  ;;  %v4404_v23 = vrot.slane %v19474_v51, 2  ;;  %v17323_v22 = vld [vmem:[#allocation6 + $0x558] sm:$0xff]   ;;  %v17325_v55 = vld [vmem:[#allocation6 + $0x650] sm:$0xff]  }
 0x48e   : >> { %v4403_v0 = vrot.slane %v13045_v47, 2  ;;  %v4406_v30 = vrot.slane %v13046_v15, 2  ;;  %v17324_v49 = vld [vmem:[#allocation6 + $0x5a0] sm:$0xff]   ;;  %v17327_v56 = vld [vmem:[#allocation6 + $0x610] sm:$0xff]   ;;  %v17331_v35 = vld [vmem:[#allocation6 + $0x658] sm:$0xff]  }
 0x48f   : >> { %v19482_v38 = vld [vmem:[%s19452_s13 + $0x1f0] sm:$0xff]  ;;  %v4347_v25 = vsel %vm4339_vm9, %v4345_v60, %v4346_v62  ;;  %v17333_v7 = vld [vmem:[#allocation6 + $0x618] sm:$0xff]   ;;  %v13032_v63 = vld [vmem:[%s19452_s13 + $0x1c8] sm:$0xff] }
 0x490   : >> { %14366 = vmatpush3.bf16.msra.mxu0 %v17302_v44  ;;  %15758 = vmatpush3.bf16.msra.mxu1 %v17301_v28  ;;  %v4405_v2 = vsel %vm4392_vm8, %v4403_v0, %v4404_v23  ;;  %v4407_v33 = vsel %vm4392_vm8, %v4404_v23, %v4406_v30  ;;  %v17326_v28 = vld [vmem:[#allocation6 + $0x560] sm:$0xff]   ;;  %v13047_v44 = vld [vmem:[%s19452_s13 + $0x1e8] sm:$0xfc]  ;;  %v17330_v17 = vld [vmem:[#allocation6 + $0x5b0] sm:$0xff]  }
 0x491   : >> { %14367 = vmatprep.subr.bf16.mxu0 %v17303_v40  ;;  %15759 = vmatprep.subr.bf16.mxu1 %v17304_v5  ;;  %v4409_v40 = vrot.slane %v19482_v38, 2  ;;  %v17332_v61 = vld [vmem:[#allocation6 + $0x570] sm:$0xff]   ;;  %v17334_v1 = vld [vmem:[#allocation6 + $0x5b8] sm:$0xff]   ;;  %v13076_v50 = vld [vmem:[%s19452_s13 + $0x208] sm:$0xff] }
 0x492   : >> { %v13031_v48 = vld [vmem:[%s19452_s13 + $0x1c0] sm:$0xc0]  ;;  %v13033_v58 = vld [vmem:[%s19452_s13 + $0x1d0] sm:$0x3f]  ;;  %v17347_v0 = vld [vmem:[#allocation6 + $0x638] sm:$0xff]  }
 0x493   : >> { %v13075_v19 = vld [vmem:[%s19452_s13 + $0x200] sm:$0xc0]  ;;  %v13077_v16 = vld [vmem:[%s19452_s13 + $0x210] sm:$0x3f] }
 0x494   : >> { %14368 = vmatpush3.bf16.msra.mxu0 %v17305_v32  ;;  %15760 = vmatpush3.bf16.msra.mxu1 %v17304_v5  ;;  %v13030_v5 = vld [vmem:[%s19452_s13 + $0x1b0] sm:$0x3f]  ;;  %v17328_v32 = vld [vmem:[#allocation6 + $0x5a8] sm:$0xff]   ;;  %v17336_v43 = vld [vmem:[#allocation6 + $0x5c0] sm:$0xff]   ;;  %v4855_v9 = vrot.slane %v13077_v16, 6 }
 0x495   : >> { %14369 = vmatprep.subr.bf16.mxu0 %v17306_v59  ;;  %15761 = vmatprep.subr.bf16.mxu1 %v17307_v53  ;;  %v4408_v59 = vrot.slane %v13047_v44, 2  ;;  %v19503_v26 = vld [vmem:[%s19452_s13 + $0x210] sm:$0xff]  ;;  %v13034_v52 = vld [vmem:[%s19452_s13 + $0x1e0] sm:$0xc0] }
 0x496   : >> { %v4355_v60 = vrot.slane %v13034_v52, 6  ;;  %v4905_v52 = vrot.slane %v19503_v26, 2 }
 0x498   : >> { %14370 = vmatpush3.bf16.msra.mxu0 %v17308_v31  ;;  %15762 = vmatpush3.bf16.msra.mxu1 %v17307_v53  ;;  %v13048_v53 = vld [vmem:[%s19452_s13 + $0x1f8] sm:$0x3]  ;;  %v17329_v31 = vld [vmem:[#allocation6 + $0x568] sm:$0xff]  }
 0x499   : >> { %14371 = vmatprep.subr.bf16.mxu0 %v17309_v6  ;;  %15763 = vmatprep.subr.bf16.mxu1 %v17310_v13  ;;  %v4348_v6 = vrot.slane %v13030_v5, 6  ;;  %v17352_v5 = vld [vmem:[#allocation6 + $0x5f0] sm:$0xff]  }
 0x49c   : >> { %14372 = vmatpush3.bf16.msra.mxu0 %v17311_v18  ;;  %15764 = vmatpush3.bf16.msra.mxu1 %v17310_v13  ;;  %v4411_v13 = vrot.slane %v13048_v53, 2  ;;  %v4349_v18 = vsel %vm4339_vm9, %v4346_v62, %v4348_v6  ;;  %v17345_v62 = vld [vmem:[#allocation6 + $0x5d8] sm:$0xff]   ;;  %v13082_v53 = vld [vmem:[%s19452_s13 + $0x248] sm:$0xff] }
 0x49d   : >> { %14437 = vmatprep.subr.bf16.mxu1 %v17312_v36  ;;  %14517 = vmatprep.subr.bf16.mxu0 %v17313_v46  ;;  %v17337_v36 = vld [vmem:[#allocation6 + $0x660] sm:$0xff]   ;;  %v17335_v46 = vld [vmem:[#allocation6 + $0x578] sm:$0xff]  }
 0x49e   : >> { %v4412_v37 = vsel %vm4392_vm8, %v4409_v40, %v4411_v13 }
 0x49f   : >> { %4647 = vmatmul.mubr.bf16.vlgmr.msra.gmra.mrb[0].mxu0 %v4342_v21  ;;  %15766 = vmatmul.mubr.bf16.vlgmr.msra.gmra.mrb[0].mxu1 %v4397_v11  ;;  %v4350_v21 = vrot.slane %v13031_v48, 6  ;;  %v4852_v11 = vrot.slane %v13075_v19, 6  ;;  %v19541_v48 = vld [vmem:[%s19452_s13 + $0x290] sm:$0xff] }
 0x4a0   : >> { %14438 = vmatpush3.bf16.msra.mxu1 %v17314_v20  ;;  %14518 = vmatpush3.bf16.msra.mxu0 %v17315_v8  ;;  %v4351_v20 = vrot.slane %v13032_v63, 6  ;;  %v4853_v8 = vrot.slane %v13076_v50, 6 }
 0x4a1   : >> { %14439 = vmatprep.subr.bf16.mxu1 %v17316_v14  ;;  %4654 = vmatprep.mubr.bf16.mxu0 %v13037_v41  ;;  %v4410_v41 = vsel %vm4392_vm8, %v4408_v59, %v4409_v40  ;;  %v17340_v14 = vld [vmem:[#allocation6 + $0x668] sm:$0xff]  }
 0x4a2   : >> { %15769 = vmatprep.mubr.bf16.mxu1 %v4400_v3  ;;  %14519 = vmatprep.subr.bf16.mxu0 %v17319_v10  ;;  %v4352_v27 = vsel %vm4339_vm9, %v4350_v21, %v4351_v20  ;;  %v4854_v54 = vsel %vm4339_vm9, %v4852_v11, %v4853_v8  ;;  %v4353_v10 = vrot.slane %v13033_v58, 6  ;;  %v17341_v3 = vld [vmem:[#allocation6 + $0x628] sm:$0xff]   ;;  %v4856_v47 = vsel %vm4339_vm9, %v4853_v8, %v4855_v9  ;;  %v19558_v58 = vld [vmem:[#allocation6 + $0x698] sm:$0xff]   ;;  %v19567_v9 = vld [vmem:[%s19452_s13 + $0x270] sm:$0xff] }
 0x4a3   : >> { %v13085_v21 = vld [vmem:[%s19452_s13 + $0x268] sm:$0xff] }
 0x4a4   : >> { %14440 = vmatpush3.bf16.msra.mxu1 %v17317_v39  ;;  %14520 = vmatpush3.bf16.msra.mxu0 %v17321_v57  ;;  %v17339_v39 = vld [vmem:[#allocation6 + $0x5c8] sm:$0xff]   ;;  %v17342_v57 = vld [vmem:[#allocation6 + $0x5d0] sm:$0xff]  }
 0x4a5   : >> { %14441 = vmatprep.subr.bf16.mxu1 %v17318_v34  ;;  %14521 = vmatprep.subr.bf16.mxu0 %v17325_v55  ;;  %v17343_v34 = vld [vmem:[#allocation6 + $0x670] sm:$0xff]   ;;  %v13129_v11 = vld [vmem:[%s19452_s13 + $0x2a8] sm:$0xff] }
 0x4a7   : >> { %4655 = vmatmul.mubr.bf16.gmra.mrb[4].mxu0 %v4344_v4  ;;  %15770 = vmatmul.mubr.bf16.gmra.mrb[4].mxu1 %v4402_v42  ;;  %v13079_v4 = vld [vmem:[%s19452_s13 + $0x228] sm:$0xff]  ;;  %v4354_v42 = vsel %vm4339_vm9, %v4351_v20, %v4353_v10 }
 0x4a8   : >> { %14442 = vmatpush3.bf16.msra.mxu1 %v17320_v45  ;;  %4662 = vmatprep.mubr.bf16.mxu0 %v13029_v24  ;;  %v13035_v45 = vld [vmem:[%s19452_s13 + $0x1e8] sm:$0xff]  ;;  %v17344_v24 = vld [vmem:[#allocation6 + $0x630] sm:$0xff]   ;;  %v4858_v15 = vrot.slane %v13079_v4, 6 }
 0x4a9   : >> { %14443 = vmatprep.subr.bf16.mxu1 %v17322_v12  ;;  %15773 = vmatprep.mubr.bf16.mxu1 %v4405_v2  ;;  %v13078_v12 = vld [vmem:[%s19452_s13 + $0x220] sm:$0xc0]  ;;  %v4356_v23 = vrot.slane %v13035_v45, 6 }
 0x4aa   : >> { %14522 = vmatpush3.bf16.msra.mxu0 %v17327_v56  ;;  %v4857_v55 = vrot.slane %v13078_v12, 6  ;;  %v17348_v2 = vld [vmem:[#allocation6 + $0x5e0] sm:$0xff]   ;;  %v19519_v56 = vld [vmem:[%s19452_s13 + $0x230] sm:$0xff] }
 0x4ab   : >> { %14523 = vmatprep.subr.bf16.mxu0 %v17331_v35  ;;  %v4357_v30 = vsel %vm4339_vm9, %v4355_v60, %v4356_v23  ;;  %v13081_v35 = vld [vmem:[%s19452_s13 + $0x240] sm:$0xc0]  ;;  %v13092_v60 = vld [vmem:[%s19452_s13 + $0x218] sm:$0x3] }
 0x4ac   : >> { %14444 = vmatpush3.bf16.msra.mxu1 %v17323_v22  ;;  %v19513_v22 = vld [vmem:[#allocation6 + $0x680] sm:$0xff]   ;;  %v4862_v13 = vrot.slane %v13081_v35, 6 }
 0x4ad   : >> { %14445 = vmatprep.subr.bf16.mxu1 %v17324_v49  ;;  %v4859_v49 = vsel %vm4339_vm9, %v4857_v55, %v4858_v15  ;;  %v13131_v55 = vld [vmem:[%s19452_s13 + $0x2c0] sm:$0xc0] }
 0x4ae   : >> { %14524 = vmatpush3.bf16.msra.mxu0 %v17333_v7 }
 0x4af   : >> { %4663 = vmatmul.mubr.bf16.gmra.mrb[8].mxu0 %v4347_v25  ;;  %15774 = vmatmul.mubr.bf16.gmra.mrb[8].mxu1 %v4407_v33  ;;  %v13036_v25 = vld [vmem:[%s19452_s13 + $0x1f0] sm:$0x3f] }
 0x4b0   : >> { %14446 = vmatpush3.bf16.msra.mxu1 %v17326_v28  ;;  %4670 = vmatprep.mubr.bf16.mxu0 %v19463_v29  ;;  %v17338_v29 = vld [vmem:[#allocation6 + $0x620] sm:$0xff]   ;;  %v13080_v33 = vld [vmem:[%s19452_s13 + $0x230] sm:$0x3f]  ;;  %v17350_v28 = vld [vmem:[#allocation6 + $0x5e8] sm:$0xff]   ;;  %v4358_v44 = vrot.slane %v13036_v25, 6  ;;  %v5373_v25 = vrot.slane %v13131_v55, 6 }
 0x4b1   : >> { %14447 = vmatprep.subr.bf16.mxu1 %v17328_v32  ;;  %15777 = vmatprep.mubr.bf16.mxu1 %v4410_v41  ;;  %v4860_v40 = vrot.slane %v13080_v33, 6  ;;  %v13125_v41 = vld [vmem:[%s19452_s13 + $0x280] sm:$0xc0]  ;;  %v4910_v33 = vrot.slane %v19519_v56, 2  ;;  %v13144_v55 = vld [vmem:[%s19452_s13 + $0x2b8] sm:$0x3] }
 0x4b2   : >> { %14525 = vmatprep.subr.bf16.mxu0 %v17337_v36  ;;  %v4359_v32 = vsel %vm4339_vm9, %v4356_v23, %v4358_v44  ;;  %v5363_v7 = vrot.slane %v13125_v41, 6 }
 0x4b3   : >> { %14526 = vmatpush3.bf16.msra.mxu0 %v17338_v29  ;;  %v4861_v59 = vsel %vm4339_vm9, %v4858_v15, %v4860_v40  ;;  %v13084_v29 = vld [vmem:[%s19452_s13 + $0x260] sm:$0xc0]  ;;  %v13132_v15 = vld [vmem:[%s19452_s13 + $0x2c8] sm:$0xff] }
 0x4b4   : >> { %14448 = vmatpush3.bf16.msra.mxu1 %v17329_v31  ;;  %14527 = vmatprep.subr.bf16.mxu0 %v17340_v14  ;;  %v13126_v31 = vld [vmem:[%s19452_s13 + $0x288] sm:$0xff]  ;;  %v4868_v14 = vrot.slane %v13085_v21, 6 }
 0x4b5   : >> { %14449 = vmatprep.subr.bf16.mxu1 %v17330_v17  ;;  %v4863_v17 = vrot.slane %v13082_v53, 6  ;;  %v5364_v6 = vrot.slane %v13126_v31, 6 }
 0x4b7   : >> { %4671 = vmatmul.mubr.bf16.gmra.mrb[12].mxu0 %v4349_v18  ;;  %15778 = vmatmul.mubr.bf16.gmra.mrb[12].mxu1 %v4412_v37  ;;  %v19534_v18 = vld [vmem:[%s19452_s13 + $0x250] sm:$0xff] }
 0x4b8   : >> { %14450 = vmatpush3.bf16.msra.mxu1 %v17332_v61  ;;  %4678 = vmatprep.mubr.bf16.mxu0 %v13032_v63  ;;  %v4864_v61 = vsel %vm4339_vm9, %v4862_v13, %v4863_v17  ;;  %v13083_v37 = vld [vmem:[%s19452_s13 + $0x250] sm:$0x3f]  ;;  %v4915_v41 = vrot.slane %v19534_v18, 2  ;;  %v13135_v13 = vld [vmem:[%s19452_s13 + $0x2e8] sm:$0xff] }
 0x4b9   : >> { %14451 = vmatprep.subr.bf16.mxu1 %v17334_v1  ;;  %5157 = vmatprep.mubr.bf16.mxu1 %v13076_v50  ;;  %v5365_v1 = vsel %vm4339_vm9, %v5363_v7, %v5364_v6  ;;  %v13127_v63 = vld [vmem:[%s19452_s13 + $0x290] sm:$0x3f]  ;;  %v19538_v50 = vld [vmem:[#allocation6 + $0x688] sm:$0xff]   ;;  %v4865_v19 = vrot.slane %v13083_v37, 6  ;;  %v13096_v7 = vld [vmem:[%s19452_s13 + $0x258] sm:$0x3] }
 0x4ba   : >> { %14528 = vmatpush3.bf16.msra.mxu0 %v17341_v3  ;;  %v5366_v36 = vrot.slane %v13127_v63, 6  ;;  %v4917_v37 = vrot.slane %v13096_v7, 2 }
 0x4bb   : >> { %14529 = vmatprep.subr.bf16.mxu0 %v17343_v34  ;;  %v4866_v20 = vsel %vm4339_vm9, %v4863_v17, %v4865_v19  ;;  %v19570_v34 = vld [vmem:[%s19452_s13 + $0x2b0] sm:$0xff] }
 0x4bc   : >> { %14452 = vmatpush3.bf16.msra.mxu1 %v17335_v46  ;;  %v19548_v46 = vld [vmem:[#allocation6 + $0x690] sm:$0xff]   ;;  %v5367_v8 = vsel %vm4339_vm9, %v5364_v6, %v5366_v36  ;;  %v4918_v36 = vsel %vm4392_vm8, %v4915_v41, %v4917_v37 }
 0x4bd   : >> { %15781 = vmatprep.subr.bf16.mxu1 %v17336_v43 }
 0x4be   : >> { %14530 = vmatpush3.bf16.msra.mxu0 %v17344_v24  ;;  %v13091_v24 = vld [vmem:[%s19452_s13 + $0x208] sm:$0xfc] }
 0x4bf   : >> { %4679 = vmatmul.mubr.bf16.gmra.mrb[16].mxu0 %v4352_v27  ;;  %5158 = vmatmul.mubr.bf16.vlgmr.msra.gmra.mrb[16].mxu1 %v4854_v54  ;;  %v5369_v27 = vrot.slane %v13129_v11, 6  ;;  %v4867_v54 = vrot.slane %v13084_v29, 6  ;;  %v4904_v12 = vrot.slane %v13091_v24, 2  ;;  %v13141_v29 = vld [vmem:[%s19452_s13 + $0x288] sm:$0xfc] }
 0x4c0   : >> { %15782 = vmatpush3.bf16.msra.mxu1 %v17336_v43  ;;  %4686 = vmatprep.mubr.bf16.mxu0 %v19474_v51  ;;  %v17346_v51 = vld [vmem:[#allocation6 + $0x678] sm:$0xff]   ;;  %v13128_v43 = vld [vmem:[%s19452_s13 + $0x2a0] sm:$0xc0]  ;;  %v13143_v24 = vld [vmem:[%s19452_s13 + $0x2a8] sm:$0xfc] }
 0x4c1   : >> { %5165 = vmatprep.mubr.bf16.mxu1 %v19503_v26  ;;  %15783 = vmatprep.subr.bf16.mxu1 %v17339_v39  ;;  %v5368_v16 = vrot.slane %v13128_v43, 6  ;;  %v4869_v10 = vsel %vm4339_vm9, %v4867_v54, %v4868_v14  ;;  %v4906_v23 = vsel %vm4392_vm8, %v4904_v12, %v4905_v52  ;;  %v19595_v26 = vld [vmem:[#allocation6 + $0x6b8] sm:$0xff]   ;;  %v13145_v43 = vld [vmem:[%s19452_s13 + $0x2c8] sm:$0xfc]  ;;  %v5415_v54 = vrot.slane %v13141_v29, 2 }
 0x4c2   : >> { %14531 = vmatprep.subr.bf16.mxu0 %v17346_v51  ;;  %v19584_v51 = vld [vmem:[#allocation6 + $0x6b0] sm:$0xff]  }
 0x4c3   : >> { %14532 = vmatpush3.bf16.msra.mxu0 %v17347_v0  ;;  %v5370_v3 = vsel %vm4339_vm9, %v5368_v16, %v5369_v27 }
 0x4c4   : >> { %15784 = vmatpush3.bf16.msra.mxu1 %v17339_v39  ;;  %15813 = vmatprep.subr.bf16.mxu0 %v19513_v22  ;;  %v19562_v39 = vld [vmem:[#allocation6 + $0x6a0] sm:$0xff]  }
 0x4c5   : >> { %15785 = vmatprep.subr.bf16.mxu1 %v17342_v57 }
 0x4c7   : >> { %4687 = vmatmul.mubr.bf16.gmra.mrb[20].mxu0 %v4354_v42  ;;  %5166 = vmatmul.mubr.bf16.gmra.mrb[20].mxu1 %v4856_v47 }
 0x4c8   : >> { %4694 = vmatprep.mubr.bf16.mxu0 %v13035_v45  ;;  %5173 = vmatprep.mubr.bf16.mxu1 %v13079_v4  ;;  %v13130_v45 = vld [vmem:[%s19452_s13 + $0x2b0] sm:$0x3f]  ;;  %v19577_v4 = vld [vmem:[#allocation6 + $0x6a8] sm:$0xff]  }
 0x4c9   : >> { %15786 = vmatpush3.bf16.msra.mxu1 %v17342_v57  ;;  %v13086_v57 = vld [vmem:[%s19452_s13 + $0x270] sm:$0x3f]  ;;  %v5371_v47 = vrot.slane %v13130_v45, 6  ;;  %v13146_v45 = vld [vmem:[%s19452_s13 + $0x2d8] sm:$0x3] }
 0x4ca   : >> { %15787 = vmatprep.subr.bf16.mxu1 %v17345_v62  ;;  %v4870_v42 = vrot.slane %v13086_v57, 6  ;;  %v13142_v57 = vld [vmem:[%s19452_s13 + $0x298] sm:$0x3] }
 0x4cb   : >> { %v5372_v0 = vsel %vm4339_vm9, %v5369_v27, %v5371_v47  ;;  %v5416_v27 = vrot.slane %v19541_v48, 2  ;;  %v5428_v47 = vrot.slane %v13146_v45, 2 }
 0x4cd   : >> { %15788 = vmatpush3.bf16.msra.mxu1 %v17345_v62  ;;  %v4871_v62 = vsel %vm4339_vm9, %v4868_v14, %v4870_v42  ;;  %v13147_v42 = vld [vmem:[%s19452_s13 + $0x2e8] sm:$0xfc] }
 0x4ce   : >> { %15789 = vmatprep.subr.bf16.mxu1 %v17348_v2 }
 0x4cf   : >> { %4695 = vmatmul.mubr.bf16.gmra.mrb[24].mxu0 %v4357_v30  ;;  %5174 = vmatmul.mubr.bf16.gmra.mrb[24].mxu1 %v4859_v49  ;;  %v5374_v30 = vrot.slane %v13132_v15, 6  ;;  %v4907_v49 = vrot.slane %v13092_v60, 2 }
 0x4d0   : >> { %4702 = vmatprep.mubr.bf16.mxu0 %v19482_v38  ;;  %5181 = vmatprep.mubr.bf16.mxu1 %v19519_v56  ;;  %v17354_v38 = vld [vmem:[#allocation6 + $0x5f8] sm:$0xff]  }
 0x4d1   : >> { %15790 = vmatpush3.bf16.msra.mxu1 %v17348_v2  ;;  %v13093_v2 = vld [vmem:[%s19452_s13 + $0x228] sm:$0xfc]  ;;  %v4908_v44 = vsel %vm4392_vm8, %v4905_v52, %v4907_v49  ;;  %v5375_v40 = vsel %vm4339_vm9, %v5373_v25, %v5374_v30  ;;  %v5421_v52 = vrot.slane %v19570_v34, 2 }
 0x4d2   : >> { %15791 = vmatprep.subr.bf16.mxu1 %v17350_v28 }
 0x4d5   : >> { %15792 = vmatpush3.bf16.msra.mxu1 %v17350_v28  ;;  %v4909_v28 = vrot.slane %v13093_v2, 2  ;;  %v13148_v2 = vld [vmem:[%s19452_s13 + $0x2f8] sm:$0x3] }
 0x4d6   : >> { %15793 = vmatprep.subr.bf16.mxu1 %v17352_v5 }
 0x4d7   : >> { %4703 = vmatmul.mubr.bf16.gmra.mrb[28].mxu0 %v4359_v32  ;;  %5182 = vmatmul.mubr.bf16.gmra.mrb[28].mxu1 %v4861_v59  ;;  %v13094_v32 = vld [vmem:[%s19452_s13 + $0x238] sm:$0x3]  ;;  %v13133_v59 = vld [vmem:[%s19452_s13 + $0x2d0] sm:$0x3f] }
 0x4d8   : >> { %5189 = vmatprep.mubr.bf16.mxu1 %v13082_v53  ;;  %5668 = vmatprep.mubr.bf16.mxu0 %v13126_v31  ;;  %v19607_v53 = vld [vmem:[%s19452_s13 + $0x2d0] sm:$0xff]  ;;  %v13095_v31 = vld [vmem:[%s19452_s13 + $0x248] sm:$0xfc]  ;;  %v4912_v56 = vrot.slane %v13094_v32, 2  ;;  %v5376_v35 = vrot.slane %v13133_v59, 6 }
 0x4d9   : >> { %15794 = vmatpush3.bf16.msra.mxu1 %v17352_v5  ;;  %v4911_v5 = vsel %vm4392_vm8, %v4909_v28, %v4910_v33  ;;  %v5426_v16 = vrot.slane %v19607_v53, 2 }
 0x4da   : >> { %15795 = vmatprep.subr.bf16.mxu1 %v17354_v38  ;;  %v4913_v17 = vsel %vm4392_vm8, %v4910_v33, %v4912_v56  ;;  %v5377_v6 = vsel %vm4339_vm9, %v5374_v30, %v5376_v35  ;;  %v5433_v30 = vrot.slane %v13148_v2, 2 }
 0x4dd   : >> { %15796 = vmatpush3.bf16.msra.mxu1 %v17354_v38  ;;  %v4914_v38 = vrot.slane %v13095_v31, 2 }
 0x4de   : >> { %16453 = vmatprep.subr.bf16.mxu1 %v19513_v22 }
 0x4df   : >> { %5190 = vmatmul.mubr.bf16.gmra.mrb[32].mxu1 %v4864_v61  ;;  %5669 = vmatmul.mubr.bf16.vlgmr.msra.gmra.mrb[32].mxu0 %v5365_v1  ;;  %v13134_v61 = vld [vmem:[%s19452_s13 + $0x2e0] sm:$0xc0]  ;;  %v13097_v1 = vld [vmem:[%s19452_s13 + $0x268] sm:$0xfc] }
 0x4e0   : >> { %15814 = vmatpush3.bf16.msra.mxu0 %v19513_v22  ;;  %5197 = vmatprep.mubr.bf16.mxu1 %v19534_v18  ;;  %v5379_v18 = vrot.slane %v13135_v13, 6  ;;  %v5378_v63 = vrot.slane %v13134_v61, 6  ;;  %v4919_v19 = vrot.slane %v13097_v1, 2 }
 0x4e1   : >> { %5676 = vmatprep.mubr.bf16.mxu0 %v19541_v48  ;;  %15815 = vmatprep.subr.bf16.mxu0 %v19538_v50 }
 0x4e4   : >> { %15816 = vmatpush3.bf16.msra.mxu0 %v19538_v50 }
 0x4e5   : >> { %15817 = vmatprep.subr.bf16.mxu0 %v19548_v46 }
 0x4e7   : >> { %5198 = vmatmul.mubr.bf16.gmra.mrb[36].mxu1 %v4866_v20  ;;  %5677 = vmatmul.mubr.bf16.gmra.mrb[36].mxu0 %v5367_v8  ;;  %v5380_v20 = vsel %vm4339_vm9, %v5378_v63, %v5379_v18  ;;  %v13098_v8 = vld [vmem:[%s19452_s13 + $0x278] sm:$0x3] }
 0x4e8   : >> { %5205 = vmatprep.mubr.bf16.mxu1 %v13085_v21  ;;  %5684 = vmatprep.mubr.bf16.mxu0 %v13129_v11  ;;  %v13136_v21 = vld [vmem:[%s19452_s13 + $0x2f0] sm:$0x3f] }
 0x4e9   : >> { %15818 = vmatpush3.bf16.msra.mxu0 %v19548_v46  ;;  %v13140_v11 = vld [vmem:[%s19452_s13 + $0x2f0] sm:$0xff]  ;;  %v5381_v14 = vrot.slane %v13136_v21, 6 }
 0x4ea   : >> { %15819 = vmatprep.subr.bf16.mxu0 %v19558_v58  ;;  %v5431_v12 = vrot.slane %v13140_v11, 2 }
 0x4ed   : >> { %15820 = vmatpush3.bf16.msra.mxu0 %v19558_v58 }
 0x4ee   : >> { %15821 = vmatprep.subr.bf16.mxu0 %v19562_v39 }
 0x4ef   : >> { %5206 = vmatmul.mubr.bf16.gmra.mrb[40].mxu1 %v4869_v10  ;;  %5685 = vmatmul.mubr.bf16.gmra.mrb[40].mxu0 %v5370_v3  ;;  %v5425_v10 = vrot.slane %v13145_v43, 2 }
 0x4f0   : >> { %5213 = vmatprep.mubr.bf16.mxu1 %v19567_v9  ;;  %5692 = vmatprep.mubr.bf16.mxu0 %v19570_v34  ;;  %v5423_v34 = vrot.slane %v13144_v55, 2 }
 0x4f1   : >> { %15822 = vmatpush3.bf16.msra.mxu0 %v19562_v39  ;;  %v5427_v48 = vsel %vm4392_vm8, %v5425_v10, %v5426_v16 }
 0x4f2   : >> { %15823 = vmatprep.subr.bf16.mxu0 %v19577_v4  ;;  %v5424_v49 = vsel %vm4392_vm8, %v5421_v52, %v5423_v34 }
 0x4f5   : >> { %15824 = vmatpush3.bf16.msra.mxu0 %v19577_v4 }
 0x4f6   : >> { %15825 = vmatprep.subr.bf16.mxu0 %v19584_v51 }
 0x4f7   : >> { %5214 = vmatmul.mubr.bf16.gmra.mrb[44].mxu1 %v4871_v62  ;;  %5693 = vmatmul.mubr.bf16.gmra.mrb[44].mxu0 %v5372_v0  ;;  %v5420_v62 = vrot.slane %v13143_v24, 2  ;;  %v5430_v0 = vrot.slane %v13147_v42, 2 }
 0x4f8   : >> { %15797 = vmatprep.mubr.bf16.mxu1 %v4906_v23  ;;  %5700 = vmatprep.mubr.bf16.mxu0 %v13132_v15  ;;  %v5429_v15 = vsel %vm4392_vm8, %v5426_v16, %v5428_v47 }
 0x4f9   : >> { %15826 = vmatpush3.bf16.msra.mxu0 %v19584_v51  ;;  %v5432_v60 = vsel %vm4392_vm8, %v5430_v0, %v5431_v12 }
 0x4fa   : >> { %15827 = vmatprep.subr.bf16.mxu0 %v19595_v26 }
 0x4fd   : >> { %15828 = vmatpush3.bf16.msra.mxu0 %v19595_v26 }
 0x4ff   : >> { %15798 = vmatmul.mubr.bf16.vlgmr.msra.gmra.mrb[0].mxu1 %v4908_v44  ;;  %5701 = vmatmul.mubr.bf16.gmra.mrb[48].mxu0 %v5375_v40 }
 0x500   : >> { %16461 = vmatpush3.bf16.msra.mxu1 %v19513_v22  ;;  %15801 = vmatprep.mubr.bf16.mxu1 %v4911_v5  ;;  %v4916_v22 = vsel %vm4392_vm8, %v4914_v38, %v4915_v41 }
 0x501   : >> { %16454 = vmatprep.subr.bf16.mxu1 %v19538_v50  ;;  %5708 = vmatprep.mubr.bf16.mxu0 %v19607_v53 }
 0x504   : >> { %16462 = vmatpush3.bf16.msra.mxu1 %v19538_v50  ;;  %v4920_v50 = vrot.slane %v19567_v9, 2  ;;  %v5417_v9 = vsel %vm4392_vm8, %v5415_v54, %v5416_v27 }
 0x505   : >> { %16455 = vmatprep.subr.bf16.mxu1 %v19548_v46 }
 0x507   : >> { %15802 = vmatmul.mubr.bf16.gmra.mrb[4].mxu1 %v4913_v17  ;;  %5709 = vmatmul.mubr.bf16.gmra.mrb[52].mxu0 %v5377_v6 }
 0x508   : >> { %16463 = vmatpush3.bf16.msra.mxu1 %v19548_v46  ;;  %15805 = vmatprep.mubr.bf16.mxu1 %v4916_v22  ;;  %v4921_v46 = vsel %vm4392_vm8, %v4919_v19, %v4920_v50 }
 0x509   : >> { %16456 = vmatprep.subr.bf16.mxu1 %v19558_v58  ;;  %5716 = vmatprep.mubr.bf16.mxu0 %v13135_v13 }
 0x50c   : >> { %16464 = vmatpush3.bf16.msra.mxu1 %v19558_v58  ;;  %v4922_v58 = vrot.slane %v13098_v8, 2 }
 0x50d   : >> { %16457 = vmatprep.subr.bf16.mxu1 %v19562_v39 }
 0x50e   : >> { %v4923_v3 = vsel %vm4392_vm8, %v4920_v50, %v4922_v58  ;;  %v19662_v50 = vld [vmem:[#allocation8 + $0x2] ss:$0 sm:$0xff] }
 0x50f   : >> { %15806 = vmatmul.mubr.bf16.gmra.mrb[8].mxu1 %v4918_v36  ;;  %5717 = vmatmul.mubr.bf16.gmra.mrb[56].mxu0 %v5380_v20 }
 0x510   : >> { %16465 = vmatpush3.bf16.msra.mxu1 %v19562_v39  ;;  %15809 = vmatprep.mubr.bf16.mxu1 %v4921_v46  ;;  %v5382_v39 = vsel %vm4339_vm9, %v5379_v18, %v5381_v14 }
 0x511   : >> { %16458 = vmatprep.subr.bf16.mxu1 %v19577_v4  ;;  %5724 = vmatprep.mubr.bf16.mxu0 %v13140_v11 }
 0x514   : >> { %16466 = vmatpush3.bf16.msra.mxu1 %v19577_v4  ;;  %v5418_v4 = vrot.slane %v13142_v57, 2 }
 0x515   : >> { %16459 = vmatprep.subr.bf16.mxu1 %v19584_v51 }
 0x516   : >> { %v5419_v23 = vsel %vm4392_vm8, %v5416_v27, %v5418_v4 }
 0x517   : >> { %15810 = vmatmul.mubr.bf16.gmra.mrb[12].mxu1 %v4923_v3  ;;  %5725 = vmatmul.mubr.bf16.gmra.mrb[60].mxu0 %v5382_v39 }
 0x518   : >> { %16467 = vmatpush3.bf16.msra.mxu1 %v19584_v51  ;;  %15829 = vmatprep.mubr.bf16.mxu0 %v5417_v9  ;;  %v5422_v51 = vsel %vm4392_vm8, %v5420_v62, %v5421_v52 }
 0x519   : >> { %16460 = vmatprep.subr.bf16.mxu1 %v19595_v26  ;;  %15837 = vmatprep.mubr.bf16.mxu1 %v5427_v48 }
 0x51c   : >> { %16468 = vmatpush3.bf16.msra.mxu1 %v19595_v26  ;;  %v5434_v26 = vsel %vm4392_vm8, %v5431_v12, %v5433_v30 }
 0x51f   : >> { %15830 = vmatmul.mubr.bf16.vlgmr.msra.gmra.mrb[64].mxu0 %v5419_v23  ;;  %15838 = vmatmul.mubr.bf16.vlgmr.msra.gmra.mrb[8].mxu1 %v5429_v15 }
 0x520   : >> { %15833 = vmatprep.mubr.bf16.mxu0 %v5422_v51  ;;  %15841 = vmatprep.mubr.bf16.mxu1 %v5432_v60 }
 0x527   : >> { %15834 = vmatmul.mubr.bf16.gmra.mrb[68].mxu0 %v5424_v49  ;;  %15842 = vmatmul.mubr.bf16.gmra.mrb[12].mxu1 %v5434_v26 }
 0x572   : >> { %v14373_v25 = vpop.f32.mrb[0].mxu0 }
 0x573   : >> { %v14374_v33 = vpop.f32.mrb[1].mxu0 }
 0x574   : >> { %v14375_v28 = vadd.f32 %v14374_v33, %v14373_v25  ;;  %v14376_v44 = vpop.f32.mrb[2].mxu0 }
 0x575   : >> { %v14377_v40 = vpop.f32.mrb[3].mxu0 }
 0x576   : >> { %v14378_v5 = vadd.f32 %v14377_v40, %v14376_v44  ;;  %v16474_v8 = vadd.f32 %v14375_v28, %v19662_v50 }
 0x578   : >> { %v16484_v27 = vadd.f32 %v14378_v5, %v19662_v50 }
 0x57a   : >> { %v14379_v32 = vpop.f32.mrb[4].mxu0 }
 0x57b   : >> { %v14380_v59 = vpop.f32.mrb[5].mxu0 }
 0x57c   : >> { %v14381_v53 = vadd.f32 %v14380_v59, %v14379_v32  ;;  %v14382_v31 = vpop.f32.mrb[6].mxu0 }
 0x57d   : >> { %v14383_v56 = vpop.f32.mrb[7].mxu0 }
 0x57e   : >> { %v14384_v35 = vadd.f32 %v14383_v56, %v14382_v31  ;;  %v16469_v48 = vadd.f32 %v14381_v53, %v19662_v50 }
 0x580   : >> { %v16479_v62 = vadd.f32 %v14384_v35, %v19662_v50 }
 0x582   : >> { %v14385_v41 = vpop.f32.mrb[8].mxu0 }
 0x583   : >> { %v14386_v38 = vpop.f32.mrb[9].mxu0 }
 0x584   : >> { %v14387_v17 = vadd.f32 %v14386_v38, %v14385_v41  ;;  %v14388_v6 = vpop.f32.mrb[10].mxu0 }
 0x585   : >> { %v14389_v22 = vpop.f32.mrb[11].mxu0 }
 0x586   : >> { %v14390_v13 = vadd.f32 %v14389_v22, %v14388_v6  ;;  %v16494_v30 = vadd.f32 %v14387_v17, %v19662_v50 }
 0x588   : >> { %v16504_v40 = vadd.f32 %v14390_v13, %v19662_v50 }
 0x58a   : >> { %v14391_v7 = vpop.f32.mrb[12].mxu0 }
 0x58b   : >> { %v14392_v61 = vpop.f32.mrb[13].mxu0 }
 0x58c   : >> { %v14393_v1 = vadd.f32 %v14392_v61, %v14391_v7  ;;  %v14394_v18 = vpop.f32.mrb[14].mxu0 }
 0x58d   : >> { %v14395_v37 = vpop.f32.mrb[15].mxu0 }
 0x58e   : >> { %v14396_v63 = vadd.f32 %v14395_v37, %v14394_v18  ;;  %v16489_v38 = vadd.f32 %v14393_v1, %v19662_v50 }
 0x590   : >> { %v16499_v18 = vadd.f32 %v14396_v63, %v19662_v50 }
 0x592   : >> { %v14397_v19 = vpop.f32.mrb[16].mxu0  ;;  %v14453_v36 = vpop.f32.mrb[16].mxu1 }
 0x593   : >> { %v14398_v20 = vpop.f32.mrb[17].mxu0  ;;  %v14454_v46 = vpop.f32.mrb[17].mxu1 }
 0x594   : >> { %v19665_v21 = vadd.f32 %v14398_v20, %v14397_v19  ;;  %v14455_v11 = vadd.f32 %v14454_v46, %v14453_v36  ;;  %v14400_v29 = vpop.f32.mrb[18].mxu0  ;;  %v14456_v43 = vpop.f32.mrb[18].mxu1 }
 0x595   : >> { %v14401_v58 = vpop.f32.mrb[19].mxu0  ;;  %v14457_v14 = vpop.f32.mrb[19].mxu1 }
 0x596   : >> { %v19668_v54 = vadd.f32 %v14401_v58, %v14400_v29  ;;  %v14458_v16 = vadd.f32 %v14457_v14, %v14456_v43  ;;  %v19670_v10 = vadd.f32 %v16474_v8, %v14455_v11  ;;  %v16513_v29 = vadd.f32 %v19665_v21, %v19662_v50 }
 0x598   : >> { %v19672_v3 = vadd.f32 %v16484_v27, %v14458_v16 }
 0x59a   : >> { %v14403_v39 = vpop.f32.mrb[20].mxu0  ;;  %v14459_v9 = vpop.f32.mrb[20].mxu1 }
 0x59b   : >> { %v14404_v57 = vpop.f32.mrb[21].mxu0  ;;  %v14460_v45 = vpop.f32.mrb[21].mxu1 }
 0x59c   : >> { %v19675_v24 = vadd.f32 %v14404_v57, %v14403_v39  ;;  %v14461_v42 = vadd.f32 %v14460_v45, %v14459_v9  ;;  %v14406_v4 = vpop.f32.mrb[22].mxu0  ;;  %v14462_v47 = vpop.f32.mrb[22].mxu1  ;;  %v16521_v39 = vadd.f32 %v19668_v54, %v19662_v50 }
 0x59d   : >> { %v14407_v52 = vpop.f32.mrb[23].mxu0  ;;  %v14463_v12 = vpop.f32.mrb[23].mxu1 }
 0x59e   : >> { %v19678_v0 = vadd.f32 %v14407_v52, %v14406_v4  ;;  %v14464_v23 = vadd.f32 %v14463_v12, %v14462_v47  ;;  %v19680_v15 = vadd.f32 %v16469_v48, %v14461_v42  ;;  %v16509_v52 = vadd.f32 %v19675_v24, %v19662_v50 }
 0x5a0   : >> { %v19682_v51 = vadd.f32 %v16479_v62, %v14464_v23 }
 0x5a2   : >> { %v14409_v60 = vpop.f32.mrb[24].mxu0  ;;  %v14465_v55 = vpop.f32.mrb[24].mxu1 }
 0x5a3   : >> { %v14410_v2 = vpop.f32.mrb[25].mxu0  ;;  %v14466_v34 = vpop.f32.mrb[25].mxu1 }
 0x5a4   : >> { %v19685_v49 = vadd.f32 %v14410_v2, %v14409_v60  ;;  %v14467_v26 = vadd.f32 %v14466_v34, %v14465_v55  ;;  %v14412_v25 = vpop.f32.mrb[26].mxu0  ;;  %v14468_v33 = vpop.f32.mrb[26].mxu1  ;;  %v16517_v2 = vadd.f32 %v19678_v0, %v19662_v50 }
 0x5a5   : >> { %v14413_v28 = vpop.f32.mrb[27].mxu0  ;;  %v14469_v44 = vpop.f32.mrb[27].mxu1 }
 0x5a6   : >> { %v19688_v5 = vadd.f32 %v14413_v28, %v14412_v25  ;;  %v14470_v32 = vadd.f32 %v14469_v44, %v14468_v33  ;;  %v19690_v59 = vadd.f32 %v16494_v30, %v14467_v26  ;;  %v16529_v24 = vadd.f32 %v19685_v49, %v19662_v50 }
 0x5a8   : >> { %v19692_v53 = vadd.f32 %v16504_v40, %v14470_v32  ;;  %v16537_v0 = vadd.f32 %v19688_v5, %v19662_v50 }
 0x5aa   : >> { %v14415_v31 = vpop.f32.mrb[28].mxu0  ;;  %v14471_v56 = vpop.f32.mrb[28].mxu1 }
 0x5ab   : >> { %v14416_v35 = vpop.f32.mrb[29].mxu0  ;;  %v14472_v41 = vpop.f32.mrb[29].mxu1 }
 0x5ac   : >> { %v19695_v17 = vadd.f32 %v14416_v35, %v14415_v31  ;;  %v14473_v6 = vadd.f32 %v14472_v41, %v14471_v56  ;;  %v14418_v22 = vpop.f32.mrb[30].mxu0  ;;  %v14474_v7 = vpop.f32.mrb[30].mxu1 }
 0x5ad   : >> { %v14419_v61 = vpop.f32.mrb[31].mxu0  ;;  %v14475_v13 = vpop.f32.mrb[31].mxu1 }
 0x5ae   : >> { %v19698_v37 = vadd.f32 %v14419_v61, %v14418_v22  ;;  %v14476_v19 = vadd.f32 %v14475_v13, %v14474_v7  ;;  %v19700_v36 = vadd.f32 %v16489_v38, %v14473_v6  ;;  %v16525_v49 = vadd.f32 %v19695_v17, %v19662_v50 }
 0x5b0   : >> { %v19702_v20 = vadd.f32 %v16499_v18, %v14476_v19  ;;  %v16533_v5 = vadd.f32 %v19698_v37, %v19662_v50 }
 0x5b2   : >> { %v14477_v46 = vpop.f32.mrb[32].mxu1  ;;  %v14533_v8 = vpop.f32.mrb[32].mxu0 }
 0x5b3   : >> { %v14478_v11 = vpop.f32.mrb[33].mxu1  ;;  %v14534_v1 = vpop.f32.mrb[33].mxu0 }
 0x5b4   : >> { %v14479_v43 = vadd.f32 %v14478_v11, %v14477_v46  ;;  %v19706_v58 = vadd.f32 %v14534_v1, %v14533_v8  ;;  %v14480_v14 = vpop.f32.mrb[34].mxu1  ;;  %v14536_v27 = vpop.f32.mrb[34].mxu0 }
 0x5b5   : >> { %v14481_v63 = vpop.f32.mrb[35].mxu1  ;;  %v14537_v16 = vpop.f32.mrb[35].mxu0 }
 0x5b6   : >> { %v19710_v9 = vadd.f32 %v16513_v29, %v14479_v43  ;;  %v14482_v57 = vadd.f32 %v14481_v63, %v14480_v14  ;;  %v19712_v45 = vadd.f32 %v14537_v16, %v14536_v27 }
 0x5b8   : >> { %v19714_v48 = vadd.f32 %v16521_v39, %v14482_v57 }
 0x5ba   : >> { %v14483_v42 = vpop.f32.mrb[36].mxu1  ;;  %v14539_v4 = vpop.f32.mrb[36].mxu0 }
 0x5bb   : >> { %v14484_v21 = vpop.f32.mrb[37].mxu1  ;;  %v14540_v47 = vpop.f32.mrb[37].mxu0 }
 0x5bc   : >> { %v14485_v12 = vadd.f32 %v14484_v21, %v14483_v42  ;;  %v14541_v62 = vadd.f32 %v14540_v47, %v14539_v4  ;;  %v14486_v23 = vpop.f32.mrb[38].mxu1  ;;  %v14542_v60 = vpop.f32.mrb[38].mxu0 }
 0x5bd   : >> { %v14487_v55 = vpop.f32.mrb[39].mxu1  ;;  %v14543_v54 = vpop.f32.mrb[39].mxu0 }
 0x5be   : >> { %v19720_v34 = vadd.f32 %v16509_v52, %v14485_v12  ;;  %v14488_v30 = vadd.f32 %v14487_v55, %v14486_v23  ;;  %v14544_v26 = vadd.f32 %v14543_v54, %v14542_v60 }
 0x5c0   : >> { %v19722_v25 = vadd.f32 %v16517_v2, %v14488_v30 }
 0x5c2   : >> { %v14489_v33 = vpop.f32.mrb[40].mxu1  ;;  %v14545_v28 = vpop.f32.mrb[40].mxu0 }
 0x5c3   : >> { %v14490_v44 = vpop.f32.mrb[41].mxu1  ;;  %v14546_v40 = vpop.f32.mrb[41].mxu0 }
 0x5c4   : >> { %v14491_v32 = vadd.f32 %v14490_v44, %v14489_v33  ;;  %v14547_v31 = vadd.f32 %v14546_v40, %v14545_v28  ;;  %v14492_v56 = vpop.f32.mrb[42].mxu1  ;;  %v14548_v35 = vpop.f32.mrb[42].mxu0 }
 0x5c5   : >> { %v14493_v41 = vpop.f32.mrb[43].mxu1  ;;  %v14549_v38 = vpop.f32.mrb[43].mxu0 }
 0x5c6   : >> { %v19728_v6 = vadd.f32 %v16529_v24, %v14491_v32  ;;  %v14494_v22 = vadd.f32 %v14493_v41, %v14492_v56  ;;  %v14550_v7 = vadd.f32 %v14549_v38, %v14548_v35 }
 0x5c8   : >> { %v19730_v61 = vadd.f32 %v16537_v0, %v14494_v22 }
 0x5ca   : >> { %v14495_v13 = vpop.f32.mrb[44].mxu1  ;;  %v14551_v18 = vpop.f32.mrb[44].mxu0 }
 0x5cb   : >> { %v14496_v19 = vpop.f32.mrb[45].mxu1  ;;  %v14552_v46 = vpop.f32.mrb[45].mxu0 }
 0x5cc   : >> { %v14497_v8 = vadd.f32 %v14496_v19, %v14495_v13  ;;  %v14553_v11 = vadd.f32 %v14552_v46, %v14551_v18  ;;  %v14498_v1 = vpop.f32.mrb[46].mxu1  ;;  %v14554_v29 = vpop.f32.mrb[46].mxu0 }
 0x5cd   : >> { %v14499_v43 = vpop.f32.mrb[47].mxu1  ;;  %v14555_v14 = vpop.f32.mrb[47].mxu0 }
 0x5ce   : >> { %v16526_v27 = vadd.f32 %v16525_v49, %v14497_v8  ;;  %v14500_v63 = vadd.f32 %v14499_v43, %v14498_v1  ;;  %v14556_v16 = vadd.f32 %v14555_v14, %v14554_v29 }
 0x5d0   : >> { %v16534_v39 = vadd.f32 %v16533_v5, %v14500_v63 }
 0x5d2   : >> { %v15799_v57 = vpop.f32.mrb[0].mxu1  ;;  %v14557_v42 = vpop.f32.mrb[48].mxu0 }
 0x5d3   : >> { %v16471_v4 = vadd.f32 %v19680_v15, %v15799_v57  ;;  %v5256_v21 = vpop.f32.mrb[1].mxu1  ;;  %v14558_v47 = vpop.f32.mrb[49].mxu0 }
 0x5d4   : >> { %v16476_v17 = vadd.f32 %v19670_v10, %v5256_v21  ;;  %v14559_v52 = vadd.f32 %v14558_v47, %v14557_v42  ;;  %v15800_v12 = vpop.f32.mrb[2].mxu1  ;;  %v14560_v23 = vpop.f32.mrb[50].mxu0 }
 0x5d5   : >> { %v16481_v60 = vadd.f32 %v19682_v51, %v15800_v12  ;;  %v5259_v55 = vpop.f32.mrb[3].mxu1  ;;  %v14561_v54 = vpop.f32.mrb[51].mxu0  ;;  %v16472_v50 = vadd.f32 %v16471_v4, %v14541_v62 }
 0x5d6   : >> { %v16486_v37 = vadd.f32 %v19672_v3, %v5259_v55  ;;  %v14562_v2 = vadd.f32 %v14561_v54, %v14560_v23  ;;  %v16477_v30 = vadd.f32 %v16476_v17, %v19706_v58  ;;  %v16515_v33 = vadd.f32 %v19710_v9, %v14559_v52 }
 0x5d7   : >> { %v16482_v15 = vadd.f32 %v16481_v60, %v14544_v26 }
 0x5d8   : >> { %v19743_v28 = vadd.f32 %v16486_v37, %v19712_v45  ;;  %v16523_v10 = vadd.f32 %v19714_v48, %v14562_v2 }
 0x5da   : >> { %v15803_v44 = vpop.f32.mrb[4].mxu1  ;;  %v14563_v40 = vpop.f32.mrb[52].mxu0 }
 0x5db   : >> { %v16491_v51 = vadd.f32 %v19700_v36, %v15803_v44  ;;  %v5272_v24 = vpop.f32.mrb[5].mxu1  ;;  %v14564_v32 = vpop.f32.mrb[53].mxu0 }
 0x5dc   : >> { %v16496_v62 = vadd.f32 %v19690_v59, %v5272_v24  ;;  %v14565_v3 = vadd.f32 %v14564_v32, %v14563_v40  ;;  %v15804_v56 = vpop.f32.mrb[6].mxu1  ;;  %v14566_v35 = vpop.f32.mrb[54].mxu0 }
 0x5dd   : >> { %v16501_v58 = vadd.f32 %v19702_v20, %v15804_v56  ;;  %v5275_v9 = vpop.f32.mrb[7].mxu1  ;;  %v14567_v26 = vpop.f32.mrb[55].mxu0  ;;  %v19749_v41 = vadd.f32 %v16491_v51, %v14553_v11 }
 0x5de   : >> { %v16506_v45 = vadd.f32 %v19692_v53, %v5275_v9  ;;  %v14568_v48 = vadd.f32 %v14567_v26, %v14566_v35  ;;  %v16511_v38 = vadd.f32 %v19720_v34, %v14565_v3  ;;  %v19753_v0 = vadd.f32 %v16496_v62, %v14547_v31 }
 0x5df   : >> { %v19755_v36 = vadd.f32 %v16501_v58, %v14556_v16 }
 0x5e0   : >> { %v16519_v59 = vadd.f32 %v19722_v25, %v14568_v48  ;;  %v19758_v22 = vadd.f32 %v16506_v45, %v14550_v7 }
 0x5e2   : >> { %v14569_v13 = vpop.f32.mrb[56].mxu0 }
 0x5e3   : >> { %v14570_v18 = vpop.f32.mrb[57].mxu0 }
 0x5e4   : >> { %v14571_v20 = vadd.f32 %v14570_v18, %v14569_v13  ;;  %v14572_v19 = vpop.f32.mrb[58].mxu0 }
 0x5e5   : >> { %v14573_v46 = vpop.f32.mrb[59].mxu0 }
 0x5e6   : >> { %v14574_v49 = vadd.f32 %v14573_v46, %v14572_v19  ;;  %v19761_v8 = vadd.f32 %v19728_v6, %v14571_v20 }
 0x5e8   : >> { %v19764_v53 = vadd.f32 %v19730_v61, %v14574_v49 }
 0x5ea   : >> { %v14575_v34 = vpop.f32.mrb[60].mxu0 }
 0x5eb   : >> { %v14576_v31 = vpop.f32.mrb[61].mxu0 }
 0x5ec   : >> { %v14577_v11 = vadd.f32 %v14576_v31, %v14575_v34  ;;  %v14578_v1 = vpop.f32.mrb[62].mxu0 }
 0x5ed   : >> { %v14579_v29 = vpop.f32.mrb[63].mxu0 }
 0x5ee   : >> { %v14580_v25 = vadd.f32 %v14579_v29, %v14578_v1  ;;  %v16527_v7 = vadd.f32 %v16526_v27, %v14577_v11 }
 0x5f0   : >> { %v16535_v43 = vadd.f32 %v16534_v39, %v14580_v25 }
 0x5f2   : >> { %v15831_v14 = vpop.f32.mrb[64].mxu0  ;;  %v15839_v5 = vpop.f32.mrb[8].mxu1 }
 0x5f3   : >> { %v16473_v63 = vadd.f32 %v16472_v50, %v15831_v14  ;;  %v16512_v16 = vadd.f32 %v16511_v38, %v15839_v5  ;;  %v5767_v57 = vpop.f32.mrb[65].mxu0  ;;  %v5799_v42 = vpop.f32.mrb[9].mxu1 }
 0x5f4   : >> { %v16478_v4 = vadd.f32 %v16477_v30, %v5767_v57  ;;  %v16516_v6 = vadd.f32 %v16515_v33, %v5799_v42  ;;  %v15832_v21 = vpop.f32.mrb[66].mxu0  ;;  %v15840_v47 = vpop.f32.mrb[10].mxu1 }
 0x5f5   : >> { %vm5848_vm10 = vcmp.gt.f32.partialorder %v16473_v63, 0.0  ;;  %v5864_v61 = vmul.f32 0.1, %v16473_v63  ;;  %vm5856_vm11 = vcmp.gt.f32.partialorder %v16512_v16, 0.0  ;;  %v5872_v17 = vmul.f32 0.1, %v16512_v16 }
 0x5f6   : >> { %vm5846_vm12 = vcmp.gt.f32.partialorder %v16478_v4, 0.0  ;;  %v5862_v52 = vmul.f32 0.1, %v16478_v4  ;;  %vm5854_vm13 = vcmp.gt.f32.partialorder %v16516_v6, 0.0  ;;  %v5870_v12 = vmul.f32 0.1, %v16516_v6 }
 0x5f7   : >> { %v16483_v27 = vadd.f32 %v16482_v15, %v15832_v21  ;;  %v16520_v39 = vadd.f32 %v16519_v59, %v15840_v47  ;;  %v5770_v23 = vpop.f32.mrb[67].mxu0  ;;  %v5802_v60 = vpop.f32.mrb[11].mxu1  ;;  %v5880_v55 = vsel %vm5848_vm10, %v16473_v63, %v5864_v61  ;;  %v5888_v54 = vsel %vm5856_vm11, %v16512_v16, %v5872_v17 }
 0x5f8   : >> { %v16488_v50 = vadd.f32 %v19743_v28, %v5770_v23  ;;  %v16524_v37 = vadd.f32 %v16523_v10, %v5802_v60  ;;  %v5878_v40 = vsel %vm5846_vm12, %v16478_v4, %v5862_v52  ;;  %v5886_v15 = vsel %vm5854_vm13, %v16516_v6, %v5870_v12 }
 0x5f9   : >> { %vm5849_vm14 = vcmp.gt.f32.partialorder %v16483_v27, 0.0  ;;  %v5865_v2 = vmul.f32 0.1, %v16483_v27  ;;  %vm5857_vm15 = vcmp.gt.f32.partialorder %v16520_v39, 0.0  ;;  %v5873_v30 = vmul.f32 0.1, %v16520_v39 }
 0x5fa   : >> { %vm5847_vm2 = vcmp.gt.f32.partialorder %v16488_v50, 0.0  ;;  %v5863_v33 = vmul.f32 0.1, %v16488_v50  ;;  %vm5855_vm3 = vcmp.gt.f32.partialorder %v16524_v37, 0.0  ;;  %v5871_v44 = vmul.f32 0.1, %v16524_v37 }
 0x5fb   : >> { %v5881_v51 = vsel %vm5849_vm14, %v16483_v27, %v5865_v2  ;;  %v5889_v24 = vsel %vm5857_vm15, %v16520_v39, %v5873_v30  ;;  %v15835_v32 = vpop.f32.mrb[68].mxu0  ;;  %v15843_v62 = vpop.f32.mrb[12].mxu1 }
 0x5fc   : >> { %v5895_v3 = vpack.c.bf16 %v5881_v51, %v5880_v55  ;;  %v5899_v28 = vpack.c.bf16 %v5889_v24, %v5888_v54  ;;  %v5879_v10 = vsel %vm5847_vm2, %v16488_v50, %v5863_v33  ;;  %v5887_v56 = vsel %vm5855_vm3, %v16524_v37, %v5871_v44  ;;  %v5783_v35 = vpop.f32.mrb[69].mxu0  ;;  %v5815_v58 = vpop.f32.mrb[13].mxu1 }
 0x5fd   : >> { %v5894_v9 = vpack.c.bf16 %v5879_v10, %v5878_v40  ;;  %v5898_v26 = vpack.c.bf16 %v5887_v56, %v5886_v15  ;;  %v16493_v45 = vadd.f32 %v19749_v41, %v15835_v32  ;;  %v16528_v48 = vadd.f32 %v16527_v7, %v15843_v62  ;;  %v15836_v38 = vpop.f32.mrb[70].mxu0  ;;  %v15844_v59 = vpop.f32.mrb[14].mxu1 }
 0x5fe   : >> { %13176 = vst [vmem:[%s19772_s14 + $0x210] sm:$0xff] %v5895_v3  ;;  %13180 = vst [vmem:[%s19772_s14 + $0x250] sm:$0xff] %v5899_v28  ;;  %v16498_v13 = vadd.f32 %v19753_v0, %v5783_v35  ;;  %v16532_v18 = vadd.f32 %v19761_v8, %v5815_v58  ;;  %v16503_v20 = vadd.f32 %v19755_v36, %v15836_v38  ;;  %v5786_v41 = vpop.f32.mrb[71].mxu0  ;;  %v5818_v46 = vpop.f32.mrb[15].mxu1 }
 0x5ff   : >> { %v16536_v19 = vadd.f32 %v16535_v43, %v15844_v59  ;;  %13175 = vst [vmem:[%s19772_s14 + $0x208] sm:$0xff] %v5894_v9  ;;  %13179 = vst [vmem:[%s19772_s14 + $0x248] sm:$0xff] %v5898_v26  ;;  %v5868_v49 = vmul.f32 0.1, %v16493_v45  ;;  %vm5852_vm4 = vcmp.gt.f32.partialorder %v16493_v45, 0.0  ;;  %vm5860_vm5 = vcmp.gt.f32.partialorder %v16528_v48, 0.0 }
 0x600   : >> { %v5876_v34 = vmul.f32 0.1, %v16528_v48  ;;  %vm5850_vm6 = vcmp.gt.f32.partialorder %v16498_v13, 0.0  ;;  %vm5853_vm7 = vcmp.gt.f32.partialorder %v16503_v20, 0.0  ;;  %v5869_v31 = vmul.f32 0.1, %v16503_v20 }
 0x601   : >> { %v5866_v11 = vmul.f32 0.1, %v16498_v13  ;;  %vm5858_vm8 = vcmp.gt.f32.partialorder %v16532_v18, 0.0  ;;  %vm5861_vm9 = vcmp.gt.f32.partialorder %v16536_v19, 0.0  ;;  %v5877_v0 = vmul.f32 0.1, %v16536_v19 }
 0x602   : >> { %v5884_v8 = vsel %vm5852_vm4, %v16493_v45, %v5868_v49  ;;  %v5885_v36 = vsel %vm5853_vm7, %v16503_v20, %v5869_v31  ;;  %v16508_v1 = vadd.f32 %v19758_v22, %v5786_v41  ;;  %v16540_v29 = vadd.f32 %v19764_v53, %v5818_v46 }
 0x603   : >> { %v5892_v25 = vsel %vm5860_vm5, %v16528_v48, %v5876_v34  ;;  %v5874_v7 = vmul.f32 0.1, %v16532_v18  ;;  %v5897_v43 = vpack.c.bf16 %v5885_v36, %v5884_v8  ;;  %v5893_v14 = vsel %vm5861_vm9, %v16536_v19, %v5877_v0 }
 0x604   : >> { %v5901_v5 = vpack.c.bf16 %v5893_v14, %v5892_v25  ;;  %vm5851_vm10 = vcmp.gt.f32.partialorder %v16508_v1, 0.0  ;;  %v5867_v63 = vmul.f32 0.1, %v16508_v1  ;;  %vm5859_vm11 = vcmp.gt.f32.partialorder %v16540_v29, 0.0  ;;  %4303 = sbr.rel (!%p4301_p13) target bundleno = 1149 (0x47d), region = 214 }
 0x605   : >> { %13178 = vst [vmem:[%s19772_s14 + $0x230] sm:$0xff] %v5897_v43  ;;  %v5875_v16 = vmul.f32 0.1, %v16540_v29  ;;  %v5882_v57 = vsel %vm5850_vm6, %v16498_v13, %v5866_v11  ;;  %v5890_v22 = vsel %vm5858_vm8, %v16532_v18, %v5874_v7 }
 0x606   : >> { %13182 = vst [vmem:[%s19772_s14 + $0x270] sm:$0xff] %v5901_v5  ;;  %v5883_v42 = vsel %vm5851_vm10, %v16508_v1, %v5867_v63 }
 0x607   : >> { %v5896_v4 = vpack.c.bf16 %v5883_v42, %v5882_v57  ;;  %v5891_v53 = vsel %vm5859_vm11, %v16540_v29, %v5875_v16 }
 0x608   : >> { %v5900_v6 = vpack.c.bf16 %v5891_v53, %v5890_v22 }
 0x609   : >> { %13177 = vst [vmem:[%s19772_s14 + $0x228] sm:$0xff] %v5896_v4 }
 0x60a   : >> { %13181 = vst [vmem:[%s19772_s14 + $0x268] sm:$0xff] %v5900_v6 }
 0x60b LB: >> { %v17360_v21 = vld [vmem:[#allocation6 + $0x700] sm:$0xff]   ;;  %v17363_v17 = vld [vmem:[#allocation6 + $0x708] sm:$0xff]   ;;  %v17366_v27 = vld [vmem:[#allocation6 + $0x710] sm:$0xff]   ;;  %s13860_s16 = sshll.u32 %s17912_s15, 7  ;;  %vm5952_vm12 = vcmask 1043456   ;;  %s5917_s15 = sadd.s32 1, %s17912_s15   ;;  %s17912_s15 = sphi %s19792_s15, %s5917_s15  }
 0x60c   : >> { %v17361_v47 = vld [vmem:[#allocation6 + $0x740] sm:$0xff]   ;;  %14597 = vmatprep.subr.bf16.mxu0 %v17360_v21  ;;  %v17364_v52 = vld [vmem:[#allocation6 + $0x748] sm:$0xff]   ;;  %v17367_v39 = vld [vmem:[#allocation6 + $0x750] sm:$0xff]   ;;  %s19800_s6 = scalar_lea.vmem [#allocation3], %s13860_s16  ;;  %s20120_s28 = scalar_lea.vmem [#allocation2], %s13860_s16 }
 0x60d   : >> { %v17362_v61 = vld [vmem:[#allocation6 + $0x6c0] sm:$0xff]   ;;  %15845 = vmatprep.subr.bf16.mxu1 %v17361_v47  ;;  %v17365_v12 = vld [vmem:[#allocation6 + $0x6c8] sm:$0xff]   ;;  %v17368_v23 = vld [vmem:[#allocation6 + $0x6d0] sm:$0xff]   ;;  %p5914_p0 = scmp.ge.s32.totalorder %s5917_s15, 8  }
 0x60e   : >> { %14598 = vmatpush3.bf16.msra.mxu0 %v17362_v61  ;;  %15846 = vmatpush3.bf16.msra.mxu1 %v17361_v47  ;;  %v17369_v60 = vld [vmem:[#allocation6 + $0x718] sm:$0xff]   ;;  %v17372_v50 = vld [vmem:[#allocation6 + $0x720] sm:$0xff]   ;;  %v17375_v30 = vld [vmem:[#allocation6 + $0x728] sm:$0xff]   ;;  %s20140_s30 = smov (%p5914_p0), 0  }
 0x60f   : >> { %14599 = vmatprep.subr.bf16.mxu0 %v17363_v17  ;;  %15847 = vmatprep.subr.bf16.mxu1 %v17364_v52  ;;  %v17370_v55 = vld [vmem:[#allocation6 + $0x758] sm:$0xff]   ;;  %v17373_v37 = vld [vmem:[#allocation6 + $0x760] sm:$0xff]   ;;  %v17376_v33 = vld [vmem:[#allocation6 + $0x768] sm:$0xff]  }
 0x610   : >> { %v17371_v54 = vld [vmem:[#allocation6 + $0x6d8] sm:$0xff]   ;;  %v17374_v2 = vld [vmem:[#allocation6 + $0x6e0] sm:$0xff]   ;;  %v17377_v44 = vld [vmem:[#allocation6 + $0x6e8] sm:$0xff]  }
 0x611   : >> { %v17378_v40 = vld [vmem:[#allocation6 + $0x730] sm:$0xff]   ;;  %v13187_v24 = vld [vmem:[%s19800_s6 + $0x108] sm:$0xff]  ;;  %v17381_v3 = vld [vmem:[#allocation6 + $0x738] sm:$0xff]  }
 0x612   : >> { %14600 = vmatpush3.bf16.msra.mxu0 %v17365_v12  ;;  %15848 = vmatpush3.bf16.msra.mxu1 %v17364_v52  ;;  %v17379_v15 = vld [vmem:[#allocation6 + $0x770] sm:$0xff]   ;;  %v13202_v62 = vld [vmem:[%s19800_s6 + $0x108] sm:$0xf0]  ;;  %v17382_v28 = vld [vmem:[#allocation6 + $0x778] sm:$0xff]   ;;  %v5954_v9 = vrot.slane %v13187_v24, 4 }
 0x613   : >> { %14601 = vmatprep.subr.bf16.mxu0 %v17366_v27  ;;  %15849 = vmatprep.subr.bf16.mxu1 %v17367_v39  ;;  %v17380_v51 = vld [vmem:[#allocation6 + $0x6f0] sm:$0xff]   ;;  %v6005_v10 = vrot.slane %v13202_v62, 4  ;;  %v13186_v35 = vld [vmem:[%s19800_s6 + $0x100] sm:$0xf0]  ;;  %v17383_v58 = vld [vmem:[#allocation6 + $0x6f8] sm:$0xff]  }
 0x614   : >> { %v13198_v32 = vld [vmem:[%s19800_s6 + $0x110] sm:$0xff]  ;;  %6258 = vmatprep.mubr.bf16.mxu0 %v13187_v24  ;;  %v13203_v26 = vld [vmem:[%s19800_s6 + $0x118] sm:$0xf]  ;;  %v5953_v48 = vrot.slane %v13186_v35, 4  ;;  %v17384_v59 = vld [vmem:[#allocation6 + $0x7c0] sm:$0xff]  }
 0x615   : >> { %v6006_v56 = vrot.slane %v13198_v32, 4  ;;  %v6008_v38 = vrot.slane %v13203_v26, 4  ;;  %v17385_v13 = vld [vmem:[#allocation6 + $0x880] sm:$0xff]   ;;  %v19811_v46 = vld [vmem:[%s19800_s6 + $0x130] sm:$0xff]  ;;  %v13204_v49 = vld [vmem:[%s19800_s6 + $0x128] sm:$0xf0] }
 0x616   : >> { %14602 = vmatpush3.bf16.msra.mxu0 %v17368_v23  ;;  %15850 = vmatpush3.bf16.msra.mxu1 %v17367_v39  ;;  %v17386_v18 = vld [vmem:[#allocation6 + $0x780] sm:$0xff]   ;;  %v5955_v19 = vsel %vm5952_vm12, %v5953_v48, %v5954_v9  ;;  %v13188_v34 = vld [vmem:[%s19800_s6 + $0x110] sm:$0xf]  ;;  %v17388_v31 = vld [vmem:[#allocation6 + $0x7c8] sm:$0xff]   ;;  %v6010_v11 = vrot.slane %v13204_v49, 4  ;;  %v6011_v0 = vrot.slane %v19811_v46, 4 }
 0x617   : >> { %14603 = vmatprep.subr.bf16.mxu0 %v17369_v60  ;;  %15851 = vmatprep.subr.bf16.mxu1 %v17370_v55  ;;  %v6007_v45 = vsel %vm5952_vm12, %v6005_v10, %v6006_v56  ;;  %v17387_v20 = vld [vmem:[#allocation6 + $0x840] sm:$0xff]   ;;  %v6009_v41 = vsel %vm5952_vm12, %v6006_v56, %v6008_v38  ;;  %v13205_v8 = vld [vmem:[%s19800_s6 + $0x138] sm:$0xf]  ;;  %v17389_v36 = vld [vmem:[#allocation6 + $0x788] sm:$0xff]   ;;  %v5956_v1 = vrot.slane %v13188_v34, 4 }
 0x618   : >> { %15861 = vmatprep.mubr.bf16.mxu1 %v6007_v45  ;;  %v17391_v29 = vld [vmem:[#allocation6 + $0x888] sm:$0xff]   ;;  %v6012_v25 = vsel %vm5952_vm12, %v6010_v11, %v6011_v0  ;;  %v6013_v7 = vrot.slane %v13205_v8, 4  ;;  %v17390_v43 = vld [vmem:[#allocation6 + $0x7d0] sm:$0xff]   ;;  %v13189_v4 = vld [vmem:[%s19800_s6 + $0x120] sm:$0xf0] }
 0x619   : >> { %v17393_v14 = vld [vmem:[#allocation6 + $0x848] sm:$0xff]   ;;  %v17392_v5 = vld [vmem:[#allocation6 + $0x790] sm:$0xff]   ;;  %v5957_v16 = vsel %vm5952_vm12, %v5954_v9, %v5956_v1  ;;  %v17394_v53 = vld [vmem:[#allocation6 + $0x7d8] sm:$0xff]   ;;  %v5958_v52 = vrot.slane %v13189_v4, 4 }
 0x61a   : >> { %14604 = vmatpush3.bf16.msra.mxu0 %v17371_v54  ;;  %15852 = vmatpush3.bf16.msra.mxu1 %v17370_v55  ;;  %v13190_v63 = vld [vmem:[%s19800_s6 + $0x128] sm:$0xff]  ;;  %v6014_v57 = vsel %vm5952_vm12, %v6011_v0, %v6013_v7  ;;  %v19822_v42 = vld [vmem:[%s19800_s6 + $0x150] sm:$0xff]  ;;  %v13207_v61 = vld [vmem:[%s19800_s6 + $0x158] sm:$0xf] }
 0x61b   : >> { %14605 = vmatprep.subr.bf16.mxu0 %v17372_v50  ;;  %15853 = vmatprep.subr.bf16.mxu1 %v17373_v37  ;;  %v13206_v22 = vld [vmem:[%s19800_s6 + $0x148] sm:$0xf0]  ;;  %v5959_v6 = vrot.slane %v13190_v63, 4  ;;  %v6016_v47 = vrot.slane %v19822_v42, 4  ;;  %v17395_v17 = vld [vmem:[#allocation6 + $0x798] sm:$0xff]   ;;  %v17397_v12 = vld [vmem:[#allocation6 + $0x890] sm:$0xff]  }
 0x61c   : >> { %v6015_v21 = vrot.slane %v13206_v22, 4  ;;  %v6018_v39 = vrot.slane %v13207_v61, 4  ;;  %v17396_v23 = vld [vmem:[#allocation6 + $0x7e0] sm:$0xff]   ;;  %v17399_v60 = vld [vmem:[#allocation6 + $0x850] sm:$0xff]   ;;  %v17403_v24 = vld [vmem:[#allocation6 + $0x898] sm:$0xff]  }
 0x61d   : >> { %v19830_v55 = vld [vmem:[%s19800_s6 + $0x170] sm:$0xff]  ;;  %v5960_v54 = vsel %vm5952_vm12, %v5958_v52, %v5959_v6  ;;  %v17405_v10 = vld [vmem:[#allocation6 + $0x858] sm:$0xff]   ;;  %v13193_v26 = vld [vmem:[%s19800_s6 + $0x148] sm:$0xff] }
 0x61e   : >> { %14606 = vmatpush3.bf16.msra.mxu0 %v17374_v2  ;;  %15854 = vmatpush3.bf16.msra.mxu1 %v17373_v37  ;;  %v6017_v27 = vsel %vm5952_vm12, %v6015_v21, %v6016_v47  ;;  %v6019_v50 = vsel %vm5952_vm12, %v6016_v47, %v6018_v39  ;;  %v17398_v37 = vld [vmem:[#allocation6 + $0x7a0] sm:$0xff]   ;;  %v13208_v2 = vld [vmem:[%s19800_s6 + $0x168] sm:$0xf0]  ;;  %v17402_v62 = vld [vmem:[#allocation6 + $0x7f0] sm:$0xff]  }
 0x61f   : >> { %14607 = vmatprep.subr.bf16.mxu0 %v17375_v30  ;;  %15855 = vmatprep.subr.bf16.mxu1 %v17376_v33  ;;  %v6021_v30 = vrot.slane %v19830_v55, 4  ;;  %v17404_v56 = vld [vmem:[#allocation6 + $0x7b0] sm:$0xff]   ;;  %v17406_v35 = vld [vmem:[#allocation6 + $0x7f8] sm:$0xff]   ;;  %v13237_v45 = vld [vmem:[%s19800_s6 + $0x208] sm:$0xff] }
 0x620   : >> { %v13192_v48 = vld [vmem:[%s19800_s6 + $0x140] sm:$0xf0]  ;;  %v13194_v34 = vld [vmem:[%s19800_s6 + $0x150] sm:$0xf]  ;;  %v17419_v21 = vld [vmem:[#allocation6 + $0x878] sm:$0xff]  }
 0x621   : >> { %v13236_v38 = vld [vmem:[%s19800_s6 + $0x200] sm:$0xf0]  ;;  %v13238_v8 = vld [vmem:[%s19800_s6 + $0x210] sm:$0xf] }
 0x622   : >> { %14608 = vmatpush3.bf16.msra.mxu0 %v17377_v44  ;;  %15856 = vmatpush3.bf16.msra.mxu1 %v17376_v33  ;;  %v13191_v33 = vld [vmem:[%s19800_s6 + $0x130] sm:$0xf]  ;;  %v17400_v44 = vld [vmem:[#allocation6 + $0x7e8] sm:$0xff]   ;;  %v17408_v49 = vld [vmem:[#allocation6 + $0x800] sm:$0xff]   ;;  %v6467_v7 = vrot.slane %v13238_v8, 4 }
 0x623   : >> { %14609 = vmatprep.subr.bf16.mxu0 %v17378_v40  ;;  %15857 = vmatprep.subr.bf16.mxu1 %v17379_v15  ;;  %v6020_v40 = vrot.slane %v13208_v2, 4  ;;  %v19851_v1 = vld [vmem:[%s19800_s6 + $0x210] sm:$0xff]  ;;  %v13195_v4 = vld [vmem:[%s19800_s6 + $0x160] sm:$0xf0] }
 0x624   : >> { %v5968_v52 = vrot.slane %v13195_v4, 4  ;;  %v6517_v4 = vrot.slane %v19851_v1, 4 }
 0x626   : >> { %14610 = vmatpush3.bf16.msra.mxu0 %v17380_v51  ;;  %15858 = vmatpush3.bf16.msra.mxu1 %v17379_v15  ;;  %v13209_v15 = vld [vmem:[%s19800_s6 + $0x178] sm:$0xf]  ;;  %v17401_v51 = vld [vmem:[#allocation6 + $0x7a8] sm:$0xff]  }
 0x627   : >> { %14611 = vmatprep.subr.bf16.mxu0 %v17381_v3  ;;  %15859 = vmatprep.subr.bf16.mxu1 %v17382_v28  ;;  %v5961_v3 = vrot.slane %v13191_v33, 4  ;;  %v17424_v33 = vld [vmem:[#allocation6 + $0x830] sm:$0xff]  }
 0x62a   : >> { %14612 = vmatpush3.bf16.msra.mxu0 %v17383_v58  ;;  %15860 = vmatpush3.bf16.msra.mxu1 %v17382_v28  ;;  %v6023_v28 = vrot.slane %v13209_v15, 4  ;;  %v5962_v58 = vsel %vm5952_vm12, %v5959_v6, %v5961_v3  ;;  %v17417_v6 = vld [vmem:[#allocation6 + $0x818] sm:$0xff]   ;;  %v13243_v15 = vld [vmem:[%s19800_s6 + $0x248] sm:$0xff] }
 0x62b   : >> { %14677 = vmatprep.subr.bf16.mxu1 %v17384_v59  ;;  %14757 = vmatprep.subr.bf16.mxu0 %v17385_v13  ;;  %v17409_v59 = vld [vmem:[#allocation6 + $0x8a0] sm:$0xff]   ;;  %v17407_v13 = vld [vmem:[#allocation6 + $0x7b8] sm:$0xff]  }
 0x62c   : >> { %v6024_v9 = vsel %vm5952_vm12, %v6021_v30, %v6023_v28 }
 0x62d   : >> { %6259 = vmatmul.mubr.bf16.vlgmr.msra.gmra.mrb[0].mxu0 %v5955_v19  ;;  %15862 = vmatmul.mubr.bf16.vlgmr.msra.gmra.mrb[0].mxu1 %v6009_v41  ;;  %v5963_v19 = vrot.slane %v13192_v48, 4  ;;  %v6464_v41 = vrot.slane %v13236_v38, 4  ;;  %v19889_v48 = vld [vmem:[%s19800_s6 + $0x310] sm:$0xff] }
 0x62e   : >> { %14678 = vmatpush3.bf16.msra.mxu1 %v17386_v18  ;;  %14758 = vmatpush3.bf16.msra.mxu0 %v17387_v20  ;;  %v5964_v18 = vrot.slane %v13193_v26, 4  ;;  %v6465_v20 = vrot.slane %v13237_v45, 4 }
 0x62f   : >> { %14679 = vmatprep.subr.bf16.mxu1 %v17388_v31  ;;  %6266 = vmatprep.mubr.bf16.mxu0 %v13198_v32  ;;  %v6022_v32 = vsel %vm5952_vm12, %v6020_v40, %v6021_v30  ;;  %v17412_v31 = vld [vmem:[#allocation6 + $0x8a8] sm:$0xff]  }
 0x630   : >> { %15865 = vmatprep.mubr.bf16.mxu1 %v6012_v25  ;;  %14759 = vmatprep.subr.bf16.mxu0 %v17391_v29  ;;  %v5965_v11 = vsel %vm5952_vm12, %v5963_v19, %v5964_v18  ;;  %v6466_v0 = vsel %vm5952_vm12, %v6464_v41, %v6465_v20  ;;  %v5966_v29 = vrot.slane %v13194_v34, 4  ;;  %v17413_v25 = vld [vmem:[#allocation6 + $0x868] sm:$0xff]   ;;  %v6468_v22 = vsel %vm5952_vm12, %v6465_v20, %v6467_v7  ;;  %v19906_v34 = vld [vmem:[#allocation6 + $0x8d8] sm:$0xff]   ;;  %v19915_v7 = vld [vmem:[%s19800_s6 + $0x270] sm:$0xff] }
 0x631   : >> { %v13246_v19 = vld [vmem:[%s19800_s6 + $0x268] sm:$0xff] }
 0x632   : >> { %14680 = vmatpush3.bf16.msra.mxu1 %v17389_v36  ;;  %14760 = vmatpush3.bf16.msra.mxu0 %v17393_v14  ;;  %v17411_v36 = vld [vmem:[#allocation6 + $0x808] sm:$0xff]   ;;  %v17414_v14 = vld [vmem:[#allocation6 + $0x810] sm:$0xff]  }
 0x633   : >> { %14681 = vmatprep.subr.bf16.mxu1 %v17390_v43  ;;  %14761 = vmatprep.subr.bf16.mxu0 %v17397_v12  ;;  %v17415_v43 = vld [vmem:[#allocation6 + $0x8b0] sm:$0xff]   ;;  %v13290_v41 = vld [vmem:[%s19800_s6 + $0x328] sm:$0xff] }
 0x635   : >> { %6267 = vmatmul.mubr.bf16.gmra.mrb[4].mxu0 %v5957_v16  ;;  %15866 = vmatmul.mubr.bf16.gmra.mrb[4].mxu1 %v6014_v57  ;;  %v13240_v16 = vld [vmem:[%s19800_s6 + $0x228] sm:$0xff]  ;;  %v5967_v57 = vsel %vm5952_vm12, %v5964_v18, %v5966_v29 }
 0x636   : >> { %14682 = vmatpush3.bf16.msra.mxu1 %v17392_v5  ;;  %6274 = vmatprep.mubr.bf16.mxu0 %v13190_v63  ;;  %v13196_v5 = vld [vmem:[%s19800_s6 + $0x168] sm:$0xff]  ;;  %v17416_v63 = vld [vmem:[#allocation6 + $0x870] sm:$0xff]   ;;  %v6470_v61 = vrot.slane %v13240_v16, 4 }
 0x637   : >> { %14683 = vmatprep.subr.bf16.mxu1 %v17394_v53  ;;  %15869 = vmatprep.mubr.bf16.mxu1 %v6017_v27  ;;  %v13239_v53 = vld [vmem:[%s19800_s6 + $0x220] sm:$0xf0]  ;;  %v5969_v47 = vrot.slane %v13196_v5, 4 }
 0x638   : >> { %14762 = vmatpush3.bf16.msra.mxu0 %v17399_v60  ;;  %v6469_v12 = vrot.slane %v13239_v53, 4  ;;  %v17420_v27 = vld [vmem:[#allocation6 + $0x820] sm:$0xff]   ;;  %v19867_v60 = vld [vmem:[%s19800_s6 + $0x230] sm:$0xff] }
 0x639   : >> { %14763 = vmatprep.subr.bf16.mxu0 %v17403_v24  ;;  %v5970_v39 = vsel %vm5952_vm12, %v5968_v52, %v5969_v47  ;;  %v13242_v24 = vld [vmem:[%s19800_s6 + $0x240] sm:$0xf0]  ;;  %v13253_v52 = vld [vmem:[%s19800_s6 + $0x218] sm:$0xf] }
 0x63a   : >> { %14684 = vmatpush3.bf16.msra.mxu1 %v17395_v17  ;;  %v19861_v17 = vld [vmem:[#allocation6 + $0x8c0] sm:$0xff]   ;;  %v6474_v28 = vrot.slane %v13242_v24, 4 }
 0x63b   : >> { %14685 = vmatprep.subr.bf16.mxu1 %v17396_v23  ;;  %v6471_v23 = vsel %vm5952_vm12, %v6469_v12, %v6470_v61  ;;  %v13292_v12 = vld [vmem:[%s19800_s6 + $0x340] sm:$0xf0] }
 0x63c   : >> { %14764 = vmatpush3.bf16.msra.mxu0 %v17405_v10 }
 0x63d   : >> { %6275 = vmatmul.mubr.bf16.gmra.mrb[8].mxu0 %v5960_v54  ;;  %15870 = vmatmul.mubr.bf16.gmra.mrb[8].mxu1 %v6019_v50  ;;  %v13197_v54 = vld [vmem:[%s19800_s6 + $0x170] sm:$0xf] }
 0x63e   : >> { %14686 = vmatpush3.bf16.msra.mxu1 %v17398_v37  ;;  %6282 = vmatprep.mubr.bf16.mxu0 %v19811_v46  ;;  %v17410_v46 = vld [vmem:[#allocation6 + $0x860] sm:$0xff]   ;;  %v13241_v50 = vld [vmem:[%s19800_s6 + $0x230] sm:$0xf]  ;;  %v17422_v37 = vld [vmem:[#allocation6 + $0x828] sm:$0xff]   ;;  %v5971_v2 = vrot.slane %v13197_v54, 4  ;;  %v6985_v54 = vrot.slane %v13292_v12, 4 }
 0x63f   : >> { %14687 = vmatprep.subr.bf16.mxu1 %v17400_v44  ;;  %15873 = vmatprep.mubr.bf16.mxu1 %v6022_v32  ;;  %v6472_v30 = vrot.slane %v13241_v50, 4  ;;  %v13286_v32 = vld [vmem:[%s19800_s6 + $0x300] sm:$0xf0]  ;;  %v6522_v50 = vrot.slane %v19867_v60, 4  ;;  %v13305_v12 = vld [vmem:[%s19800_s6 + $0x338] sm:$0xf] }
 0x640   : >> { %14765 = vmatprep.subr.bf16.mxu0 %v17409_v59  ;;  %v5972_v44 = vsel %vm5952_vm12, %v5969_v47, %v5971_v2  ;;  %v6975_v10 = vrot.slane %v13286_v32, 4 }
 0x641   : >> { %14766 = vmatpush3.bf16.msra.mxu0 %v17410_v46  ;;  %v6473_v40 = vsel %vm5952_vm12, %v6470_v61, %v6472_v30  ;;  %v13245_v46 = vld [vmem:[%s19800_s6 + $0x260] sm:$0xf0]  ;;  %v13293_v61 = vld [vmem:[%s19800_s6 + $0x348] sm:$0xff] }
 0x642   : >> { %14688 = vmatpush3.bf16.msra.mxu1 %v17401_v51  ;;  %14767 = vmatprep.subr.bf16.mxu0 %v17412_v31  ;;  %v13287_v51 = vld [vmem:[%s19800_s6 + $0x308] sm:$0xff]  ;;  %v6480_v31 = vrot.slane %v13246_v19, 4 }
 0x643   : >> { %14689 = vmatprep.subr.bf16.mxu1 %v17402_v62  ;;  %v6475_v62 = vrot.slane %v13243_v15, 4  ;;  %v6976_v3 = vrot.slane %v13287_v51, 4 }
 0x645   : >> { %6283 = vmatmul.mubr.bf16.gmra.mrb[12].mxu0 %v5962_v58  ;;  %15874 = vmatmul.mubr.bf16.gmra.mrb[12].mxu1 %v6024_v9  ;;  %v19882_v58 = vld [vmem:[%s19800_s6 + $0x250] sm:$0xff] }
 0x646   : >> { %14690 = vmatpush3.bf16.msra.mxu1 %v17404_v56  ;;  %6290 = vmatprep.mubr.bf16.mxu0 %v13193_v26  ;;  %v6476_v56 = vsel %vm5952_vm12, %v6474_v28, %v6475_v62  ;;  %v13244_v9 = vld [vmem:[%s19800_s6 + $0x250] sm:$0xf]  ;;  %v6527_v32 = vrot.slane %v19882_v58, 4  ;;  %v13296_v28 = vld [vmem:[%s19800_s6 + $0x368] sm:$0xff] }
 0x647   : >> { %14691 = vmatprep.subr.bf16.mxu1 %v17406_v35  ;;  %6769 = vmatprep.mubr.bf16.mxu1 %v13237_v45  ;;  %v6977_v35 = vsel %vm5952_vm12, %v6975_v10, %v6976_v3  ;;  %v13288_v26 = vld [vmem:[%s19800_s6 + $0x310] sm:$0xf]  ;;  %v19886_v45 = vld [vmem:[#allocation6 + $0x8c8] sm:$0xff]   ;;  %v6477_v38 = vrot.slane %v13244_v9, 4  ;;  %v13257_v10 = vld [vmem:[%s19800_s6 + $0x258] sm:$0xf] }
 0x648   : >> { %14768 = vmatpush3.bf16.msra.mxu0 %v17413_v25  ;;  %v6978_v59 = vrot.slane %v13288_v26, 4  ;;  %v6529_v9 = vrot.slane %v13257_v10, 4 }
 0x649   : >> { %14769 = vmatprep.subr.bf16.mxu0 %v17415_v43  ;;  %v6478_v18 = vsel %vm5952_vm12, %v6475_v62, %v6477_v38  ;;  %v19918_v43 = vld [vmem:[%s19800_s6 + $0x330] sm:$0xff] }
 0x64a   : >> { %14692 = vmatpush3.bf16.msra.mxu1 %v17407_v13  ;;  %v19896_v13 = vld [vmem:[#allocation6 + $0x8d0] sm:$0xff]   ;;  %v6979_v20 = vsel %vm5952_vm12, %v6976_v3, %v6978_v59  ;;  %v6530_v59 = vsel %vm5952_vm12, %v6527_v32, %v6529_v9 }
 0x64b   : >> { %15877 = vmatprep.subr.bf16.mxu1 %v17408_v49 }
 0x64c   : >> { %14770 = vmatpush3.bf16.msra.mxu0 %v17416_v63  ;;  %v13252_v63 = vld [vmem:[%s19800_s6 + $0x208] sm:$0xf0] }
 0x64d   : >> { %6291 = vmatmul.mubr.bf16.gmra.mrb[16].mxu0 %v5965_v11  ;;  %6770 = vmatmul.mubr.bf16.vlgmr.msra.gmra.mrb[16].mxu1 %v6466_v0  ;;  %v6981_v11 = vrot.slane %v13290_v41, 4  ;;  %v6479_v0 = vrot.slane %v13245_v46, 4  ;;  %v6516_v53 = vrot.slane %v13252_v63, 4  ;;  %v13302_v46 = vld [vmem:[%s19800_s6 + $0x308] sm:$0xf0] }
 0x64e   : >> { %15878 = vmatpush3.bf16.msra.mxu1 %v17408_v49  ;;  %6298 = vmatprep.mubr.bf16.mxu0 %v19822_v42  ;;  %v17418_v42 = vld [vmem:[#allocation6 + $0x8b8] sm:$0xff]   ;;  %v13289_v49 = vld [vmem:[%s19800_s6 + $0x320] sm:$0xf0]  ;;  %v13304_v63 = vld [vmem:[%s19800_s6 + $0x328] sm:$0xf0] }
 0x64f   : >> { %6777 = vmatprep.mubr.bf16.mxu1 %v19851_v1  ;;  %15879 = vmatprep.subr.bf16.mxu1 %v17411_v36  ;;  %v6980_v8 = vrot.slane %v13289_v49, 4  ;;  %v6481_v29 = vsel %vm5952_vm12, %v6479_v0, %v6480_v31  ;;  %v6518_v47 = vsel %vm5952_vm12, %v6516_v53, %v6517_v4  ;;  %v19943_v1 = vld [vmem:[#allocation6 + $0x8f8] sm:$0xff]   ;;  %v13306_v49 = vld [vmem:[%s19800_s6 + $0x348] sm:$0xf0]  ;;  %v7027_v0 = vrot.slane %v13302_v46, 4 }
 0x650   : >> { %14771 = vmatprep.subr.bf16.mxu0 %v17418_v42  ;;  %v19932_v42 = vld [vmem:[#allocation6 + $0x8f0] sm:$0xff]  }
 0x651   : >> { %14772 = vmatpush3.bf16.msra.mxu0 %v17419_v21  ;;  %v6982_v25 = vsel %vm5952_vm12, %v6980_v8, %v6981_v11 }
 0x652   : >> { %15880 = vmatpush3.bf16.msra.mxu1 %v17411_v36  ;;  %15909 = vmatprep.subr.bf16.mxu0 %v19861_v17  ;;  %v19910_v36 = vld [vmem:[#allocation6 + $0x8e0] sm:$0xff]  }
 0x653   : >> { %15881 = vmatprep.subr.bf16.mxu1 %v17414_v14 }
 0x655   : >> { %6299 = vmatmul.mubr.bf16.gmra.mrb[20].mxu0 %v5967_v57  ;;  %6778 = vmatmul.mubr.bf16.gmra.mrb[20].mxu1 %v6468_v22 }
 0x656   : >> { %6306 = vmatprep.mubr.bf16.mxu0 %v13196_v5  ;;  %6785 = vmatprep.mubr.bf16.mxu1 %v13240_v16  ;;  %v13291_v5 = vld [vmem:[%s19800_s6 + $0x330] sm:$0xf]  ;;  %v19925_v16 = vld [vmem:[#allocation6 + $0x8e8] sm:$0xff]  }
 0x657   : >> { %15882 = vmatpush3.bf16.msra.mxu1 %v17414_v14  ;;  %v13247_v14 = vld [vmem:[%s19800_s6 + $0x270] sm:$0xf]  ;;  %v6983_v22 = vrot.slane %v13291_v5, 4  ;;  %v13307_v5 = vld [vmem:[%s19800_s6 + $0x358] sm:$0xf] }
 0x658   : >> { %15883 = vmatprep.subr.bf16.mxu1 %v17417_v6  ;;  %v6482_v57 = vrot.slane %v13247_v14, 4  ;;  %v13303_v14 = vld [vmem:[%s19800_s6 + $0x318] sm:$0xf] }
 0x659   : >> { %v6984_v21 = vsel %vm5952_vm12, %v6981_v11, %v6983_v22  ;;  %v7028_v11 = vrot.slane %v19889_v48, 4  ;;  %v7040_v22 = vrot.slane %v13307_v5, 4 }
 0x65b   : >> { %15884 = vmatpush3.bf16.msra.mxu1 %v17417_v6  ;;  %v6483_v6 = vsel %vm5952_vm12, %v6480_v31, %v6482_v57  ;;  %v13308_v57 = vld [vmem:[%s19800_s6 + $0x368] sm:$0xf0] }
 0x65c   : >> { %15885 = vmatprep.subr.bf16.mxu1 %v17420_v27 }
 0x65d   : >> { %6307 = vmatmul.mubr.bf16.gmra.mrb[24].mxu0 %v5970_v39  ;;  %6786 = vmatmul.mubr.bf16.gmra.mrb[24].mxu1 %v6471_v23  ;;  %v6986_v39 = vrot.slane %v13293_v61, 4  ;;  %v6519_v23 = vrot.slane %v13253_v52, 4 }
 0x65e   : >> { %6314 = vmatprep.mubr.bf16.mxu0 %v19830_v55  ;;  %6793 = vmatprep.mubr.bf16.mxu1 %v19867_v60  ;;  %v17426_v55 = vld [vmem:[#allocation6 + $0x838] sm:$0xff]  }
 0x65f   : >> { %15886 = vmatpush3.bf16.msra.mxu1 %v17420_v27  ;;  %v13254_v27 = vld [vmem:[%s19800_s6 + $0x228] sm:$0xf0]  ;;  %v6520_v2 = vsel %vm5952_vm12, %v6517_v4, %v6519_v23  ;;  %v6987_v30 = vsel %vm5952_vm12, %v6985_v54, %v6986_v39  ;;  %v7033_v4 = vrot.slane %v19918_v43, 4 }
 0x660   : >> { %15887 = vmatprep.subr.bf16.mxu1 %v17422_v37 }
 0x663   : >> { %15888 = vmatpush3.bf16.msra.mxu1 %v17422_v37  ;;  %v6521_v37 = vrot.slane %v13254_v27, 4  ;;  %v13309_v27 = vld [vmem:[%s19800_s6 + $0x378] sm:$0xf] }
 0x664   : >> { %15889 = vmatprep.subr.bf16.mxu1 %v17424_v33 }
 0x665   : >> { %6315 = vmatmul.mubr.bf16.gmra.mrb[28].mxu0 %v5972_v44  ;;  %6794 = vmatmul.mubr.bf16.gmra.mrb[28].mxu1 %v6473_v40  ;;  %v13255_v44 = vld [vmem:[%s19800_s6 + $0x238] sm:$0xf]  ;;  %v13294_v40 = vld [vmem:[%s19800_s6 + $0x350] sm:$0xf] }
 0x666   : >> { %6801 = vmatprep.mubr.bf16.mxu1 %v13243_v15  ;;  %7280 = vmatprep.mubr.bf16.mxu0 %v13287_v51  ;;  %v19955_v15 = vld [vmem:[%s19800_s6 + $0x350] sm:$0xff]  ;;  %v13256_v51 = vld [vmem:[%s19800_s6 + $0x248] sm:$0xf0]  ;;  %v6524_v60 = vrot.slane %v13255_v44, 4  ;;  %v6988_v24 = vrot.slane %v13294_v40, 4 }
 0x667   : >> { %15890 = vmatpush3.bf16.msra.mxu1 %v17424_v33  ;;  %v6523_v33 = vsel %vm5952_vm12, %v6521_v37, %v6522_v50  ;;  %v7038_v8 = vrot.slane %v19955_v15, 4 }
 0x668   : >> { %15891 = vmatprep.subr.bf16.mxu1 %v17426_v55  ;;  %v6525_v62 = vsel %vm5952_vm12, %v6522_v50, %v6524_v60  ;;  %v6989_v3 = vsel %vm5952_vm12, %v6986_v39, %v6988_v24  ;;  %v7045_v39 = vrot.slane %v13309_v27, 4 }
 0x66b   : >> { %15892 = vmatpush3.bf16.msra.mxu1 %v17426_v55  ;;  %v6526_v55 = vrot.slane %v13256_v51, 4 }
 0x66c   : >> { %16565 = vmatprep.subr.bf16.mxu1 %v19861_v17 }
 0x66d   : >> { %6802 = vmatmul.mubr.bf16.gmra.mrb[32].mxu1 %v6476_v56  ;;  %7281 = vmatmul.mubr.bf16.vlgmr.msra.gmra.mrb[32].mxu0 %v6977_v35  ;;  %v13295_v56 = vld [vmem:[%s19800_s6 + $0x360] sm:$0xf0]  ;;  %v13258_v35 = vld [vmem:[%s19800_s6 + $0x268] sm:$0xf0] }
 0x66e   : >> { %15910 = vmatpush3.bf16.msra.mxu0 %v19861_v17  ;;  %6809 = vmatprep.mubr.bf16.mxu1 %v19882_v58  ;;  %v6991_v58 = vrot.slane %v13296_v28, 4  ;;  %v6990_v26 = vrot.slane %v13295_v56, 4  ;;  %v6531_v38 = vrot.slane %v13258_v35, 4 }
 0x66f   : >> { %7288 = vmatprep.mubr.bf16.mxu0 %v19889_v48  ;;  %15911 = vmatprep.subr.bf16.mxu0 %v19886_v45 }
 0x672   : >> { %15912 = vmatpush3.bf16.msra.mxu0 %v19886_v45 }
 0x673   : >> { %15913 = vmatprep.subr.bf16.mxu0 %v19896_v13 }
 0x675   : >> { %6810 = vmatmul.mubr.bf16.gmra.mrb[36].mxu1 %v6478_v18  ;;  %7289 = vmatmul.mubr.bf16.gmra.mrb[36].mxu0 %v6979_v20  ;;  %v6992_v18 = vsel %vm5952_vm12, %v6990_v26, %v6991_v58  ;;  %v13259_v20 = vld [vmem:[%s19800_s6 + $0x278] sm:$0xf] }
 0x676   : >> { %6817 = vmatprep.mubr.bf16.mxu1 %v13246_v19  ;;  %7296 = vmatprep.mubr.bf16.mxu0 %v13290_v41  ;;  %v13297_v19 = vld [vmem:[%s19800_s6 + $0x370] sm:$0xf] }
 0x677   : >> { %15914 = vmatpush3.bf16.msra.mxu0 %v19896_v13  ;;  %v13301_v41 = vld [vmem:[%s19800_s6 + $0x370] sm:$0xff]  ;;  %v6993_v31 = vrot.slane %v13297_v19, 4 }
 0x678   : >> { %15915 = vmatprep.subr.bf16.mxu0 %v19906_v34  ;;  %v7043_v53 = vrot.slane %v13301_v41, 4 }
 0x67b   : >> { %15916 = vmatpush3.bf16.msra.mxu0 %v19906_v34 }
 0x67c   : >> { %15917 = vmatprep.subr.bf16.mxu0 %v19910_v36 }
 0x67d   : >> { %6818 = vmatmul.mubr.bf16.gmra.mrb[40].mxu1 %v6481_v29  ;;  %7297 = vmatmul.mubr.bf16.gmra.mrb[40].mxu0 %v6982_v25  ;;  %v7037_v29 = vrot.slane %v13306_v49, 4 }
 0x67e   : >> { %6825 = vmatprep.mubr.bf16.mxu1 %v19915_v7  ;;  %7304 = vmatprep.mubr.bf16.mxu0 %v19918_v43  ;;  %v7035_v43 = vrot.slane %v13305_v12, 4 }
 0x67f   : >> { %15918 = vmatpush3.bf16.msra.mxu0 %v19910_v36  ;;  %v7039_v48 = vsel %vm5952_vm12, %v7037_v29, %v7038_v8 }
 0x680   : >> { %15919 = vmatprep.subr.bf16.mxu0 %v19925_v16  ;;  %v7036_v23 = vsel %vm5952_vm12, %v7033_v4, %v7035_v43 }
 0x683   : >> { %15920 = vmatpush3.bf16.msra.mxu0 %v19925_v16 }
 0x684   : >> { %15921 = vmatprep.subr.bf16.mxu0 %v19932_v42 }
 0x685   : >> { %6826 = vmatmul.mubr.bf16.gmra.mrb[44].mxu1 %v6483_v6  ;;  %7305 = vmatmul.mubr.bf16.gmra.mrb[44].mxu0 %v6984_v21  ;;  %v7032_v6 = vrot.slane %v13304_v63, 4  ;;  %v7042_v21 = vrot.slane %v13308_v57, 4 }
 0x686   : >> { %15893 = vmatprep.mubr.bf16.mxu1 %v6518_v47  ;;  %7312 = vmatprep.mubr.bf16.mxu0 %v13293_v61  ;;  %v7041_v61 = vsel %vm5952_vm12, %v7038_v8, %v7040_v22 }
 0x687   : >> { %15922 = vmatpush3.bf16.msra.mxu0 %v19932_v42  ;;  %v7044_v52 = vsel %vm5952_vm12, %v7042_v21, %v7043_v53 }
 0x688   : >> { %15923 = vmatprep.subr.bf16.mxu0 %v19943_v1 }
 0x68b   : >> { %15924 = vmatpush3.bf16.msra.mxu0 %v19943_v1 }
 0x68d   : >> { %15894 = vmatmul.mubr.bf16.vlgmr.msra.gmra.mrb[0].mxu1 %v6520_v2  ;;  %7313 = vmatmul.mubr.bf16.gmra.mrb[48].mxu0 %v6987_v30 }
 0x68e   : >> { %16573 = vmatpush3.bf16.msra.mxu1 %v19861_v17  ;;  %15897 = vmatprep.mubr.bf16.mxu1 %v6523_v33  ;;  %v6528_v17 = vsel %vm5952_vm12, %v6526_v55, %v6527_v32 }
 0x68f   : >> { %16566 = vmatprep.subr.bf16.mxu1 %v19886_v45  ;;  %7320 = vmatprep.mubr.bf16.mxu0 %v19955_v15 }
 0x692   : >> { %16574 = vmatpush3.bf16.msra.mxu1 %v19886_v45  ;;  %v6532_v45 = vrot.slane %v19915_v7, 4  ;;  %v7029_v7 = vsel %vm5952_vm12, %v7027_v0, %v7028_v11 }
 0x693   : >> { %16567 = vmatprep.subr.bf16.mxu1 %v19896_v13 }
 0x695   : >> { %15898 = vmatmul.mubr.bf16.gmra.mrb[4].mxu1 %v6525_v62  ;;  %7321 = vmatmul.mubr.bf16.gmra.mrb[52].mxu0 %v6989_v3 }
 0x696   : >> { %16575 = vmatpush3.bf16.msra.mxu1 %v19896_v13  ;;  %15901 = vmatprep.mubr.bf16.mxu1 %v6528_v17  ;;  %v6533_v13 = vsel %vm5952_vm12, %v6531_v38, %v6532_v45 }
 0x697   : >> { %16568 = vmatprep.subr.bf16.mxu1 %v19906_v34  ;;  %7328 = vmatprep.mubr.bf16.mxu0 %v13296_v28 }
 0x69a   : >> { %16576 = vmatpush3.bf16.msra.mxu1 %v19906_v34  ;;  %v6534_v34 = vrot.slane %v13259_v20, 4 }
 0x69b   : >> { %16569 = vmatprep.subr.bf16.mxu1 %v19910_v36 }
 0x69c   : >> { %v6535_v25 = vsel %vm5952_vm12, %v6532_v45, %v6534_v34  ;;  %v20010_v45 = vld [vmem:[#allocation8 + $0x3] ss:$0 sm:$0xff] }
 0x69d   : >> { %15902 = vmatmul.mubr.bf16.gmra.mrb[8].mxu1 %v6530_v59  ;;  %7329 = vmatmul.mubr.bf16.gmra.mrb[56].mxu0 %v6992_v18 }
 0x69e   : >> { %16577 = vmatpush3.bf16.msra.mxu1 %v19910_v36  ;;  %15905 = vmatprep.mubr.bf16.mxu1 %v6533_v13  ;;  %v6994_v36 = vsel %vm5952_vm12, %v6991_v58, %v6993_v31 }
 0x69f   : >> { %16570 = vmatprep.subr.bf16.mxu1 %v19925_v16  ;;  %7336 = vmatprep.mubr.bf16.mxu0 %v13301_v41 }
 0x6a2   : >> { %16578 = vmatpush3.bf16.msra.mxu1 %v19925_v16  ;;  %v7030_v16 = vrot.slane %v13303_v14, 4 }
 0x6a3   : >> { %16571 = vmatprep.subr.bf16.mxu1 %v19932_v42 }
 0x6a4   : >> { %v7031_v47 = vsel %vm5952_vm12, %v7028_v11, %v7030_v16 }
 0x6a5   : >> { %15906 = vmatmul.mubr.bf16.gmra.mrb[12].mxu1 %v6535_v25  ;;  %7337 = vmatmul.mubr.bf16.gmra.mrb[60].mxu0 %v6994_v36 }
 0x6a6   : >> { %16579 = vmatpush3.bf16.msra.mxu1 %v19932_v42  ;;  %15925 = vmatprep.mubr.bf16.mxu0 %v7029_v7  ;;  %v7034_v42 = vsel %vm5952_vm12, %v7032_v6, %v7033_v4 }
 0x6a7   : >> { %16572 = vmatprep.subr.bf16.mxu1 %v19943_v1  ;;  %15933 = vmatprep.mubr.bf16.mxu1 %v7039_v48 }
 0x6aa   : >> { %16580 = vmatpush3.bf16.msra.mxu1 %v19943_v1  ;;  %v7046_v1 = vsel %vm5952_vm12, %v7043_v53, %v7045_v39 }
 0x6ad   : >> { %15926 = vmatmul.mubr.bf16.vlgmr.msra.gmra.mrb[64].mxu0 %v7031_v47  ;;  %15934 = vmatmul.mubr.bf16.vlgmr.msra.gmra.mrb[8].mxu1 %v7041_v61 }
 0x6ae   : >> { %15929 = vmatprep.mubr.bf16.mxu0 %v7034_v42  ;;  %15937 = vmatprep.mubr.bf16.mxu1 %v7044_v52 }
 0x6b5   : >> { %15930 = vmatmul.mubr.bf16.gmra.mrb[68].mxu0 %v7036_v23  ;;  %15938 = vmatmul.mubr.bf16.gmra.mrb[12].mxu1 %v7046_v1 }
 0x700   : >> { %v14613_v54 = vpop.f32.mrb[0].mxu0 }
 0x701   : >> { %v14614_v50 = vpop.f32.mrb[1].mxu0 }
 0x702   : >> { %v14615_v37 = vadd.f32 %v14614_v50, %v14613_v54  ;;  %v14616_v2 = vpop.f32.mrb[2].mxu0 }
 0x703   : >> { %v14617_v30 = vpop.f32.mrb[3].mxu0 }
 0x704   : >> { %v14618_v33 = vadd.f32 %v14617_v30, %v14616_v2  ;;  %v16586_v20 = vadd.f32 %v14615_v37, %v20010_v45 }
 0x706   : >> { %v16596_v11 = vadd.f32 %v14618_v33, %v20010_v45 }
 0x708   : >> { %v14619_v44 = vpop.f32.mrb[4].mxu0 }
 0x709   : >> { %v14620_v40 = vpop.f32.mrb[5].mxu0 }
 0x70a   : >> { %v14621_v15 = vadd.f32 %v14620_v40, %v14619_v44  ;;  %v14622_v51 = vpop.f32.mrb[6].mxu0 }
 0x70b   : >> { %v14623_v60 = vpop.f32.mrb[7].mxu0 }
 0x70c   : >> { %v14624_v24 = vadd.f32 %v14623_v60, %v14622_v51  ;;  %v16581_v48 = vadd.f32 %v14621_v15, %v20010_v45 }
 0x70e   : >> { %v16591_v6 = vadd.f32 %v14624_v24, %v20010_v45 }
 0x710   : >> { %v14625_v32 = vpop.f32.mrb[8].mxu0 }
 0x711   : >> { %v14626_v55 = vpop.f32.mrb[9].mxu0 }
 0x712   : >> { %v14627_v62 = vadd.f32 %v14626_v55, %v14625_v32  ;;  %v14628_v3 = vpop.f32.mrb[10].mxu0 }
 0x713   : >> { %v14629_v17 = vpop.f32.mrb[11].mxu0 }
 0x714   : >> { %v14630_v28 = vadd.f32 %v14629_v17, %v14628_v3  ;;  %v16606_v39 = vadd.f32 %v14627_v62, %v20010_v45 }
 0x716   : >> { %v16616_v30 = vadd.f32 %v14630_v28, %v20010_v45 }
 0x718   : >> { %v14631_v10 = vpop.f32.mrb[12].mxu0 }
 0x719   : >> { %v14632_v56 = vpop.f32.mrb[13].mxu0 }
 0x71a   : >> { %v14633_v35 = vadd.f32 %v14632_v56, %v14631_v10  ;;  %v14634_v58 = vpop.f32.mrb[14].mxu0 }
 0x71b   : >> { %v14635_v9 = vpop.f32.mrb[15].mxu0 }
 0x71c   : >> { %v14636_v26 = vadd.f32 %v14635_v9, %v14634_v58  ;;  %v16601_v55 = vadd.f32 %v14633_v35, %v20010_v45 }
 0x71e   : >> { %v16611_v58 = vadd.f32 %v14636_v26, %v20010_v45 }
 0x720   : >> { %v14637_v38 = vpop.f32.mrb[16].mxu0  ;;  %v14693_v59 = vpop.f32.mrb[16].mxu1 }
 0x721   : >> { %v14638_v18 = vpop.f32.mrb[17].mxu0  ;;  %v14694_v13 = vpop.f32.mrb[17].mxu1 }
 0x722   : >> { %v20013_v19 = vadd.f32 %v14638_v18, %v14637_v38  ;;  %v14695_v41 = vadd.f32 %v14694_v13, %v14693_v59  ;;  %v14640_v46 = vpop.f32.mrb[18].mxu0  ;;  %v14696_v49 = vpop.f32.mrb[18].mxu1 }
 0x723   : >> { %v14641_v34 = vpop.f32.mrb[19].mxu0  ;;  %v14697_v31 = vpop.f32.mrb[19].mxu1 }
 0x724   : >> { %v20016_v0 = vadd.f32 %v14641_v34, %v14640_v46  ;;  %v14698_v8 = vadd.f32 %v14697_v31, %v14696_v49  ;;  %v20018_v29 = vadd.f32 %v16586_v20, %v14695_v41  ;;  %v16625_v46 = vadd.f32 %v20013_v19, %v20010_v45 }
 0x726   : >> { %v20020_v25 = vadd.f32 %v16596_v11, %v14698_v8 }
 0x728   : >> { %v14643_v36 = vpop.f32.mrb[20].mxu0  ;;  %v14699_v7 = vpop.f32.mrb[20].mxu1 }
 0x729   : >> { %v14644_v14 = vpop.f32.mrb[21].mxu0  ;;  %v14700_v5 = vpop.f32.mrb[21].mxu1 }
 0x72a   : >> { %v20023_v63 = vadd.f32 %v14644_v14, %v14643_v36  ;;  %v14701_v57 = vadd.f32 %v14700_v5, %v14699_v7  ;;  %v14646_v16 = vpop.f32.mrb[22].mxu0  ;;  %v14702_v22 = vpop.f32.mrb[22].mxu1  ;;  %v16633_v36 = vadd.f32 %v20016_v0, %v20010_v45 }
 0x72b   : >> { %v14647_v4 = vpop.f32.mrb[23].mxu0  ;;  %v14703_v53 = vpop.f32.mrb[23].mxu1 }
 0x72c   : >> { %v20026_v21 = vadd.f32 %v14647_v4, %v14646_v16  ;;  %v14704_v47 = vadd.f32 %v14703_v53, %v14702_v22  ;;  %v20028_v61 = vadd.f32 %v16581_v48, %v14701_v57  ;;  %v16621_v4 = vadd.f32 %v20023_v63, %v20010_v45 }
 0x72e   : >> { %v20030_v42 = vadd.f32 %v16591_v6, %v14704_v47 }
 0x730   : >> { %v14649_v52 = vpop.f32.mrb[24].mxu0  ;;  %v14705_v12 = vpop.f32.mrb[24].mxu1 }
 0x731   : >> { %v14650_v27 = vpop.f32.mrb[25].mxu0  ;;  %v14706_v43 = vpop.f32.mrb[25].mxu1 }
 0x732   : >> { %v20033_v23 = vadd.f32 %v14650_v27, %v14649_v52  ;;  %v14707_v1 = vadd.f32 %v14706_v43, %v14705_v12  ;;  %v14652_v54 = vpop.f32.mrb[26].mxu0  ;;  %v14708_v50 = vpop.f32.mrb[26].mxu1  ;;  %v16629_v27 = vadd.f32 %v20026_v21, %v20010_v45 }
 0x733   : >> { %v14653_v37 = vpop.f32.mrb[27].mxu0  ;;  %v14709_v2 = vpop.f32.mrb[27].mxu1 }
 0x734   : >> { %v20036_v33 = vadd.f32 %v14653_v37, %v14652_v54  ;;  %v14710_v44 = vadd.f32 %v14709_v2, %v14708_v50  ;;  %v20038_v40 = vadd.f32 %v16606_v39, %v14707_v1  ;;  %v16641_v63 = vadd.f32 %v20033_v23, %v20010_v45 }
 0x736   : >> { %v20040_v15 = vadd.f32 %v16616_v30, %v14710_v44  ;;  %v16649_v21 = vadd.f32 %v20036_v33, %v20010_v45 }
 0x738   : >> { %v14655_v51 = vpop.f32.mrb[28].mxu0  ;;  %v14711_v60 = vpop.f32.mrb[28].mxu1 }
 0x739   : >> { %v14656_v24 = vpop.f32.mrb[29].mxu0  ;;  %v14712_v32 = vpop.f32.mrb[29].mxu1 }
 0x73a   : >> { %v20043_v62 = vadd.f32 %v14656_v24, %v14655_v51  ;;  %v14713_v3 = vadd.f32 %v14712_v32, %v14711_v60  ;;  %v14658_v17 = vpop.f32.mrb[30].mxu0  ;;  %v14714_v10 = vpop.f32.mrb[30].mxu1 }
 0x73b   : >> { %v14659_v56 = vpop.f32.mrb[31].mxu0  ;;  %v14715_v28 = vpop.f32.mrb[31].mxu1 }
 0x73c   : >> { %v20046_v9 = vadd.f32 %v14659_v56, %v14658_v17  ;;  %v14716_v38 = vadd.f32 %v14715_v28, %v14714_v10  ;;  %v20048_v59 = vadd.f32 %v16601_v55, %v14713_v3  ;;  %v16637_v23 = vadd.f32 %v20043_v62, %v20010_v45 }
 0x73e   : >> { %v20050_v18 = vadd.f32 %v16611_v58, %v14716_v38  ;;  %v16645_v33 = vadd.f32 %v20046_v9, %v20010_v45 }
 0x740   : >> { %v14717_v13 = vpop.f32.mrb[32].mxu1  ;;  %v14773_v20 = vpop.f32.mrb[32].mxu0 }
 0x741   : >> { %v14718_v41 = vpop.f32.mrb[33].mxu1  ;;  %v14774_v35 = vpop.f32.mrb[33].mxu0 }
 0x742   : >> { %v14719_v49 = vadd.f32 %v14718_v41, %v14717_v13  ;;  %v20054_v34 = vadd.f32 %v14774_v35, %v14773_v20  ;;  %v14720_v31 = vpop.f32.mrb[34].mxu1  ;;  %v14776_v11 = vpop.f32.mrb[34].mxu0 }
 0x743   : >> { %v14721_v26 = vpop.f32.mrb[35].mxu1  ;;  %v14777_v8 = vpop.f32.mrb[35].mxu0 }
 0x744   : >> { %v20058_v7 = vadd.f32 %v16625_v46, %v14719_v49  ;;  %v14722_v14 = vadd.f32 %v14721_v26, %v14720_v31  ;;  %v20060_v5 = vadd.f32 %v14777_v8, %v14776_v11 }
 0x746   : >> { %v20062_v48 = vadd.f32 %v16633_v36, %v14722_v14 }
 0x748   : >> { %v14723_v57 = vpop.f32.mrb[36].mxu1  ;;  %v14779_v16 = vpop.f32.mrb[36].mxu0 }
 0x749   : >> { %v14724_v19 = vpop.f32.mrb[37].mxu1  ;;  %v14780_v22 = vpop.f32.mrb[37].mxu0 }
 0x74a   : >> { %v14725_v53 = vadd.f32 %v14724_v19, %v14723_v57  ;;  %v14781_v6 = vadd.f32 %v14780_v22, %v14779_v16  ;;  %v14726_v47 = vpop.f32.mrb[38].mxu1  ;;  %v14782_v52 = vpop.f32.mrb[38].mxu0 }
 0x74b   : >> { %v14727_v12 = vpop.f32.mrb[39].mxu1  ;;  %v14783_v0 = vpop.f32.mrb[39].mxu0 }
 0x74c   : >> { %v20068_v43 = vadd.f32 %v16621_v4, %v14725_v53  ;;  %v14728_v39 = vadd.f32 %v14727_v12, %v14726_v47  ;;  %v14784_v1 = vadd.f32 %v14783_v0, %v14782_v52 }
 0x74e   : >> { %v20070_v54 = vadd.f32 %v16629_v27, %v14728_v39 }
 0x750   : >> { %v14729_v50 = vpop.f32.mrb[40].mxu1  ;;  %v14785_v37 = vpop.f32.mrb[40].mxu0 }
 0x751   : >> { %v14730_v2 = vpop.f32.mrb[41].mxu1  ;;  %v14786_v30 = vpop.f32.mrb[41].mxu0 }
 0x752   : >> { %v14731_v44 = vadd.f32 %v14730_v2, %v14729_v50  ;;  %v14787_v51 = vadd.f32 %v14786_v30, %v14785_v37  ;;  %v14732_v60 = vpop.f32.mrb[42].mxu1  ;;  %v14788_v24 = vpop.f32.mrb[42].mxu0 }
 0x753   : >> { %v14733_v32 = vpop.f32.mrb[43].mxu1  ;;  %v14789_v55 = vpop.f32.mrb[43].mxu0 }
 0x754   : >> { %v20076_v3 = vadd.f32 %v16641_v63, %v14731_v44  ;;  %v14734_v17 = vadd.f32 %v14733_v32, %v14732_v60  ;;  %v14790_v10 = vadd.f32 %v14789_v55, %v14788_v24 }
 0x756   : >> { %v20078_v56 = vadd.f32 %v16649_v21, %v14734_v17 }
 0x758   : >> { %v14735_v28 = vpop.f32.mrb[44].mxu1  ;;  %v14791_v58 = vpop.f32.mrb[44].mxu0 }
 0x759   : >> { %v14736_v38 = vpop.f32.mrb[45].mxu1  ;;  %v14792_v13 = vpop.f32.mrb[45].mxu0 }
 0x75a   : >> { %v14737_v20 = vadd.f32 %v14736_v38, %v14735_v28  ;;  %v14793_v41 = vadd.f32 %v14792_v13, %v14791_v58  ;;  %v14738_v35 = vpop.f32.mrb[46].mxu1  ;;  %v14794_v46 = vpop.f32.mrb[46].mxu0 }
 0x75b   : >> { %v14739_v49 = vpop.f32.mrb[47].mxu1  ;;  %v14795_v31 = vpop.f32.mrb[47].mxu0 }
 0x75c   : >> { %v16638_v11 = vadd.f32 %v16637_v23, %v14737_v20  ;;  %v14740_v26 = vadd.f32 %v14739_v49, %v14738_v35  ;;  %v14796_v8 = vadd.f32 %v14795_v31, %v14794_v46 }
 0x75e   : >> { %v16646_v36 = vadd.f32 %v16645_v33, %v14740_v26 }
 0x760   : >> { %v15895_v14 = vpop.f32.mrb[0].mxu1  ;;  %v14797_v57 = vpop.f32.mrb[48].mxu0 }
 0x761   : >> { %v16583_v16 = vadd.f32 %v20028_v61, %v15895_v14  ;;  %v6868_v19 = vpop.f32.mrb[1].mxu1  ;;  %v14798_v22 = vpop.f32.mrb[49].mxu0 }
 0x762   : >> { %v16588_v62 = vadd.f32 %v20018_v29, %v6868_v19  ;;  %v14799_v4 = vadd.f32 %v14798_v22, %v14797_v57  ;;  %v15896_v53 = vpop.f32.mrb[2].mxu1  ;;  %v14800_v47 = vpop.f32.mrb[50].mxu0 }
 0x763   : >> { %v16593_v52 = vadd.f32 %v20030_v42, %v15896_v53  ;;  %v6871_v12 = vpop.f32.mrb[3].mxu1  ;;  %v14801_v0 = vpop.f32.mrb[51].mxu0  ;;  %v16584_v45 = vadd.f32 %v16583_v16, %v14781_v6 }
 0x764   : >> { %v16598_v9 = vadd.f32 %v20020_v25, %v6871_v12  ;;  %v14802_v27 = vadd.f32 %v14801_v0, %v14800_v47  ;;  %v16589_v39 = vadd.f32 %v16588_v62, %v20054_v34  ;;  %v16627_v50 = vadd.f32 %v20058_v7, %v14799_v4 }
 0x765   : >> { %v16594_v61 = vadd.f32 %v16593_v52, %v14784_v1 }
 0x766   : >> { %v20091_v37 = vadd.f32 %v16598_v9, %v20060_v5  ;;  %v16635_v29 = vadd.f32 %v20062_v48, %v14802_v27 }
 0x768   : >> { %v15899_v2 = vpop.f32.mrb[4].mxu1  ;;  %v14803_v30 = vpop.f32.mrb[52].mxu0 }
 0x769   : >> { %v16603_v42 = vadd.f32 %v20048_v59, %v15899_v2  ;;  %v6884_v63 = vpop.f32.mrb[5].mxu1  ;;  %v14804_v44 = vpop.f32.mrb[53].mxu0 }
 0x76a   : >> { %v16608_v6 = vadd.f32 %v20038_v40, %v6884_v63  ;;  %v14805_v25 = vadd.f32 %v14804_v44, %v14803_v30  ;;  %v15900_v60 = vpop.f32.mrb[6].mxu1  ;;  %v14806_v24 = vpop.f32.mrb[54].mxu0 }
 0x76b   : >> { %v16613_v34 = vadd.f32 %v20050_v18, %v15900_v60  ;;  %v6887_v7 = vpop.f32.mrb[7].mxu1  ;;  %v14807_v1 = vpop.f32.mrb[55].mxu0  ;;  %v20097_v32 = vadd.f32 %v16603_v42, %v14793_v41 }
 0x76c   : >> { %v16618_v5 = vadd.f32 %v20040_v15, %v6887_v7  ;;  %v14808_v48 = vadd.f32 %v14807_v1, %v14806_v24  ;;  %v16623_v55 = vadd.f32 %v20068_v43, %v14805_v25  ;;  %v20101_v21 = vadd.f32 %v16608_v6, %v14787_v51 }
 0x76d   : >> { %v20103_v59 = vadd.f32 %v16613_v34, %v14796_v8 }
 0x76e   : >> { %v16631_v40 = vadd.f32 %v20070_v54, %v14808_v48  ;;  %v20106_v17 = vadd.f32 %v16618_v5, %v14790_v10 }
 0x770   : >> { %v14809_v28 = vpop.f32.mrb[56].mxu0 }
 0x771   : >> { %v14810_v58 = vpop.f32.mrb[57].mxu0 }
 0x772   : >> { %v14811_v18 = vadd.f32 %v14810_v58, %v14809_v28  ;;  %v14812_v38 = vpop.f32.mrb[58].mxu0 }
 0x773   : >> { %v14813_v13 = vpop.f32.mrb[59].mxu0 }
 0x774   : >> { %v14814_v23 = vadd.f32 %v14813_v13, %v14812_v38  ;;  %v20109_v20 = vadd.f32 %v20076_v3, %v14811_v18 }
 0x776   : >> { %v20112_v15 = vadd.f32 %v20078_v56, %v14814_v23 }
 0x778   : >> { %v14815_v43 = vpop.f32.mrb[60].mxu0 }
 0x779   : >> { %v14816_v51 = vpop.f32.mrb[61].mxu0 }
 0x77a   : >> { %v14817_v41 = vadd.f32 %v14816_v51, %v14815_v43  ;;  %v14818_v35 = vpop.f32.mrb[62].mxu0 }
 0x77b   : >> { %v14819_v46 = vpop.f32.mrb[63].mxu0 }
 0x77c   : >> { %v14820_v54 = vadd.f32 %v14819_v46, %v14818_v35  ;;  %v16639_v10 = vadd.f32 %v16638_v11, %v14817_v41 }
 0x77e   : >> { %v16647_v49 = vadd.f32 %v16646_v36, %v14820_v54 }
 0x780   : >> { %v15927_v31 = vpop.f32.mrb[64].mxu0  ;;  %v15935_v33 = vpop.f32.mrb[8].mxu1 }
 0x781   : >> { %v16585_v26 = vadd.f32 %v16584_v45, %v15927_v31  ;;  %v16624_v8 = vadd.f32 %v16623_v55, %v15935_v33  ;;  %v7379_v14 = vpop.f32.mrb[65].mxu0  ;;  %v7411_v57 = vpop.f32.mrb[9].mxu1 }
 0x782   : >> { %v16590_v16 = vadd.f32 %v16589_v39, %v7379_v14  ;;  %v16628_v3 = vadd.f32 %v16627_v50, %v7411_v57  ;;  %v15928_v19 = vpop.f32.mrb[66].mxu0  ;;  %v15936_v22 = vpop.f32.mrb[10].mxu1 }
 0x783   : >> { %vm7460_vm13 = vcmp.gt.f32.partialorder %v16585_v26, 0.0  ;;  %v7476_v56 = vmul.f32 0.1, %v16585_v26  ;;  %vm7468_vm14 = vcmp.gt.f32.partialorder %v16624_v8, 0.0  ;;  %v7484_v62 = vmul.f32 0.1, %v16624_v8 }
 0x784   : >> { %vm7458_vm15 = vcmp.gt.f32.partialorder %v16590_v16, 0.0  ;;  %v7474_v4 = vmul.f32 0.1, %v16590_v16  ;;  %vm7466_vm2 = vcmp.gt.f32.partialorder %v16628_v3, 0.0  ;;  %v7482_v53 = vmul.f32 0.1, %v16628_v3 }
 0x785   : >> { %v16595_v11 = vadd.f32 %v16594_v61, %v15928_v19  ;;  %v16632_v36 = vadd.f32 %v16631_v40, %v15936_v22  ;;  %v7382_v47 = vpop.f32.mrb[67].mxu0  ;;  %v7414_v52 = vpop.f32.mrb[11].mxu1  ;;  %v7492_v12 = vsel %vm7460_vm13, %v16585_v26, %v7476_v56  ;;  %v7500_v0 = vsel %vm7468_vm14, %v16624_v8, %v7484_v62 }
 0x786   : >> { %v16600_v45 = vadd.f32 %v20091_v37, %v7382_v47  ;;  %v16636_v9 = vadd.f32 %v16635_v29, %v7414_v52  ;;  %v7490_v30 = vsel %vm7458_vm15, %v16590_v16, %v7474_v4  ;;  %v7498_v61 = vsel %vm7466_vm2, %v16628_v3, %v7482_v53 }
 0x787   : >> { %vm7461_vm3 = vcmp.gt.f32.partialorder %v16595_v11, 0.0  ;;  %v7477_v27 = vmul.f32 0.1, %v16595_v11  ;;  %vm7469_vm4 = vcmp.gt.f32.partialorder %v16632_v36, 0.0  ;;  %v7485_v39 = vmul.f32 0.1, %v16632_v36 }
 0x788   : >> { %vm7459_vm5 = vcmp.gt.f32.partialorder %v16600_v45, 0.0  ;;  %v7475_v50 = vmul.f32 0.1, %v16600_v45  ;;  %vm7467_vm6 = vcmp.gt.f32.partialorder %v16636_v9, 0.0  ;;  %v7483_v2 = vmul.f32 0.1, %v16636_v9 }
 0x789   : >> { %v7493_v42 = vsel %vm7461_vm3, %v16595_v11, %v7477_v27  ;;  %v7501_v63 = vsel %vm7469_vm4, %v16632_v36, %v7485_v39  ;;  %v15931_v44 = vpop.f32.mrb[68].mxu0  ;;  %v15939_v6 = vpop.f32.mrb[12].mxu1 }
 0x78a   : >> { %v7507_v25 = vpack.c.bf16 %v7493_v42, %v7492_v12  ;;  %v7511_v37 = vpack.c.bf16 %v7501_v63, %v7500_v0  ;;  %v7491_v29 = vsel %vm7459_vm5, %v16600_v45, %v7475_v50  ;;  %v7499_v60 = vsel %vm7467_vm6, %v16636_v9, %v7483_v2  ;;  %v7395_v24 = vpop.f32.mrb[69].mxu0  ;;  %v7427_v34 = vpop.f32.mrb[13].mxu1 }
 0x78b   : >> { %v7506_v7 = vpack.c.bf16 %v7491_v29, %v7490_v30  ;;  %v7510_v1 = vpack.c.bf16 %v7499_v60, %v7498_v61  ;;  %v16605_v5 = vadd.f32 %v20097_v32, %v15931_v44  ;;  %v16640_v48 = vadd.f32 %v16639_v10, %v15939_v6  ;;  %v15932_v55 = vpop.f32.mrb[70].mxu0  ;;  %v15940_v40 = vpop.f32.mrb[14].mxu1 }
 0x78c   : >> { %13337 = vst [vmem:[%s20120_s28 + $0x210] sm:$0xff] %v7507_v25  ;;  %13341 = vst [vmem:[%s20120_s28 + $0x250] sm:$0xff] %v7511_v37  ;;  %v16610_v28 = vadd.f32 %v20101_v21, %v7395_v24  ;;  %v16644_v58 = vadd.f32 %v20109_v20, %v7427_v34  ;;  %v16615_v18 = vadd.f32 %v20103_v59, %v15932_v55  ;;  %v7398_v32 = vpop.f32.mrb[71].mxu0  ;;  %v7430_v13 = vpop.f32.mrb[15].mxu1 }
 0x78d   : >> { %v16648_v38 = vadd.f32 %v16647_v49, %v15940_v40  ;;  %13336 = vst [vmem:[%s20120_s28 + $0x208] sm:$0xff] %v7506_v7  ;;  %13340 = vst [vmem:[%s20120_s28 + $0x248] sm:$0xff] %v7510_v1  ;;  %v7480_v23 = vmul.f32 0.1, %v16605_v5  ;;  %vm7464_vm7 = vcmp.gt.f32.partialorder %v16605_v5, 0.0  ;;  %vm7472_vm8 = vcmp.gt.f32.partialorder %v16640_v48, 0.0 }
 0x78e   : >> { %v7488_v43 = vmul.f32 0.1, %v16640_v48  ;;  %vm7462_vm9 = vcmp.gt.f32.partialorder %v16610_v28, 0.0  ;;  %vm7465_vm10 = vcmp.gt.f32.partialorder %v16615_v18, 0.0  ;;  %v7481_v51 = vmul.f32 0.1, %v16615_v18 }
 0x78f   : >> { %v7478_v41 = vmul.f32 0.1, %v16610_v28  ;;  %vm7470_vm11 = vcmp.gt.f32.partialorder %v16644_v58, 0.0  ;;  %vm7473_vm12 = vcmp.gt.f32.partialorder %v16648_v38, 0.0  ;;  %v7489_v21 = vmul.f32 0.1, %v16648_v38 }
 0x790   : >> { %v7496_v20 = vsel %vm7464_vm7, %v16605_v5, %v7480_v23  ;;  %v7497_v59 = vsel %vm7465_vm10, %v16615_v18, %v7481_v51  ;;  %v16620_v35 = vadd.f32 %v20106_v17, %v7398_v32  ;;  %v16652_v46 = vadd.f32 %v20112_v15, %v7430_v13 }
 0x791   : >> { %v7504_v54 = vsel %vm7472_vm8, %v16640_v48, %v7488_v43  ;;  %v7486_v10 = vmul.f32 0.1, %v16644_v58  ;;  %v7509_v49 = vpack.c.bf16 %v7497_v59, %v7496_v20  ;;  %v7505_v31 = vsel %vm7473_vm12, %v16648_v38, %v7489_v21 }
 0x792   : >> { %v7513_v33 = vpack.c.bf16 %v7505_v31, %v7504_v54  ;;  %vm7463_vm13 = vcmp.gt.f32.partialorder %v16620_v35, 0.0  ;;  %v7479_v26 = vmul.f32 0.1, %v16620_v35  ;;  %vm7471_vm14 = vcmp.gt.f32.partialorder %v16652_v46, 0.0  ;;  %5916 = sbr.rel (!%p5914_p0) target bundleno = 1547 (0x60b), region = 225 }
 0x793   : >> { %13339 = vst [vmem:[%s20120_s28 + $0x230] sm:$0xff] %v7509_v49  ;;  %v7487_v8 = vmul.f32 0.1, %v16652_v46  ;;  %v7494_v14 = vsel %vm7462_vm9, %v16610_v28, %v7478_v41  ;;  %v7502_v17 = vsel %vm7470_vm11, %v16644_v58, %v7486_v10 }
 0x794   : >> { %13343 = vst [vmem:[%s20120_s28 + $0x270] sm:$0xff] %v7513_v33  ;;  %v7495_v57 = vsel %vm7463_vm13, %v16620_v35, %v7479_v26 }
 0x795   : >> { %v7508_v16 = vpack.c.bf16 %v7495_v57, %v7494_v14  ;;  %v7503_v15 = vsel %vm7471_vm14, %v16652_v46, %v7487_v8 }
 0x796   : >> { %v7512_v3 = vpack.c.bf16 %v7503_v15, %v7502_v17 }
 0x797   : >> { %13338 = vst [vmem:[%s20120_s28 + $0x228] sm:$0xff] %v7508_v16 }
 0x798   : >> { %13342 = vst [vmem:[%s20120_s28 + $0x268] sm:$0xff] %v7512_v3 }
 0x799 LB: >> { %v17432_v19 = vld [vmem:[#allocation6 + $0x940] sm:$0xff]   ;;  %v17435_v62 = vld [vmem:[#allocation6 + $0x948] sm:$0xff]   ;;  %v17438_v11 = vld [vmem:[#allocation6 + $0x950] sm:$0xff]   ;;  %s13865_s23 = sshll.u32 %s17916_s30, 7  ;;  %s7529_s30 = sadd.s32 1, %s17916_s30   ;;  %s17916_s30 = sphi %s20140_s30, %s7529_s30  }
 0x79a   : >> { %v17433_v22 = vld [vmem:[#allocation6 + $0x980] sm:$0xff]   ;;  %14837 = vmatprep.subr.bf16.mxu0 %v17432_v19  ;;  %v17436_v4 = vld [vmem:[#allocation6 + $0x988] sm:$0xff]   ;;  %v17439_v36 = vld [vmem:[#allocation6 + $0x990] sm:$0xff]   ;;  %s20148_s24 = scalar_lea.vmem [#allocation2], %s13865_s23  ;;  %s20342_s17 = scalar_lea.vmem [#allocation3], %s13865_s23 }
 0x79b   : >> { %v17434_v56 = vld [vmem:[#allocation6 + $0x900] sm:$0xff]   ;;  %15941 = vmatprep.subr.bf16.mxu1 %v17433_v22  ;;  %v17437_v53 = vld [vmem:[#allocation6 + $0x908] sm:$0xff]   ;;  %v17440_v47 = vld [vmem:[#allocation6 + $0x910] sm:$0xff]   ;;  %p7526_p3 = scmp.ge.s32.totalorder %s7529_s30, 8  }
 0x79c   : >> { %14838 = vmatpush3.bf16.msra.mxu0 %v17434_v56  ;;  %15942 = vmatpush3.bf16.msra.mxu1 %v17433_v22  ;;  %v17441_v52 = vld [vmem:[#allocation6 + $0x958] sm:$0xff]   ;;  %v17444_v45 = vld [vmem:[#allocation6 + $0x960] sm:$0xff]   ;;  %v17447_v39 = vld [vmem:[#allocation6 + $0x968] sm:$0xff]   ;;  %s20362_s22 = smov (%p7526_p3), 0  }
 0x79d   : >> { %14839 = vmatprep.subr.bf16.mxu0 %v17435_v62  ;;  %15943 = vmatprep.subr.bf16.mxu1 %v17436_v4  ;;  %v17442_v12 = vld [vmem:[#allocation6 + $0x998] sm:$0xff]   ;;  %v17445_v9 = vld [vmem:[#allocation6 + $0x9a0] sm:$0xff]   ;;  %v17448_v50 = vld [vmem:[#allocation6 + $0x9a8] sm:$0xff]  }
 0x79e   : >> { %v17443_v0 = vld [vmem:[#allocation6 + $0x918] sm:$0xff]   ;;  %v17446_v27 = vld [vmem:[#allocation6 + $0x920] sm:$0xff]   ;;  %v17449_v2 = vld [vmem:[#allocation6 + $0x928] sm:$0xff]  }
 0x79f   : >> { %v17450_v30 = vld [vmem:[#allocation6 + $0x970] sm:$0xff]   ;;  %v17453_v63 = vld [vmem:[#allocation6 + $0x978] sm:$0xff]   ;;  %v7540_v44 = vld [vmem:[%s20148_s24 + $0x8] sm:$0xff] }
 0x7a0   : >> { %14840 = vmatpush3.bf16.msra.mxu0 %v17437_v53  ;;  %15944 = vmatpush3.bf16.msra.mxu1 %v17436_v4  ;;  %v17451_v61 = vld [vmem:[#allocation6 + $0x9b0] sm:$0xff]   ;;  %v17454_v25 = vld [vmem:[#allocation6 + $0x9b8] sm:$0xff]   ;;  %v17456_v29 = vld [vmem:[#allocation6 + $0xa00] sm:$0xff]  }
 0x7a1   : >> { %14841 = vmatprep.subr.bf16.mxu0 %v17438_v11  ;;  %15945 = vmatprep.subr.bf16.mxu1 %v17439_v36  ;;  %v17452_v42 = vld [vmem:[#allocation6 + $0x930] sm:$0xff]   ;;  %v17455_v37 = vld [vmem:[#allocation6 + $0x938] sm:$0xff]   ;;  %v17457_v60 = vld [vmem:[#allocation6 + $0xac0] sm:$0xff]  }
 0x7a2   : >> { %v7547_v6 = vld [vmem:[%s20148_s24 + $0x10] sm:$0xff]  ;;  %7780 = vmatprep.mubr.bf16.mxu0 %v7540_v44  ;;  %v7539_v24 = vld [vmem:[%s20148_s24] sm:$0xff]  ;;  %v7551_v34 = vld [vmem:[%s20148_s24 + $0x18] sm:$0xff] }
 0x7a3   : >> { %15957 = vmatprep.mubr.bf16.mxu1 %v7547_v6  ;;  %v17458_v7 = vld [vmem:[#allocation6 + $0x9c0] sm:$0xff]   ;;  %v17460_v5 = vld [vmem:[#allocation6 + $0xa08] sm:$0xff]   ;;  %v7548_v40 = vld [vmem:[%s20148_s24 + $0x30] sm:$0xff] }
 0x7a4   : >> { %14842 = vmatpush3.bf16.msra.mxu0 %v17440_v47  ;;  %15946 = vmatpush3.bf16.msra.mxu1 %v17439_v36  ;;  %v17459_v1 = vld [vmem:[#allocation6 + $0xa80] sm:$0xff]   ;;  %v17461_v48 = vld [vmem:[#allocation6 + $0x9c8] sm:$0xff]   ;;  %v17462_v58 = vld [vmem:[#allocation6 + $0xa10] sm:$0xff]  }
 0x7a5   : >> { %14843 = vmatprep.subr.bf16.mxu0 %v17441_v52  ;;  %15947 = vmatprep.subr.bf16.mxu1 %v17442_v12  ;;  %v17463_v55 = vld [vmem:[#allocation6 + $0xac8] sm:$0xff]   ;;  %v7552_v18 = vld [vmem:[%s20148_s24 + $0x38] sm:$0xff]  ;;  %v17464_v38 = vld [vmem:[#allocation6 + $0x9d0] sm:$0xff]  }
 0x7a6   : >> { %v17465_v28 = vld [vmem:[#allocation6 + $0xa88] sm:$0xff]   ;;  %v17466_v32 = vld [vmem:[#allocation6 + $0xa18] sm:$0xff]   ;;  %v20158_v23 = vld [vmem:[%s20148_s24 + $0x50] sm:$0xff] }
 0x7a7   : >> { %v7542_v13 = vld [vmem:[%s20148_s24 + $0x28] sm:$0xff]  ;;  %v17469_v43 = vld [vmem:[#allocation6 + $0xad0] sm:$0xff]   ;;  %v17467_v41 = vld [vmem:[#allocation6 + $0x9d8] sm:$0xff]  }
 0x7a8   : >> { %14844 = vmatpush3.bf16.msra.mxu0 %v17443_v0  ;;  %15948 = vmatpush3.bf16.msra.mxu1 %v17442_v12  ;;  %v17471_v51 = vld [vmem:[#allocation6 + $0xa90] sm:$0xff]   ;;  %v17468_v21 = vld [vmem:[#allocation6 + $0xa20] sm:$0xff]   ;;  %v7553_v59 = vld [vmem:[%s20148_s24 + $0x58] sm:$0xff] }
 0x7a9   : >> { %14845 = vmatprep.subr.bf16.mxu0 %v17444_v45  ;;  %15949 = vmatprep.subr.bf16.mxu1 %v17445_v9  ;;  %v7541_v20 = vld [vmem:[%s20148_s24 + $0x20] sm:$0xff]  ;;  %v17475_v46 = vld [vmem:[#allocation6 + $0xad8] sm:$0xff]   ;;  %v17472_v54 = vld [vmem:[#allocation6 + $0xa28] sm:$0xff]  }
 0x7aa   : >> { %v17470_v35 = vld [vmem:[#allocation6 + $0x9e0] sm:$0xff]   ;;  %v20164_v10 = vld [vmem:[%s20148_s24 + $0x70] sm:$0xff]  ;;  %v17477_v49 = vld [vmem:[#allocation6 + $0xa98] sm:$0xff]  }
 0x7ab   : >> { %v17473_v31 = vld [vmem:[#allocation6 + $0x9e8] sm:$0xff]   ;;  %v17474_v33 = vld [vmem:[#allocation6 + $0xa30] sm:$0xff]   ;;  %v7554_v26 = vld [vmem:[%s20148_s24 + $0x78] sm:$0xff] }
 0x7ac   : >> { %14846 = vmatpush3.bf16.msra.mxu0 %v17446_v27  ;;  %15950 = vmatpush3.bf16.msra.mxu1 %v17445_v9  ;;  %v17476_v8 = vld [vmem:[#allocation6 + $0x9f0] sm:$0xff]   ;;  %v17478_v14 = vld [vmem:[#allocation6 + $0xa38] sm:$0xff]   ;;  %v17481_v57 = vld [vmem:[#allocation6 + $0xae0] sm:$0xff]  }
 0x7ad   : >> { %14847 = vmatprep.subr.bf16.mxu0 %v17447_v39  ;;  %15951 = vmatprep.subr.bf16.mxu1 %v17448_v50  ;;  %v7544_v17 = vld [vmem:[%s20148_s24 + $0x48] sm:$0xff]  ;;  %v17482_v16 = vld [vmem:[#allocation6 + $0xaa0] sm:$0xff]   ;;  %v17479_v22 = vld [vmem:[#allocation6 + $0x9f8] sm:$0xff]  }
 0x7ae   : >> { %v13375_v15 = vld [vmem:[%s20148_s24 + $0x208] sm:$0xff]  ;;  %v17480_v56 = vld [vmem:[#allocation6 + $0xa40] sm:$0xff]   ;;  %v17487_v4 = vld [vmem:[#allocation6 + $0xaf0] sm:$0xff]  }
 0x7af   : >> { %v17484_v3 = vld [vmem:[#allocation6 + $0xae8] sm:$0xff]   ;;  %v7543_v62 = vld [vmem:[%s20148_s24 + $0x40] sm:$0xff]  ;;  %v20173_v11 = vld [vmem:[%s20148_s24 + $0x210] sm:$0xff] }
 0x7b0   : >> { %14848 = vmatpush3.bf16.msra.mxu0 %v17449_v2  ;;  %15952 = vmatpush3.bf16.msra.mxu1 %v17448_v50  ;;  %v17485_v19 = vld [vmem:[#allocation6 + $0xaa8] sm:$0xff]   ;;  %v13374_v53 = vld [vmem:[%s20148_s24 + $0x200] sm:$0xff]  ;;  %v17488_v47 = vld [vmem:[#allocation6 + $0xab0] sm:$0xff]  }
 0x7b1   : >> { %14849 = vmatprep.subr.bf16.mxu0 %v17450_v30  ;;  %15953 = vmatprep.subr.bf16.mxu1 %v17451_v61  ;;  %v17483_v36 = vld [vmem:[#allocation6 + $0xa48] sm:$0xff]   ;;  %v17490_v52 = vld [vmem:[#allocation6 + $0xaf8] sm:$0xff]   ;;  %v17486_v12 = vld [vmem:[#allocation6 + $0xa50] sm:$0xff]  }
 0x7b2   : >> { %v17491_v0 = vld [vmem:[#allocation6 + $0xab8] sm:$0xff]   ;;  %v7546_v45 = vld [vmem:[%s20148_s24 + $0x68] sm:$0xff]  ;;  %v20179_v27 = vld [vmem:[#allocation6 + $0xb00] sm:$0xff]  }
 0x7b3   : >> { %v13377_v9 = vld [vmem:[%s20148_s24 + $0x228] sm:$0xff]  ;;  %v17489_v39 = vld [vmem:[#allocation6 + $0xa58] sm:$0xff]   ;;  %v17492_v50 = vld [vmem:[#allocation6 + $0xa60] sm:$0xff]  }
 0x7b4   : >> { %14850 = vmatpush3.bf16.msra.mxu0 %v17452_v42  ;;  %15954 = vmatpush3.bf16.msra.mxu1 %v17451_v61  ;;  %v7545_v2 = vld [vmem:[%s20148_s24 + $0x60] sm:$0xff]  ;;  %v20185_v61 = vld [vmem:[%s20148_s24 + $0x230] sm:$0xff]  ;;  %v17494_v42 = vld [vmem:[#allocation6 + $0xa68] sm:$0xff]  }
 0x7b5   : >> { %14851 = vmatprep.subr.bf16.mxu0 %v17453_v63  ;;  %15955 = vmatprep.subr.bf16.mxu1 %v17454_v25  ;;  %v13376_v30 = vld [vmem:[%s20148_s24 + $0x220] sm:$0xff]  ;;  %v17496_v63 = vld [vmem:[#allocation6 + $0xa70] sm:$0xff]  }
 0x7b8   : >> { %14852 = vmatpush3.bf16.msra.mxu0 %v17455_v37  ;;  %15956 = vmatpush3.bf16.msra.mxu1 %v17454_v25  ;;  %v17498_v25 = vld [vmem:[#allocation6 + $0xa78] sm:$0xff]   ;;  %v13378_v37 = vld [vmem:[%s20148_s24 + $0x240] sm:$0xff] }
 0x7b9   : >> { %14917 = vmatprep.subr.bf16.mxu1 %v17456_v29  ;;  %14997 = vmatprep.subr.bf16.mxu0 %v17457_v60  ;;  %v13416_v29 = vld [vmem:[%s20148_s24 + $0x400] sm:$0xff]  ;;  %v20194_v60 = vld [vmem:[%s20148_s24 + $0x250] sm:$0xff] }
 0x7bb   : >> { %7781 = vmatmul.mubr.bf16.vlgmr.msra.gmra.mrb[0].mxu0 %v7539_v24  ;;  %15958 = vmatmul.mubr.bf16.vlgmr.msra.gmra.mrb[0].mxu1 %v7551_v34  ;;  %v17495_v24 = vld [vmem:[#allocation6 + $0xb08] sm:$0xff]   ;;  %v20197_v34 = vld [vmem:[%s20148_s24 + $0x410] sm:$0xff] }
 0x7bc   : >> { %14918 = vmatpush3.bf16.msra.mxu1 %v17458_v7  ;;  %14998 = vmatpush3.bf16.msra.mxu0 %v17459_v1  ;;  %v17497_v7 = vld [vmem:[#allocation6 + $0xb10] sm:$0xff]   ;;  %v13381_v1 = vld [vmem:[%s20148_s24 + $0x268] sm:$0xff] }
 0x7bd   : >> { %14919 = vmatprep.subr.bf16.mxu1 %v17460_v5  ;;  %7788 = vmatprep.mubr.bf16.mxu0 %v7547_v6  ;;  %v13417_v6 = vld [vmem:[%s20148_s24 + $0x408] sm:$0xff] }
 0x7be   : >> { %15961 = vmatprep.mubr.bf16.mxu1 %v7548_v40  ;;  %14999 = vmatprep.subr.bf16.mxu0 %v17463_v55  ;;  %v13419_v5 = vld [vmem:[%s20148_s24 + $0x428] sm:$0xff]  ;;  %v17500_v55 = vld [vmem:[#allocation6 + $0xb20] sm:$0xff]  }
 0x7c0   : >> { %14920 = vmatpush3.bf16.msra.mxu1 %v17461_v48  ;;  %15000 = vmatpush3.bf16.msra.mxu0 %v17465_v28  ;;  %v17499_v48 = vld [vmem:[#allocation6 + $0xb18] sm:$0xff]   ;;  %v13418_v28 = vld [vmem:[%s20148_s24 + $0x420] sm:$0xff] }
 0x7c1   : >> { %14921 = vmatprep.subr.bf16.mxu1 %v17462_v58  ;;  %15001 = vmatprep.subr.bf16.mxu0 %v17469_v43  ;;  %v13385_v58 = vld [vmem:[%s20148_s24 + $0x270] sm:$0xff]  ;;  %v13386_v43 = vld [vmem:[%s20148_s24 + $0x218] sm:$0xff] }
 0x7c3   : >> { %7789 = vmatmul.mubr.bf16.gmra.mrb[4].mxu0 %v7540_v44  ;;  %15962 = vmatmul.mubr.bf16.gmra.mrb[4].mxu1 %v7552_v18  ;;  %v13379_v44 = vld [vmem:[%s20148_s24 + $0x248] sm:$0xff]  ;;  %v20209_v18 = vld [vmem:[%s20148_s24 + $0x430] sm:$0xff] }
 0x7c4   : >> { %14922 = vmatpush3.bf16.msra.mxu1 %v17464_v38  ;;  %7796 = vmatprep.mubr.bf16.mxu0 %v7542_v13  ;;  %v17501_v38 = vld [vmem:[#allocation6 + $0xb28] sm:$0xff]  }
 0x7c5   : >> { %14923 = vmatprep.subr.bf16.mxu1 %v17466_v32  ;;  %15965 = vmatprep.mubr.bf16.mxu1 %v20158_v23  ;;  %v17502_v32 = vld [vmem:[#allocation6 + $0xb30] sm:$0xff]  }
 0x7c6   : >> { %15002 = vmatpush3.bf16.msra.mxu0 %v17471_v51  ;;  %v13420_v51 = vld [vmem:[%s20148_s24 + $0x440] sm:$0xff] }
 0x7c7   : >> { %15003 = vmatprep.subr.bf16.mxu0 %v17475_v46  ;;  %v13427_v46 = vld [vmem:[%s20148_s24 + $0x470] sm:$0xff] }
 0x7c8   : >> { %14924 = vmatpush3.bf16.msra.mxu1 %v17467_v41  ;;  %v13426_v41 = vld [vmem:[%s20148_s24 + $0x450] sm:$0xff] }
 0x7c9   : >> { %14925 = vmatprep.subr.bf16.mxu1 %v17468_v21  ;;  %v13387_v21 = vld [vmem:[%s20148_s24 + $0x238] sm:$0xff] }
 0x7ca   : >> { %15004 = vmatpush3.bf16.msra.mxu0 %v17477_v49  ;;  %v13430_v49 = vld [vmem:[%s20148_s24 + $0x458] sm:$0xff] }
 0x7cb   : >> { %7797 = vmatmul.mubr.bf16.gmra.mrb[8].mxu0 %v7541_v20  ;;  %15966 = vmatmul.mubr.bf16.gmra.mrb[8].mxu1 %v7553_v59  ;;  %v13423_v20 = vld [vmem:[%s20148_s24 + $0x468] sm:$0xff]  ;;  %v13388_v59 = vld [vmem:[%s20148_s24 + $0x258] sm:$0xff] }
 0x7cc   : >> { %14926 = vmatpush3.bf16.msra.mxu1 %v17470_v35  ;;  %7804 = vmatprep.mubr.bf16.mxu0 %v7548_v40  ;;  %v13380_v40 = vld [vmem:[%s20148_s24 + $0x260] sm:$0xff] }
 0x7cd   : >> { %14927 = vmatprep.subr.bf16.mxu1 %v17472_v54  ;;  %15969 = vmatprep.mubr.bf16.mxu1 %v20164_v10  ;;  %v13422_v35 = vld [vmem:[%s20148_s24 + $0x460] sm:$0xff]  ;;  %v13389_v54 = vld [vmem:[%s20148_s24 + $0x278] sm:$0xff] }
 0x7ce   : >> { %15005 = vmatprep.subr.bf16.mxu0 %v17481_v57 }
 0x7cf   : >> { %15006 = vmatpush3.bf16.msra.mxu0 %v17482_v16 }
 0x7d0   : >> { %14928 = vmatpush3.bf16.msra.mxu1 %v17473_v31  ;;  %15007 = vmatprep.subr.bf16.mxu0 %v17484_v3  ;;  %v13429_v31 = vld [vmem:[%s20148_s24 + $0x438] sm:$0xff] }
 0x7d1   : >> { %14929 = vmatprep.subr.bf16.mxu1 %v17474_v33  ;;  %v13431_v33 = vld [vmem:[%s20148_s24 + $0x478] sm:$0xff] }
 0x7d3   : >> { %7805 = vmatmul.mubr.bf16.gmra.mrb[12].mxu0 %v7542_v13  ;;  %15970 = vmatmul.mubr.bf16.gmra.mrb[12].mxu1 %v7554_v26  ;;  %v13421_v13 = vld [vmem:[%s20148_s24 + $0x448] sm:$0xff] }
 0x7d4   : >> { %14930 = vmatpush3.bf16.msra.mxu1 %v17476_v8  ;;  %7812 = vmatprep.mubr.bf16.mxu0 %v7544_v17 }
 0x7d5   : >> { %14931 = vmatprep.subr.bf16.mxu1 %v17478_v14  ;;  %8203 = vmatprep.mubr.bf16.mxu1 %v13375_v15 }
 0x7d6   : >> { %15008 = vmatpush3.bf16.msra.mxu0 %v17485_v19 }
 0x7d7   : >> { %15009 = vmatprep.subr.bf16.mxu0 %v17487_v4 }
 0x7d8   : >> { %14932 = vmatpush3.bf16.msra.mxu1 %v17479_v22 }
 0x7d9   : >> { %15973 = vmatprep.subr.bf16.mxu1 %v17480_v56 }
 0x7da   : >> { %15010 = vmatpush3.bf16.msra.mxu0 %v17488_v47 }
 0x7db   : >> { %7813 = vmatmul.mubr.bf16.gmra.mrb[16].mxu0 %v7543_v62  ;;  %8204 = vmatmul.mubr.bf16.vlgmr.msra.gmra.mrb[16].mxu1 %v13374_v53 }
 0x7dc   : >> { %15974 = vmatpush3.bf16.msra.mxu1 %v17480_v56  ;;  %7820 = vmatprep.mubr.bf16.mxu0 %v20158_v23  ;;  %v17503_v23 = vld [vmem:[#allocation6 + $0xb38] sm:$0xff]  }
 0x7dd   : >> { %8211 = vmatprep.mubr.bf16.mxu1 %v20173_v11  ;;  %15975 = vmatprep.subr.bf16.mxu1 %v17483_v36 }
 0x7de   : >> { %15011 = vmatprep.subr.bf16.mxu0 %v17490_v52 }
 0x7df   : >> { %15012 = vmatpush3.bf16.msra.mxu0 %v17491_v0 }
 0x7e0   : >> { %15976 = vmatpush3.bf16.msra.mxu1 %v17483_v36  ;;  %16005 = vmatprep.subr.bf16.mxu0 %v20179_v27 }
 0x7e1   : >> { %15977 = vmatprep.subr.bf16.mxu1 %v17486_v12 }
 0x7e3   : >> { %7821 = vmatmul.mubr.bf16.gmra.mrb[20].mxu0 %v7544_v17  ;;  %8212 = vmatmul.mubr.bf16.gmra.mrb[20].mxu1 %v13375_v15 }
 0x7e4   : >> { %7828 = vmatprep.mubr.bf16.mxu0 %v7546_v45  ;;  %8219 = vmatprep.mubr.bf16.mxu1 %v13377_v9 }
 0x7e5   : >> { %15978 = vmatpush3.bf16.msra.mxu1 %v17486_v12 }
 0x7e6   : >> { %15979 = vmatprep.subr.bf16.mxu1 %v17489_v39 }
 0x7e9   : >> { %15980 = vmatpush3.bf16.msra.mxu1 %v17489_v39 }
 0x7ea   : >> { %15981 = vmatprep.subr.bf16.mxu1 %v17492_v50 }
 0x7eb   : >> { %7829 = vmatmul.mubr.bf16.gmra.mrb[24].mxu0 %v7545_v2  ;;  %8220 = vmatmul.mubr.bf16.gmra.mrb[24].mxu1 %v13376_v30 }
 0x7ec   : >> { %7836 = vmatprep.mubr.bf16.mxu0 %v20164_v10  ;;  %8227 = vmatprep.mubr.bf16.mxu1 %v20185_v61  ;;  %v13428_v10 = vld [vmem:[%s20148_s24 + $0x418] sm:$0xff] }
 0x7ed   : >> { %15982 = vmatpush3.bf16.msra.mxu1 %v17492_v50  ;;  %v20232_v50 = vld [vmem:[#allocation8 + $0x4] ss:$0 sm:$0xff] }
 0x7ee   : >> { %15983 = vmatprep.subr.bf16.mxu1 %v17494_v42 }
 0x7f1   : >> { %15984 = vmatpush3.bf16.msra.mxu1 %v17494_v42 }
 0x7f2   : >> { %15985 = vmatprep.subr.bf16.mxu1 %v17496_v63 }
 0x7f3   : >> { %7837 = vmatmul.mubr.bf16.gmra.mrb[28].mxu0 %v7546_v45  ;;  %8228 = vmatmul.mubr.bf16.gmra.mrb[28].mxu1 %v13377_v9 }
 0x7f4   : >> { %8235 = vmatprep.mubr.bf16.mxu1 %v13379_v44  ;;  %8626 = vmatprep.mubr.bf16.mxu0 %v13417_v6 }
 0x7f5   : >> { %15986 = vmatpush3.bf16.msra.mxu1 %v17496_v63 }
 0x7f6   : >> { %15987 = vmatprep.subr.bf16.mxu1 %v17498_v25 }
 0x7f9   : >> { %15988 = vmatpush3.bf16.msra.mxu1 %v17498_v25 }
 0x7fa   : >> { %16677 = vmatprep.subr.bf16.mxu1 %v20179_v27 }
 0x7fb   : >> { %8236 = vmatmul.mubr.bf16.gmra.mrb[32].mxu1 %v13378_v37  ;;  %8627 = vmatmul.mubr.bf16.vlgmr.msra.gmra.mrb[32].mxu0 %v13416_v29 }
 0x7fc   : >> { %16006 = vmatpush3.bf16.msra.mxu0 %v20179_v27  ;;  %8243 = vmatprep.mubr.bf16.mxu1 %v20194_v60 }
 0x7fd   : >> { %8634 = vmatprep.mubr.bf16.mxu0 %v20197_v34  ;;  %16007 = vmatprep.subr.bf16.mxu0 %v17495_v24 }
 0x800   : >> { %16008 = vmatpush3.bf16.msra.mxu0 %v17495_v24 }
 0x801   : >> { %16009 = vmatprep.subr.bf16.mxu0 %v17497_v7 }
 0x803   : >> { %8244 = vmatmul.mubr.bf16.gmra.mrb[36].mxu1 %v13379_v44  ;;  %8635 = vmatmul.mubr.bf16.gmra.mrb[36].mxu0 %v13417_v6 }
 0x804   : >> { %8251 = vmatprep.mubr.bf16.mxu1 %v13381_v1  ;;  %8642 = vmatprep.mubr.bf16.mxu0 %v13419_v5 }
 0x805   : >> { %16010 = vmatpush3.bf16.msra.mxu0 %v17497_v7 }
 0x806   : >> { %16011 = vmatprep.subr.bf16.mxu0 %v17499_v48 }
 0x809   : >> { %16012 = vmatpush3.bf16.msra.mxu0 %v17499_v48 }
 0x80a   : >> { %16013 = vmatprep.subr.bf16.mxu0 %v17500_v55 }
 0x80b   : >> { %8252 = vmatmul.mubr.bf16.gmra.mrb[40].mxu1 %v13380_v40  ;;  %8643 = vmatmul.mubr.bf16.gmra.mrb[40].mxu0 %v13418_v28 }
 0x80c   : >> { %8259 = vmatprep.mubr.bf16.mxu1 %v13385_v58  ;;  %8650 = vmatprep.mubr.bf16.mxu0 %v20209_v18 }
 0x80d   : >> { %16014 = vmatpush3.bf16.msra.mxu0 %v17500_v55 }
 0x80e   : >> { %16015 = vmatprep.subr.bf16.mxu0 %v17501_v38 }
 0x811   : >> { %16016 = vmatpush3.bf16.msra.mxu0 %v17501_v38 }
 0x812   : >> { %16017 = vmatprep.subr.bf16.mxu0 %v17502_v32 }
 0x813   : >> { %8260 = vmatmul.mubr.bf16.gmra.mrb[44].mxu1 %v13381_v1  ;;  %8651 = vmatmul.mubr.bf16.gmra.mrb[44].mxu0 %v13419_v5 }
 0x814   : >> { %15989 = vmatprep.mubr.bf16.mxu1 %v20173_v11  ;;  %8658 = vmatprep.mubr.bf16.mxu0 %v13421_v13 }
 0x815   : >> { %16018 = vmatpush3.bf16.msra.mxu0 %v17502_v32 }
 0x816   : >> { %16019 = vmatprep.subr.bf16.mxu0 %v17503_v23 }
 0x819   : >> { %16020 = vmatpush3.bf16.msra.mxu0 %v17503_v23 }
 0x81b   : >> { %15990 = vmatmul.mubr.bf16.vlgmr.msra.gmra.mrb[0].mxu1 %v13386_v43  ;;  %8659 = vmatmul.mubr.bf16.gmra.mrb[48].mxu0 %v13420_v51 }
 0x81c   : >> { %16685 = vmatpush3.bf16.msra.mxu1 %v20179_v27  ;;  %15993 = vmatprep.mubr.bf16.mxu1 %v20185_v61 }
 0x81d   : >> { %16678 = vmatprep.subr.bf16.mxu1 %v17495_v24  ;;  %8666 = vmatprep.mubr.bf16.mxu0 %v13426_v41 }
 0x820   : >> { %16686 = vmatpush3.bf16.msra.mxu1 %v17495_v24 }
 0x821   : >> { %16679 = vmatprep.subr.bf16.mxu1 %v17497_v7 }
 0x823   : >> { %15994 = vmatmul.mubr.bf16.gmra.mrb[4].mxu1 %v13387_v21  ;;  %8667 = vmatmul.mubr.bf16.gmra.mrb[52].mxu0 %v13421_v13 }
 0x824   : >> { %16687 = vmatpush3.bf16.msra.mxu1 %v17497_v7  ;;  %15997 = vmatprep.mubr.bf16.mxu1 %v20194_v60 }
 0x825   : >> { %16680 = vmatprep.subr.bf16.mxu1 %v17499_v48  ;;  %8674 = vmatprep.mubr.bf16.mxu0 %v13423_v20 }
 0x828   : >> { %16688 = vmatpush3.bf16.msra.mxu1 %v17499_v48 }
 0x829   : >> { %16681 = vmatprep.subr.bf16.mxu1 %v17500_v55 }
 0x82b   : >> { %15998 = vmatmul.mubr.bf16.gmra.mrb[8].mxu1 %v13388_v59  ;;  %8675 = vmatmul.mubr.bf16.gmra.mrb[56].mxu0 %v13422_v35 }
 0x82c   : >> { %16689 = vmatpush3.bf16.msra.mxu1 %v17500_v55  ;;  %16001 = vmatprep.mubr.bf16.mxu1 %v13385_v58 }
 0x82d   : >> { %16682 = vmatprep.subr.bf16.mxu1 %v17501_v38  ;;  %8682 = vmatprep.mubr.bf16.mxu0 %v13427_v46 }
 0x830   : >> { %16690 = vmatpush3.bf16.msra.mxu1 %v17501_v38 }
 0x831   : >> { %16683 = vmatprep.subr.bf16.mxu1 %v17502_v32 }
 0x833   : >> { %16002 = vmatmul.mubr.bf16.gmra.mrb[12].mxu1 %v13389_v54  ;;  %8683 = vmatmul.mubr.bf16.gmra.mrb[60].mxu0 %v13423_v20 }
 0x834   : >> { %16691 = vmatpush3.bf16.msra.mxu1 %v17502_v32  ;;  %16021 = vmatprep.mubr.bf16.mxu0 %v20197_v34 }
 0x835   : >> { %16684 = vmatprep.subr.bf16.mxu1 %v17503_v23  ;;  %16029 = vmatprep.mubr.bf16.mxu1 %v13426_v41 }
 0x838   : >> { %16692 = vmatpush3.bf16.msra.mxu1 %v17503_v23 }
 0x83b   : >> { %16022 = vmatmul.mubr.bf16.vlgmr.msra.gmra.mrb[64].mxu0 %v13428_v10  ;;  %16030 = vmatmul.mubr.bf16.vlgmr.msra.gmra.mrb[8].mxu1 %v13430_v49 }
 0x83c   : >> { %16025 = vmatprep.mubr.bf16.mxu0 %v20209_v18  ;;  %16033 = vmatprep.mubr.bf16.mxu1 %v13427_v46 }
 0x843   : >> { %16026 = vmatmul.mubr.bf16.gmra.mrb[68].mxu0 %v13429_v31  ;;  %16034 = vmatmul.mubr.bf16.gmra.mrb[12].mxu1 %v13431_v33 }
 0x88e   : >> { %v14853_v26 = vpop.f32.mrb[0].mxu0 }
 0x88f   : >> { %v14854_v8 = vpop.f32.mrb[1].mxu0 }
 0x890   : >> { %v14855_v14 = vadd.f32 %v14854_v8, %v14853_v26  ;;  %v14856_v57 = vpop.f32.mrb[2].mxu0 }
 0x891   : >> { %v14857_v17 = vpop.f32.mrb[3].mxu0 }
 0x892   : >> { %v14858_v16 = vadd.f32 %v14857_v17, %v14856_v57  ;;  %v16698_v63 = vadd.f32 %v14855_v14, %v20232_v50 }
 0x894   : >> { %v16708_v24 = vadd.f32 %v14858_v16, %v20232_v50 }
 0x896   : >> { %v14859_v15 = vpop.f32.mrb[4].mxu0 }
 0x897   : >> { %v14860_v3 = vpop.f32.mrb[5].mxu0 }
 0x898   : >> { %v14861_v19 = vadd.f32 %v14860_v3, %v14859_v15  ;;  %v14862_v22 = vpop.f32.mrb[6].mxu0 }
 0x899   : >> { %v14863_v56 = vpop.f32.mrb[7].mxu0 }
 0x89a   : >> { %v14864_v62 = vadd.f32 %v14863_v56, %v14862_v22  ;;  %v16693_v58 = vadd.f32 %v14861_v19, %v20232_v50 }
 0x89c   : >> { %v16703_v51 = vadd.f32 %v14864_v62, %v20232_v50 }
 0x89e   : >> { %v14865_v4 = vpop.f32.mrb[8].mxu0 }
 0x89f   : >> { %v14866_v53 = vpop.f32.mrb[9].mxu0 }
 0x8a0   : >> { %v14867_v11 = vadd.f32 %v14866_v53, %v14865_v4  ;;  %v14868_v36 = vpop.f32.mrb[10].mxu0 }
 0x8a1   : >> { %v14869_v47 = vpop.f32.mrb[11].mxu0 }
 0x8a2   : >> { %v14870_v52 = vadd.f32 %v14869_v47, %v14868_v36  ;;  %v16718_v49 = vadd.f32 %v14867_v11, %v20232_v50 }
 0x8a4   : >> { %v16728_v17 = vadd.f32 %v14870_v52, %v20232_v50 }
 0x8a6   : >> { %v14871_v12 = vpop.f32.mrb[12].mxu0 }
 0x8a7   : >> { %v14872_v0 = vpop.f32.mrb[13].mxu0 }
 0x8a8   : >> { %v14873_v45 = vadd.f32 %v14872_v0, %v14871_v12  ;;  %v14874_v9 = vpop.f32.mrb[14].mxu0 }
 0x8a9   : >> { %v14875_v27 = vpop.f32.mrb[15].mxu0 }
 0x8aa   : >> { %v14876_v39 = vadd.f32 %v14875_v27, %v14874_v9  ;;  %v16713_v53 = vadd.f32 %v14873_v45, %v20232_v50 }
 0x8ac   : >> { %v16723_v9 = vadd.f32 %v14876_v39, %v20232_v50 }
 0x8ae   : >> { %v14877_v2 = vpop.f32.mrb[16].mxu0  ;;  %v14933_v30 = vpop.f32.mrb[16].mxu1 }
 0x8af   : >> { %v14878_v61 = vpop.f32.mrb[17].mxu0  ;;  %v14934_v42 = vpop.f32.mrb[17].mxu1 }
 0x8b0   : >> { %v20235_v44 = vadd.f32 %v14878_v61, %v14877_v2  ;;  %v14935_v6 = vadd.f32 %v14934_v42, %v14933_v30  ;;  %v14880_v25 = vpop.f32.mrb[18].mxu0  ;;  %v14936_v37 = vpop.f32.mrb[18].mxu1 }
 0x8b1   : >> { %v14881_v29 = vpop.f32.mrb[19].mxu0  ;;  %v14937_v60 = vpop.f32.mrb[19].mxu1 }
 0x8b2   : >> { %v20238_v34 = vadd.f32 %v14881_v29, %v14880_v25  ;;  %v14938_v7 = vadd.f32 %v14937_v60, %v14936_v37  ;;  %v20240_v1 = vadd.f32 %v16698_v63, %v14935_v6  ;;  %v16737_v25 = vadd.f32 %v20235_v44, %v20232_v50 }
 0x8b4   : >> { %v20242_v5 = vadd.f32 %v16708_v24, %v14938_v7 }
 0x8b6   : >> { %v14883_v48 = vpop.f32.mrb[20].mxu0  ;;  %v14939_v55 = vpop.f32.mrb[20].mxu1 }
 0x8b7   : >> { %v14884_v40 = vpop.f32.mrb[21].mxu0  ;;  %v14940_v28 = vpop.f32.mrb[21].mxu1 }
 0x8b8   : >> { %v20245_v18 = vadd.f32 %v14884_v40, %v14883_v48  ;;  %v14941_v38 = vadd.f32 %v14940_v28, %v14939_v55  ;;  %v14886_v32 = vpop.f32.mrb[22].mxu0  ;;  %v14942_v13 = vpop.f32.mrb[22].mxu1  ;;  %v16745_v48 = vadd.f32 %v20238_v34, %v20232_v50 }
 0x8b9   : >> { %v14887_v23 = vpop.f32.mrb[23].mxu0  ;;  %v14943_v43 = vpop.f32.mrb[23].mxu1 }
 0x8ba   : >> { %v20248_v41 = vadd.f32 %v14887_v23, %v14886_v32  ;;  %v14944_v21 = vadd.f32 %v14943_v43, %v14942_v13  ;;  %v20250_v20 = vadd.f32 %v16693_v58, %v14941_v38  ;;  %v16733_v23 = vadd.f32 %v20245_v18, %v20232_v50 }
 0x8bc   : >> { %v20252_v59 = vadd.f32 %v16703_v51, %v14944_v21 }
 0x8be   : >> { %v14889_v35 = vpop.f32.mrb[24].mxu0  ;;  %v14945_v46 = vpop.f32.mrb[24].mxu1 }
 0x8bf   : >> { %v14890_v54 = vpop.f32.mrb[25].mxu0  ;;  %v14946_v10 = vpop.f32.mrb[25].mxu1 }
 0x8c0   : >> { %v20255_v31 = vadd.f32 %v14890_v54, %v14889_v35  ;;  %v14947_v33 = vadd.f32 %v14946_v10, %v14945_v46  ;;  %v14892_v26 = vpop.f32.mrb[26].mxu0  ;;  %v14948_v8 = vpop.f32.mrb[26].mxu1  ;;  %v16741_v54 = vadd.f32 %v20248_v41, %v20232_v50 }
 0x8c1   : >> { %v14893_v14 = vpop.f32.mrb[27].mxu0  ;;  %v14949_v57 = vpop.f32.mrb[27].mxu1 }
 0x8c2   : >> { %v20258_v16 = vadd.f32 %v14893_v14, %v14892_v26  ;;  %v14950_v15 = vadd.f32 %v14949_v57, %v14948_v8  ;;  %v20260_v3 = vadd.f32 %v16718_v49, %v14947_v33  ;;  %v16753_v18 = vadd.f32 %v20255_v31, %v20232_v50 }
 0x8c4   : >> { %v20262_v19 = vadd.f32 %v16728_v17, %v14950_v15  ;;  %v16761_v41 = vadd.f32 %v20258_v16, %v20232_v50 }
 0x8c6   : >> { %v14895_v22 = vpop.f32.mrb[28].mxu0  ;;  %v14951_v56 = vpop.f32.mrb[28].mxu1 }
 0x8c7   : >> { %v14896_v62 = vpop.f32.mrb[29].mxu0  ;;  %v14952_v4 = vpop.f32.mrb[29].mxu1 }
 0x8c8   : >> { %v20265_v11 = vadd.f32 %v14896_v62, %v14895_v22  ;;  %v14953_v36 = vadd.f32 %v14952_v4, %v14951_v56  ;;  %v14898_v47 = vpop.f32.mrb[30].mxu0  ;;  %v14954_v12 = vpop.f32.mrb[30].mxu1 }
 0x8c9   : >> { %v14899_v0 = vpop.f32.mrb[31].mxu0  ;;  %v14955_v52 = vpop.f32.mrb[31].mxu1 }
 0x8ca   : >> { %v20268_v27 = vadd.f32 %v14899_v0, %v14898_v47  ;;  %v14956_v2 = vadd.f32 %v14955_v52, %v14954_v12  ;;  %v20270_v30 = vadd.f32 %v16713_v53, %v14953_v36  ;;  %v16749_v31 = vadd.f32 %v20265_v11, %v20232_v50 }
 0x8cc   : >> { %v20272_v61 = vadd.f32 %v16723_v9, %v14956_v2  ;;  %v16757_v16 = vadd.f32 %v20268_v27, %v20232_v50 }
 0x8ce   : >> { %v14957_v42 = vpop.f32.mrb[32].mxu1  ;;  %v15013_v63 = vpop.f32.mrb[32].mxu0 }
 0x8cf   : >> { %v14958_v6 = vpop.f32.mrb[33].mxu1  ;;  %v15014_v45 = vpop.f32.mrb[33].mxu0 }
 0x8d0   : >> { %v14959_v37 = vadd.f32 %v14958_v6, %v14957_v42  ;;  %v20276_v29 = vadd.f32 %v15014_v45, %v15013_v63  ;;  %v14960_v60 = vpop.f32.mrb[34].mxu1  ;;  %v15016_v24 = vpop.f32.mrb[34].mxu0 }
 0x8d1   : >> { %v14961_v39 = vpop.f32.mrb[35].mxu1  ;;  %v15017_v7 = vpop.f32.mrb[35].mxu0 }
 0x8d2   : >> { %v20280_v55 = vadd.f32 %v16737_v25, %v14959_v37  ;;  %v14962_v40 = vadd.f32 %v14961_v39, %v14960_v60  ;;  %v20282_v28 = vadd.f32 %v15017_v7, %v15016_v24 }
 0x8d4   : >> { %v20284_v58 = vadd.f32 %v16745_v48, %v14962_v40 }
 0x8d6   : >> { %v14963_v38 = vpop.f32.mrb[36].mxu1  ;;  %v15019_v32 = vpop.f32.mrb[36].mxu0 }
 0x8d7   : >> { %v14964_v44 = vpop.f32.mrb[37].mxu1  ;;  %v15020_v13 = vpop.f32.mrb[37].mxu0 }
 0x8d8   : >> { %v14965_v43 = vadd.f32 %v14964_v44, %v14963_v38  ;;  %v15021_v51 = vadd.f32 %v15020_v13, %v15019_v32  ;;  %v14966_v21 = vpop.f32.mrb[38].mxu1  ;;  %v15022_v35 = vpop.f32.mrb[38].mxu0 }
 0x8d9   : >> { %v14967_v46 = vpop.f32.mrb[39].mxu1  ;;  %v15023_v34 = vpop.f32.mrb[39].mxu0 }
 0x8da   : >> { %v20290_v10 = vadd.f32 %v16733_v23, %v14965_v43  ;;  %v14968_v49 = vadd.f32 %v14967_v46, %v14966_v21  ;;  %v15024_v33 = vadd.f32 %v15023_v34, %v15022_v35 }
 0x8dc   : >> { %v20292_v26 = vadd.f32 %v16741_v54, %v14968_v49 }
 0x8de   : >> { %v14969_v8 = vpop.f32.mrb[40].mxu1  ;;  %v15025_v14 = vpop.f32.mrb[40].mxu0 }
 0x8df   : >> { %v14970_v57 = vpop.f32.mrb[41].mxu1  ;;  %v15026_v17 = vpop.f32.mrb[41].mxu0 }
 0x8e0   : >> { %v14971_v15 = vadd.f32 %v14970_v57, %v14969_v8  ;;  %v15027_v22 = vadd.f32 %v15026_v17, %v15025_v14  ;;  %v14972_v56 = vpop.f32.mrb[42].mxu1  ;;  %v15028_v62 = vpop.f32.mrb[42].mxu0 }
 0x8e1   : >> { %v14973_v4 = vpop.f32.mrb[43].mxu1  ;;  %v15029_v53 = vpop.f32.mrb[43].mxu0 }
 0x8e2   : >> { %v20298_v36 = vadd.f32 %v16753_v18, %v14971_v15  ;;  %v14974_v47 = vadd.f32 %v14973_v4, %v14972_v56  ;;  %v15030_v12 = vadd.f32 %v15029_v53, %v15028_v62 }
 0x8e4   : >> { %v20300_v0 = vadd.f32 %v16761_v41, %v14974_v47 }
 0x8e6   : >> { %v14975_v52 = vpop.f32.mrb[44].mxu1  ;;  %v15031_v9 = vpop.f32.mrb[44].mxu0 }
 0x8e7   : >> { %v14976_v2 = vpop.f32.mrb[45].mxu1  ;;  %v15032_v42 = vpop.f32.mrb[45].mxu0 }
 0x8e8   : >> { %v14977_v63 = vadd.f32 %v14976_v2, %v14975_v52  ;;  %v15033_v6 = vadd.f32 %v15032_v42, %v15031_v9  ;;  %v14978_v45 = vpop.f32.mrb[46].mxu1  ;;  %v15034_v25 = vpop.f32.mrb[46].mxu0 }
 0x8e9   : >> { %v14979_v37 = vpop.f32.mrb[47].mxu1  ;;  %v15035_v60 = vpop.f32.mrb[47].mxu0 }
 0x8ea   : >> { %v16750_v24 = vadd.f32 %v16749_v31, %v14977_v63  ;;  %v14980_v39 = vadd.f32 %v14979_v37, %v14978_v45  ;;  %v15036_v7 = vadd.f32 %v15035_v60, %v15034_v25 }
 0x8ec   : >> { %v16758_v48 = vadd.f32 %v16757_v16, %v14980_v39 }
 0x8ee   : >> { %v15991_v40 = vpop.f32.mrb[0].mxu1  ;;  %v15037_v38 = vpop.f32.mrb[48].mxu0 }
 0x8ef   : >> { %v16695_v32 = vadd.f32 %v20250_v20, %v15991_v40  ;;  %v8302_v44 = vpop.f32.mrb[1].mxu1  ;;  %v15038_v13 = vpop.f32.mrb[49].mxu0 }
 0x8f0   : >> { %v16700_v11 = vadd.f32 %v20240_v1, %v8302_v44  ;;  %v15039_v23 = vadd.f32 %v15038_v13, %v15037_v38  ;;  %v15992_v43 = vpop.f32.mrb[2].mxu1  ;;  %v15040_v21 = vpop.f32.mrb[50].mxu0 }
 0x8f1   : >> { %v16705_v35 = vadd.f32 %v20252_v59, %v15992_v43  ;;  %v8305_v46 = vpop.f32.mrb[3].mxu1  ;;  %v15041_v34 = vpop.f32.mrb[51].mxu0  ;;  %v16696_v50 = vadd.f32 %v16695_v32, %v15021_v51 }
 0x8f2   : >> { %v16710_v27 = vadd.f32 %v20242_v5, %v8305_v46  ;;  %v15042_v54 = vadd.f32 %v15041_v34, %v15040_v21  ;;  %v16701_v49 = vadd.f32 %v16700_v11, %v20276_v29  ;;  %v16739_v8 = vadd.f32 %v20280_v55, %v15039_v23 }
 0x8f3   : >> { %v16706_v20 = vadd.f32 %v16705_v35, %v15024_v33 }
 0x8f4   : >> { %v20313_v14 = vadd.f32 %v16710_v27, %v20282_v28  ;;  %v16747_v1 = vadd.f32 %v20284_v58, %v15042_v54 }
 0x8f6   : >> { %v15995_v57 = vpop.f32.mrb[4].mxu1  ;;  %v15043_v17 = vpop.f32.mrb[52].mxu0 }
 0x8f7   : >> { %v16715_v59 = vadd.f32 %v20270_v30, %v15995_v57  ;;  %v8318_v18 = vpop.f32.mrb[5].mxu1  ;;  %v15044_v15 = vpop.f32.mrb[53].mxu0 }
 0x8f8   : >> { %v16720_v51 = vadd.f32 %v20260_v3, %v8318_v18  ;;  %v15045_v5 = vadd.f32 %v15044_v15, %v15043_v17  ;;  %v15996_v56 = vpop.f32.mrb[6].mxu1  ;;  %v15046_v62 = vpop.f32.mrb[54].mxu0 }
 0x8f9   : >> { %v16725_v29 = vadd.f32 %v20272_v61, %v15996_v56  ;;  %v8321_v55 = vpop.f32.mrb[7].mxu1  ;;  %v15047_v33 = vpop.f32.mrb[55].mxu0  ;;  %v20319_v4 = vadd.f32 %v16715_v59, %v15033_v6 }
 0x8fa   : >> { %v16730_v28 = vadd.f32 %v20262_v19, %v8321_v55  ;;  %v15048_v58 = vadd.f32 %v15047_v33, %v15046_v62  ;;  %v16735_v53 = vadd.f32 %v20290_v10, %v15045_v5  ;;  %v20323_v41 = vadd.f32 %v16720_v51, %v15027_v22 }
 0x8fb   : >> { %v20325_v30 = vadd.f32 %v16725_v29, %v15036_v7 }
 0x8fc   : >> { %v16743_v3 = vadd.f32 %v20292_v26, %v15048_v58  ;;  %v20328_v47 = vadd.f32 %v16730_v28, %v15030_v12 }
 0x8fe   : >> { %v15049_v52 = vpop.f32.mrb[56].mxu0 }
 0x8ff   : >> { %v15050_v9 = vpop.f32.mrb[57].mxu0 }
 0x900   : >> { %v15051_v61 = vadd.f32 %v15050_v9, %v15049_v52  ;;  %v15052_v2 = vpop.f32.mrb[58].mxu0 }
 0x901   : >> { %v15053_v42 = vpop.f32.mrb[59].mxu0 }
 0x902   : >> { %v15054_v31 = vadd.f32 %v15053_v42, %v15052_v2  ;;  %v20331_v63 = vadd.f32 %v20298_v36, %v15051_v61 }
 0x904   : >> { %v20334_v19 = vadd.f32 %v20300_v0, %v15054_v31 }
 0x906   : >> { %v15055_v10 = vpop.f32.mrb[60].mxu0 }
 0x907   : >> { %v15056_v22 = vpop.f32.mrb[61].mxu0 }
 0x908   : >> { %v15057_v6 = vadd.f32 %v15056_v22, %v15055_v10  ;;  %v15058_v45 = vpop.f32.mrb[62].mxu0 }
 0x909   : >> { %v15059_v25 = vpop.f32.mrb[63].mxu0 }
 0x90a   : >> { %v15060_v26 = vadd.f32 %v15059_v25, %v15058_v45  ;;  %v16751_v12 = vadd.f32 %v16750_v24, %v15057_v6 }
 0x90c   : >> { %v16759_v37 = vadd.f32 %v16758_v48, %v15060_v26 }
 0x90e   : >> { %v16023_v60 = vpop.f32.mrb[64].mxu0  ;;  %v16031_v16 = vpop.f32.mrb[8].mxu1 }
 0x90f   : >> { %v16697_v39 = vadd.f32 %v16696_v50, %v16023_v60  ;;  %v16736_v7 = vadd.f32 %v16735_v53, %v16031_v16  ;;  %v8725_v40 = vpop.f32.mrb[65].mxu0  ;;  %v8757_v38 = vpop.f32.mrb[9].mxu1 }
 0x910   : >> { %v16702_v32 = vadd.f32 %v16701_v49, %v8725_v40  ;;  %v16740_v36 = vadd.f32 %v16739_v8, %v8757_v38  ;;  %v16024_v44 = vpop.f32.mrb[66].mxu0  ;;  %v16032_v13 = vpop.f32.mrb[10].mxu1 }
 0x911   : >> { %vm8806_vm15 = vcmp.gt.f32.partialorder %v16697_v39, 0.0  ;;  %v8822_v0 = vmul.f32 0.1, %v16697_v39  ;;  %vm8814_vm2 = vcmp.gt.f32.partialorder %v16736_v7, 0.0  ;;  %v8830_v11 = vmul.f32 0.1, %v16736_v7 }
 0x912   : >> { %vm8804_vm3 = vcmp.gt.f32.partialorder %v16702_v32, 0.0  ;;  %v8820_v23 = vmul.f32 0.1, %v16702_v32  ;;  %vm8812_vm4 = vcmp.gt.f32.partialorder %v16740_v36, 0.0  ;;  %v8828_v43 = vmul.f32 0.1, %v16740_v36 }
 0x913   : >> { %v16707_v24 = vadd.f32 %v16706_v20, %v16024_v44  ;;  %v16744_v48 = vadd.f32 %v16743_v3, %v16032_v13  ;;  %v8728_v21 = vpop.f32.mrb[67].mxu0  ;;  %v8760_v35 = vpop.f32.mrb[11].mxu1  ;;  %v8838_v46 = vsel %vm8806_vm15, %v16697_v39, %v8822_v0  ;;  %v8846_v34 = vsel %vm8814_vm2, %v16736_v7, %v8830_v11 }
 0x914   : >> { %v16712_v50 = vadd.f32 %v20313_v14, %v8728_v21  ;;  %v16748_v27 = vadd.f32 %v16747_v1, %v8760_v35  ;;  %v8836_v17 = vsel %vm8804_vm3, %v16702_v32, %v8820_v23  ;;  %v8844_v20 = vsel %vm8812_vm4, %v16740_v36, %v8828_v43 }
 0x915   : >> { %vm8807_vm5 = vcmp.gt.f32.partialorder %v16707_v24, 0.0  ;;  %v8823_v54 = vmul.f32 0.1, %v16707_v24  ;;  %vm8815_vm6 = vcmp.gt.f32.partialorder %v16744_v48, 0.0  ;;  %v8831_v49 = vmul.f32 0.1, %v16744_v48 }
 0x916   : >> { %vm8805_vm7 = vcmp.gt.f32.partialorder %v16712_v50, 0.0  ;;  %v8821_v8 = vmul.f32 0.1, %v16712_v50  ;;  %vm8813_vm8 = vcmp.gt.f32.partialorder %v16748_v27, 0.0  ;;  %v8829_v57 = vmul.f32 0.1, %v16748_v27 }
 0x917   : >> { %v8839_v59 = vsel %vm8807_vm5, %v16707_v24, %v8823_v54  ;;  %v8847_v18 = vsel %vm8815_vm6, %v16744_v48, %v8831_v49  ;;  %v16027_v15 = vpop.f32.mrb[68].mxu0  ;;  %v16035_v51 = vpop.f32.mrb[12].mxu1 }
 0x918   : >> { %v8853_v5 = vpack.c.bf16 %v8839_v59, %v8838_v46  ;;  %v8857_v14 = vpack.c.bf16 %v8847_v18, %v8846_v34  ;;  %v8837_v1 = vsel %vm8805_vm7, %v16712_v50, %v8821_v8  ;;  %v8845_v56 = vsel %vm8813_vm8, %v16748_v27, %v8829_v57  ;;  %v8741_v62 = vpop.f32.mrb[69].mxu0  ;;  %v8773_v29 = vpop.f32.mrb[13].mxu1 }
 0x919   : >> { %v8852_v55 = vpack.c.bf16 %v8837_v1, %v8836_v17  ;;  %v8856_v33 = vpack.c.bf16 %v8845_v56, %v8844_v20  ;;  %v16717_v28 = vadd.f32 %v20319_v4, %v16027_v15  ;;  %v16752_v58 = vadd.f32 %v16751_v12, %v16035_v51  ;;  %v16028_v53 = vpop.f32.mrb[70].mxu0  ;;  %v16036_v3 = vpop.f32.mrb[14].mxu1 }
 0x91a   : >> { %13459 = vst [vmem:[%s20342_s17 + $0x210] sm:$0xff] %v8853_v5  ;;  %13463 = vst [vmem:[%s20342_s17 + $0x250] sm:$0xff] %v8857_v14  ;;  %v16722_v52 = vadd.f32 %v20323_v41, %v8741_v62  ;;  %v16756_v9 = vadd.f32 %v20331_v63, %v8773_v29  ;;  %v16727_v61 = vadd.f32 %v20325_v30, %v16028_v53  ;;  %v8744_v4 = vpop.f32.mrb[71].mxu0  ;;  %v8776_v42 = vpop.f32.mrb[15].mxu1 }
 0x91b   : >> { %v16760_v2 = vadd.f32 %v16759_v37, %v16036_v3  ;;  %13458 = vst [vmem:[%s20342_s17 + $0x208] sm:$0xff] %v8852_v55  ;;  %13462 = vst [vmem:[%s20342_s17 + $0x248] sm:$0xff] %v8856_v33  ;;  %v8826_v31 = vmul.f32 0.1, %v16717_v28  ;;  %vm8810_vm9 = vcmp.gt.f32.partialorder %v16717_v28, 0.0  ;;  %vm8818_vm10 = vcmp.gt.f32.partialorder %v16752_v58, 0.0 }
 0x91c   : >> { %v8834_v10 = vmul.f32 0.1, %v16752_v58  ;;  %vm8808_vm11 = vcmp.gt.f32.partialorder %v16722_v52, 0.0  ;;  %vm8811_vm12 = vcmp.gt.f32.partialorder %v16727_v61, 0.0  ;;  %v8827_v22 = vmul.f32 0.1, %v16727_v61 }
 0x91d   : >> { %v8824_v6 = vmul.f32 0.1, %v16722_v52  ;;  %vm8816_vm13 = vcmp.gt.f32.partialorder %v16756_v9, 0.0  ;;  %vm8819_vm14 = vcmp.gt.f32.partialorder %v16760_v2, 0.0  ;;  %v8835_v41 = vmul.f32 0.1, %v16760_v2 }
 0x91e   : >> { %v8842_v63 = vsel %vm8810_vm9, %v16717_v28, %v8826_v31  ;;  %v8843_v30 = vsel %vm8811_vm12, %v16727_v61, %v8827_v22  ;;  %v16732_v45 = vadd.f32 %v20328_v47, %v8744_v4  ;;  %v16764_v25 = vadd.f32 %v20334_v19, %v8776_v42 }
 0x91f   : >> { %v8850_v26 = vsel %vm8818_vm10, %v16752_v58, %v8834_v10  ;;  %v8832_v12 = vmul.f32 0.1, %v16756_v9  ;;  %v8855_v37 = vpack.c.bf16 %v8843_v30, %v8842_v63  ;;  %v8851_v60 = vsel %vm8819_vm14, %v16760_v2, %v8835_v41 }
 0x920   : >> { %v8859_v16 = vpack.c.bf16 %v8851_v60, %v8850_v26  ;;  %vm8809_vm15 = vcmp.gt.f32.partialorder %v16732_v45, 0.0  ;;  %v8825_v39 = vmul.f32 0.1, %v16732_v45  ;;  %vm8817_vm2 = vcmp.gt.f32.partialorder %v16764_v25, 0.0  ;;  %7528 = sbr.rel (!%p7526_p3) target bundleno = 1945 (0x799), region = 236 }
 0x921   : >> { %13461 = vst [vmem:[%s20342_s17 + $0x230] sm:$0xff] %v8855_v37  ;;  %v8833_v7 = vmul.f32 0.1, %v16764_v25  ;;  %v8840_v40 = vsel %vm8808_vm11, %v16722_v52, %v8824_v6  ;;  %v8848_v47 = vsel %vm8816_vm13, %v16756_v9, %v8832_v12 }
 0x922   : >> { %13465 = vst [vmem:[%s20342_s17 + $0x270] sm:$0xff] %v8859_v16  ;;  %v8841_v38 = vsel %vm8809_vm15, %v16732_v45, %v8825_v39 }
 0x923   : >> { %v8854_v32 = vpack.c.bf16 %v8841_v38, %v8840_v40  ;;  %v8849_v19 = vsel %vm8817_vm2, %v16764_v25, %v8833_v7 }
 0x924   : >> { %v8858_v36 = vpack.c.bf16 %v8849_v19, %v8848_v47 }
 0x925   : >> { %13460 = vst [vmem:[%s20342_s17 + $0x228] sm:$0xff] %v8854_v32 }
 0x926   : >> { %13464 = vst [vmem:[%s20342_s17 + $0x268] sm:$0xff] %v8858_v36 }
 0x927 LB: >> { %v17504_v44 = vld [vmem:[#allocation6 + $0xb80] sm:$0xff]   ;;  %v17507_v11 = vld [vmem:[#allocation6 + $0xb88] sm:$0xff]   ;;  %v17510_v24 = vld [vmem:[#allocation6 + $0xb90] sm:$0xff]   ;;  %s13869_s25 = sshll.u32 %s17920_s22, 7  ;;  %s8875_s22 = sadd.s32 1, %s17920_s22   ;;  %s17920_s22 = sphi %s20362_s22, %s8875_s22  }
 0x928   : >> { %v17505_v13 = vld [vmem:[#allocation6 + $0xbc0] sm:$0xff]   ;;  %15077 = vmatprep.subr.bf16.mxu0 %v17504_v44  ;;  %v17508_v23 = vld [vmem:[#allocation6 + $0xbc8] sm:$0xff]   ;;  %v17511_v48 = vld [vmem:[#allocation6 + $0xbd0] sm:$0xff]   ;;  %s20370_s21 = scalar_lea.vmem [#allocation3], %s13869_s25  ;;  %s20772_s7 = scalar_lea.vmem [#allocation2], %s13869_s25 }
 0x929   : >> { %v17506_v0 = vld [vmem:[#allocation6 + $0xb40] sm:$0xff]   ;;  %16037 = vmatprep.subr.bf16.mxu1 %v17505_v13  ;;  %v17509_v43 = vld [vmem:[#allocation6 + $0xb48] sm:$0xff]   ;;  %v17512_v21 = vld [vmem:[#allocation6 + $0xb50] sm:$0xff]   ;;  %p8872_p8 = scmp.ge.s32.totalorder %s8875_s22, 8  }
 0x92a   : >> { %15078 = vmatpush3.bf16.msra.mxu0 %v17506_v0  ;;  %16038 = vmatpush3.bf16.msra.mxu1 %v17505_v13  ;;  %v17513_v35 = vld [vmem:[#allocation6 + $0xb98] sm:$0xff]   ;;  %v17516_v50 = vld [vmem:[#allocation6 + $0xba0] sm:$0xff]   ;;  %v17519_v49 = vld [vmem:[#allocation6 + $0xba8] sm:$0xff]   ;;  %s20792_s29 = smov (%p8872_p8), 0  }
 0x92b   : >> { %15079 = vmatprep.subr.bf16.mxu0 %v17507_v11  ;;  %16039 = vmatprep.subr.bf16.mxu1 %v17508_v23  ;;  %v17514_v46 = vld [vmem:[#allocation6 + $0xbd8] sm:$0xff]   ;;  %v17517_v27 = vld [vmem:[#allocation6 + $0xbe0] sm:$0xff]   ;;  %v17520_v8 = vld [vmem:[#allocation6 + $0xbe8] sm:$0xff]  }
 0x92c   : >> { %v17515_v34 = vld [vmem:[#allocation6 + $0xb58] sm:$0xff]   ;;  %v17518_v54 = vld [vmem:[#allocation6 + $0xb60] sm:$0xff]   ;;  %v17521_v57 = vld [vmem:[#allocation6 + $0xb68] sm:$0xff]  }
 0x92d   : >> { %v17522_v17 = vld [vmem:[#allocation6 + $0xbb0] sm:$0xff]   ;;  %v17525_v18 = vld [vmem:[#allocation6 + $0xbb8] sm:$0xff]   ;;  %v13470_v51 = vld [vmem:[%s20370_s21 + $0x1e8] sm:$0xff] }
 0x92e   : >> { %15080 = vmatpush3.bf16.msra.mxu0 %v17509_v43  ;;  %16040 = vmatpush3.bf16.msra.mxu1 %v17508_v23  ;;  %v17523_v20 = vld [vmem:[#allocation6 + $0xbf0] sm:$0xff]   ;;  %v17526_v15 = vld [vmem:[#allocation6 + $0xbf8] sm:$0xff]   ;;  %v13469_v14 = vld [vmem:[%s20370_s21 + $0x1e0] sm:$0x80]  ;;  %v8907_v1 = vshll.u32 %v13470_v51, 16  ;;  %v8904_v56 = vshrl.u32 %v13470_v51, 16 }
 0x92f   : >> { %15081 = vmatprep.subr.bf16.mxu0 %v17510_v24  ;;  %16041 = vmatprep.subr.bf16.mxu1 %v17511_v48  ;;  %v17524_v59 = vld [vmem:[#allocation6 + $0xb70] sm:$0xff]   ;;  %v8900_v29 = vshrl.u32 %v13469_v14, 16  ;;  %v13481_v55 = vld [vmem:[%s20370_s21 + $0x1f8] sm:$0x1]  ;;  %v17528_v2 = vld [vmem:[#allocation6 + $0xc40] sm:$0xff]  }
 0x930   : >> { %v13471_v5 = vld [vmem:[%s20370_s21 + $0x1f0] sm:$0xff]  ;;  %9265 = vmatprep.mubr.bf16.mxu0 %v13470_v51  ;;  %v8998_v28 = vshll.u32 %v13481_v55, 16  ;;  %v17527_v58 = vld [vmem:[#allocation6 + $0xb78] sm:$0xff]   ;;  %v8992_v53 = vrot.slane %v8907_v1, 1  ;;  %v8906_v9 = vrot.slane %v8904_v56, 7  ;;  %v17529_v10 = vld [vmem:[#allocation6 + $0xd00] sm:$0xff]  }
 0x931   : >> { %v8915_v62 = vshll.u32 %v13471_v5, 16  ;;  %v8912_v33 = vshrl.u32 %v13471_v5, 16  ;;  %v8902_v52 = vrot.slane %v8900_v29, 7  ;;  %v17530_v6 = vld [vmem:[#allocation6 + $0xc00] sm:$0xff]   ;;  %v20380_v45 = vld [vmem:[%s20370_s21 + $0x208] sm:$0xff]  ;;  %v20383_v12 = vld [vmem:[%s20370_s21 + $0x210] sm:$0xff] }
 0x932   : >> { %15082 = vmatpush3.bf16.msra.mxu0 %v17512_v21  ;;  %16042 = vmatpush3.bf16.msra.mxu1 %v17511_v48  ;;  %v9000_v61 = vrot.slane %v8998_v28, 1  ;;  %v8993_v4 = vor.u32 %v8992_v53, %v8904_v56  ;;  %v8909_v42 = vor.u32 %v8907_v1, %v8906_v9  ;;  %v17531_v30 = vld [vmem:[#allocation6 + $0xcc0] sm:$0xff]   ;;  %v17532_v26 = vld [vmem:[#allocation6 + $0xc48] sm:$0xff]   ;;  %v8924_v37 = vshrl.u32 %v20380_v45, 16  ;;  %v13482_v16 = vld [vmem:[%s20370_s21 + $0x218] sm:$0x1] }
 0x933   : >> { %15083 = vmatprep.subr.bf16.mxu0 %v17513_v35  ;;  %16043 = vmatprep.subr.bf16.mxu1 %v17514_v46  ;;  %v8994_v3 = vrot.slane %v8915_v62, 1  ;;  %v8914_v25 = vrot.slane %v8912_v33, 7  ;;  %v8927_v60 = vshll.u32 %v20380_v45, 16  ;;  %v17533_v39 = vld [vmem:[#allocation6 + $0xc08] sm:$0xff]   ;;  %v8935_v7 = vshll.u32 %v20383_v12, 16  ;;  %v17534_v19 = vld [vmem:[#allocation6 + $0xc50] sm:$0xff]  }
 0x934   : >> { %v8910_v41 = vsel %vm958_vm1, %v8902_v52, %v8909_v42  ;;  %v8932_v40 = vshrl.u32 %v20383_v12, 16  ;;  %v9008_v38 = vshll.u32 %v13482_v16, 16  ;;  %v17535_v47 = vld [vmem:[#allocation6 + $0xd08] sm:$0xff]   ;;  %v17536_v24 = vld [vmem:[#allocation6 + $0xc10] sm:$0xff]   ;;  %v17538_v35 = vld [vmem:[#allocation6 + $0xc58] sm:$0xff]  }
 0x935   : >> { %v8996_v31 = vor.u32 %v8994_v3, %v8912_v33  ;;  %v8995_v22 = vsel %vm1051_vm0, %v8993_v4, %v8994_v3  ;;  %v9002_v32 = vrot.slane %v8927_v60, 1  ;;  %v9004_v36 = vrot.slane %v8935_v7, 1  ;;  %v17537_v23 = vld [vmem:[#allocation6 + $0xcc8] sm:$0xff]   ;;  %v17540_v56 = vld [vmem:[#allocation6 + $0xc60] sm:$0xff]   ;;  %v17543_v33 = vld [vmem:[#allocation6 + $0xcd0] sm:$0xff]  }
 0x936   : >> { %15084 = vmatpush3.bf16.msra.mxu0 %v17515_v34  ;;  %16044 = vmatpush3.bf16.msra.mxu1 %v17514_v46  ;;  %v8917_v44 = vor.u32 %v8915_v62, %v8914_v25  ;;  %v9010_v13 = vrot.slane %v9008_v38, 1  ;;  %v20402_v46 = vld [vmem:[%s20370_s21 + $0x228] sm:$0xff]  ;;  %v20405_v34 = vld [vmem:[%s20370_s21 + $0x230] sm:$0xff]  ;;  %v17542_v3 = vld [vmem:[#allocation6 + $0xc20] sm:$0xff]  }
 0x937   : >> { %15085 = vmatprep.subr.bf16.mxu0 %v17516_v50  ;;  %16045 = vmatprep.subr.bf16.mxu1 %v17517_v27  ;;  %v9001_v63 = vsel %vm1051_vm0, %v8996_v31, %v9000_v61  ;;  %v9003_v0 = vor.u32 %v9002_v32, %v8924_v37  ;;  %v20392_v11 = vor.u32 %v9004_v36, %v8932_v40  ;;  %v20407_v50 = vrot.slane %v8924_v37, 7  ;;  %v20438_v52 = vld [vmem:[%s20370_s21 + $0x248] sm:$0xff]  ;;  %v13484_v31 = vld [vmem:[%s20370_s21 + $0x258] sm:$0x1]  ;;  %v17546_v25 = vld [vmem:[#allocation6 + $0xc70] sm:$0xff]  }
 0x938   : >> { %16053 = vmatprep.mubr.bf16.mxu1 %v8995_v22  ;;  %v8918_v48 = vsel %vm958_vm1, %v8906_v9, %v8917_v44  ;;  %v8934_v9 = vrot.slane %v8932_v40, 7  ;;  %v17544_v61 = vld [vmem:[#allocation6 + $0xc68] sm:$0xff]   ;;  %v8964_v4 = vshrl.u32 %v20438_v52, 16  ;;  %v8967_v42 = vshll.u32 %v20438_v52, 16  ;;  %v17549_v40 = vld [vmem:[#allocation6 + $0xcd8] sm:$0xff]  }
 0x939   : >> { %v20395_v43 = vsel %vm1051_vm0, %v9003_v0, %v9004_v36  ;;  %v9011_v21 = vsel %vm1051_vm0, %v20392_v11, %v9010_v13  ;;  %v20421_v1 = vor.u32 %v8927_v60, %v20407_v50  ;;  %v13475_v36 = vld [vmem:[%s20370_s21 + $0x220] sm:$0x80] }
 0x93a   : >> { %15086 = vmatpush3.bf16.msra.mxu0 %v17518_v54  ;;  %16046 = vmatpush3.bf16.msra.mxu1 %v17517_v27  ;;  %v8944_v27 = vshrl.u32 %v20402_v46, 16  ;;  %v8947_v54 = vshll.u32 %v20402_v46, 16  ;;  %v8937_v37 = vor.u32 %v8935_v7, %v8934_v9  ;;  %v13511_v13 = vld [vmem:[%s20370_s21 + $0x200] sm:$0x80]  ;;  %v8940_v0 = vshrl.u32 %v13475_v36, 16 }
 0x93b   : >> { %15087 = vmatprep.subr.bf16.mxu0 %v17519_v49  ;;  %16047 = vmatprep.subr.bf16.mxu1 %v17520_v8  ;;  %v8955_v49 = vshll.u32 %v20405_v34, 16  ;;  %v13520_v36 = vld [vmem:[%s20370_s21 + $0x260] sm:$0x80] }
 0x93c   : >> { %v8938_v7 = vsel %vm958_vm1, %v20407_v50, %v8937_v37  ;;  %v8946_v44 = vrot.slane %v8944_v27, 7  ;;  %v17554_v50 = vld [vmem:[#allocation6 + $0xce0] sm:$0xff]  }
 0x93e   : >> { %15088 = vmatpush3.bf16.msra.mxu0 %v17521_v57  ;;  %16048 = vmatpush3.bf16.msra.mxu1 %v17520_v8  ;;  %v13472_v8 = vld [vmem:[%s20370_s21 + $0x200] sm:$0x80]  ;;  %v8952_v57 = vshrl.u32 %v20405_v34, 16 }
 0x93f   : >> { %15089 = vmatprep.subr.bf16.mxu0 %v17522_v17  ;;  %16049 = vmatprep.subr.bf16.mxu1 %v17523_v20  ;;  %v17539_v17 = vld [vmem:[#allocation6 + $0xc18] sm:$0xff]  }
 0x942   : >> { %15090 = vmatpush3.bf16.msra.mxu0 %v17524_v59  ;;  %16050 = vmatpush3.bf16.msra.mxu1 %v17523_v20  ;;  %v8920_v20 = vshrl.u32 %v13472_v8, 16  ;;  %v13483_v59 = vld [vmem:[%s20370_s21 + $0x238] sm:$0x1]  ;;  %v20476_v8 = vor.u32 %v8947_v54, %v8946_v44 }
 0x943   : >> { %15091 = vmatprep.subr.bf16.mxu0 %v17525_v18  ;;  %16051 = vmatprep.subr.bf16.mxu1 %v17526_v15  ;;  %v9012_v18 = vrot.slane %v8947_v54, 1  ;;  %v9018_v51 = vshll.u32 %v13483_v59, 16  ;;  %v17555_v54 = vld [vmem:[#allocation6 + $0xc88] sm:$0xff]  }
 0x944   : >> { %v8922_v14 = vrot.slane %v8920_v20, 7 }
 0x945   : >> { %v9013_v62 = vor.u32 %v9012_v18, %v8944_v27  ;;  %v9020_v55 = vrot.slane %v9018_v51, 1  ;;  %v17552_v27 = vld [vmem:[#allocation6 + $0xc80] sm:$0xff]   ;;  %v8954_v18 = vrot.slane %v8952_v57, 7  ;;  %v17559_v51 = vld [vmem:[#allocation6 + $0xd30] sm:$0xff]  }
 0x946   : >> { %15092 = vmatpush3.bf16.msra.mxu0 %v17527_v58  ;;  %16052 = vmatpush3.bf16.msra.mxu1 %v17526_v15  ;;  %v9014_v15 = vrot.slane %v8955_v49, 1  ;;  %v8930_v58 = vsel %vm958_vm1, %v8922_v14, %v20421_v1  ;;  %v13514_v14 = vld [vmem:[%s20370_s21 + $0x220] sm:$0x80] }
 0x947   : >> { %15157 = vmatprep.subr.bf16.mxu1 %v17528_v2  ;;  %15237 = vmatprep.subr.bf16.mxu0 %v17529_v10  ;;  %v20441_v2 = vld [vmem:[%s20370_s21 + $0x250] sm:$0xff]  ;;  %v17545_v10 = vld [vmem:[#allocation6 + $0xc28] sm:$0xff]  }
 0x948   : >> { %v20427_v29 = vor.u32 %v9014_v15, %v8952_v57  ;;  %v20430_v28 = vsel %vm1051_vm0, %v9013_v62, %v9014_v15  ;;  %v8975_v22 = vshll.u32 %v20441_v2, 16  ;;  %v17557_v15 = vld [vmem:[#allocation6 + $0xce8] sm:$0xff]   ;;  %v17560_v57 = vld [vmem:[#allocation6 + $0xcf0] sm:$0xff]   ;;  %v8966_v62 = vrot.slane %v8964_v4, 7 }
 0x949   : >> { %9266 = vmatmul.mubr.bf16.vlgmr.msra.gmra.mrb[0].mxu0 %v8910_v41  ;;  %16054 = vmatmul.mubr.bf16.vlgmr.msra.gmra.mrb[0].mxu1 %v9001_v63  ;;  %v9028_v41 = vshll.u32 %v13484_v31, 16  ;;  %v17547_v63 = vld [vmem:[#allocation6 + $0xd18] sm:$0xff]  }
 0x94a   : >> { %15158 = vmatpush3.bf16.msra.mxu1 %v17530_v6  ;;  %15238 = vmatpush3.bf16.msra.mxu0 %v17531_v30  ;;  %v9021_v53 = vsel %vm1051_vm0, %v20427_v29, %v9020_v55  ;;  %v8972_v6 = vshrl.u32 %v20441_v2, 16  ;;  %v9022_v30 = vrot.slane %v8967_v42, 1  ;;  %v20503_v9 = vor.u32 %v8967_v42, %v8966_v62 }
 0x94b   : >> { %15159 = vmatprep.subr.bf16.mxu1 %v17532_v26  ;;  %9273 = vmatprep.mubr.bf16.mxu0 %v13471_v5  ;;  %v17541_v5 = vld [vmem:[#allocation6 + $0xd10] sm:$0xff]   ;;  %v9024_v26 = vrot.slane %v8975_v22, 1  ;;  %v9030_v60 = vrot.slane %v9028_v41, 1  ;;  %v17566_v41 = vld [vmem:[#allocation6 + $0xca8] sm:$0xff]  }
 0x94c   : >> { %15239 = vmatprep.subr.bf16.mxu0 %v17535_v47  ;;  %16057 = vmatprep.mubr.bf16.mxu1 %v20395_v43  ;;  %v9023_v16 = vor.u32 %v9022_v30, %v8964_v4  ;;  %v17548_v47 = vld [vmem:[#allocation6 + $0xc30] sm:$0xff]   ;;  %v17564_v4 = vld [vmem:[#allocation6 + $0xca0] sm:$0xff]   ;;  %v8974_v42 = vrot.slane %v8972_v6, 7 }
 0x94d   : >> { %v13517_v30 = vld [vmem:[%s20370_s21 + $0x240] sm:$0x80] }
 0x94e   : >> { %15160 = vmatpush3.bf16.msra.mxu1 %v17533_v39  ;;  %15240 = vmatpush3.bf16.msra.mxu0 %v17537_v23  ;;  %v20459_v39 = vor.u32 %v9024_v26, %v8972_v6  ;;  %v20462_v38 = vsel %vm1051_vm0, %v9023_v16, %v9024_v26  ;;  %v9460_v23 = vshrl.u32 %v13511_v13, 16  ;;  %v17568_v26 = vld [vmem:[#allocation6 + $0xcb0] sm:$0xff]   ;;  %v9500_v6 = vshrl.u32 %v13517_v30, 16  ;;  %v17570_v16 = vld [vmem:[#allocation6 + $0xcb8] sm:$0xff]  }
 0x94f   : >> { %15161 = vmatprep.subr.bf16.mxu1 %v17534_v19  ;;  %15241 = vmatprep.subr.bf16.mxu0 %v17541_v5  ;;  %v17550_v19 = vld [vmem:[#allocation6 + $0xc78] sm:$0xff]   ;;  %v8957_v5 = vor.u32 %v8955_v49, %v8954_v18  ;;  %v20542_v13 = vld [vmem:[#allocation6 + $0xd50] sm:$0xff]  }
 0x950   : >> { %v9031_v32 = vsel %vm1051_vm0, %v20459_v39, %v9030_v60  ;;  %v17562_v49 = vld [vmem:[#allocation6 + $0xd38] sm:$0xff]  }
 0x951   : >> { %9274 = vmatmul.mubr.bf16.gmra.mrb[4].mxu0 %v8918_v48  ;;  %16058 = vmatmul.mubr.bf16.gmra.mrb[4].mxu1 %v9011_v21  ;;  %v8942_v48 = vrot.slane %v8940_v0, 7  ;;  %v9462_v21 = vrot.slane %v9460_v23, 7  ;;  %v20494_v55 = vsel %vm958_vm1, %v8946_v44, %v8957_v5  ;;  %v13556_v44 = vld [vmem:[%s20370_s21 + $0x240] sm:$0x80]  ;;  %v9520_v23 = vshrl.u32 %v13520_v36, 16  ;;  %v20583_v5 = vld [vmem:[#allocation6 + $0xd70] sm:$0xff]  }
 0x952   : >> { %15162 = vmatpush3.bf16.msra.mxu1 %v17536_v24  ;;  %9281 = vmatprep.mubr.bf16.mxu0 %v20380_v45  ;;  %v17551_v24 = vld [vmem:[#allocation6 + $0xc38] sm:$0xff]  }
 0x953   : >> { %15163 = vmatprep.subr.bf16.mxu1 %v17538_v35  ;;  %15242 = vmatpush3.bf16.msra.mxu0 %v17543_v33  ;;  %v17553_v35 = vld [vmem:[#allocation6 + $0xd20] sm:$0xff]   ;;  %v8950_v20 = vsel %vm958_vm1, %v8942_v48, %v20476_v8  ;;  %v9470_v59 = vsel %vm958_vm1, %v9462_v21, %v20421_v1  ;;  %v17558_v1 = vld [vmem:[#allocation6 + $0xc90] sm:$0xff]   ;;  %v9480_v33 = vshrl.u32 %v13514_v14, 16  ;;  %v10039_v48 = vshrl.u32 %v13556_v44, 16  ;;  %v13565_v44 = vld [vmem:[%s20370_s21 + $0x238] sm:$0x1] }
 0x954   : >> { %16061 = vmatprep.mubr.bf16.mxu1 %v20430_v28  ;;  %15243 = vmatprep.subr.bf16.mxu0 %v17547_v63  ;;  %v8977_v63 = vor.u32 %v8975_v22, %v8974_v42  ;;  %v9502_v22 = vrot.slane %v9500_v6, 7  ;;  %v20550_v21 = vld [vmem:[%s20370_s21 + $0x270] sm:$0xff] }
 0x956   : >> { %15164 = vmatpush3.bf16.msra.mxu1 %v17539_v17  ;;  %v17556_v17 = vld [vmem:[#allocation6 + $0xd28] sm:$0xff]   ;;  %v20519_v37 = vsel %vm958_vm1, %v8966_v62, %v8977_v63 }
 0x957   : >> { %15165 = vmatprep.subr.bf16.mxu1 %v17540_v56  ;;  %15244 = vmatpush3.bf16.msra.mxu0 %v17549_v40 }
 0x958   : >> { %15245 = vmatprep.subr.bf16.mxu0 %v17553_v35  ;;  %v9522_v35 = vrot.slane %v9520_v23, 7 }
 0x959   : >> { %9282 = vmatmul.mubr.bf16.gmra.mrb[8].mxu0 %v8930_v58  ;;  %16062 = vmatmul.mubr.bf16.gmra.mrb[8].mxu1 %v9021_v53  ;;  %v17561_v58 = vld [vmem:[#allocation6 + $0xc98] sm:$0xff]  }
 0x95a   : >> { %15166 = vmatpush3.bf16.msra.mxu1 %v17542_v3  ;;  %9289 = vmatprep.mubr.bf16.mxu0 %v20383_v12  ;;  %v17563_v53 = vld [vmem:[#allocation6 + $0xcf8] sm:$0xff]  }
 0x95b   : >> { %15167 = vmatprep.subr.bf16.mxu1 %v17544_v61  ;;  %16065 = vmatprep.mubr.bf16.mxu1 %v20462_v38  ;;  %v9482_v61 = vrot.slane %v9480_v33, 7 }
 0x95c   : >> { %15246 = vmatpush3.bf16.msra.mxu0 %v17554_v50 }
 0x95d   : >> { %15247 = vmatprep.subr.bf16.mxu0 %v17556_v17  ;;  %v20563_v17 = vld [vmem:[#allocation6 + $0xd60] sm:$0xff]  }
 0x95e   : >> { %15168 = vmatpush3.bf16.msra.mxu1 %v17545_v10  ;;  %v9490_v10 = vsel %vm958_vm1, %v9482_v61, %v20476_v8 }
 0x95f   : >> { %15169 = vmatprep.subr.bf16.mxu1 %v17546_v25  ;;  %v13553_v25 = vld [vmem:[%s20370_s21 + $0x220] sm:$0x80] }
 0x960   : >> { %15248 = vmatpush3.bf16.msra.mxu0 %v17557_v15  ;;  %v10019_v60 = vshrl.u32 %v13553_v25, 16 }
 0x961   : >> { %9290 = vmatmul.mubr.bf16.gmra.mrb[12].mxu0 %v8938_v7  ;;  %16066 = vmatmul.mubr.bf16.gmra.mrb[12].mxu1 %v9031_v32  ;;  %v20529_v32 = vld [vmem:[#allocation6 + $0xd48] sm:$0xff]  }
 0x962   : >> { %15170 = vmatpush3.bf16.msra.mxu1 %v17548_v47  ;;  %9297 = vmatprep.mubr.bf16.mxu0 %v20402_v46  ;;  %v10021_v40 = vrot.slane %v10019_v60, 7  ;;  %v9510_v47 = vsel %vm958_vm1, %v9502_v22, %v20503_v9  ;;  %v13526_v60 = vld [vmem:[%s20370_s21 + $0x278] sm:$0x1] }
 0x963   : >> { %15171 = vmatprep.subr.bf16.mxu1 %v17550_v19  ;;  %9824 = vmatprep.mubr.bf16.mxu1 %v20380_v45  ;;  %v13478_v45 = vld [vmem:[%s20370_s21 + $0x240] sm:$0x80]  ;;  %v20532_v19 = vld [vmem:[%s20370_s21 + $0x268] sm:$0xff] }
 0x964   : >> { %v8960_v56 = vshrl.u32 %v13478_v45, 16  ;;  %15249 = vmatprep.subr.bf16.mxu0 %v17559_v51  ;;  %v9527_v0 = vshll.u32 %v20532_v19, 16  ;;  %v13523_v45 = vld [vmem:[%s20370_s21 + $0x218] sm:$0x1]  ;;  %v13559_v51 = vld [vmem:[%s20370_s21 + $0x260] sm:$0x80] }
 0x965   : >> { %15250 = vmatpush3.bf16.msra.mxu0 %v17560_v57  ;;  %v10059_v57 = vshrl.u32 %v13559_v51, 16 }
 0x966   : >> { %15172 = vmatpush3.bf16.msra.mxu1 %v17551_v24  ;;  %v8962_v3 = vrot.slane %v8960_v56, 7  ;;  %15251 = vmatprep.subr.bf16.mxu0 %v17562_v49  ;;  %v9581_v42 = vrot.slane %v9527_v0, 1 }
 0x967   : >> { %16069 = vmatprep.subr.bf16.mxu1 %v17552_v27  ;;  %v10061_v62 = vrot.slane %v10059_v57, 7 }
 0x968   : >> { %v8970_v31 = vsel %vm958_vm1, %v8962_v3, %v20503_v9 }
 0x969   : >> { %9298 = vmatmul.mubr.bf16.gmra.mrb[16].mxu0 %v8950_v20  ;;  %9825 = vmatmul.mubr.bf16.vlgmr.msra.gmra.mrb[16].mxu1 %v9470_v59  ;;  %v9535_v59 = vshll.u32 %v20550_v21, 16 }
 0x96a   : >> { %16070 = vmatpush3.bf16.msra.mxu1 %v17552_v27  ;;  %9305 = vmatprep.mubr.bf16.mxu0 %v20405_v34  ;;  %v9532_v27 = vshrl.u32 %v20550_v21, 16 }
 0x96b   : >> { %9832 = vmatprep.mubr.bf16.mxu1 %v20383_v12  ;;  %16071 = vmatprep.subr.bf16.mxu1 %v17555_v54  ;;  %v20497_v12 = vld [vmem:[#allocation6 + $0xd40] sm:$0xff]   ;;  %v9583_v6 = vrot.slane %v9535_v59, 1 }
 0x96c   : >> { %15252 = vmatpush3.bf16.msra.mxu0 %v17563_v53  ;;  %v9534_v18 = vrot.slane %v9532_v27, 7  ;;  %v20600_v53 = vld [vmem:[%s20370_s21 + $0x288] sm:$0xff] }
 0x96d   : >> { %16101 = vmatprep.subr.bf16.mxu0 %v20497_v12  ;;  %v10083_v3 = vshrl.u32 %v20600_v53, 16  ;;  %v10086_v61 = vshll.u32 %v20600_v53, 16 }
 0x96e   : >> { %16072 = vmatpush3.bf16.msra.mxu1 %v17555_v54  ;;  %v20573_v54 = vld [vmem:[#allocation6 + $0xd68] sm:$0xff]   ;;  %v9537_v15 = vor.u32 %v9535_v59, %v9534_v18 }
 0x96f   : >> { %16073 = vmatprep.subr.bf16.mxu1 %v17558_v1 }
 0x971   : >> { %9306 = vmatmul.mubr.bf16.gmra.mrb[20].mxu0 %v20494_v55  ;;  %9833 = vmatmul.mubr.bf16.gmra.mrb[20].mxu1 %v8938_v7  ;;  %v10029_v7 = vsel %vm958_vm1, %v10021_v40, %v20476_v8  ;;  %v10041_v8 = vrot.slane %v10039_v48, 7 }
 0x972   : >> { %9313 = vmatprep.mubr.bf16.mxu0 %v20438_v52  ;;  %9840 = vmatprep.mubr.bf16.mxu1 %v20402_v46 }
 0x973   : >> { %16074 = vmatpush3.bf16.msra.mxu1 %v17558_v1  ;;  %v9557_v1 = vshll.u32 %v13523_v45, 16 }
 0x974   : >> { %16075 = vmatprep.subr.bf16.mxu1 %v17561_v58 }
 0x975   : >> { %v9559_v56 = vrot.slane %v9557_v1, 1 }
 0x977   : >> { %16076 = vmatpush3.bf16.msra.mxu1 %v17561_v58  ;;  %v9560_v33 = vsel %vm1051_vm0, %v20392_v11, %v9559_v56  ;;  %v13525_v11 = vld [vmem:[%s20370_s21 + $0x258] sm:$0x1] }
 0x978   : >> { %16077 = vmatprep.subr.bf16.mxu1 %v17564_v4 }
 0x979   : >> { %9314 = vmatmul.mubr.bf16.gmra.mrb[24].mxu0 %v8970_v31  ;;  %9841 = vmatmul.mubr.bf16.gmra.mrb[24].mxu1 %v9490_v10  ;;  %v10085_v10 = vrot.slane %v10083_v3, 7 }
 0x97a   : >> { %9321 = vmatprep.mubr.bf16.mxu0 %v20441_v2  ;;  %9848 = vmatprep.mubr.bf16.mxu1 %v20405_v34 }
 0x97b   : >> { %16078 = vmatpush3.bf16.msra.mxu1 %v17564_v4  ;;  %v10088_v25 = vor.u32 %v10086_v61, %v10085_v10 }
 0x97c   : >> { %16079 = vmatprep.subr.bf16.mxu1 %v17566_v41 }
 0x97f   : >> { %16080 = vmatpush3.bf16.msra.mxu1 %v17566_v41  ;;  %v20618_v41 = vld [vmem:[%s20370_s21 + $0x290] sm:$0xff] }
 0x980   : >> { %16081 = vmatprep.subr.bf16.mxu1 %v17568_v26 }
 0x981   : >> { %9322 = vmatmul.mubr.bf16.gmra.mrb[28].mxu0 %v20519_v37  ;;  %9849 = vmatmul.mubr.bf16.gmra.mrb[28].mxu1 %v20494_v55 }
 0x982   : >> { %9856 = vmatprep.mubr.bf16.mxu1 %v20438_v52  ;;  %10383 = vmatprep.mubr.bf16.mxu0 %v20402_v46  ;;  %v9524_v46 = vshrl.u32 %v20532_v19, 16 }
 0x983   : >> { %16082 = vmatpush3.bf16.msra.mxu1 %v17568_v26  ;;  %v10091_v26 = vshrl.u32 %v20618_v41, 16 }
 0x984   : >> { %16083 = vmatprep.subr.bf16.mxu1 %v17570_v16  ;;  %v9526_v24 = vrot.slane %v9524_v46, 7 }
 0x986   : >> { %v9529_v50 = vor.u32 %v9527_v0, %v9526_v24  ;;  %v9538_v14 = vsel %vm958_vm1, %v9526_v24, %v9537_v15  ;;  %v10116_v24 = vshll.u32 %v13565_v44, 16 }
 0x987   : >> { %16084 = vmatpush3.bf16.msra.mxu1 %v17570_v16  ;;  %v10094_v16 = vshll.u32 %v20618_v41, 16 }
 0x988   : >> { %16789 = vmatprep.subr.bf16.mxu1 %v20497_v12  ;;  %v9530_v20 = vsel %vm958_vm1, %v9522_v35, %v9529_v50  ;;  %v10069_v58 = vsel %vm958_vm1, %v10061_v62, %v9529_v50 }
 0x989   : >> { %9857 = vmatmul.mubr.bf16.gmra.mrb[32].mxu1 %v9510_v47  ;;  %10384 = vmatmul.mubr.bf16.vlgmr.msra.gmra.mrb[32].mxu0 %v10029_v7  ;;  %v9587_v47 = vshll.u32 %v13526_v60, 16  ;;  %v10093_v7 = vrot.slane %v10091_v26, 7 }
 0x98a   : >> { %16102 = vmatpush3.bf16.msra.mxu0 %v20497_v12  ;;  %9864 = vmatprep.mubr.bf16.mxu1 %v20441_v2 }
 0x98b   : >> { %10391 = vmatprep.mubr.bf16.mxu0 %v20405_v34  ;;  %16103 = vmatprep.subr.bf16.mxu0 %v20529_v32  ;;  %v20552_v34 = vld [vmem:[#allocation6 + $0xd58] sm:$0xff]   ;;  %v10096_v36 = vor.u32 %v10094_v16, %v10093_v7 }
 0x98d   : >> { %v10097_v23 = vsel %vm958_vm1, %v10085_v10, %v10096_v36 }
 0x98e   : >> { %16104 = vmatpush3.bf16.msra.mxu0 %v20529_v32 }
 0x98f   : >> { %16105 = vmatprep.subr.bf16.mxu0 %v20542_v13 }
 0x991   : >> { %9865 = vmatmul.mubr.bf16.gmra.mrb[36].mxu1 %v20519_v37  ;;  %10392 = vmatmul.mubr.bf16.gmra.mrb[36].mxu0 %v20494_v55  ;;  %v13524_v55 = vld [vmem:[%s20370_s21 + $0x238] sm:$0x1] }
 0x992   : >> { %9872 = vmatprep.mubr.bf16.mxu1 %v20532_v19  ;;  %10399 = vmatprep.mubr.bf16.mxu0 %v20438_v52  ;;  %v10049_v52 = vsel %vm958_vm1, %v10041_v8, %v20503_v9  ;;  %v9567_v49 = vshll.u32 %v13524_v55, 16  ;;  %v13562_v9 = vld [vmem:[%s20370_s21 + $0x280] sm:$0x80]  ;;  %v10142_v8 = vrot.slane %v10094_v16, 1 }
 0x993   : >> { %16106 = vmatpush3.bf16.msra.mxu0 %v20542_v13  ;;  %v10079_v31 = vshrl.u32 %v13562_v9, 16 }
 0x994   : >> { %16107 = vmatprep.subr.bf16.mxu0 %v20552_v34  ;;  %v10144_v15 = vor.u32 %v10142_v8, %v10091_v26 }
 0x995   : >> { %v10081_v30 = vrot.slane %v10079_v31, 7 }
 0x997   : >> { %16108 = vmatpush3.bf16.msra.mxu0 %v20552_v34  ;;  %v10089_v40 = vsel %vm958_vm1, %v10081_v30, %v10088_v25 }
 0x998   : >> { %16109 = vmatprep.subr.bf16.mxu0 %v20563_v17 }
 0x999   : >> { %9873 = vmatmul.mubr.bf16.gmra.mrb[40].mxu1 %v9530_v20  ;;  %10400 = vmatmul.mubr.bf16.gmra.mrb[40].mxu0 %v10049_v52 }
 0x99a   : >> { %9880 = vmatprep.mubr.bf16.mxu1 %v20550_v21  ;;  %10407 = vmatprep.mubr.bf16.mxu0 %v20441_v2  ;;  %v20588_v2 = vld [vmem:[#allocation6 + $0xd78] sm:$0xff]  }
 0x99b   : >> { %16110 = vmatpush3.bf16.msra.mxu0 %v20563_v17 }
 0x99c   : >> { %16111 = vmatprep.subr.bf16.mxu0 %v20573_v54 }
 0x99f   : >> { %16112 = vmatpush3.bf16.msra.mxu0 %v20573_v54 }
 0x9a0   : >> { %16113 = vmatprep.subr.bf16.mxu0 %v20583_v5 }
 0x9a1   : >> { %9881 = vmatmul.mubr.bf16.gmra.mrb[44].mxu1 %v9538_v14  ;;  %10408 = vmatmul.mubr.bf16.gmra.mrb[44].mxu0 %v20519_v37  ;;  %v9582_v37 = vor.u32 %v9581_v42, %v9524_v46  ;;  %v9589_v46 = vrot.slane %v9587_v47, 1 }
 0x9a2   : >> { %16085 = vmatprep.mubr.bf16.mxu1 %v20395_v43  ;;  %10415 = vmatprep.mubr.bf16.mxu0 %v20532_v19  ;;  %v9569_v43 = vrot.slane %v9567_v49, 1  ;;  %v9585_v19 = vor.u32 %v9583_v6, %v9532_v27  ;;  %v13566_v27 = vld [vmem:[%s20370_s21 + $0x258] sm:$0x1] }
 0x9a3   : >> { %16114 = vmatpush3.bf16.msra.mxu0 %v20583_v5  ;;  %v10126_v59 = vshll.u32 %v13566_v27, 16 }
 0x9a4   : >> { %16115 = vmatprep.subr.bf16.mxu0 %v20588_v2  ;;  %v9570_v4 = vsel %vm1051_vm0, %v20427_v29, %v9569_v43  ;;  %v9590_v0 = vsel %vm1051_vm0, %v9585_v19, %v9589_v46 }
 0x9a7   : >> { %16116 = vmatpush3.bf16.msra.mxu0 %v20588_v2 }
 0x9a9   : >> { %16086 = vmatmul.mubr.bf16.vlgmr.msra.gmra.mrb[0].mxu1 %v9560_v33  ;;  %10416 = vmatmul.mubr.bf16.gmra.mrb[48].mxu0 %v10069_v58 }
 0x9aa   : >> { %16797 = vmatpush3.bf16.msra.mxu1 %v20497_v12  ;;  %16089 = vmatprep.mubr.bf16.mxu1 %v20430_v28  ;;  %v9577_v12 = vshll.u32 %v13525_v11, 16 }
 0x9ab   : >> { %16790 = vmatprep.subr.bf16.mxu1 %v20529_v32  ;;  %10423 = vmatprep.mubr.bf16.mxu0 %v20550_v21  ;;  %v10140_v21 = vrot.slane %v10086_v61, 1 }
 0x9ac   : >> { %v9579_v63 = vrot.slane %v9577_v12, 1 }
 0x9ad   : >> { %v10141_v50 = vor.u32 %v10140_v21, %v10083_v3 }
 0x9ae   : >> { %16798 = vmatpush3.bf16.msra.mxu1 %v20529_v32  ;;  %v9580_v22 = vsel %vm1051_vm0, %v20459_v39, %v9579_v63  ;;  %v9584_v32 = vsel %vm1051_vm0, %v9582_v37, %v9583_v6 }
 0x9af   : >> { %16791 = vmatprep.subr.bf16.mxu1 %v20542_v13 }
 0x9b1   : >> { %16090 = vmatmul.mubr.bf16.gmra.mrb[4].mxu1 %v9570_v4  ;;  %10424 = vmatmul.mubr.bf16.gmra.mrb[52].mxu0 %v9538_v14 }
 0x9b2   : >> { %16799 = vmatpush3.bf16.msra.mxu1 %v20542_v13  ;;  %16093 = vmatprep.mubr.bf16.mxu1 %v20462_v38  ;;  %v13567_v13 = vld [vmem:[%s20370_s21 + $0x278] sm:$0x1] }
 0x9b3   : >> { %16792 = vmatprep.subr.bf16.mxu1 %v20552_v34  ;;  %10431 = vmatprep.mubr.bf16.mxu0 %v20600_v53  ;;  %v10136_v48 = vshll.u32 %v13567_v13, 16 }
 0x9b5   : >> { %v10138_v35 = vrot.slane %v10136_v48, 1 }
 0x9b6   : >> { %16800 = vmatpush3.bf16.msra.mxu1 %v20552_v34  ;;  %v10118_v34 = vrot.slane %v10116_v24, 1 }
 0x9b7   : >> { %16793 = vmatprep.subr.bf16.mxu1 %v20563_v17  ;;  %v10139_v52 = vsel %vm1051_vm0, %v9585_v19, %v10138_v35 }
 0x9b8   : >> { %v10119_v20 = vsel %vm1051_vm0, %v20427_v29, %v10118_v34 }
 0x9b9   : >> { %16094 = vmatmul.mubr.bf16.gmra.mrb[8].mxu1 %v9580_v22  ;;  %10432 = vmatmul.mubr.bf16.gmra.mrb[56].mxu0 %v10089_v40 }
 0x9ba   : >> { %16801 = vmatpush3.bf16.msra.mxu1 %v20563_v17  ;;  %16097 = vmatprep.mubr.bf16.mxu1 %v9584_v32  ;;  %v13568_v17 = vld [vmem:[%s20370_s21 + $0x298] sm:$0x1] }
 0x9bb   : >> { %16794 = vmatprep.subr.bf16.mxu1 %v20573_v54  ;;  %10439 = vmatprep.mubr.bf16.mxu0 %v20618_v41  ;;  %v10146_v18 = vshll.u32 %v13568_v17, 16  ;;  %v20662_v41 = vld [vmem:[#allocation8 + $0x5] ss:$0 sm:$0xff] }
 0x9bd   : >> { %v10148_v45 = vrot.slane %v10146_v18, 1 }
 0x9be   : >> { %16802 = vmatpush3.bf16.msra.mxu1 %v20573_v54  ;;  %v10128_v54 = vrot.slane %v10126_v59, 1 }
 0x9bf   : >> { %16795 = vmatprep.subr.bf16.mxu1 %v20583_v5 }
 0x9c0   : >> { %v10129_v51 = vsel %vm1051_vm0, %v20459_v39, %v10128_v54 }
 0x9c1   : >> { %16098 = vmatmul.mubr.bf16.gmra.mrb[12].mxu1 %v9590_v0  ;;  %10440 = vmatmul.mubr.bf16.gmra.mrb[60].mxu0 %v10097_v23 }
 0x9c2   : >> { %16803 = vmatpush3.bf16.msra.mxu1 %v20583_v5  ;;  %16117 = vmatprep.mubr.bf16.mxu0 %v20430_v28  ;;  %v10143_v28 = vsel %vm1051_vm0, %v10141_v50, %v10142_v8  ;;  %v10149_v5 = vsel %vm1051_vm0, %v10144_v15, %v10148_v45 }
 0x9c3   : >> { %16796 = vmatprep.subr.bf16.mxu1 %v20588_v2  ;;  %16125 = vmatprep.mubr.bf16.mxu1 %v9584_v32 }
 0x9c6   : >> { %16804 = vmatpush3.bf16.msra.mxu1 %v20588_v2 }
 0x9c9   : >> { %16118 = vmatmul.mubr.bf16.vlgmr.msra.gmra.mrb[64].mxu0 %v10119_v20  ;;  %16126 = vmatmul.mubr.bf16.vlgmr.msra.gmra.mrb[8].mxu1 %v10139_v52 }
 0x9ca   : >> { %16121 = vmatprep.mubr.bf16.mxu0 %v20462_v38  ;;  %16129 = vmatprep.mubr.bf16.mxu1 %v10143_v28 }
 0x9d1   : >> { %16122 = vmatmul.mubr.bf16.gmra.mrb[68].mxu0 %v10129_v51  ;;  %16130 = vmatmul.mubr.bf16.gmra.mrb[12].mxu1 %v10149_v5 }
 0xa1c   : >> { %v15093_v29 = vpop.f32.mrb[0].mxu0 }
 0xa1d   : >> { %v15094_v14 = vpop.f32.mrb[1].mxu0 }
 0xa1e   : >> { %v15095_v1 = vadd.f32 %v15094_v14, %v15093_v29  ;;  %v15096_v57 = vpop.f32.mrb[2].mxu0 }
 0xa1f   : >> { %v15097_v2 = vpop.f32.mrb[3].mxu0 }
 0xa20   : >> { %v15098_v56 = vadd.f32 %v15097_v2, %v15096_v57  ;;  %v16810_v37 = vadd.f32 %v15095_v1, %v20662_v41 }
 0xa22   : >> { %v16820_v7 = vadd.f32 %v15098_v56, %v20662_v41 }
 0xa24   : >> { %v15099_v62 = vpop.f32.mrb[4].mxu0 }
 0xa25   : >> { %v15100_v55 = vpop.f32.mrb[5].mxu0 }
 0xa26   : >> { %v15101_v38 = vadd.f32 %v15100_v55, %v15099_v62  ;;  %v15102_v33 = vpop.f32.mrb[6].mxu0 }
 0xa27   : >> { %v15103_v58 = vpop.f32.mrb[7].mxu0 }
 0xa28   : >> { %v15104_v49 = vadd.f32 %v15103_v58, %v15102_v33  ;;  %v16805_v24 = vadd.f32 %v15101_v38, %v20662_v41 }
 0xa2a   : >> { %v16815_v27 = vadd.f32 %v15104_v49, %v20662_v41 }
 0xa2c   : >> { %v15105_v53 = vpop.f32.mrb[8].mxu0 }
 0xa2d   : >> { %v15106_v43 = vpop.f32.mrb[9].mxu0 }
 0xa2e   : >> { %v15107_v3 = vadd.f32 %v15106_v43, %v15105_v53  ;;  %v15108_v39 = vpop.f32.mrb[10].mxu0 }
 0xa2f   : >> { %v15109_v11 = vpop.f32.mrb[11].mxu0 }
 0xa30   : >> { %v15110_v9 = vadd.f32 %v15109_v11, %v15108_v39  ;;  %v16830_v45 = vadd.f32 %v15107_v3, %v20662_v41 }
 0xa32   : >> { %v16840_v2 = vadd.f32 %v15110_v9, %v20662_v41 }
 0xa34   : >> { %v15111_v61 = vpop.f32.mrb[12].mxu0 }
 0xa35   : >> { %v15112_v4 = vpop.f32.mrb[13].mxu0 }
 0xa36   : >> { %v15113_v12 = vadd.f32 %v15112_v4, %v15111_v61  ;;  %v15114_v31 = vpop.f32.mrb[14].mxu0 }
 0xa37   : >> { %v15115_v10 = vpop.f32.mrb[15].mxu0 }
 0xa38   : >> { %v15116_v42 = vadd.f32 %v15115_v10, %v15114_v31  ;;  %v16825_v43 = vadd.f32 %v15113_v12, %v20662_v41 }
 0xa3a   : >> { %v16835_v31 = vadd.f32 %v15116_v42, %v20662_v41 }
 0xa3c   : >> { %v15117_v63 = vpop.f32.mrb[16].mxu0  ;;  %v15173_v30 = vpop.f32.mrb[16].mxu1 }
 0xa3d   : >> { %v15118_v25 = vpop.f32.mrb[17].mxu0  ;;  %v15174_v26 = vpop.f32.mrb[17].mxu1 }
 0xa3e   : >> { %v20665_v6 = vadd.f32 %v15118_v25, %v15117_v63  ;;  %v15175_v60 = vadd.f32 %v15174_v26, %v15173_v30  ;;  %v15120_v16 = vpop.f32.mrb[18].mxu0  ;;  %v15176_v22 = vpop.f32.mrb[18].mxu1 }
 0xa3f   : >> { %v15121_v40 = vpop.f32.mrb[19].mxu0  ;;  %v15177_v47 = vpop.f32.mrb[19].mxu1 }
 0xa40   : >> { %v20668_v32 = vadd.f32 %v15121_v40, %v15120_v16  ;;  %v15178_v19 = vadd.f32 %v15177_v47, %v15176_v22  ;;  %v20670_v46 = vadd.f32 %v16810_v37, %v15175_v60  ;;  %v16849_v16 = vadd.f32 %v20665_v6, %v20662_v41 }
 0xa42   : >> { %v20672_v36 = vadd.f32 %v16820_v7, %v15178_v19 }
 0xa44   : >> { %v15123_v44 = vpop.f32.mrb[20].mxu0  ;;  %v15179_v13 = vpop.f32.mrb[20].mxu1 }
 0xa45   : >> { %v15124_v0 = vpop.f32.mrb[21].mxu0  ;;  %v15180_v23 = vpop.f32.mrb[21].mxu1 }
 0xa46   : >> { %v20675_v48 = vadd.f32 %v15124_v0, %v15123_v44  ;;  %v15181_v21 = vadd.f32 %v15180_v23, %v15179_v13  ;;  %v15126_v34 = vpop.f32.mrb[22].mxu0  ;;  %v15182_v35 = vpop.f32.mrb[22].mxu1  ;;  %v16857_v44 = vadd.f32 %v20668_v32, %v20662_v41 }
 0xa47   : >> { %v15127_v50 = vpop.f32.mrb[23].mxu0  ;;  %v15183_v8 = vpop.f32.mrb[23].mxu1 }
 0xa48   : >> { %v20678_v17 = vadd.f32 %v15127_v50, %v15126_v34  ;;  %v15184_v20 = vadd.f32 %v15183_v8, %v15182_v35  ;;  %v20680_v52 = vadd.f32 %v16805_v24, %v15181_v21  ;;  %v16845_v50 = vadd.f32 %v20675_v48, %v20662_v41 }
 0xa4a   : >> { %v20682_v59 = vadd.f32 %v16815_v27, %v15184_v20 }
 0xa4c   : >> { %v15129_v18 = vpop.f32.mrb[24].mxu0  ;;  %v15185_v28 = vpop.f32.mrb[24].mxu1 }
 0xa4d   : >> { %v15130_v54 = vpop.f32.mrb[25].mxu0  ;;  %v15186_v15 = vpop.f32.mrb[25].mxu1 }
 0xa4e   : >> { %v20685_v51 = vadd.f32 %v15130_v54, %v15129_v18  ;;  %v15187_v5 = vadd.f32 %v15186_v15, %v15185_v28  ;;  %v15132_v29 = vpop.f32.mrb[26].mxu0  ;;  %v15188_v14 = vpop.f32.mrb[26].mxu1  ;;  %v16853_v54 = vadd.f32 %v20678_v17, %v20662_v41 }
 0xa4f   : >> { %v15133_v1 = vpop.f32.mrb[27].mxu0  ;;  %v15189_v57 = vpop.f32.mrb[27].mxu1 }
 0xa50   : >> { %v20688_v56 = vadd.f32 %v15133_v1, %v15132_v29  ;;  %v15190_v62 = vadd.f32 %v15189_v57, %v15188_v14  ;;  %v20690_v55 = vadd.f32 %v16830_v45, %v15187_v5  ;;  %v16865_v48 = vadd.f32 %v20685_v51, %v20662_v41 }
 0xa52   : >> { %v20692_v38 = vadd.f32 %v16840_v2, %v15190_v62  ;;  %v16873_v17 = vadd.f32 %v20688_v56, %v20662_v41 }
 0xa54   : >> { %v15135_v33 = vpop.f32.mrb[28].mxu0  ;;  %v15191_v58 = vpop.f32.mrb[28].mxu1 }
 0xa55   : >> { %v15136_v49 = vpop.f32.mrb[29].mxu0  ;;  %v15192_v53 = vpop.f32.mrb[29].mxu1 }
 0xa56   : >> { %v20695_v3 = vadd.f32 %v15136_v49, %v15135_v33  ;;  %v15193_v39 = vadd.f32 %v15192_v53, %v15191_v58  ;;  %v15138_v11 = vpop.f32.mrb[30].mxu0  ;;  %v15194_v61 = vpop.f32.mrb[30].mxu1 }
 0xa57   : >> { %v15139_v4 = vpop.f32.mrb[31].mxu0  ;;  %v15195_v9 = vpop.f32.mrb[31].mxu1 }
 0xa58   : >> { %v20698_v10 = vadd.f32 %v15139_v4, %v15138_v11  ;;  %v15196_v63 = vadd.f32 %v15195_v9, %v15194_v61  ;;  %v20700_v30 = vadd.f32 %v16825_v43, %v15193_v39  ;;  %v16861_v51 = vadd.f32 %v20695_v3, %v20662_v41 }
 0xa5a   : >> { %v20702_v25 = vadd.f32 %v16835_v31, %v15196_v63  ;;  %v16869_v56 = vadd.f32 %v20698_v10, %v20662_v41 }
 0xa5c   : >> { %v15197_v26 = vpop.f32.mrb[32].mxu1  ;;  %v15253_v37 = vpop.f32.mrb[32].mxu0 }
 0xa5d   : >> { %v15198_v60 = vpop.f32.mrb[33].mxu1  ;;  %v15254_v12 = vpop.f32.mrb[33].mxu0 }
 0xa5e   : >> { %v15199_v22 = vadd.f32 %v15198_v60, %v15197_v26  ;;  %v20706_v40 = vadd.f32 %v15254_v12, %v15253_v37  ;;  %v15200_v47 = vpop.f32.mrb[34].mxu1  ;;  %v15256_v7 = vpop.f32.mrb[34].mxu0 }
 0xa5f   : >> { %v15201_v42 = vpop.f32.mrb[35].mxu1  ;;  %v15257_v19 = vpop.f32.mrb[35].mxu0 }
 0xa60   : >> { %v20710_v13 = vadd.f32 %v16849_v16, %v15199_v22  ;;  %v15202_v0 = vadd.f32 %v15201_v42, %v15200_v47  ;;  %v20712_v23 = vadd.f32 %v15257_v19, %v15256_v7 }
 0xa62   : >> { %v20714_v24 = vadd.f32 %v16857_v44, %v15202_v0 }
 0xa64   : >> { %v15203_v21 = vpop.f32.mrb[36].mxu1  ;;  %v15259_v34 = vpop.f32.mrb[36].mxu0 }
 0xa65   : >> { %v15204_v6 = vpop.f32.mrb[37].mxu1  ;;  %v15260_v35 = vpop.f32.mrb[37].mxu0 }
 0xa66   : >> { %v15205_v8 = vadd.f32 %v15204_v6, %v15203_v21  ;;  %v15261_v27 = vadd.f32 %v15260_v35, %v15259_v34  ;;  %v15206_v20 = vpop.f32.mrb[38].mxu1  ;;  %v15262_v18 = vpop.f32.mrb[38].mxu0 }
 0xa67   : >> { %v15207_v28 = vpop.f32.mrb[39].mxu1  ;;  %v15263_v32 = vpop.f32.mrb[39].mxu0 }
 0xa68   : >> { %v20720_v15 = vadd.f32 %v16845_v50, %v15205_v8  ;;  %v15208_v45 = vadd.f32 %v15207_v28, %v15206_v20  ;;  %v15264_v5 = vadd.f32 %v15263_v32, %v15262_v18 }
 0xa6a   : >> { %v20722_v29 = vadd.f32 %v16853_v54, %v15208_v45 }
 0xa6c   : >> { %v15209_v14 = vpop.f32.mrb[40].mxu1  ;;  %v15265_v1 = vpop.f32.mrb[40].mxu0 }
 0xa6d   : >> { %v15210_v57 = vpop.f32.mrb[41].mxu1  ;;  %v15266_v2 = vpop.f32.mrb[41].mxu0 }
 0xa6e   : >> { %v15211_v62 = vadd.f32 %v15210_v57, %v15209_v14  ;;  %v15267_v33 = vadd.f32 %v15266_v2, %v15265_v1  ;;  %v15212_v58 = vpop.f32.mrb[42].mxu1  ;;  %v15268_v49 = vpop.f32.mrb[42].mxu0 }
 0xa6f   : >> { %v15213_v53 = vpop.f32.mrb[43].mxu1  ;;  %v15269_v43 = vpop.f32.mrb[43].mxu0 }
 0xa70   : >> { %v20728_v39 = vadd.f32 %v16865_v48, %v15211_v62  ;;  %v15214_v11 = vadd.f32 %v15213_v53, %v15212_v58  ;;  %v15270_v61 = vadd.f32 %v15269_v43, %v15268_v49 }
 0xa72   : >> { %v20730_v4 = vadd.f32 %v16873_v17, %v15214_v11 }
 0xa74   : >> { %v15215_v9 = vpop.f32.mrb[44].mxu1  ;;  %v15271_v31 = vpop.f32.mrb[44].mxu0 }
 0xa75   : >> { %v15216_v63 = vpop.f32.mrb[45].mxu1  ;;  %v15272_v26 = vpop.f32.mrb[45].mxu0 }
 0xa76   : >> { %v15217_v37 = vadd.f32 %v15216_v63, %v15215_v9  ;;  %v15273_v60 = vadd.f32 %v15272_v26, %v15271_v31  ;;  %v15218_v12 = vpop.f32.mrb[46].mxu1  ;;  %v15274_v16 = vpop.f32.mrb[46].mxu0 }
 0xa77   : >> { %v15219_v22 = vpop.f32.mrb[47].mxu1  ;;  %v15275_v47 = vpop.f32.mrb[47].mxu0 }
 0xa78   : >> { %v16862_v7 = vadd.f32 %v16861_v51, %v15217_v37  ;;  %v15220_v42 = vadd.f32 %v15219_v22, %v15218_v12  ;;  %v15276_v19 = vadd.f32 %v15275_v47, %v15274_v16 }
 0xa7a   : >> { %v16870_v44 = vadd.f32 %v16869_v56, %v15220_v42 }
 0xa7c   : >> { %v16087_v0 = vpop.f32.mrb[0].mxu1  ;;  %v15277_v21 = vpop.f32.mrb[48].mxu0 }
 0xa7d   : >> { %v16807_v34 = vadd.f32 %v20680_v52, %v16087_v0  ;;  %v9923_v6 = vpop.f32.mrb[1].mxu1  ;;  %v15278_v35 = vpop.f32.mrb[49].mxu0 }
 0xa7e   : >> { %v16812_v3 = vadd.f32 %v20670_v46, %v9923_v6  ;;  %v15279_v50 = vadd.f32 %v15278_v35, %v15277_v21  ;;  %v16088_v8 = vpop.f32.mrb[2].mxu1  ;;  %v15280_v20 = vpop.f32.mrb[50].mxu0 }
 0xa7f   : >> { %v16817_v18 = vadd.f32 %v20682_v59, %v16088_v8  ;;  %v9926_v28 = vpop.f32.mrb[3].mxu1  ;;  %v15281_v32 = vpop.f32.mrb[51].mxu0  ;;  %v16808_v41 = vadd.f32 %v16807_v34, %v15261_v27 }
 0xa80   : >> { %v16822_v10 = vadd.f32 %v20672_v36, %v9926_v28  ;;  %v15282_v54 = vadd.f32 %v15281_v32, %v15280_v20  ;;  %v16813_v45 = vadd.f32 %v16812_v3, %v20706_v40  ;;  %v16851_v14 = vadd.f32 %v20710_v13, %v15279_v50 }
 0xa81   : >> { %v16818_v52 = vadd.f32 %v16817_v18, %v15264_v5 }
 0xa82   : >> { %v20743_v1 = vadd.f32 %v16822_v10, %v20712_v23  ;;  %v16859_v46 = vadd.f32 %v20714_v24, %v15282_v54 }
 0xa84   : >> { %v16091_v57 = vpop.f32.mrb[4].mxu1  ;;  %v15283_v2 = vpop.f32.mrb[52].mxu0 }
 0xa85   : >> { %v16827_v59 = vadd.f32 %v20700_v30, %v16091_v57  ;;  %v9939_v48 = vpop.f32.mrb[5].mxu1  ;;  %v15284_v62 = vpop.f32.mrb[53].mxu0 }
 0xa86   : >> { %v16832_v27 = vadd.f32 %v20690_v55, %v9939_v48  ;;  %v15285_v36 = vadd.f32 %v15284_v62, %v15283_v2  ;;  %v16092_v58 = vpop.f32.mrb[6].mxu1  ;;  %v15286_v49 = vpop.f32.mrb[54].mxu0 }
 0xa87   : >> { %v16837_v40 = vadd.f32 %v20702_v25, %v16092_v58  ;;  %v9942_v13 = vpop.f32.mrb[7].mxu1  ;;  %v15287_v5 = vpop.f32.mrb[55].mxu0  ;;  %v20749_v53 = vadd.f32 %v16827_v59, %v15273_v60 }
 0xa88   : >> { %v16842_v23 = vadd.f32 %v20692_v38, %v9942_v13  ;;  %v15288_v24 = vadd.f32 %v15287_v5, %v15286_v49  ;;  %v16847_v43 = vadd.f32 %v20720_v15, %v15285_v36  ;;  %v20753_v17 = vadd.f32 %v16832_v27, %v15267_v33 }
 0xa89   : >> { %v20755_v30 = vadd.f32 %v16837_v40, %v15276_v19 }
 0xa8a   : >> { %v16855_v55 = vadd.f32 %v20722_v29, %v15288_v24  ;;  %v20758_v11 = vadd.f32 %v16842_v23, %v15270_v61 }
 0xa8c   : >> { %v15289_v9 = vpop.f32.mrb[56].mxu0 }
 0xa8d   : >> { %v15290_v31 = vpop.f32.mrb[57].mxu0 }
 0xa8e   : >> { %v15291_v25 = vadd.f32 %v15290_v31, %v15289_v9  ;;  %v15292_v63 = vpop.f32.mrb[58].mxu0 }
 0xa8f   : >> { %v15293_v26 = vpop.f32.mrb[59].mxu0 }
 0xa90   : >> { %v15294_v51 = vadd.f32 %v15293_v26, %v15292_v63  ;;  %v20761_v37 = vadd.f32 %v20728_v39, %v15291_v25 }
 0xa92   : >> { %v20764_v38 = vadd.f32 %v20730_v4, %v15294_v51 }
 0xa94   : >> { %v15295_v15 = vpop.f32.mrb[60].mxu0 }
 0xa95   : >> { %v15296_v33 = vpop.f32.mrb[61].mxu0 }
 0xa96   : >> { %v15297_v60 = vadd.f32 %v15296_v33, %v15295_v15  ;;  %v15298_v12 = vpop.f32.mrb[62].mxu0 }
 0xa97   : >> { %v15299_v16 = vpop.f32.mrb[63].mxu0 }
 0xa98   : >> { %v15300_v29 = vadd.f32 %v15299_v16, %v15298_v12  ;;  %v16863_v61 = vadd.f32 %v16862_v7, %v15297_v60 }
 0xa9a   : >> { %v16871_v22 = vadd.f32 %v16870_v44, %v15300_v29 }
 0xa9c   : >> { %v16119_v47 = vpop.f32.mrb[64].mxu0  ;;  %v16127_v56 = vpop.f32.mrb[8].mxu1 }
 0xa9d   : >> { %v16809_v42 = vadd.f32 %v16808_v41, %v16119_v47  ;;  %v16848_v19 = vadd.f32 %v16847_v43, %v16127_v56  ;;  %v10482_v0 = vpop.f32.mrb[65].mxu0  ;;  %v10514_v21 = vpop.f32.mrb[9].mxu1 }
 0xa9e   : >> { %v16814_v34 = vadd.f32 %v16813_v45, %v10482_v0  ;;  %v16852_v39 = vadd.f32 %v16851_v14, %v10514_v21  ;;  %v16120_v6 = vpop.f32.mrb[66].mxu0  ;;  %v16128_v35 = vpop.f32.mrb[10].mxu1 }
 0xa9f   : >> { %vm10563_vm3 = vcmp.gt.f32.partialorder %v16809_v42, 0.0  ;;  %v10579_v4 = vmul.f32 0.1, %v16809_v42  ;;  %vm10571_vm4 = vcmp.gt.f32.partialorder %v16848_v19, 0.0  ;;  %v10587_v3 = vmul.f32 0.1, %v16848_v19 }
 0xaa0   : >> { %vm10561_vm5 = vcmp.gt.f32.partialorder %v16814_v34, 0.0  ;;  %v10577_v50 = vmul.f32 0.1, %v16814_v34  ;;  %vm10569_vm6 = vcmp.gt.f32.partialorder %v16852_v39, 0.0  ;;  %v10585_v8 = vmul.f32 0.1, %v16852_v39 }
 0xaa1   : >> { %v16819_v7 = vadd.f32 %v16818_v52, %v16120_v6  ;;  %v16856_v44 = vadd.f32 %v16855_v55, %v16128_v35  ;;  %v10485_v20 = vpop.f32.mrb[67].mxu0  ;;  %v10517_v18 = vpop.f32.mrb[11].mxu1  ;;  %v10595_v28 = vsel %vm10563_vm3, %v16809_v42, %v10579_v4  ;;  %v10603_v32 = vsel %vm10571_vm4, %v16848_v19, %v10587_v3 }
 0xaa2   : >> { %v16824_v41 = vadd.f32 %v20743_v1, %v10485_v20  ;;  %v16860_v10 = vadd.f32 %v16859_v46, %v10517_v18  ;;  %v10593_v2 = vsel %vm10561_vm5, %v16814_v34, %v10577_v50  ;;  %v10601_v52 = vsel %vm10569_vm6, %v16852_v39, %v10585_v8 }
 0xaa3   : >> { %vm10564_vm7 = vcmp.gt.f32.partialorder %v16819_v7, 0.0  ;;  %v10580_v54 = vmul.f32 0.1, %v16819_v7  ;;  %vm10572_vm8 = vcmp.gt.f32.partialorder %v16856_v44, 0.0  ;;  %v10588_v45 = vmul.f32 0.1, %v16856_v44 }
 0xaa4   : >> { %vm10562_vm9 = vcmp.gt.f32.partialorder %v16824_v41, 0.0  ;;  %v10578_v14 = vmul.f32 0.1, %v16824_v41  ;;  %vm10570_vm10 = vcmp.gt.f32.partialorder %v16860_v10, 0.0  ;;  %v10586_v57 = vmul.f32 0.1, %v16860_v10 }
 0xaa5   : >> { %v10596_v59 = vsel %vm10564_vm7, %v16819_v7, %v10580_v54  ;;  %v10604_v48 = vsel %vm10572_vm8, %v16856_v44, %v10588_v45  ;;  %v16123_v62 = vpop.f32.mrb[68].mxu0  ;;  %v16131_v27 = vpop.f32.mrb[12].mxu1 }
 0xaa6   : >> { %v10610_v36 = vpack.c.bf16 %v10596_v59, %v10595_v28  ;;  %v10614_v1 = vpack.c.bf16 %v10604_v48, %v10603_v32  ;;  %v10594_v46 = vsel %vm10562_vm9, %v16824_v41, %v10578_v14  ;;  %v10602_v58 = vsel %vm10570_vm10, %v16860_v10, %v10586_v57  ;;  %v10498_v49 = vpop.f32.mrb[69].mxu0  ;;  %v10530_v40 = vpop.f32.mrb[13].mxu1 }
 0xaa7   : >> { %v10609_v13 = vpack.c.bf16 %v10594_v46, %v10593_v2  ;;  %v10613_v5 = vpack.c.bf16 %v10602_v58, %v10601_v52  ;;  %v16829_v23 = vadd.f32 %v20749_v53, %v16123_v62  ;;  %v16864_v24 = vadd.f32 %v16863_v61, %v16131_v27  ;;  %v16124_v43 = vpop.f32.mrb[70].mxu0  ;;  %v16132_v55 = vpop.f32.mrb[14].mxu1 }
 0xaa8   : >> { %13596 = vst [vmem:[%s20772_s7 + $0x210] sm:$0xff] %v10610_v36  ;;  %13600 = vst [vmem:[%s20772_s7 + $0x250] sm:$0xff] %v10614_v1  ;;  %v16834_v9 = vadd.f32 %v20753_v17, %v10498_v49  ;;  %v16868_v31 = vadd.f32 %v20761_v37, %v10530_v40  ;;  %v16839_v25 = vadd.f32 %v20755_v30, %v16124_v43  ;;  %v10501_v53 = vpop.f32.mrb[71].mxu0  ;;  %v10533_v26 = vpop.f32.mrb[15].mxu1 }
 0xaa9   : >> { %v16872_v63 = vadd.f32 %v16871_v22, %v16132_v55  ;;  %13595 = vst [vmem:[%s20772_s7 + $0x208] sm:$0xff] %v10609_v13  ;;  %13599 = vst [vmem:[%s20772_s7 + $0x248] sm:$0xff] %v10613_v5  ;;  %v10583_v51 = vmul.f32 0.1, %v16829_v23  ;;  %vm10567_vm11 = vcmp.gt.f32.partialorder %v16829_v23, 0.0  ;;  %vm10575_vm12 = vcmp.gt.f32.partialorder %v16864_v24, 0.0 }
 0xaaa   : >> { %v10591_v15 = vmul.f32 0.1, %v16864_v24  ;;  %vm10565_vm13 = vcmp.gt.f32.partialorder %v16834_v9, 0.0  ;;  %vm10568_vm14 = vcmp.gt.f32.partialorder %v16839_v25, 0.0  ;;  %v10584_v33 = vmul.f32 0.1, %v16839_v25 }
 0xaab   : >> { %v10581_v60 = vmul.f32 0.1, %v16834_v9  ;;  %vm10573_vm15 = vcmp.gt.f32.partialorder %v16868_v31, 0.0  ;;  %vm10576_vm2 = vcmp.gt.f32.partialorder %v16872_v63, 0.0  ;;  %v10592_v17 = vmul.f32 0.1, %v16872_v63 }
 0xaac   : >> { %v10599_v37 = vsel %vm10567_vm11, %v16829_v23, %v10583_v51  ;;  %v10600_v30 = vsel %vm10568_vm14, %v16839_v25, %v10584_v33  ;;  %v16844_v12 = vadd.f32 %v20758_v11, %v10501_v53  ;;  %v16876_v16 = vadd.f32 %v20764_v38, %v10533_v26 }
 0xaad   : >> { %v10607_v29 = vsel %vm10575_vm12, %v16864_v24, %v10591_v15  ;;  %v10589_v61 = vmul.f32 0.1, %v16868_v31  ;;  %v10612_v22 = vpack.c.bf16 %v10600_v30, %v10599_v37  ;;  %v10608_v47 = vsel %vm10576_vm2, %v16872_v63, %v10592_v17 }
 0xaae   : >> { %v10616_v56 = vpack.c.bf16 %v10608_v47, %v10607_v29  ;;  %vm10566_vm3 = vcmp.gt.f32.partialorder %v16844_v12, 0.0  ;;  %v10582_v42 = vmul.f32 0.1, %v16844_v12  ;;  %vm10574_vm4 = vcmp.gt.f32.partialorder %v16876_v16, 0.0  ;;  %8874 = sbr.rel (!%p8872_p8) target bundleno = 2343 (0x927), region = 247 }
 0xaaf   : >> { %13598 = vst [vmem:[%s20772_s7 + $0x230] sm:$0xff] %v10612_v22  ;;  %v10590_v19 = vmul.f32 0.1, %v16876_v16  ;;  %v10597_v0 = vsel %vm10565_vm13, %v16834_v9, %v10581_v60  ;;  %v10605_v11 = vsel %vm10573_vm15, %v16868_v31, %v10589_v61 }
 0xab0   : >> { %13602 = vst [vmem:[%s20772_s7 + $0x270] sm:$0xff] %v10616_v56  ;;  %v10598_v21 = vsel %vm10566_vm3, %v16844_v12, %v10582_v42 }
 0xab1   : >> { %v10611_v34 = vpack.c.bf16 %v10598_v21, %v10597_v0  ;;  %v10606_v38 = vsel %vm10574_vm4, %v16876_v16, %v10590_v19 }
 0xab2   : >> { %v10615_v39 = vpack.c.bf16 %v10606_v38, %v10605_v11 }
 0xab3   : >> { %13597 = vst [vmem:[%s20772_s7 + $0x228] sm:$0xff] %v10611_v34 }
 0xab4   : >> { %13601 = vst [vmem:[%s20772_s7 + $0x268] sm:$0xff] %v10615_v39 }
 0xab5 LB: >> { %v17576_v6 = vld [vmem:[%s21556_s3 + $0x40] sm:$0xff]   ;;  %v17579_v3 = vld [vmem:[%s21556_s3 + $0x48] sm:$0xff]   ;;  %v17582_v7 = vld [vmem:[%s21556_s3 + $0x50] sm:$0xff]   ;;  %s13873_s22 = sshll.u32 %s17924_s29, 7  ;;  %vm12452_vm6 = vcmask 31744   ;;  %s10632_s29 = sadd.s32 1, %s17924_s29   ;;  %s17924_s29 = sphi %s20792_s29, %s10632_s29  }
 0xab6   : >> { %v17577_v35 = vld [vmem:[%s21556_s3 + $0x80] sm:$0xff]   ;;  %15317 = vmatprep.subr.bf16.mxu0 %v17576_v6  ;;  %v17580_v50 = vld [vmem:[%s21556_s3 + $0x88] sm:$0xff]   ;;  %v17583_v44 = vld [vmem:[%s21556_s3 + $0x90] sm:$0xff]   ;;  %s20869_s6 = scalar_lea.vmem [#allocation2], %s13873_s22  ;;  %p10629_p10 = scmp.ge.s32.totalorder %s10632_s29, 8  }
 0xab7   : >> { %v17578_v4 = vld [vmem:[%s21556_s3] sm:$0xff]   ;;  %16133 = vmatprep.subr.bf16.mxu1 %v17577_v35  ;;  %v17581_v8 = vld [vmem:[%s21556_s3 + $0x8] sm:$0xff]   ;;  %v17584_v20 = vld [vmem:[%s21556_s3 + $0x10] sm:$0xff]  }
 0xab8   : >> { %15318 = vmatpush3.bf16.msra.mxu0 %v17578_v4  ;;  %16134 = vmatpush3.bf16.msra.mxu1 %v17577_v35  ;;  %v17585_v18 = vld [vmem:[%s21556_s3 + $0x58] sm:$0xff]   ;;  %v17588_v41 = vld [vmem:[%s21556_s3 + $0x60] sm:$0xff]   ;;  %v17591_v45 = vld [vmem:[%s21556_s3 + $0x68] sm:$0xff]  }
 0xab9   : >> { %15319 = vmatprep.subr.bf16.mxu0 %v17579_v3  ;;  %16135 = vmatprep.subr.bf16.mxu1 %v17580_v50  ;;  %v17586_v28 = vld [vmem:[%s21556_s3 + $0x98] sm:$0xff]   ;;  %v17589_v10 = vld [vmem:[%s21556_s3 + $0xa0] sm:$0xff]   ;;  %v17592_v14 = vld [vmem:[%s21556_s3 + $0xa8] sm:$0xff]  }
 0xaba   : >> { %v17587_v32 = vld [vmem:[%s21556_s3 + $0x18] sm:$0xff]   ;;  %v17590_v54 = vld [vmem:[%s21556_s3 + $0x20] sm:$0xff]   ;;  %v17593_v57 = vld [vmem:[%s21556_s3 + $0x28] sm:$0xff]  }
 0xabb   : >> { %v17594_v2 = vld [vmem:[%s21556_s3 + $0x70] sm:$0xff]   ;;  %v17597_v48 = vld [vmem:[%s21556_s3 + $0x78] sm:$0xff]   ;;  %v13608_v27 = vld [vmem:[%s20869_s6 + $0x1e8] sm:$0xff] }
 0xabc   : >> { %15320 = vmatpush3.bf16.msra.mxu0 %v17581_v8  ;;  %16136 = vmatpush3.bf16.msra.mxu1 %v17580_v50  ;;  %v17595_v52 = vld [vmem:[%s21556_s3 + $0xb0] sm:$0xff]   ;;  %v17598_v62 = vld [vmem:[%s21556_s3 + $0xb8] sm:$0xff]   ;;  %v13607_v1 = vld [vmem:[%s20869_s6 + $0x1e0] sm:$0x80]  ;;  %v10666_v46 = vshll.u32 %v13608_v27, 16  ;;  %v10663_v58 = vshrl.u32 %v13608_v27, 16 }
 0xabd   : >> { %15321 = vmatprep.subr.bf16.mxu0 %v17582_v7  ;;  %16137 = vmatprep.subr.bf16.mxu1 %v17583_v44  ;;  %v17596_v59 = vld [vmem:[%s21556_s3 + $0x30] sm:$0xff]   ;;  %v10659_v40 = vshrl.u32 %v13607_v1, 16  ;;  %v13619_v13 = vld [vmem:[%s20869_s6 + $0x1f8] sm:$0x1]  ;;  %v17600_v63 = vld [vmem:[%s21556_s3 + $0x100] sm:$0xff]  }
 0xabe   : >> { %v13609_v36 = vld [vmem:[%s20869_s6 + $0x1f0] sm:$0xff]  ;;  %11023 = vmatprep.mubr.bf16.mxu0 %v13608_v27  ;;  %v10757_v23 = vshll.u32 %v13619_v13, 16  ;;  %v17599_v24 = vld [vmem:[%s21556_s3 + $0x38] sm:$0xff]   ;;  %v10751_v43 = vrot.slane %v10666_v46, 1  ;;  %v10665_v31 = vrot.slane %v10663_v58, 7  ;;  %v17601_v15 = vld [vmem:[%s21556_s3 + $0x1c0] sm:$0xff]  }
 0xabf   : >> { %v10674_v49 = vshll.u32 %v13609_v36, 16  ;;  %v10671_v5 = vshrl.u32 %v13609_v36, 16  ;;  %v10661_v9 = vrot.slane %v10659_v40, 7  ;;  %v17602_v60 = vld [vmem:[%s21556_s3 + $0xc0] sm:$0xff]   ;;  %v20894_v12 = vld [vmem:[%s20869_s6 + $0x208] sm:$0xff]  ;;  %v20900_v61 = vld [vmem:[%s20869_s6 + $0x210] sm:$0xff] }
 0xac0   : >> { %15322 = vmatpush3.bf16.msra.mxu0 %v17584_v20  ;;  %16138 = vmatpush3.bf16.msra.mxu1 %v17583_v44  ;;  %v10759_v25 = vrot.slane %v10757_v23, 1  ;;  %v10752_v53 = vor.u32 %v10751_v43, %v10663_v58  ;;  %v10668_v26 = vor.u32 %v10666_v46, %v10665_v31  ;;  %v17603_v30 = vld [vmem:[%s21556_s3 + $0x180] sm:$0xff]   ;;  %v17604_v29 = vld [vmem:[%s21556_s3 + $0x108] sm:$0xff]   ;;  %v10683_v22 = vshrl.u32 %v20894_v12, 16  ;;  %v13620_v56 = vld [vmem:[%s20869_s6 + $0x218] sm:$0x1] }
 0xac1   : >> { %15323 = vmatprep.subr.bf16.mxu0 %v17585_v18  ;;  %16139 = vmatprep.subr.bf16.mxu1 %v17586_v28  ;;  %v10753_v55 = vrot.slane %v10674_v49, 1  ;;  %v10673_v16 = vrot.slane %v10671_v5, 7  ;;  %v10686_v47 = vshll.u32 %v20894_v12, 16  ;;  %v17605_v42 = vld [vmem:[%s21556_s3 + $0xc8] sm:$0xff]   ;;  %v10694_v19 = vshll.u32 %v20900_v61, 16  ;;  %v17606_v38 = vld [vmem:[%s21556_s3 + $0x110] sm:$0xff]  }
 0xac2   : >> { %v10669_v17 = vsel %vm958_vm1, %v10661_v9, %v10668_v26  ;;  %v10691_v0 = vshrl.u32 %v20900_v61, 16  ;;  %v10767_v21 = vshll.u32 %v13620_v56, 16  ;;  %v17607_v11 = vld [vmem:[%s21556_s3 + $0x1c8] sm:$0xff]   ;;  %v17608_v7 = vld [vmem:[%s21556_s3 + $0xd0] sm:$0xff]   ;;  %v17610_v18 = vld [vmem:[%s21556_s3 + $0x118] sm:$0xff]  }
 0xac3   : >> { %v10755_v51 = vor.u32 %v10753_v55, %v10671_v5  ;;  %v10754_v33 = vsel %vm1051_vm0, %v10752_v53, %v10753_v55  ;;  %v10761_v34 = vrot.slane %v10686_v47, 1  ;;  %v10763_v39 = vrot.slane %v10694_v19, 1  ;;  %v17609_v50 = vld [vmem:[%s21556_s3 + $0x188] sm:$0xff]   ;;  %v17612_v58 = vld [vmem:[%s21556_s3 + $0x120] sm:$0xff]   ;;  %v17615_v5 = vld [vmem:[%s21556_s3 + $0x190] sm:$0xff]  }
 0xac4   : >> { %15324 = vmatpush3.bf16.msra.mxu0 %v17587_v32  ;;  %16140 = vmatpush3.bf16.msra.mxu1 %v17586_v28  ;;  %v10676_v6 = vor.u32 %v10674_v49, %v10673_v16  ;;  %v10769_v35 = vrot.slane %v10767_v21, 1  ;;  %v20937_v28 = vld [vmem:[%s20869_s6 + $0x228] sm:$0xff]  ;;  %v20940_v32 = vld [vmem:[%s20869_s6 + $0x230] sm:$0xff]  ;;  %v17614_v55 = vld [vmem:[%s21556_s3 + $0xe0] sm:$0xff]  }
 0xac5   : >> { %15325 = vmatprep.subr.bf16.mxu0 %v17588_v41  ;;  %16141 = vmatprep.subr.bf16.mxu1 %v17589_v10  ;;  %v10760_v37 = vsel %vm1051_vm0, %v10755_v51, %v10759_v25  ;;  %v10762_v4 = vor.u32 %v10761_v34, %v10683_v22  ;;  %v20918_v3 = vor.u32 %v10763_v39, %v10691_v0  ;;  %v20942_v41 = vrot.slane %v10683_v22, 7  ;;  %v20988_v9 = vld [vmem:[%s20869_s6 + $0x248] sm:$0xff]  ;;  %v13622_v51 = vld [vmem:[%s20869_s6 + $0x258] sm:$0x1]  ;;  %v17618_v16 = vld [vmem:[%s21556_s3 + $0x130] sm:$0xff]  }
 0xac6   : >> { %16149 = vmatprep.mubr.bf16.mxu1 %v10754_v33  ;;  %v10677_v44 = vsel %vm958_vm1, %v10665_v31, %v10676_v6  ;;  %v10693_v31 = vrot.slane %v10691_v0, 7  ;;  %v17616_v25 = vld [vmem:[%s21556_s3 + $0x128] sm:$0xff]   ;;  %v10723_v53 = vshrl.u32 %v20988_v9, 16  ;;  %v10726_v26 = vshll.u32 %v20988_v9, 16  ;;  %v17621_v0 = vld [vmem:[%s21556_s3 + $0x198] sm:$0xff]  }
 0xac7   : >> { %v20924_v8 = vsel %vm1051_vm0, %v10762_v4, %v10763_v39  ;;  %v10770_v20 = vsel %vm1051_vm0, %v20918_v3, %v10769_v35  ;;  %v20962_v46 = vor.u32 %v10686_v47, %v20942_v41  ;;  %v13613_v39 = vld [vmem:[%s20869_s6 + $0x220] sm:$0x80] }
 0xac8   : >> { %15326 = vmatpush3.bf16.msra.mxu0 %v17590_v54  ;;  %16142 = vmatpush3.bf16.msra.mxu1 %v17589_v10  ;;  %v10703_v10 = vshrl.u32 %v20937_v28, 16  ;;  %v10706_v54 = vshll.u32 %v20937_v28, 16  ;;  %v10696_v22 = vor.u32 %v10694_v19, %v10693_v31  ;;  %v17620_v19 = vld [vmem:[%s21556_s3 + $0xf0] sm:$0xff]   ;;  %v13649_v35 = vld [vmem:[%s20869_s6 + $0x200] sm:$0x80]  ;;  %v10699_v4 = vshrl.u32 %v13613_v39, 16 }
 0xac9   : >> { %15327 = vmatprep.subr.bf16.mxu0 %v17591_v45  ;;  %16143 = vmatprep.subr.bf16.mxu1 %v17592_v14  ;;  %v10714_v45 = vshll.u32 %v20940_v32, 16  ;;  %v13658_v39 = vld [vmem:[%s20869_s6 + $0x260] sm:$0x80] }
 0xaca   : >> { %v10705_v6 = vrot.slane %v10703_v10, 7 }
 0xacc   : >> { %15328 = vmatpush3.bf16.msra.mxu0 %v17593_v57  ;;  %16144 = vmatpush3.bf16.msra.mxu1 %v17592_v14  ;;  %v13610_v14 = vld [vmem:[%s20869_s6 + $0x200] sm:$0x80]  ;;  %v10711_v57 = vshrl.u32 %v20940_v32, 16 }
 0xacd   : >> { %15329 = vmatprep.subr.bf16.mxu0 %v17594_v2  ;;  %16145 = vmatprep.subr.bf16.mxu1 %v17595_v52  ;;  %v17611_v2 = vld [vmem:[%s21556_s3 + $0xd8] sm:$0xff]  }
 0xad0   : >> { %15330 = vmatpush3.bf16.msra.mxu0 %v17596_v59  ;;  %16146 = vmatpush3.bf16.msra.mxu1 %v17595_v52  ;;  %v10679_v52 = vshrl.u32 %v13610_v14, 16  ;;  %v13621_v59 = vld [vmem:[%s20869_s6 + $0x238] sm:$0x1]  ;;  %v17624_v14 = vld [vmem:[%s21556_s3 + $0x140] sm:$0xff]  }
 0xad1   : >> { %15331 = vmatprep.subr.bf16.mxu0 %v17597_v48  ;;  %16147 = vmatprep.subr.bf16.mxu1 %v17598_v62  ;;  %v10771_v48 = vrot.slane %v10706_v54, 1  ;;  %v10777_v27 = vshll.u32 %v13621_v59, 16  ;;  %v17627_v59 = vld [vmem:[%s21556_s3 + $0x148] sm:$0xff]  }
 0xad2   : >> { %v10681_v1 = vrot.slane %v10679_v52, 7 }
 0xad3   : >> { %v10772_v49 = vor.u32 %v10771_v48, %v10703_v10  ;;  %v10779_v13 = vrot.slane %v10777_v27, 1  ;;  %v21056_v10 = vor.u32 %v10706_v54, %v10705_v6  ;;  %v17629_v48 = vld [vmem:[%s21556_s3 + $0x1a8] sm:$0xff]   ;;  %v17631_v27 = vld [vmem:[%s21556_s3 + $0x1f0] sm:$0xff]  }
 0xad4   : >> { %15332 = vmatpush3.bf16.msra.mxu0 %v17599_v24  ;;  %16148 = vmatpush3.bf16.msra.mxu1 %v17598_v62  ;;  %v10773_v62 = vrot.slane %v10714_v45, 1  ;;  %v10689_v24 = vsel %vm958_vm1, %v10681_v1, %v20962_v46  ;;  %v17630_v1 = vld [vmem:[%s21556_s3 + $0x150] sm:$0xff]  }
 0xad5   : >> { %15397 = vmatprep.subr.bf16.mxu1 %v17600_v63  ;;  %15477 = vmatprep.subr.bf16.mxu0 %v17601_v15  ;;  %v20994_v63 = vld [vmem:[%s20869_s6 + $0x250] sm:$0xff]  ;;  %v17617_v15 = vld [vmem:[%s21556_s3 + $0xe8] sm:$0xff]  }
 0xad6   : >> { %v20971_v40 = vor.u32 %v10773_v62, %v10711_v57  ;;  %v20977_v23 = vsel %vm1051_vm0, %v10772_v49, %v10773_v62  ;;  %v10734_v33 = vshll.u32 %v20994_v63, 16  ;;  %v13616_v62 = vld [vmem:[%s20869_s6 + $0x240] sm:$0x80]  ;;  %v10725_v49 = vrot.slane %v10723_v53, 7 }
 0xad7   : >> { %11024 = vmatmul.mubr.bf16.vlgmr.msra.gmra.mrb[0].mxu0 %v10669_v17  ;;  %16150 = vmatmul.mubr.bf16.vlgmr.msra.gmra.mrb[0].mxu1 %v10760_v37  ;;  %v10787_v17 = vshll.u32 %v13622_v51, 16  ;;  %v17619_v37 = vld [vmem:[%s21556_s3 + $0x1d8] sm:$0xff]  }
 0xad8   : >> { %15398 = vmatpush3.bf16.msra.mxu1 %v17602_v60  ;;  %15478 = vmatpush3.bf16.msra.mxu0 %v17603_v30  ;;  %v10780_v43 = vsel %vm1051_vm0, %v20971_v40, %v10779_v13  ;;  %v10731_v60 = vshrl.u32 %v20994_v63, 16  ;;  %v10781_v30 = vrot.slane %v10726_v26, 1  ;;  %v17633_v13 = vld [vmem:[%s21556_s3 + $0x158] sm:$0xff]   ;;  %v21116_v31 = vor.u32 %v10726_v26, %v10725_v49 }
 0xad9   : >> { %15399 = vmatprep.subr.bf16.mxu1 %v17604_v29  ;;  %11031 = vmatprep.mubr.bf16.mxu0 %v13609_v36  ;;  %v17613_v36 = vld [vmem:[%s21556_s3 + $0x1d0] sm:$0xff]   ;;  %v10783_v29 = vrot.slane %v10734_v33, 1  ;;  %v10789_v47 = vrot.slane %v10787_v17, 1  ;;  %v17638_v17 = vld [vmem:[%s21556_s3 + $0x168] sm:$0xff]  }
 0xada   : >> { %15479 = vmatprep.subr.bf16.mxu0 %v17607_v11  ;;  %16153 = vmatprep.mubr.bf16.mxu1 %v20924_v8  ;;  %v10782_v56 = vor.u32 %v10781_v30, %v10723_v53  ;;  %v10697_v11 = vsel %vm958_vm1, %v20942_v41, %v10696_v22  ;;  %v17626_v41 = vld [vmem:[%s21556_s3 + $0x1a0] sm:$0xff]  }
 0xadb   : >> { %v17636_v53 = vld [vmem:[%s21556_s3 + $0x160] sm:$0xff]  }
 0xadc   : >> { %15400 = vmatpush3.bf16.msra.mxu1 %v17605_v42  ;;  %15480 = vmatpush3.bf16.msra.mxu0 %v17609_v50  ;;  %v21021_v42 = vor.u32 %v10783_v29, %v10731_v60  ;;  %v21027_v21 = vsel %vm1051_vm0, %v10782_v56, %v10783_v29  ;;  %v11218_v50 = vshrl.u32 %v13649_v35, 16  ;;  %v13655_v30 = vld [vmem:[%s20869_s6 + $0x240] sm:$0x80]  ;;  %v21173_v35 = vld [vmem:[%s21556_s3 + $0x210] sm:$0xff]  }
 0xadd   : >> { %15401 = vmatprep.subr.bf16.mxu1 %v17606_v38  ;;  %15481 = vmatprep.subr.bf16.mxu0 %v17613_v36  ;;  %v17622_v38 = vld [vmem:[%s21556_s3 + $0x138] sm:$0xff]   ;;  %v13652_v36 = vld [vmem:[%s20869_s6 + $0x220] sm:$0x80]  ;;  %v11258_v22 = vshrl.u32 %v13655_v30, 16 }
 0xade   : >> { %v10790_v34 = vsel %vm1051_vm0, %v21021_v42, %v10789_v47 }
 0xadf   : >> { %11032 = vmatmul.mubr.bf16.gmra.mrb[4].mxu0 %v10677_v44  ;;  %16154 = vmatmul.mubr.bf16.gmra.mrb[4].mxu1 %v10770_v20  ;;  %v10701_v44 = vrot.slane %v10699_v4, 7  ;;  %v11220_v20 = vrot.slane %v11218_v50, 7  ;;  %v11260_v56 = vrot.slane %v11258_v22, 7  ;;  %v11278_v50 = vshrl.u32 %v13658_v39, 16 }
 0xae0   : >> { %15402 = vmatpush3.bf16.msra.mxu1 %v17608_v7  ;;  %11039 = vmatprep.mubr.bf16.mxu0 %v20894_v12  ;;  %v17623_v7 = vld [vmem:[%s21556_s3 + $0xf8] sm:$0xff]  }
 0xae1   : >> { %15403 = vmatprep.subr.bf16.mxu1 %v17610_v18  ;;  %15482 = vmatpush3.bf16.msra.mxu0 %v17615_v5  ;;  %v17625_v18 = vld [vmem:[%s21556_s3 + $0x1e0] sm:$0xff]   ;;  %v10709_v52 = vsel %vm958_vm1, %v10701_v44, %v21056_v10  ;;  %v11228_v54 = vsel %vm958_vm1, %v11220_v20, %v20962_v46  ;;  %v17632_v46 = vld [vmem:[%s21556_s3 + $0x1b0] sm:$0xff]   ;;  %v17634_v5 = vld [vmem:[%s21556_s3 + $0x1f8] sm:$0xff]  }
 0xae2   : >> { %16157 = vmatprep.mubr.bf16.mxu1 %v20977_v23  ;;  %15483 = vmatprep.subr.bf16.mxu0 %v17619_v37  ;;  %v21186_v20 = vld [vmem:[%s21556_s3 + $0x218] sm:$0xff]  }
 0xae4   : >> { %15404 = vmatpush3.bf16.msra.mxu1 %v17611_v2  ;;  %v17628_v2 = vld [vmem:[%s21556_s3 + $0x1e8] sm:$0xff]  }
 0xae5   : >> { %15405 = vmatprep.subr.bf16.mxu1 %v17612_v58  ;;  %15484 = vmatpush3.bf16.msra.mxu0 %v17621_v0  ;;  %v10719_v58 = vshrl.u32 %v13616_v62, 16  ;;  %v13661_v62 = vld [vmem:[%s20869_s6 + $0x218] sm:$0x1] }
 0xae6   : >> { %15485 = vmatprep.subr.bf16.mxu0 %v17625_v18  ;;  %v11280_v18 = vrot.slane %v11278_v50, 7 }
 0xae7   : >> { %11040 = vmatmul.mubr.bf16.gmra.mrb[8].mxu0 %v10689_v24  ;;  %16158 = vmatmul.mubr.bf16.gmra.mrb[8].mxu1 %v10780_v43  ;;  %v17635_v24 = vld [vmem:[%s21556_s3 + $0x1b8] sm:$0xff]   ;;  %v21110_v43 = vld [vmem:[%s21556_s3 + $0x200] sm:$0xff]  }
 0xae8   : >> { %15406 = vmatpush3.bf16.msra.mxu1 %v17614_v55  ;;  %11047 = vmatprep.mubr.bf16.mxu0 %v20900_v61  ;;  %v10721_v55 = vrot.slane %v10719_v58, 7 }
 0xae9   : >> { %15407 = vmatprep.subr.bf16.mxu1 %v17616_v25  ;;  %16161 = vmatprep.mubr.bf16.mxu1 %v21027_v21 }
 0xaea   : >> { %15486 = vmatpush3.bf16.msra.mxu0 %v17626_v41  ;;  %v10729_v51 = vsel %vm958_vm1, %v10721_v55, %v21116_v31 }
 0xaeb   : >> { %15487 = vmatprep.subr.bf16.mxu0 %v17628_v2  ;;  %v21200_v2 = vld [vmem:[%s21556_s3 + $0x220] sm:$0xff]  }
 0xaec   : >> { %15408 = vmatpush3.bf16.msra.mxu1 %v17617_v15  ;;  %v10733_v15 = vrot.slane %v10731_v60, 7  ;;  %v17640_v60 = vld [vmem:[%s21556_s3 + $0x170] sm:$0xff]  }
 0xaed   : >> { %15409 = vmatprep.subr.bf16.mxu1 %v17618_v16  ;;  %v13739_v16 = vld [vmem:[%s20869_s6 + $0x220] sm:$0x80] }
 0xaee   : >> { %15488 = vmatpush3.bf16.msra.mxu0 %v17629_v48  ;;  %v10736_v37 = vor.u32 %v10734_v33, %v10733_v15  ;;  %v11777_v47 = vshrl.u32 %v13739_v16, 16  ;;  %v17642_v33 = vld [vmem:[%s21556_s3 + $0x178] sm:$0xff]  }
 0xaef   : >> { %11048 = vmatmul.mubr.bf16.gmra.mrb[12].mxu0 %v10697_v11  ;;  %16162 = vmatmul.mubr.bf16.gmra.mrb[12].mxu1 %v10790_v34  ;;  %v21157_v34 = vld [vmem:[%s21556_s3 + $0x208] sm:$0xff]  }
 0xaf0   : >> { %15410 = vmatpush3.bf16.msra.mxu1 %v17620_v19  ;;  %11055 = vmatprep.mubr.bf16.mxu0 %v20937_v28  ;;  %v21141_v29 = vsel %vm958_vm1, %v10725_v49, %v10736_v37  ;;  %v11779_v0 = vrot.slane %v11777_v47, 7  ;;  %v11268_v19 = vsel %vm958_vm1, %v11260_v56, %v21116_v31  ;;  %v13664_v47 = vld [vmem:[%s20869_s6 + $0x278] sm:$0x1] }
 0xaf1   : >> { %15411 = vmatprep.subr.bf16.mxu1 %v17622_v38  ;;  %11582 = vmatprep.mubr.bf16.mxu1 %v20894_v12  ;;  %v10713_v12 = vrot.slane %v10711_v57, 7  ;;  %v21160_v38 = vld [vmem:[%s20869_s6 + $0x268] sm:$0xff] }
 0xaf2   : >> { %15489 = vmatprep.subr.bf16.mxu0 %v17631_v27  ;;  %v11285_v4 = vshll.u32 %v21160_v38, 16  ;;  %v13745_v27 = vld [vmem:[%s20869_s6 + $0x260] sm:$0x80] }
 0xaf3   : >> { %v10716_v57 = vor.u32 %v10714_v45, %v10713_v12  ;;  %15490 = vmatpush3.bf16.msra.mxu0 %v17632_v46  ;;  %v11817_v46 = vshrl.u32 %v13745_v27, 16 }
 0xaf4   : >> { %15412 = vmatpush3.bf16.msra.mxu1 %v17623_v7  ;;  %15491 = vmatprep.subr.bf16.mxu0 %v17634_v5  ;;  %v11339_v15 = vrot.slane %v11285_v4, 1 }
 0xaf5   : >> { %16165 = vmatprep.subr.bf16.mxu1 %v17624_v14  ;;  %v21095_v45 = vsel %vm958_vm1, %v10705_v6, %v10716_v57  ;;  %v13742_v6 = vld [vmem:[%s20869_s6 + $0x240] sm:$0x80]  ;;  %v21226_v57 = vld [vmem:[%s21556_s3 + $0x230] sm:$0xff]   ;;  %v11819_v49 = vrot.slane %v11817_v46, 7 }
 0xaf6   : >> { %v11797_v44 = vshrl.u32 %v13742_v6, 16  ;;  %v13751_v6 = vld [vmem:[%s20869_s6 + $0x238] sm:$0x1] }
 0xaf7   : >> { %11056 = vmatmul.mubr.bf16.gmra.mrb[16].mxu0 %v10709_v52  ;;  %11583 = vmatmul.mubr.bf16.vlgmr.msra.gmra.mrb[16].mxu1 %v11228_v54 }
 0xaf8   : >> { %16166 = vmatpush3.bf16.msra.mxu1 %v17624_v14  ;;  %11063 = vmatprep.mubr.bf16.mxu0 %v20940_v32 }
 0xaf9   : >> { %11590 = vmatprep.mubr.bf16.mxu1 %v20900_v61  ;;  %16167 = vmatprep.subr.bf16.mxu1 %v17627_v59  ;;  %v11238_v61 = vshrl.u32 %v13652_v36, 16 }
 0xafa   : >> { %15492 = vmatpush3.bf16.msra.mxu0 %v17635_v24  ;;  %v21246_v24 = vld [vmem:[%s20869_s6 + $0x288] sm:$0xff] }
 0xafb   : >> { %v11240_v25 = vrot.slane %v11238_v61, 7  ;;  %16197 = vmatprep.subr.bf16.mxu0 %v21110_v43  ;;  %v11841_v55 = vshrl.u32 %v21246_v24, 16 }
 0xafc   : >> { %16168 = vmatpush3.bf16.msra.mxu1 %v17627_v59  ;;  %v21213_v59 = vld [vmem:[%s21556_s3 + $0x228] sm:$0xff]  }
 0xafd   : >> { %16169 = vmatprep.subr.bf16.mxu1 %v17630_v1  ;;  %v11248_v26 = vsel %vm958_vm1, %v11240_v25, %v21056_v10  ;;  %v11844_v25 = vshll.u32 %v21246_v24, 16 }
 0xaff   : >> { %11064 = vmatmul.mubr.bf16.gmra.mrb[20].mxu0 %v21095_v45  ;;  %11591 = vmatmul.mubr.bf16.gmra.mrb[20].mxu1 %v10697_v11  ;;  %v11787_v11 = vsel %vm958_vm1, %v11779_v0, %v21056_v10  ;;  %v11799_v10 = vrot.slane %v11797_v44, 7 }
 0xb00   : >> { %11071 = vmatprep.mubr.bf16.mxu0 %v20988_v9  ;;  %11598 = vmatprep.mubr.bf16.mxu1 %v20937_v28 }
 0xb01   : >> { %16170 = vmatpush3.bf16.msra.mxu1 %v17630_v1  ;;  %v11807_v52 = vsel %vm958_vm1, %v11799_v10, %v21116_v31  ;;  %v11315_v1 = vshll.u32 %v13661_v62, 16  ;;  %v13748_v31 = vld [vmem:[%s20869_s6 + $0x280] sm:$0x80] }
 0xb02   : >> { %16171 = vmatprep.subr.bf16.mxu1 %v17633_v13 }
 0xb03   : >> { %v11317_v58 = vrot.slane %v11315_v1, 1 }
 0xb05   : >> { %16172 = vmatpush3.bf16.msra.mxu1 %v17633_v13  ;;  %v11318_v61 = vsel %vm1051_vm0, %v20918_v3, %v11317_v58  ;;  %v13663_v3 = vld [vmem:[%s20869_s6 + $0x258] sm:$0x1] }
 0xb06   : >> { %16173 = vmatprep.subr.bf16.mxu1 %v17636_v53 }
 0xb07   : >> { %11072 = vmatmul.mubr.bf16.gmra.mrb[24].mxu0 %v10729_v51  ;;  %11599 = vmatmul.mubr.bf16.gmra.mrb[24].mxu1 %v11248_v26  ;;  %v11837_v51 = vshrl.u32 %v13748_v31, 16  ;;  %v11843_v26 = vrot.slane %v11841_v55, 7 }
 0xb08   : >> { %11079 = vmatprep.mubr.bf16.mxu0 %v20994_v63  ;;  %11606 = vmatprep.mubr.bf16.mxu1 %v20940_v32 }
 0xb09   : >> { %16174 = vmatpush3.bf16.msra.mxu1 %v17636_v53  ;;  %v11839_v30 = vrot.slane %v11837_v51, 7  ;;  %v11846_v16 = vor.u32 %v11844_v25, %v11843_v26 }
 0xb0a   : >> { %16175 = vmatprep.subr.bf16.mxu1 %v17638_v17 }
 0xb0b   : >> { %v11847_v0 = vsel %vm958_vm1, %v11839_v30, %v11846_v16 }
 0xb0d   : >> { %16176 = vmatpush3.bf16.msra.mxu1 %v17638_v17  ;;  %v21264_v17 = vld [vmem:[%s20869_s6 + $0x290] sm:$0xff] }
 0xb0e   : >> { %16177 = vmatprep.subr.bf16.mxu1 %v17640_v60 }
 0xb0f   : >> { %11080 = vmatmul.mubr.bf16.gmra.mrb[28].mxu0 %v21141_v29  ;;  %11607 = vmatmul.mubr.bf16.gmra.mrb[28].mxu1 %v21095_v45 }
 0xb10   : >> { %11614 = vmatprep.mubr.bf16.mxu1 %v20988_v9  ;;  %12141 = vmatprep.mubr.bf16.mxu0 %v20937_v28  ;;  %v11282_v28 = vshrl.u32 %v21160_v38, 16 }
 0xb11   : >> { %16178 = vmatpush3.bf16.msra.mxu1 %v17640_v60  ;;  %v11849_v60 = vshrl.u32 %v21264_v17, 16 }
 0xb12   : >> { %16179 = vmatprep.subr.bf16.mxu1 %v17642_v33  ;;  %v11284_v7 = vrot.slane %v11282_v28, 7 }
 0xb14   : >> { %v11287_v41 = vor.u32 %v11285_v4, %v11284_v7 }
 0xb15   : >> { %16180 = vmatpush3.bf16.msra.mxu1 %v17642_v33  ;;  %v11852_v33 = vshll.u32 %v21264_v17, 16 }
 0xb16   : >> { %16901 = vmatprep.subr.bf16.mxu1 %v21110_v43  ;;  %v11827_v13 = vsel %vm958_vm1, %v11819_v49, %v11287_v41 }
 0xb17   : >> { %11615 = vmatmul.mubr.bf16.gmra.mrb[32].mxu1 %v11268_v19  ;;  %12142 = vmatmul.mubr.bf16.vlgmr.msra.gmra.mrb[32].mxu0 %v11787_v11  ;;  %v11345_v19 = vshll.u32 %v13664_v47, 16  ;;  %v11851_v11 = vrot.slane %v11849_v60, 7  ;;  %v11900_v10 = vrot.slane %v11852_v33, 1 }
 0xb18   : >> { %16198 = vmatpush3.bf16.msra.mxu0 %v21110_v43  ;;  %11622 = vmatprep.mubr.bf16.mxu1 %v20994_v63 }
 0xb19   : >> { %12149 = vmatprep.mubr.bf16.mxu0 %v20940_v32  ;;  %16199 = vmatprep.subr.bf16.mxu0 %v21157_v34  ;;  %v21181_v32 = vld [vmem:[%s20869_s6 + $0x270] sm:$0xff]  ;;  %v11854_v39 = vor.u32 %v11852_v33, %v11851_v11 }
 0xb1a   : >> { %v11290_v14 = vshrl.u32 %v21181_v32, 16  ;;  %v11293_v54 = vshll.u32 %v21181_v32, 16 }
 0xb1b   : >> { %v11855_v50 = vsel %vm958_vm1, %v11843_v26, %v11854_v39 }
 0xb1c   : >> { %16200 = vmatpush3.bf16.msra.mxu0 %v21157_v34  ;;  %v11292_v12 = vrot.slane %v11290_v14, 7  ;;  %v11341_v22 = vrot.slane %v11293_v54, 1 }
 0xb1d   : >> { %16201 = vmatprep.subr.bf16.mxu0 %v21173_v35 }
 0xb1e   : >> { %v11295_v48 = vor.u32 %v11293_v54, %v11292_v12 }
 0xb1f   : >> { %11623 = vmatmul.mubr.bf16.gmra.mrb[36].mxu1 %v21141_v29  ;;  %12150 = vmatmul.mubr.bf16.gmra.mrb[36].mxu0 %v21095_v45  ;;  %v13662_v45 = vld [vmem:[%s20869_s6 + $0x238] sm:$0x1] }
 0xb20   : >> { %11630 = vmatprep.mubr.bf16.mxu1 %v21160_v38  ;;  %12157 = vmatprep.mubr.bf16.mxu0 %v20988_v9  ;;  %v11288_v9 = vsel %vm958_vm1, %v11280_v18, %v11287_v41  ;;  %v11296_v36 = vsel %vm958_vm1, %v11284_v7, %v11295_v48  ;;  %v11325_v5 = vshll.u32 %v13662_v45, 16  ;;  %v11874_v7 = vshll.u32 %v13751_v6, 16 }
 0xb21   : >> { %16202 = vmatpush3.bf16.msra.mxu0 %v21173_v35  ;;  %v11902_v48 = vor.u32 %v11900_v10, %v11849_v60 }
 0xb22   : >> { %16203 = vmatprep.subr.bf16.mxu0 %v21186_v20 }
 0xb25   : >> { %16204 = vmatpush3.bf16.msra.mxu0 %v21186_v20 }
 0xb26   : >> { %16205 = vmatprep.subr.bf16.mxu0 %v21200_v2 }
 0xb27   : >> { %11631 = vmatmul.mubr.bf16.gmra.mrb[40].mxu1 %v11288_v9  ;;  %12158 = vmatmul.mubr.bf16.gmra.mrb[40].mxu0 %v11807_v52 }
 0xb28   : >> { %11638 = vmatprep.mubr.bf16.mxu1 %v21181_v32  ;;  %12165 = vmatprep.mubr.bf16.mxu0 %v20994_v63  ;;  %v21234_v63 = vld [vmem:[%s21556_s3 + $0x238] sm:$0xff]  }
 0xb29   : >> { %16206 = vmatpush3.bf16.msra.mxu0 %v21200_v2 }
 0xb2a   : >> { %16207 = vmatprep.subr.bf16.mxu0 %v21213_v59 }
 0xb2d   : >> { %16208 = vmatpush3.bf16.msra.mxu0 %v21213_v59 }
 0xb2e   : >> { %16209 = vmatprep.subr.bf16.mxu0 %v21226_v57 }
 0xb2f   : >> { %11639 = vmatmul.mubr.bf16.gmra.mrb[44].mxu1 %v11296_v36  ;;  %12166 = vmatmul.mubr.bf16.gmra.mrb[44].mxu0 %v21141_v29  ;;  %v11340_v29 = vor.u32 %v11339_v15, %v11282_v28  ;;  %v11347_v28 = vrot.slane %v11345_v19, 1 }
 0xb30   : >> { %16181 = vmatprep.mubr.bf16.mxu1 %v20924_v8  ;;  %12173 = vmatprep.mubr.bf16.mxu0 %v21160_v38  ;;  %v11327_v8 = vrot.slane %v11325_v5, 1  ;;  %v11343_v38 = vor.u32 %v11341_v22, %v11290_v14  ;;  %v13752_v14 = vld [vmem:[%s20869_s6 + $0x258] sm:$0x1] }
 0xb31   : >> { %16210 = vmatpush3.bf16.msra.mxu0 %v21226_v57  ;;  %v11884_v54 = vshll.u32 %v13752_v14, 16 }
 0xb32   : >> { %16211 = vmatprep.subr.bf16.mxu0 %v21234_v63  ;;  %v11328_v53 = vsel %vm1051_vm0, %v20971_v40, %v11327_v8  ;;  %v11348_v4 = vsel %vm1051_vm0, %v11343_v38, %v11347_v28 }
 0xb35   : >> { %16212 = vmatpush3.bf16.msra.mxu0 %v21234_v63 }
 0xb37   : >> { %16182 = vmatmul.mubr.bf16.vlgmr.msra.gmra.mrb[0].mxu1 %v11318_v61  ;;  %12174 = vmatmul.mubr.bf16.gmra.mrb[48].mxu0 %v11827_v13 }
 0xb38   : >> { %16909 = vmatpush3.bf16.msra.mxu1 %v21110_v43  ;;  %16185 = vmatprep.mubr.bf16.mxu1 %v20977_v23  ;;  %v11335_v43 = vshll.u32 %v13663_v3, 16 }
 0xb39   : >> { %16902 = vmatprep.subr.bf16.mxu1 %v21157_v34  ;;  %12181 = vmatprep.mubr.bf16.mxu0 %v21181_v32  ;;  %v11898_v32 = vrot.slane %v11844_v25, 1 }
 0xb3a   : >> { %v11337_v37 = vrot.slane %v11335_v43, 1 }
 0xb3b   : >> { %v11899_v41 = vor.u32 %v11898_v32, %v11841_v55 }
 0xb3c   : >> { %16910 = vmatpush3.bf16.msra.mxu1 %v21157_v34  ;;  %v11338_v56 = vsel %vm1051_vm0, %v21021_v42, %v11337_v37  ;;  %v11342_v34 = vsel %vm1051_vm0, %v11340_v29, %v11341_v22 }
 0xb3d   : >> { %16903 = vmatprep.subr.bf16.mxu1 %v21173_v35 }
 0xb3f   : >> { %16186 = vmatmul.mubr.bf16.gmra.mrb[4].mxu1 %v11328_v53  ;;  %12182 = vmatmul.mubr.bf16.gmra.mrb[52].mxu0 %v11296_v36 }
 0xb40   : >> { %16911 = vmatpush3.bf16.msra.mxu1 %v21173_v35  ;;  %16189 = vmatprep.mubr.bf16.mxu1 %v21027_v21  ;;  %v13753_v35 = vld [vmem:[%s20869_s6 + $0x278] sm:$0x1] }
 0xb41   : >> { %16904 = vmatprep.subr.bf16.mxu1 %v21186_v20  ;;  %12189 = vmatprep.mubr.bf16.mxu0 %v21246_v24  ;;  %v11894_v44 = vshll.u32 %v13753_v35, 16 }
 0xb43   : >> { %v11896_v18 = vrot.slane %v11894_v44, 1 }
 0xb44   : >> { %16912 = vmatpush3.bf16.msra.mxu1 %v21186_v20  ;;  %v11876_v20 = vrot.slane %v11874_v7, 1 }
 0xb45   : >> { %16905 = vmatprep.subr.bf16.mxu1 %v21200_v2  ;;  %v11897_v52 = vsel %vm1051_vm0, %v11343_v38, %v11896_v18 }
 0xb46   : >> { %v11877_v9 = vsel %vm1051_vm0, %v20971_v40, %v11876_v20 }
 0xb47   : >> { %16190 = vmatmul.mubr.bf16.gmra.mrb[8].mxu1 %v11338_v56  ;;  %12190 = vmatmul.mubr.bf16.gmra.mrb[56].mxu0 %v11847_v0 }
 0xb48   : >> { %16913 = vmatpush3.bf16.msra.mxu1 %v21200_v2  ;;  %16193 = vmatprep.mubr.bf16.mxu1 %v11342_v34  ;;  %v13754_v2 = vld [vmem:[%s20869_s6 + $0x298] sm:$0x1]  ;;  %s21454_s6 = scalar_lea.vmem %s18547_s18, %s13873_s22 }
 0xb49   : >> { %16906 = vmatprep.subr.bf16.mxu1 %v21213_v59  ;;  %12197 = vmatprep.mubr.bf16.mxu0 %v21264_v17  ;;  %v11904_v12 = vshll.u32 %v13754_v2, 16  ;;  %v21308_v17 = vld [vmem:[#allocation9] ss:$0 sm:$0xff] }
 0xb4b   : >> { %v11906_v62 = vrot.slane %v11904_v12, 1 }
 0xb4c   : >> { %16914 = vmatpush3.bf16.msra.mxu1 %v21213_v59  ;;  %v11886_v59 = vrot.slane %v11884_v54, 1 }
 0xb4d   : >> { %16907 = vmatprep.subr.bf16.mxu1 %v21226_v57 }
 0xb4e   : >> { %v11887_v27 = vsel %vm1051_vm0, %v21021_v42, %v11886_v59 }
 0xb4f   : >> { %16194 = vmatmul.mubr.bf16.gmra.mrb[12].mxu1 %v11348_v4  ;;  %12198 = vmatmul.mubr.bf16.gmra.mrb[60].mxu0 %v11855_v50 }
 0xb50   : >> { %16915 = vmatpush3.bf16.msra.mxu1 %v21226_v57  ;;  %16213 = vmatprep.mubr.bf16.mxu0 %v20977_v23  ;;  %v11901_v23 = vsel %vm1051_vm0, %v11899_v41, %v11900_v10  ;;  %v11907_v57 = vsel %vm1051_vm0, %v11902_v48, %v11906_v62 }
 0xb51   : >> { %16908 = vmatprep.subr.bf16.mxu1 %v21234_v63  ;;  %16221 = vmatprep.mubr.bf16.mxu1 %v11342_v34 }
 0xb54   : >> { %16916 = vmatpush3.bf16.msra.mxu1 %v21234_v63 }
 0xb57   : >> { %16214 = vmatmul.mubr.bf16.vlgmr.msra.gmra.mrb[64].mxu0 %v11877_v9  ;;  %16222 = vmatmul.mubr.bf16.vlgmr.msra.gmra.mrb[8].mxu1 %v11897_v52 }
 0xb58   : >> { %16217 = vmatprep.mubr.bf16.mxu0 %v21027_v21  ;;  %16225 = vmatprep.mubr.bf16.mxu1 %v11901_v23 }
 0xb5f   : >> { %16218 = vmatmul.mubr.bf16.gmra.mrb[68].mxu0 %v11887_v27  ;;  %16226 = vmatmul.mubr.bf16.gmra.mrb[12].mxu1 %v11907_v57 }
 0xbaa   : >> { %v15333_v40 = vpop.f32.mrb[0].mxu0 }
 0xbab   : >> { %v15334_v36 = vpop.f32.mrb[1].mxu0 }
 0xbac   : >> { %v15335_v1 = vadd.f32 %v15334_v36, %v15333_v40  ;;  %v15336_v46 = vpop.f32.mrb[2].mxu0 }
 0xbad   : >> { %v15337_v63 = vpop.f32.mrb[3].mxu0 }
 0xbae   : >> { %v15338_v58 = vadd.f32 %v15337_v63, %v15336_v46  ;;  %v16922_v29 = vadd.f32 %v15335_v1, %v21308_v17 }
 0xbb0   : >> { %v16932_v11 = vadd.f32 %v15338_v58, %v21308_v17 }
 0xbb2   : >> { %v15339_v49 = vpop.f32.mrb[4].mxu0 }
 0xbb3   : >> { %v15340_v45 = vpop.f32.mrb[5].mxu0 }
 0xbb4   : >> { %v15341_v21 = vadd.f32 %v15340_v45, %v15339_v49  ;;  %v15342_v61 = vpop.f32.mrb[6].mxu0 }
 0xbb5   : >> { %v15343_v13 = vpop.f32.mrb[7].mxu0 }
 0xbb6   : >> { %v15344_v5 = vadd.f32 %v15343_v13, %v15342_v61  ;;  %v16917_v7 = vadd.f32 %v15341_v21, %v21308_v17 }
 0xbb8   : >> { %v16927_v14 = vadd.f32 %v15344_v5, %v21308_v17 }
 0xbba   : >> { %v15345_v24 = vpop.f32.mrb[8].mxu0 }
 0xbbb   : >> { %v15346_v8 = vpop.f32.mrb[9].mxu0 }
 0xbbc   : >> { %v15347_v55 = vadd.f32 %v15346_v8, %v15345_v24  ;;  %v15348_v42 = vpop.f32.mrb[10].mxu0 }
 0xbbd   : >> { %v15349_v3 = vpop.f32.mrb[11].mxu0 }
 0xbbe   : >> { %v15350_v31 = vadd.f32 %v15349_v3, %v15348_v42  ;;  %v16942_v62 = vadd.f32 %v15347_v55, %v21308_v17 }
 0xbc0   : >> { %v16952_v63 = vadd.f32 %v15350_v31, %v21308_v17 }
 0xbc2   : >> { %v15351_v25 = vpop.f32.mrb[12].mxu0 }
 0xbc3   : >> { %v15352_v53 = vpop.f32.mrb[13].mxu0 }
 0xbc4   : >> { %v15353_v43 = vadd.f32 %v15352_v53, %v15351_v25  ;;  %v15354_v51 = vpop.f32.mrb[14].mxu0 }
 0xbc5   : >> { %v15355_v26 = vpop.f32.mrb[15].mxu0 }
 0xbc6   : >> { %v15356_v15 = vadd.f32 %v15355_v26, %v15354_v51  ;;  %v16937_v8 = vadd.f32 %v15353_v43, %v21308_v17 }
 0xbc8   : >> { %v16947_v51 = vadd.f32 %v15356_v15, %v21308_v17 }
 0xbca   : >> { %v15357_v37 = vpop.f32.mrb[16].mxu0  ;;  %v15413_v30 = vpop.f32.mrb[16].mxu1 }
 0xbcb   : >> { %v15358_v16 = vpop.f32.mrb[17].mxu0  ;;  %v15414_v60 = vpop.f32.mrb[17].mxu1 }
 0xbcc   : >> { %v21311_v22 = vadd.f32 %v15358_v16, %v15357_v37  ;;  %v15415_v47 = vadd.f32 %v15414_v60, %v15413_v30  ;;  %v15360_v33 = vpop.f32.mrb[18].mxu0  ;;  %v15416_v56 = vpop.f32.mrb[18].mxu1 }
 0xbcd   : >> { %v15361_v0 = vpop.f32.mrb[19].mxu0  ;;  %v15417_v19 = vpop.f32.mrb[19].mxu1 }
 0xbce   : >> { %v21314_v34 = vadd.f32 %v15361_v0, %v15360_v33  ;;  %v15418_v38 = vadd.f32 %v15417_v19, %v15416_v56  ;;  %v21316_v28 = vadd.f32 %v16922_v29, %v15415_v47  ;;  %v16961_v33 = vadd.f32 %v21311_v22, %v21308_v17 }
 0xbd0   : >> { %v21318_v39 = vadd.f32 %v16932_v11, %v15418_v38 }
 0xbd2   : >> { %v15363_v6 = vpop.f32.mrb[20].mxu0  ;;  %v15419_v35 = vpop.f32.mrb[20].mxu1 }
 0xbd3   : >> { %v15364_v4 = vpop.f32.mrb[21].mxu0  ;;  %v15420_v50 = vpop.f32.mrb[21].mxu1 }
 0xbd4   : >> { %v21321_v44 = vadd.f32 %v15364_v4, %v15363_v6  ;;  %v15421_v32 = vadd.f32 %v15420_v50, %v15419_v35  ;;  %v15366_v20 = vpop.f32.mrb[22].mxu0  ;;  %v15422_v18 = vpop.f32.mrb[22].mxu1  ;;  %v16969_v6 = vadd.f32 %v21314_v34, %v21308_v17 }
 0xbd5   : >> { %v15367_v41 = vpop.f32.mrb[23].mxu0  ;;  %v15423_v10 = vpop.f32.mrb[23].mxu1 }
 0xbd6   : >> { %v21324_v2 = vadd.f32 %v15367_v41, %v15366_v20  ;;  %v15424_v9 = vadd.f32 %v15423_v10, %v15422_v18  ;;  %v21326_v52 = vadd.f32 %v16917_v7, %v15421_v32  ;;  %v16957_v41 = vadd.f32 %v21321_v44, %v21308_v17 }
 0xbd8   : >> { %v21328_v54 = vadd.f32 %v16927_v14, %v15424_v9 }
 0xbda   : >> { %v15369_v12 = vpop.f32.mrb[24].mxu0  ;;  %v15425_v23 = vpop.f32.mrb[24].mxu1 }
 0xbdb   : >> { %v15370_v59 = vpop.f32.mrb[25].mxu0  ;;  %v15426_v48 = vpop.f32.mrb[25].mxu1 }
 0xbdc   : >> { %v21331_v27 = vadd.f32 %v15370_v59, %v15369_v12  ;;  %v15427_v57 = vadd.f32 %v15426_v48, %v15425_v23  ;;  %v15372_v40 = vpop.f32.mrb[26].mxu0  ;;  %v15428_v36 = vpop.f32.mrb[26].mxu1  ;;  %v16965_v59 = vadd.f32 %v21324_v2, %v21308_v17 }
 0xbdd   : >> { %v15373_v1 = vpop.f32.mrb[27].mxu0  ;;  %v15429_v46 = vpop.f32.mrb[27].mxu1 }
 0xbde   : >> { %v21334_v58 = vadd.f32 %v15373_v1, %v15372_v40  ;;  %v15430_v49 = vadd.f32 %v15429_v46, %v15428_v36  ;;  %v21336_v45 = vadd.f32 %v16942_v62, %v15427_v57  ;;  %v16977_v44 = vadd.f32 %v21331_v27, %v21308_v17 }
 0xbe0   : >> { %v21338_v21 = vadd.f32 %v16952_v63, %v15430_v49  ;;  %v16985_v2 = vadd.f32 %v21334_v58, %v21308_v17 }
 0xbe2   : >> { %v15375_v61 = vpop.f32.mrb[28].mxu0  ;;  %v15431_v13 = vpop.f32.mrb[28].mxu1 }
 0xbe3   : >> { %v15376_v5 = vpop.f32.mrb[29].mxu0  ;;  %v15432_v24 = vpop.f32.mrb[29].mxu1 }
 0xbe4   : >> { %v21341_v55 = vadd.f32 %v15376_v5, %v15375_v61  ;;  %v15433_v42 = vadd.f32 %v15432_v24, %v15431_v13  ;;  %v15378_v3 = vpop.f32.mrb[30].mxu0  ;;  %v15434_v25 = vpop.f32.mrb[30].mxu1 }
 0xbe5   : >> { %v15379_v53 = vpop.f32.mrb[31].mxu0  ;;  %v15435_v31 = vpop.f32.mrb[31].mxu1 }
 0xbe6   : >> { %v21344_v26 = vadd.f32 %v15379_v53, %v15378_v3  ;;  %v15436_v37 = vadd.f32 %v15435_v31, %v15434_v25  ;;  %v21346_v30 = vadd.f32 %v16937_v8, %v15433_v42  ;;  %v16973_v27 = vadd.f32 %v21341_v55, %v21308_v17 }
 0xbe8   : >> { %v21348_v16 = vadd.f32 %v16947_v51, %v15436_v37  ;;  %v16981_v58 = vadd.f32 %v21344_v26, %v21308_v17 }
 0xbea   : >> { %v15437_v60 = vpop.f32.mrb[32].mxu1  ;;  %v15493_v29 = vpop.f32.mrb[32].mxu0 }
 0xbeb   : >> { %v15438_v47 = vpop.f32.mrb[33].mxu1  ;;  %v15494_v43 = vpop.f32.mrb[33].mxu0 }
 0xbec   : >> { %v15439_v56 = vadd.f32 %v15438_v47, %v15437_v60  ;;  %v21352_v0 = vadd.f32 %v15494_v43, %v15493_v29  ;;  %v15440_v19 = vpop.f32.mrb[34].mxu1  ;;  %v15496_v11 = vpop.f32.mrb[34].mxu0 }
 0xbed   : >> { %v15441_v15 = vpop.f32.mrb[35].mxu1  ;;  %v15497_v38 = vpop.f32.mrb[35].mxu0 }
 0xbee   : >> { %v21356_v35 = vadd.f32 %v16961_v33, %v15439_v56  ;;  %v15442_v4 = vadd.f32 %v15441_v15, %v15440_v19  ;;  %v21358_v50 = vadd.f32 %v15497_v38, %v15496_v11 }
 0xbf0   : >> { %v21360_v7 = vadd.f32 %v16969_v6, %v15442_v4 }
 0xbf2   : >> { %v15443_v32 = vpop.f32.mrb[36].mxu1  ;;  %v15499_v20 = vpop.f32.mrb[36].mxu0 }
 0xbf3   : >> { %v15444_v22 = vpop.f32.mrb[37].mxu1  ;;  %v15500_v18 = vpop.f32.mrb[37].mxu0 }
 0xbf4   : >> { %v15445_v10 = vadd.f32 %v15444_v22, %v15443_v32  ;;  %v15501_v14 = vadd.f32 %v15500_v18, %v15499_v20  ;;  %v15446_v9 = vpop.f32.mrb[38].mxu1  ;;  %v15502_v12 = vpop.f32.mrb[38].mxu0 }
 0xbf5   : >> { %v15447_v23 = vpop.f32.mrb[39].mxu1  ;;  %v15503_v34 = vpop.f32.mrb[39].mxu0 }
 0xbf6   : >> { %v21366_v48 = vadd.f32 %v16957_v41, %v15445_v10  ;;  %v15448_v62 = vadd.f32 %v15447_v23, %v15446_v9  ;;  %v15504_v57 = vadd.f32 %v15503_v34, %v15502_v12 }
 0xbf8   : >> { %v21368_v40 = vadd.f32 %v16965_v59, %v15448_v62 }
 0xbfa   : >> { %v15449_v36 = vpop.f32.mrb[40].mxu1  ;;  %v15505_v1 = vpop.f32.mrb[40].mxu0 }
 0xbfb   : >> { %v15450_v46 = vpop.f32.mrb[41].mxu1  ;;  %v15506_v63 = vpop.f32.mrb[41].mxu0 }
 0xbfc   : >> { %v15451_v49 = vadd.f32 %v15450_v46, %v15449_v36  ;;  %v15507_v61 = vadd.f32 %v15506_v63, %v15505_v1  ;;  %v15452_v13 = vpop.f32.mrb[42].mxu1  ;;  %v15508_v5 = vpop.f32.mrb[42].mxu0 }
 0xbfd   : >> { %v15453_v24 = vpop.f32.mrb[43].mxu1  ;;  %v15509_v8 = vpop.f32.mrb[43].mxu0 }
 0xbfe   : >> { %v21374_v42 = vadd.f32 %v16977_v44, %v15451_v49  ;;  %v15454_v3 = vadd.f32 %v15453_v24, %v15452_v13  ;;  %v15510_v25 = vadd.f32 %v15509_v8, %v15508_v5 }
 0xc00   : >> { %v21376_v53 = vadd.f32 %v16985_v2, %v15454_v3 }
 0xc02   : >> { %v15455_v31 = vpop.f32.mrb[44].mxu1  ;;  %v15511_v51 = vpop.f32.mrb[44].mxu0 }
 0xc03   : >> { %v15456_v37 = vpop.f32.mrb[45].mxu1  ;;  %v15512_v60 = vpop.f32.mrb[45].mxu0 }
 0xc04   : >> { %v15457_v29 = vadd.f32 %v15456_v37, %v15455_v31  ;;  %v15513_v47 = vadd.f32 %v15512_v60, %v15511_v51  ;;  %v15458_v43 = vpop.f32.mrb[46].mxu1  ;;  %v15514_v33 = vpop.f32.mrb[46].mxu0 }
 0xc05   : >> { %v15459_v56 = vpop.f32.mrb[47].mxu1  ;;  %v15515_v19 = vpop.f32.mrb[47].mxu0 }
 0xc06   : >> { %v16974_v11 = vadd.f32 %v16973_v27, %v15457_v29  ;;  %v15460_v15 = vadd.f32 %v15459_v56, %v15458_v43  ;;  %v15516_v38 = vadd.f32 %v15515_v19, %v15514_v33 }
 0xc08   : >> { %v16982_v6 = vadd.f32 %v16981_v58, %v15460_v15 }
 0xc0a   : >> { %v16183_v4 = vpop.f32.mrb[0].mxu1  ;;  %v15517_v32 = vpop.f32.mrb[48].mxu0 }
 0xc0b   : >> { %v16919_v20 = vadd.f32 %v21326_v52, %v16183_v4  ;;  %v11681_v22 = vpop.f32.mrb[1].mxu1  ;;  %v15518_v18 = vpop.f32.mrb[49].mxu0 }
 0xc0c   : >> { %v16924_v55 = vadd.f32 %v21316_v28, %v11681_v22  ;;  %v15519_v41 = vadd.f32 %v15518_v18, %v15517_v32  ;;  %v16184_v10 = vpop.f32.mrb[2].mxu1  ;;  %v15520_v9 = vpop.f32.mrb[50].mxu0 }
 0xc0d   : >> { %v16929_v12 = vadd.f32 %v21328_v54, %v16184_v10  ;;  %v11684_v23 = vpop.f32.mrb[3].mxu1  ;;  %v15521_v34 = vpop.f32.mrb[51].mxu0  ;;  %v16920_v17 = vadd.f32 %v16919_v20, %v15501_v14 }
 0xc0e   : >> { %v16934_v26 = vadd.f32 %v21318_v39, %v11684_v23  ;;  %v15522_v59 = vadd.f32 %v15521_v34, %v15520_v9  ;;  %v16925_v62 = vadd.f32 %v16924_v55, %v21352_v0  ;;  %v16963_v36 = vadd.f32 %v21356_v35, %v15519_v41 }
 0xc0f   : >> { %v16930_v52 = vadd.f32 %v16929_v12, %v15504_v57 }
 0xc10   : >> { %v16935_v1 = vadd.f32 %v16934_v26, %v21358_v50  ;;  %v16971_v28 = vadd.f32 %v21360_v7, %v15522_v59 }
 0xc12   : >> { %v16187_v46 = vpop.f32.mrb[4].mxu1  ;;  %v15523_v63 = vpop.f32.mrb[52].mxu0 }
 0xc13   : >> { %v16939_v44 = vadd.f32 %v21346_v30, %v16187_v46  ;;  %v11697_v54 = vpop.f32.mrb[5].mxu1  ;;  %v15524_v49 = vpop.f32.mrb[53].mxu0 }
 0xc14   : >> { %v16944_v14 = vadd.f32 %v21336_v45, %v11697_v54  ;;  %v15525_v13 = vadd.f32 %v15524_v49, %v15523_v63  ;;  %v16188_v39 = vpop.f32.mrb[6].mxu1  ;;  %v15526_v5 = vpop.f32.mrb[54].mxu0 }
 0xc15   : >> { %v16949_v0 = vadd.f32 %v21348_v16, %v16188_v39  ;;  %v11700_v24 = vpop.f32.mrb[7].mxu1  ;;  %v15527_v35 = vpop.f32.mrb[55].mxu0  ;;  %v16940_v57 = vadd.f32 %v16939_v44, %v15513_v47 }
 0xc16   : >> { %v16954_v50 = vadd.f32 %v21338_v21, %v11700_v24  ;;  %v15528_v8 = vadd.f32 %v15527_v35, %v15526_v5  ;;  %v16959_v7 = vadd.f32 %v21366_v48, %v15525_v13  ;;  %v16945_v2 = vadd.f32 %v16944_v14, %v15507_v61 }
 0xc17   : >> { %v16950_v3 = vadd.f32 %v16949_v0, %v15516_v38 }
 0xc18   : >> { %v16967_v30 = vadd.f32 %v21368_v40, %v15528_v8  ;;  %v21396_v31 = vadd.f32 %v16954_v50, %v15510_v25 }
 0xc1a   : >> { %v15529_v45 = vpop.f32.mrb[56].mxu0 }
 0xc1b   : >> { %v15530_v51 = vpop.f32.mrb[57].mxu0 }
 0xc1c   : >> { %v15531_v37 = vadd.f32 %v15530_v51, %v15529_v45  ;;  %v15532_v60 = vpop.f32.mrb[58].mxu0 }
 0xc1d   : >> { %v15533_v27 = vpop.f32.mrb[59].mxu0 }
 0xc1e   : >> { %v15534_v16 = vadd.f32 %v15533_v27, %v15532_v60  ;;  %v16979_v29 = vadd.f32 %v21374_v42, %v15531_v37 }
 0xc20   : >> { %v16987_v47 = vadd.f32 %v21376_v53, %v15534_v16 }
 0xc22   : >> { %v15535_v21 = vpop.f32.mrb[60].mxu0 }
 0xc23   : >> { %v15536_v43 = vpop.f32.mrb[61].mxu0 }
 0xc24   : >> { %v15537_v33 = vadd.f32 %v15536_v43, %v15535_v21  ;;  %v15538_v48 = vpop.f32.mrb[62].mxu0 }
 0xc25   : >> { %v15539_v61 = vpop.f32.mrb[63].mxu0 }
 0xc26   : >> { %v15540_v56 = vadd.f32 %v15539_v61, %v15538_v48  ;;  %v16975_v19 = vadd.f32 %v16974_v11, %v15537_v33 }
 0xc28   : >> { %v16983_v40 = vadd.f32 %v16982_v6, %v15540_v56 }
 0xc2a   : >> { %v16215_v25 = vpop.f32.mrb[64].mxu0  ;;  %v16223_v58 = vpop.f32.mrb[8].mxu1 }
 0xc2b   : >> { %v21400_v15 = vadd.f32 %v16920_v17, %v16215_v25  ;;  %v21402_v38 = vadd.f32 %v16959_v7, %v16223_v58  ;;  %v12240_v4 = vpop.f32.mrb[65].mxu0  ;;  %v12272_v32 = vpop.f32.mrb[9].mxu1 }
 0xc2c   : >> { %v21404_v20 = vadd.f32 %v16925_v62, %v12240_v4  ;;  %v21406_v42 = vadd.f32 %v16963_v36, %v12272_v32  ;;  %v16216_v53 = vpop.f32.mrb[66].mxu0  ;;  %v16224_v22 = vpop.f32.mrb[10].mxu1 }
 0xc2d   : >> { %v13829_v18 = vmul.f32 -1.442695, %v21400_v15  ;;  %v13837_v55 = vmul.f32 -1.442695, %v21402_v38  ;;  %v21410_v11 = vadd.f32 %v16930_v52, %v16216_v53  ;;  %v21412_v6 = vadd.f32 %v16967_v30, %v16224_v22  ;;  %v12243_v41 = vpop.f32.mrb[67].mxu0  ;;  %v12275_v10 = vpop.f32.mrb[11].mxu1 }
 0xc2e   : >> { %v13827_v9 = vmul.f32 -1.442695, %v21404_v20  ;;  %v13835_v12 = vmul.f32 -1.442695, %v21406_v42  ;;  %v21416_v23 = vadd.f32 %v16935_v1, %v12243_v41  ;;  %v21418_v34 = vadd.f32 %v16971_v28, %v12275_v10 }
 0xc2f   : >> { %17648 = vpow2.f32 %v13829_v18  ;;  %v13830_v17 = vmul.f32 -1.442695, %v21410_v11  ;;  %v13838_v26 = vmul.f32 -1.442695, %v21412_v6 }
 0xc30   : >> { %17650 = vpow2.f32 %v13837_v55  ;;  %v13828_v59 = vmul.f32 -1.442695, %v21416_v23  ;;  %v13836_v62 = vmul.f32 -1.442695, %v21418_v34 }
 0xc31   : >> { %17652 = vpow2.f32 %v13827_v9 }
 0xc32   : >> { %17654 = vpow2.f32 %v13835_v12  ;;  %v16219_v36 = vpop.f32.mrb[68].mxu0  ;;  %v16227_v52 = vpop.f32.mrb[12].mxu1 }
 0xc33   : >> { %17656 = vpow2.f32 %v13830_v17  ;;  %v21424_v46 = vadd.f32 %v16940_v57, %v16219_v36  ;;  %v21426_v1 = vadd.f32 %v16975_v19, %v16227_v52  ;;  %v12256_v28 = vpop.f32.mrb[69].mxu0  ;;  %v12288_v63 = vpop.f32.mrb[13].mxu1 }
 0xc34   : >> { %17658 = vpow2.f32 %v13838_v26  ;;  %v21428_v44 = vadd.f32 %v16945_v2, %v12256_v28  ;;  %v21430_v54 = vadd.f32 %v16979_v29, %v12288_v63  ;;  %v16220_v49 = vpop.f32.mrb[70].mxu0  ;;  %v16228_v14 = vpop.f32.mrb[14].mxu1 }
 0xc35   : >> { %17660 = vpow2.f32 %v13828_v59  ;;  %v13833_v13 = vmul.f32 -1.442695, %v21424_v46  ;;  %v13841_v39 = vmul.f32 -1.442695, %v21426_v1  ;;  %v21434_v5 = vadd.f32 %v16950_v3, %v16220_v49  ;;  %v12259_v0 = vpop.f32.mrb[71].mxu0  ;;  %v12291_v24 = vpop.f32.mrb[15].mxu1 }
 0xc36   : >> { %17662 = vpow2.f32 %v13836_v62  ;;  %v13831_v35 = vmul.f32 -1.442695, %v21428_v44  ;;  %v13839_v57 = vmul.f32 -1.442695, %v21430_v54  ;;  %v21438_v50 = vadd.f32 %v16983_v40, %v16228_v14 }
 0xc37   : >> { %17664 = vpow2.f32 %v13833_v13  ;;  %v13834_v8 = vmul.f32 -1.442695, %v21434_v5  ;;  %v21442_v7 = vadd.f32 %v21396_v31, %v12259_v0  ;;  %v21444_v2 = vadd.f32 %v16987_v47, %v12291_v24 }
 0xc38   : >> { %17666 = vpow2.f32 %v13841_v39  ;;  %v12319_v31 = vlaneseq  ;;  %v13842_v41 = vmul.f32 -1.442695, %v21438_v50 }
 0xc39   : >> { %v17649_v3 = vpop.eup %17648  ;;  %17668 = vpow2.f32 %v13831_v35  ;;  %v13832_v12 = vmul.f32 -1.442695, %v21442_v7  ;;  %v13840_v59 = vmul.f32 -1.442695, %v21444_v2 }
 0xc3a   : >> { %v17651_v30 = vpop.eup %17650  ;;  %v12372_v45 = vadd.f32 1.0, %v17649_v3  ;;  %17670 = vpow2.f32 %v13839_v57  ;;  %v21446_v25 = vand.u32 127, %v12319_v31 }
 0xc3b   : >> { %v17653_v51 = vpop.eup %17652  ;;  %v12380_v37 = vadd.f32 1.0, %v17651_v30  ;;  %17672 = vpow2.f32 %v13834_v8 }
 0xc3c   : >> { %v17655_v60 = vpop.eup %17654  ;;  %17674 = vrcp.f32 %v12372_v45  ;;  %v12370_v27 = vadd.f32 1.0, %v17653_v51  ;;  %vm12321_vm5 = vcmp.eq.s32.totalorder %v21446_v25, 3 }
 0xc3d   : >> { %v17657_v16 = vpop.eup %17656  ;;  %17676 = vrcp.f32 %v12380_v37  ;;  %v12378_v29 = vadd.f32 1.0, %v17655_v60 }
 0xc3e   : >> { %v17659_v21 = vpop.eup %17658  ;;  %17678 = vrcp.f32 %v12370_v27  ;;  %v12373_v47 = vadd.f32 1.0, %v17657_v16 }
 0xc3f   : >> { %v17661_v43 = vpop.eup %17660  ;;  %17680 = vrcp.f32 %v12378_v29  ;;  %v12381_v33 = vadd.f32 1.0, %v17659_v21 }
 0xc40   : >> { %v17663_v48 = vpop.eup %17662  ;;  %17682 = vrcp.f32 %v12373_v47  ;;  %v12371_v61 = vadd.f32 1.0, %v17661_v43 }
 0xc41   : >> { %v17665_v56 = vpop.eup %17664  ;;  %17684 = vrcp.f32 %v12381_v33  ;;  %v12379_v19 = vadd.f32 1.0, %v17663_v48 }
 0xc42   : >> { %v17667_v40 = vpop.eup %17666  ;;  %17686 = vrcp.f32 %v12371_v61  ;;  %v12376_v58 = vadd.f32 1.0, %v17665_v56 }
 0xc43   : >> { %v17669_v4 = vpop.eup %17668  ;;  %17688 = vrcp.f32 %v12379_v19  ;;  %v12384_v32 = vadd.f32 1.0, %v17667_v40 }
 0xc44   : >> { %v17671_v53 = vpop.eup %17670  ;;  %17690 = vrcp.f32 %v12376_v58  ;;  %v12374_v22 = vadd.f32 1.0, %v17669_v4 }
 0xc45   : >> { %v17673_v18 = vpop.eup %17672  ;;  %17692 = vrcp.f32 %v12384_v32  ;;  %v12382_v55 = vadd.f32 1.0, %v17671_v53 }
 0xc46   : >> { %v17675_v10 = vpop.eup %17674  ;;  %17694 = vrcp.f32 %v12374_v22  ;;  %v12377_v9 = vadd.f32 1.0, %v17673_v18 }
 0xc47   : >> { %v17677_v17 = vpop.eup %17676  ;;  %v12420_v26 = vmul.f32 0.3, %v17675_v10  ;;  %17696 = vrcp.f32 %v12382_v55 }
 0xc48   : >> { %v17679_v62 = vpop.eup %17678  ;;  %v12428_v36 = vmul.f32 0.3, %v17677_v17  ;;  %17698 = vrcp.f32 %v12377_v9 }
 0xc49   : >> { %v17681_v52 = vpop.eup %17680  ;;  %v12436_v28 = vsel %vm12321_vm5, %v12420_v26, %v21400_v15  ;;  %v12418_v63 = vmul.f32 0.3, %v17679_v62  ;;  %17700 = vpow2.f32 %v13842_v41 }
 0xc4a   : >> { %v17683_v49 = vpop.eup %17682  ;;  %12455 = vst.msk [vmem:[%s21454_s6 + $0x10] sm:$0xff] %vm12452_vm6, %v12436_v28  ;;  %v12444_v14 = vsel %vm12321_vm5, %v12428_v36, %v21402_v38  ;;  %v12426_v13 = vmul.f32 0.3, %v17681_v52  ;;  %17702 = vpow2.f32 %v13832_v12 }
 0xc4b   : >> { %v17685_v39 = vpop.eup %17684  ;;  %12463 = vst.msk [vmem:[%s21454_s6 + $0x50] sm:$0xff] %vm12452_vm6, %v12444_v14  ;;  %v12434_v15 = vsel %vm12321_vm5, %v12418_v63, %v21404_v20  ;;  %v12421_v0 = vmul.f32 0.3, %v17683_v49  ;;  %17704 = vpow2.f32 %v13840_v59 }
 0xc4c   : >> { %v17687_v24 = vpop.eup %17686  ;;  %12453 = vst.msk [vmem:[%s21454_s6] sm:$0xff] %vm12452_vm6, %v12434_v15  ;;  %v12442_v38 = vsel %vm12321_vm5, %v12426_v13, %v21406_v42  ;;  %v12429_v35 = vmul.f32 0.3, %v17685_v39 }
 0xc4d   : >> { %v17689_v57 = vpop.eup %17688  ;;  %12461 = vst.msk [vmem:[%s21454_s6 + $0x40] sm:$0xff] %vm12452_vm6, %v12442_v38  ;;  %v12437_v20 = vsel %vm12321_vm5, %v12421_v0, %v21410_v11  ;;  %v12419_v8 = vmul.f32 0.3, %v17687_v24 }
 0xc4e   : >> { %v17691_v3 = vpop.eup %17690  ;;  %12456 = vst.msk [vmem:[%s21454_s6 + $0x18] sm:$0xff] %vm12452_vm6, %v12437_v20  ;;  %v12445_v30 = vsel %vm12321_vm5, %v12429_v35, %v21412_v6  ;;  %v12427_v45 = vmul.f32 0.3, %v17689_v57 }
 0xc4f   : >> { %v17693_v42 = vpop.eup %17692  ;;  %12464 = vst.msk [vmem:[%s21454_s6 + $0x58] sm:$0xff] %vm12452_vm6, %v12445_v30  ;;  %v12435_v51 = vsel %vm12321_vm5, %v12419_v8, %v21416_v23  ;;  %v12424_v37 = vmul.f32 0.3, %v17691_v3 }
 0xc50   : >> { %v17695_v11 = vpop.eup %17694  ;;  %12454 = vst.msk [vmem:[%s21454_s6 + $0x8] sm:$0xff] %vm12452_vm6, %v12435_v51  ;;  %v12443_v60 = vsel %vm12321_vm5, %v12427_v45, %v21418_v34  ;;  %v12432_v27 = vmul.f32 0.3, %v17693_v42 }
 0xc51   : >> { %v17697_v6 = vpop.eup %17696  ;;  %12462 = vst.msk [vmem:[%s21454_s6 + $0x48] sm:$0xff] %vm12452_vm6, %v12443_v60  ;;  %v12440_v16 = vsel %vm12321_vm5, %v12424_v37, %v21424_v46  ;;  %v12422_v29 = vmul.f32 0.3, %v17695_v11 }
 0xc52   : >> { %v17699_v23 = vpop.eup %17698  ;;  %12459 = vst.msk [vmem:[%s21454_s6 + $0x30] sm:$0xff] %vm12452_vm6, %v12440_v16  ;;  %v12448_v21 = vsel %vm12321_vm5, %v12432_v27, %v21426_v1  ;;  %v12430_v31 = vmul.f32 0.3, %v17697_v6 }
 0xc53   : >> { %v17701_v34 = vpop.eup %17700  ;;  %12467 = vst.msk [vmem:[%s21454_s6 + $0x70] sm:$0xff] %vm12452_vm6, %v12448_v21  ;;  %v12438_v47 = vsel %vm12321_vm5, %v12422_v29, %v21428_v44  ;;  %v12425_v43 = vmul.f32 0.3, %v17699_v23 }
 0xc54   : >> { %v17703_v33 = vpop.eup %17702  ;;  %12457 = vst.msk [vmem:[%s21454_s6 + $0x20] sm:$0xff] %vm12452_vm6, %v12438_v47  ;;  %v12446_v46 = vsel %vm12321_vm5, %v12430_v31, %v21430_v54  ;;  %v12385_v48 = vadd.f32 1.0, %v17701_v34 }
 0xc55   : >> { %v17705_v61 = vpop.eup %17704  ;;  %12465 = vst.msk [vmem:[%s21454_s6 + $0x60] sm:$0xff] %vm12452_vm6, %v12446_v46  ;;  %v12441_v1 = vsel %vm12321_vm5, %v12425_v43, %v21434_v5  ;;  %v12375_v56 = vadd.f32 1.0, %v17703_v33 }
 0xc56   : >> { %12460 = vst.msk [vmem:[%s21454_s6 + $0x38] sm:$0xff] %vm12452_vm6, %v12441_v1  ;;  %17706 = vrcp.f32 %v12385_v48  ;;  %v12383_v44 = vadd.f32 1.0, %v17705_v61 }
 0xc57   : >> { %17708 = vrcp.f32 %v12375_v56 }
 0xc58   : >> { %17710 = vrcp.f32 %v12383_v44 }
 0xc60   : >> { %v17707_v19 = vpop.eup %17706  ;;  %10631 = sbr.rel (!%p10629_p10) target bundleno = 2741 (0xab5), region = 258 }
 0xc61   : >> { %v17709_v54 = vpop.eup %17708  ;;  %v12433_v40 = vmul.f32 0.3, %v17707_v19 }
 0xc62   : >> { %v17711_v58 = vpop.eup %17710  ;;  %v12423_v4 = vmul.f32 0.3, %v17709_v54 }
 0xc63   : >> { %v12449_v32 = vsel %vm12321_vm5, %v12433_v40, %v21438_v50  ;;  %v12431_v53 = vmul.f32 0.3, %v17711_v58 }
 0xc64   : >> { %12468 = vst.msk [vmem:[%s21454_s6 + $0x78] sm:$0xff] %vm12452_vm6, %v12449_v32  ;;  %v12439_v5 = vsel %vm12321_vm5, %v12423_v4, %v21442_v7 }
 0xc65   : >> { %12458 = vst.msk [vmem:[%s21454_s6 + $0x28] sm:$0xff] %vm12452_vm6, %v12439_v5  ;;  %v12447_v22 = vsel %vm12321_vm5, %v12431_v53, %v21444_v2 }
 0xc66   : >> { %12466 = vst.msk [vmem:[%s21454_s6 + $0x68] sm:$0xff] %vm12452_vm6, %v12447_v22 }
 0xc67 PF: > { %p17_p2 = scmp.ge.s32.totalorder %s18086_s12, 4   ;;  %s21573_s18 = smov %s17888_s19 }
 0xc68   : > { %s21574_s19 = smov %s17892_s20  ;;  %s21575_s20 = smov %s18096_s27 }
 0xc69   : > { %s21576_s21 = smov %s18086_s12  ;;  %19 = sbr.rel (!%p17_p2) target bundleno = 5 (0x5), region = 269 }
 0xc70   :  { %12490 = vsyncpa [#allocation5], 1 }
 0xc71   :  { %12492 = vsyncpa [#allocation5 + $0x1], 1 }
 0xc72   :  { %12493 = vsyncpa [#allocation7], 1 }
 0xc73   :  { %12494 = vsyncpa [#allocation10], 1 }

</bundles_post_ra>
